<compile_context>
chip_gen: v5e
topology: v5e:2x2
jax: 0.10.0
libtpu: 0.0.40
codegen_flags: <defaults>
</compile_context>

<pallas_src>
import functools

import numpy as np
import jax
import jax.numpy as jnp
from jax import lax
from jax.experimental import pallas as pl
from jax.experimental.pallas import tpu as pltpu

LRELU_SLOPE = 0.2
BN_EPS = 1e-5
LANES = 128          # dense lane width carried end-to-end (channels zero-padded)
CHUNK = 128          # row-chunk for conv matmuls (bounds the live f32 accumulator)
POOL_SPAN = 32       # uniform contiguous row span read per pooled output row


def _round_up(a, b):
    return (a + b - 1) // b * b


def _block_geom(hw):
    """Geometry of the zero-ring padded slab feeding a 3x3 / pad=1 conv.

    Per image, rows are a flattened (pitch-row, column) raster with pitch P
    (multiple of 8).  Data for (y, x) lives at row G + (1+y)*P + x, x in [0,hw);
    columns [hw, P) plus the top/bottom pitch-rows are the zero ring, and the
    leading G = P zero rows keep all shifted-tap reads in-bounds.  Computing the
    conv over the whole grid with taps kh*P+kw puts the valid output (y, x) at
    row G + y*P + x - 1.
    """
    P = _round_up(hw + 2, 8)
    G = P
    Mg = G + (hw + 2) * P               # conv-grid rows computed
    R = _round_up(Mg + 2 * (P + 1), 8)  # slab rows incl. shifted-tap tail
    return dict(hw=hw, P=P, G=G, Mg=Mg, R=R)


def _block_channels(channels):
    out = []
    cc = channels[0]
    for ch in channels[1:]:
        out.append((cc, ch))
        cc = ch
    out.append((cc, cc))
    return out


# ----------------------------------------------------------------------------
# Fused encoder kernel (one grid step == one image)
# ----------------------------------------------------------------------------
def _make_encoder_kernel(cfg):
    geoms = cfg["geoms"]
    expand = cfg["expand"]
    n_blocks = len(geoms)
    hw0 = cfg["image_size"]
    m0 = hw0 * hw0
    sz = geoms[-1]["hw"]

    def kernel(*refs):
        it = iter(refs)
        x_ref = next(it)                 # (m0, 128) bf16 head-conv im2col (this image)
        wh_ref = next(it)                # (128, 128) bf16 head weights (BN folded)
        blk_w = []
        for b in range(n_blocks):
            w1 = next(it)                # (9, 128, 128) bf16
            w2 = next(it)                # (9, 128, 128) bf16
            we = next(it) if expand[b] else None
            blk_w.append((w1, w2, we))
        wfc_ref = next(it)               # (sz*sz, 128, 128) bf16
        fcb_ref = next(it)               # (1, 128) f32
        out_ref = next(it)               # (8, 128) f32 (row 0 = this image's fc output)
        go_ref = next(it)                # grid-output scratch (bf16)
        slabs = [(next(it), next(it)) for _ in range(n_blocks)]

        f32 = jnp.float32
        bf16 = jnp.bfloat16

        def lrelu(v):
            return jnp.where(v >= 0.0, v, LRELU_SLOPE * v)

        # Zero the padded slabs: the zero ring IS the conv padding.
        for xs, hs in slabs:
            xs[...] = jnp.zeros(xs.shape, bf16)
            hs[...] = jnp.zeros(hs.shape, bf16)

        # ---- head: Conv2d(cdim, c0, 5, 1, 2, bias=False)+BN+LReLU as ONE matmul ----
        for r0 in range(0, m0, CHUNK):
            rows = min(CHUNK, m0 - r0)
            acc = jnp.dot(x_ref[pl.ds(r0, rows), :], wh_ref[...],
                          preferred_element_type=f32)
            go_ref[pl.ds(r0, rows), :] = lrelu(acc).astype(bf16)

        # ---- fused AvgPool2d(2): gather + average via a tiny constant matmul ----
        def pool_matrix(wo, pitch):
            r = lax.broadcasted_iota(jnp.int32, (8, POOL_SPAN), 0)
            c = lax.broadcasted_iota(jnp.int32, (8, POOL_SPAN), 1)
            d = c - 2 * r
            sel = ((d == 0) | (d == 1) | (d == pitch) | (d == pitch + 1)) & (r < wo)
            return jnp.where(sel, 0.25, 0.0).astype(bf16)

        def pool_into(dst_ref, gdst, src_pitch, src_base):
            wo = gdst["hw"]                            # pooled spatial (square)
            S = pool_matrix(wo, src_pitch)             # rows >= wo are all-zero
            for i in range(wo):
                blk = go_ref[pl.ds(src_base(i), POOL_SPAN), :]
                pooled = jnp.dot(S, blk, preferred_element_type=f32)
                dst = gdst["G"] + (1 + i) * gdst["P"]
                # rows >= wo store zeros -> they rewrite the (already zero) ring
                dst_ref[pl.ds(dst, 8), :] = pooled.astype(bf16)

        pool_into(slabs[0][0], geoms[0], hw0, lambda i: (2 * i) * hw0)

        # ---- residual blocks: conv1+BN+LReLU -> conv2+BN -> +shortcut -> LReLU ----
        def conv_taps(src_ref, w_ref, taps, r0, rows):
            acc = jnp.dot(src_ref[pl.ds(r0 + taps[0], rows), :], w_ref[0],
                          preferred_element_type=f32)
            for t in range(1, len(taps)):
                acc = acc + jnp.dot(src_ref[pl.ds(r0 + taps[t], rows), :], w_ref[t],
                                    preferred_element_type=f32)
            return acc

        for b in range(n_blocks):
            g = geoms[b]
            x_slab, h2_slab = slabs[b]
            w1, w2, we = blk_w[b]
            P, G, Mg, hw = g["P"], g["G"], g["Mg"], g["hw"]
            taps = [kh * P + kw for kh in range(3) for kw in range(3)]

            # conv1 (+ folded BN) + LeakyReLU over the whole padded grid
            for r0 in range(0, Mg, CHUNK):
                rows = min(CHUNK, Mg - r0)
                acc = conv_taps(x_slab, w1, taps, r0, rows)
                go_ref[pl.ds(r0, rows), :] = lrelu(acc).astype(bf16)

            # re-pad conv1's valid rows into the zeroed conv2 input slab (VMEM only)
            for y in range(hw):
                src = G + y * P - 1
                dst = G + (1 + y) * P
                h2_slab[pl.ds(dst, hw), :] = go_ref[pl.ds(src, hw), :]

            # conv2 (+ folded BN) + shortcut (identity or 1x1 expand) + LeakyReLU
            for r0 in range(0, Mg, CHUNK):
                rows = min(CHUNK, Mg - r0)
                acc = conv_taps(h2_slab, w2, taps, r0, rows)
                xc = x_slab[pl.ds(r0 + P + 1, rows), :]
                if we is not None:
                    ident = jnp.dot(xc, we[...], preferred_element_type=f32)
                else:
                    ident = xc.astype(f32)
                go_ref[pl.ds(r0, rows), :] = lrelu(acc + ident).astype(bf16)

            if b + 1 < n_blocks:    # every block except the last is followed by AvgPool2d(2)
                pool_into(slabs[b + 1][0], geoms[b + 1], P,
                          lambda i, G=G, P=P: G + (2 * i) * P - 1)

        # ---- FC folded in: out = sum_s act(:, spatial s) @ Wfc[s] + b ----
        gl = geoms[-1]
        acc = jnp.zeros((8, LANES), f32)
        for i in range(sz):
            for j in range(sz):
                s = i * sz + j
                r_s = gl["G"] + i * gl["P"] + j - 1
                acc = acc + jnp.dot(go_ref[pl.ds(r_s, 8), :], wfc_ref[s],
                                    preferred_element_type=f32)
        out_ref[...] = acc + fcb_ref[...]

    return kernel


# ----------------------------------------------------------------------------
# Forward pass
# ----------------------------------------------------------------------------
def encoder_forward(params, x_nchw, *, cdim, zdim, channels, image_size):
    n, _, h, w = x_nchw.shape
    blocks_io = _block_channels(channels)
    expand = tuple(inc != outc for inc, outc in blocks_io)
    n_blocks = len(blocks_io)

    geoms = []
    hw = image_size // 2
    for i in range(n_blocks):
        geoms.append(_block_geom(hw))
        if i + 1 < n_blocks:
            hw //= 2
    sz = geoms[-1]["hw"]
    m0 = image_size * image_size

    # grid-output scratch size (covers all writes and pooling reads)
    r_go = max([m0] + [g["Mg"] for g in geoms])
    r_go = max(r_go, (image_size - 2) * image_size + POOL_SPAN)
    for b in range(n_blocks - 1):
        g = geoms[b]
        r_go = max(r_go, g["G"] + (2 * geoms[b + 1]["hw"] - 2) * g["P"] - 1 + POOL_SPAN)
    r_go = _round_up(r_go, 8)

    kernel = _make_encoder_kernel(dict(geoms=geoms, expand=expand, image_size=image_size))

    # --- head-conv im2col (5x5, pad 2): the only host-side activation prep ---
    xf = jnp.transpose(x_nchw.astype(jnp.float32), (0, 2, 3, 1))
    xp = jnp.pad(xf, ((0, 0), (2, 2), (2, 2), (0, 0)))
    pats = [xp[:, kh:kh + h, kw:kw + w, :] for kh in range(5) for kw in range(5)]
    im2col = jnp.stack(pats, axis=3).reshape(n * h * w, 25 * cdim)
    im2col = jnp.pad(im2col, ((0, 0), (0, LANES - 25 * cdim))).astype(jnp.bfloat16)

    inputs = [im2col, params["head_w"]]
    in_specs = [pl.BlockSpec((m0, LANES), lambda i: (i, 0)),
                pl.BlockSpec((LANES, LANES), lambda i: (0, 0))]
    for b in range(n_blocks):
        blk = params["blocks"][b]
        inputs += [blk["w1"], blk["w2"]]
        in_specs += [pl.BlockSpec((9, LANES, LANES), lambda i: (0, 0, 0))] * 2
        if expand[b]:
            inputs.append(blk["wexp"])
            in_specs.append(pl.BlockSpec((LANES, LANES), lambda i: (0, 0)))
    inputs += [params["fc_w"], params["fc_b"]]
    in_specs += [pl.BlockSpec((sz * sz, LANES, LANES), lambda i: (0, 0, 0)),
                 pl.BlockSpec((1, LANES), lambda i: (0, 0))]

    scratch = [pltpu.VMEM((r_go, LANES), jnp.bfloat16)]
    for g in geoms:
        scratch += [pltpu.VMEM((g["R"], LANES), jnp.bfloat16),
                    pltpu.VMEM((g["R"], LANES), jnp.bfloat16)]

    out = pl.pallas_call(
        kernel,
        out_shape=jax.ShapeDtypeStruct((n * 8, LANES), jnp.float32),
        grid=(n,),
        in_specs=in_specs,
        out_specs=pl.BlockSpec((8, LANES), lambda i: (i, 0)),
        scratch_shapes=scratch,
        compiler_params=pltpu.CompilerParams(
            dimension_semantics=("parallel",)),
    )(*inputs)

    res = out.reshape(n, 8, LANES)[:, 0, :]
    mu, logvar = res[:, :zdim], res[:, zdim:2 * zdim]
    return mu, logvar


# ----------------------------------------------------------------------------
# Parameters (BN scale folded into conv weights, channels padded to 128 lanes)
# ----------------------------------------------------------------------------
def init_params(key, cdim, zdim, channels, image_size):
    assert 25 * cdim <= LANES and max(channels) <= LANES and 2 * zdim <= LANES
    bn_scale = 1.0 / np.sqrt(1.0 + BN_EPS)   # gamma=1, beta=0, mean=0, var=1
    blocks_io = _block_channels(channels)
    n_blocks = len(blocks_io)
    keys = jax.random.split(key, 1 + 3 * n_blocks + 2)

    c0 = channels[0]
    wh = jax.random.normal(keys[0], (5, 5, cdim, c0), jnp.float32) / np.sqrt(25 * cdim)
    head_w = (jnp.zeros((LANES, LANES), jnp.float32)
              .at[:25 * cdim, :c0].set(wh.reshape(25 * cdim, c0) * bn_scale)
              .astype(jnp.bfloat16))

    def conv3(k, cin, cout, scale):
        wv = jax.random.normal(k, (3, 3, cin, cout), jnp.float32) / np.sqrt(9 * cin)
        full = (jnp.zeros((9, LANES, LANES), jnp.float32)
                .at[:, :cin, :cout].set(wv.reshape(9, cin, cout) * scale))
        return full.astype(jnp.bfloat16)

    blocks = []
    ki = 1
    for inc, outc in blocks_io:
        blk = {"w1": conv3(keys[ki], inc, outc, bn_scale),
               "w2": conv3(keys[ki + 1], outc, outc, bn_scale)}
        if inc != outc:   # shortcut 1x1 conv (no BN on the shortcut)
            we = jax.random.normal(keys[ki + 2], (inc, outc), jnp.float32) / np.sqrt(inc)
            blk["wexp"] = (jnp.zeros((LANES, LANES), jnp.float32)
                           .at[:inc, :outc].set(we).astype(jnp.bfloat16))
        blocks.append(blk)
        ki += 3

    sz = image_size // (2 ** n_blocks)
    c_last = channels[-1]
    nfeat = c_last * sz * sz
    fcw = jax.random.normal(keys[ki], (nfeat, 2 * zdim), jnp.float32) / np.sqrt(nfeat)
    # PyTorch NCHW flatten order: feature f = c*(sz*sz) + s  ->  pack per spatial s
    fcw = fcw.reshape(c_last, sz * sz, 2 * zdim).transpose(1, 0, 2)
    fc_w = (jnp.zeros((sz * sz, LANES, LANES), jnp.float32)
            .at[:, :c_last, :2 * zdim].set(fcw).astype(jnp.bfloat16))
    fcb = jax.random.normal(keys[ki + 1], (2 * zdim,), jnp.float32) * 0.01
    fc_b = jnp.zeros((1, LANES), jnp.float32).at[0, :2 * zdim].set(fcb)

    return {"head_w": head_w, "blocks": blocks, "fc_w": fc_w, "fc_b": fc_b}


if __name__ == "__main__":
    N = 2
    CDIM = 3
    ZDIM = 32
    CHANNELS = (8, 16, 32)
    IMAGE_SIZE = 16

    key = jax.random.PRNGKey(0)
    kx, kp = jax.random.split(key)
    x = jax.random.normal(kx, (N, CDIM, IMAGE_SIZE, IMAGE_SIZE), jnp.float32)
    params = init_params(kp, CDIM, ZDIM, CHANNELS, IMAGE_SIZE)

    fwd = jax.jit(functools.partial(encoder_forward, cdim=CDIM, zdim=ZDIM,
                                    channels=CHANNELS, image_size=IMAGE_SIZE))
    mu, logvar = fwd(params, x)
    jax.block_until_ready((mu, logvar))

    assert mu.shape == (N, ZDIM), mu.shape
    assert logvar.shape == (N, ZDIM), logvar.shape
    assert bool(jnp.all(jnp.isfinite(mu))) and bool(jnp.all(jnp.isfinite(logvar)))
    print("KERNEL_OK")
</pallas_src>

<mosaic_0001>
module attributes {stable_mosaic.version = 11 : i64} {
  func.func @kernel(%arg0: i32, %arg1: memref<256x128xbf16, #tpu.memory_space<vmem>>, %arg2: memref<128x128xbf16, #tpu.memory_space<vmem>>, %arg3: memref<9x128x128xbf16, #tpu.memory_space<vmem>>, %arg4: memref<9x128x128xbf16, #tpu.memory_space<vmem>>, %arg5: memref<128x128xbf16, #tpu.memory_space<vmem>>, %arg6: memref<9x128x128xbf16, #tpu.memory_space<vmem>>, %arg7: memref<9x128x128xbf16, #tpu.memory_space<vmem>>, %arg8: memref<128x128xbf16, #tpu.memory_space<vmem>>, %arg9: memref<9x128x128xbf16, #tpu.memory_space<vmem>>, %arg10: memref<9x128x128xbf16, #tpu.memory_space<vmem>>, %arg11: memref<4x128x128xbf16, #tpu.memory_space<vmem>>, %arg12: memref<1x128xf32, #tpu.memory_space<vmem>>, %arg13: memref<8x128xf32, #tpu.memory_space<vmem>>, %arg14: memref<256x128xbf16, #tpu.memory_space<vmem>>, %arg15: memref<216x128xbf16, #tpu.memory_space<vmem>>, %arg16: memref<216x128xbf16, #tpu.memory_space<vmem>>, %arg17: memref<80x128xbf16, #tpu.memory_space<vmem>>, %arg18: memref<80x128xbf16, #tpu.memory_space<vmem>>, %arg19: memref<64x128xbf16, #tpu.memory_space<vmem>>, %arg20: memref<64x128xbf16, #tpu.memory_space<vmem>>) attributes {dimension_semantics = [#tpu.dimension_semantics<parallel>], iteration_bounds = array<i64: 2>, scalar_prefetch = 0 : i64, scratch_operands = 7 : i64, tpu.core_type = #tpu.core_type<tc>, window_params = [{transform_indices = @transform_0, window_bounds = array<i64: 256, 128>}, {pipeline_mode = #tpu.pipeline_mode<synchronous>, transform_indices = @transform_1, window_bounds = array<i64: 128, 128>}, {pipeline_mode = #tpu.pipeline_mode<synchronous>, transform_indices = @transform_2, window_bounds = array<i64: 9, 128, 128>}, {pipeline_mode = #tpu.pipeline_mode<synchronous>, transform_indices = @transform_3, window_bounds = array<i64: 9, 128, 128>}, {pipeline_mode = #tpu.pipeline_mode<synchronous>, transform_indices = @transform_4, window_bounds = array<i64: 128, 128>}, {pipeline_mode = #tpu.pipeline_mode<synchronous>, transform_indices = @transform_5, window_bounds = array<i64: 9, 128, 128>}, {pipeline_mode = #tpu.pipeline_mode<synchronous>, transform_indices = @transform_6, window_bounds = array<i64: 9, 128, 128>}, {pipeline_mode = #tpu.pipeline_mode<synchronous>, transform_indices = @transform_7, window_bounds = array<i64: 128, 128>}, {pipeline_mode = #tpu.pipeline_mode<synchronous>, transform_indices = @transform_8, window_bounds = array<i64: 9, 128, 128>}, {pipeline_mode = #tpu.pipeline_mode<synchronous>, transform_indices = @transform_9, window_bounds = array<i64: 9, 128, 128>}, {pipeline_mode = #tpu.pipeline_mode<synchronous>, transform_indices = @transform_10, window_bounds = array<i64: 4, 128, 128>}, {pipeline_mode = #tpu.pipeline_mode<synchronous>, transform_indices = @transform_11, window_bounds = array<i64: 1, 128>}, {transform_indices = @transform_12, window_bounds = array<i64: 8, 128>}]} {
    %cst = arith.constant 0.000000e+00 : bf16
    %0 = vector.broadcast %cst : bf16 to vector<216x128xbf16>
    %c0 = arith.constant 0 : index
    %c0_0 = arith.constant 0 : index
    %1 = vector.load %arg15[%c0, %c0_0] : memref<216x128xbf16, #tpu.memory_space<vmem>>, vector<216x128xbf16>
    tpu.vector_store %arg15[%c0, %c0_0], %0 {strides = array<i32>} : memref<216x128xbf16, #tpu.memory_space<vmem>>, vector<216x128xbf16>,
    %cst_1 = arith.constant 0.000000e+00 : bf16
    %2 = vector.broadcast %cst_1 : bf16 to vector<216x128xbf16>
    %c0_2 = arith.constant 0 : index
    %c0_3 = arith.constant 0 : index
    %3 = vector.load %arg16[%c0_2, %c0_3] : memref<216x128xbf16, #tpu.memory_space<vmem>>, vector<216x128xbf16>
    tpu.vector_store %arg16[%c0_2, %c0_3], %2 {strides = array<i32>} : memref<216x128xbf16, #tpu.memory_space<vmem>>, vector<216x128xbf16>,
    %cst_4 = arith.constant 0.000000e+00 : bf16
    %4 = vector.broadcast %cst_4 : bf16 to vector<80x128xbf16>
    %c0_5 = arith.constant 0 : index
    %c0_6 = arith.constant 0 : index
    %5 = vector.load %arg17[%c0_5, %c0_6] : memref<80x128xbf16, #tpu.memory_space<vmem>>, vector<80x128xbf16>
    tpu.vector_store %arg17[%c0_5, %c0_6], %4 {strides = array<i32>} : memref<80x128xbf16, #tpu.memory_space<vmem>>, vector<80x128xbf16>,
    %cst_7 = arith.constant 0.000000e+00 : bf16
    %6 = vector.broadcast %cst_7 : bf16 to vector<80x128xbf16>
    %c0_8 = arith.constant 0 : index
    %c0_9 = arith.constant 0 : index
    %7 = vector.load %arg18[%c0_8, %c0_9] : memref<80x128xbf16, #tpu.memory_space<vmem>>, vector<80x128xbf16>
    tpu.vector_store %arg18[%c0_8, %c0_9], %6 {strides = array<i32>} : memref<80x128xbf16, #tpu.memory_space<vmem>>, vector<80x128xbf16>,
    %cst_10 = arith.constant 0.000000e+00 : bf16
    %8 = vector.broadcast %cst_10 : bf16 to vector<64x128xbf16>
    %c0_11 = arith.constant 0 : index
    %c0_12 = arith.constant 0 : index
    %9 = vector.load %arg19[%c0_11, %c0_12] : memref<64x128xbf16, #tpu.memory_space<vmem>>, vector<64x128xbf16>
    tpu.vector_store %arg19[%c0_11, %c0_12], %8 {strides = array<i32>} : memref<64x128xbf16, #tpu.memory_space<vmem>>, vector<64x128xbf16>,
    %cst_13 = arith.constant 0.000000e+00 : bf16
    %10 = vector.broadcast %cst_13 : bf16 to vector<64x128xbf16>
    %c0_14 = arith.constant 0 : index
    %c0_15 = arith.constant 0 : index
    %11 = vector.load %arg20[%c0_14, %c0_15] : memref<64x128xbf16, #tpu.memory_space<vmem>>, vector<64x128xbf16>
    tpu.vector_store %arg20[%c0_14, %c0_15], %10 {strides = array<i32>} : memref<64x128xbf16, #tpu.memory_space<vmem>>, vector<64x128xbf16>,
    %c0_16 = arith.constant 0 : index
    %c0_17 = arith.constant 0 : index
    %12 = vector.load %arg1[%c0_16, %c0_17] : memref<256x128xbf16, #tpu.memory_space<vmem>>, vector<128x128xbf16>
    %c0_18 = arith.constant 0 : index
    %c0_19 = arith.constant 0 : index
    %13 = vector.load %arg2[%c0_18, %c0_19] : memref<128x128xbf16, #tpu.memory_space<vmem>>, vector<128x128xbf16>
    %cst_20 = arith.constant dense<0.000000e+00> : vector<128x128xf32>
    %14 = tpu.matmul %12, %13, %cst_20 {dimension_numbers = #tpu.dot_dimension_numbers<[1], [0], [0], [1], [0, 0, 1, 1], [], []>} : vector<128x128xbf16>, vector<128x128xbf16>, vector<128x128xf32> -> vector<128x128xf32>
    %cst_21 = arith.constant 0.000000e+00 : f32
    %15 = vector.broadcast %cst_21 : f32 to vector<128x128xf32>
    %16 = arith.cmpf oge, %14, %15 : vector<128x128xf32>
    %cst_22 = arith.constant 2.000000e-01 : f32
    %17 = vector.broadcast %cst_22 : f32 to vector<128x128xf32>
    %18 = arith.mulf %17, %14 : vector<128x128xf32>
    %19 = arith.select %16, %14, %18 : vector<128x128xi1>, vector<128x128xf32>
    %20 = arith.truncf %19 : vector<128x128xf32> to vector<128x128xbf16>
    %c0_23 = arith.constant 0 : index
    %c0_24 = arith.constant 0 : index
    %21 = vector.load %arg14[%c0_23, %c0_24] : memref<256x128xbf16, #tpu.memory_space<vmem>>, vector<128x128xbf16>
    tpu.vector_store %arg14[%c0_23, %c0_24], %20 {strides = array<i32>} : memref<256x128xbf16, #tpu.memory_space<vmem>>, vector<128x128xbf16>,
    %c128 = arith.constant 128 : index
    %c0_25 = arith.constant 0 : index
    %22 = vector.load %arg1[%c128, %c0_25] : memref<256x128xbf16, #tpu.memory_space<vmem>>, vector<128x128xbf16>
    %c0_26 = arith.constant 0 : index
    %c0_27 = arith.constant 0 : index
    %23 = vector.load %arg2[%c0_26, %c0_27] : memref<128x128xbf16, #tpu.memory_space<vmem>>, vector<128x128xbf16>
    %cst_28 = arith.constant dense<0.000000e+00> : vector<128x128xf32>
    %24 = tpu.matmul %22, %23, %cst_28 {dimension_numbers = #tpu.dot_dimension_numbers<[1], [0], [0], [1], [0, 0, 1, 1], [], []>} : vector<128x128xbf16>, vector<128x128xbf16>, vector<128x128xf32> -> vector<128x128xf32>
    %cst_29 = arith.constant 0.000000e+00 : f32
    %25 = vector.broadcast %cst_29 : f32 to vector<128x128xf32>
    %26 = arith.cmpf oge, %24, %25 : vector<128x128xf32>
    %cst_30 = arith.constant 2.000000e-01 : f32
    %27 = vector.broadcast %cst_30 : f32 to vector<128x128xf32>
    %28 = arith.mulf %27, %24 : vector<128x128xf32>
    %29 = arith.select %26, %24, %28 : vector<128x128xi1>, vector<128x128xf32>
    %30 = arith.truncf %29 : vector<128x128xf32> to vector<128x128xbf16>
    %c128_31 = arith.constant 128 : index
    %c0_32 = arith.constant 0 : index
    %31 = vector.load %arg14[%c128_31, %c0_32] : memref<256x128xbf16, #tpu.memory_space<vmem>>, vector<128x128xbf16>
    tpu.vector_store %arg14[%c128_31, %c0_32], %30 {strides = array<i32>} : memref<256x128xbf16, #tpu.memory_space<vmem>>, vector<128x128xbf16>,
    %32 = tpu.iota {dimensions = array<i32: 0>} : vector<8x32xi32>
    %33 = tpu.iota {dimensions = array<i32: 1>} : vector<8x32xi32>
    %c2_i32 = arith.constant 2 : i32
    %34 = vector.broadcast %c2_i32 : i32 to vector<8x32xi32>
    %35 = arith.muli %34, %32 : vector<8x32xi32>
    %36 = arith.subi %33, %35 : vector<8x32xi32>
    %c0_i32 = arith.constant 0 : i32
    %37 = vector.broadcast %c0_i32 : i32 to vector<8x32xi32>
    %38 = arith.cmpi eq, %36, %37 : vector<8x32xi32>
    %c1_i32 = arith.constant 1 : i32
    %39 = vector.broadcast %c1_i32 : i32 to vector<8x32xi32>
    %40 = arith.cmpi eq, %36, %39 : vector<8x32xi32>
    %41 = arith.ori %38, %40 : vector<8x32xi1>
    %c16_i32 = arith.constant 16 : i32
    %42 = vector.broadcast %c16_i32 : i32 to vector<8x32xi32>
    %43 = arith.cmpi eq, %36, %42 : vector<8x32xi32>
    %44 = arith.ori %41, %43 : vector<8x32xi1>
    %c17_i32 = arith.constant 17 : i32
    %45 = vector.broadcast %c17_i32 : i32 to vector<8x32xi32>
    %46 = arith.cmpi eq, %36, %45 : vector<8x32xi32>
    %47 = arith.ori %44, %46 : vector<8x32xi1>
    %c8_i32 = arith.constant 8 : i32
    %48 = vector.broadcast %c8_i32 : i32 to vector<8x32xi32>
    %49 = arith.cmpi slt, %32, %48 : vector<8x32xi32>
    %50 = arith.andi %47, %49 : vector<8x32xi1>
    %cst_33 = arith.constant 2.500000e-01 : f32
    %cst_34 = arith.constant 0.000000e+00 : f32
    %51 = vector.broadcast %cst_33 : f32 to vector<8x32xf32>
    %52 = vector.broadcast %cst_34 : f32 to vector<8x32xf32>
    %53 = arith.select %50, %51, %52 : vector<8x32xi1>, vector<8x32xf32>
    %54 = arith.truncf %53 : vector<8x32xf32> to vector<8x32xbf16>
    %c0_35 = arith.constant 0 : index
    %c0_36 = arith.constant 0 : index
    %55 = vector.load %arg14[%c0_35, %c0_36] : memref<256x128xbf16, #tpu.memory_space<vmem>>, vector<32x128xbf16>
    %cst_37 = arith.constant dense<0.000000e+00> : vector<8x128xf32>
    %56 = tpu.matmul %54, %55, %cst_37 {dimension_numbers = #tpu.dot_dimension_numbers<[1], [0], [0], [1], [0, 0, 1, 1], [], []>} : vector<8x32xbf16>, vector<32x128xbf16>, vector<8x128xf32> -> vector<8x128xf32>
    %57 = arith.truncf %56 : vector<8x128xf32> to vector<8x128xbf16>
    %c32 = arith.constant 32 : index
    %c0_38 = arith.constant 0 : index
    %58 = vector.load %arg15[%c32, %c0_38] : memref<216x128xbf16, #tpu.memory_space<vmem>>, vector<8x128xbf16>
    tpu.vector_store %arg15[%c32, %c0_38], %57 {strides = array<i32>} : memref<216x128xbf16, #tpu.memory_space<vmem>>, vector<8x128xbf16>,
    %c32_39 = arith.constant 32 : index
    %c0_40 = arith.constant 0 : index
    %59 = vector.load %arg14[%c32_39, %c0_40] : memref<256x128xbf16, #tpu.memory_space<vmem>>, vector<32x128xbf16>
    %cst_41 = arith.constant dense<0.000000e+00> : vector<8x128xf32>
    %60 = tpu.matmul %54, %59, %cst_41 {dimension_numbers = #tpu.dot_dimension_numbers<[1], [0], [0], [1], [0, 0, 1, 1], [], []>} : vector<8x32xbf16>, vector<32x128xbf16>, vector<8x128xf32> -> vector<8x128xf32>
    %61 = arith.truncf %60 : vector<8x128xf32> to vector<8x128xbf16>
    %c48 = arith.constant 48 : index
    %c0_42 = arith.constant 0 : index
    %62 = vector.load %arg15[%c48, %c0_42] : memref<216x128xbf16, #tpu.memory_space<vmem>>, vector<8x128xbf16>
    tpu.vector_store %arg15[%c48, %c0_42], %61 {strides = array<i32>} : memref<216x128xbf16, #tpu.memory_space<vmem>>, vector<8x128xbf16>,
    %c64 = arith.constant 64 : index
    %c0_43 = arith.constant 0 : index
    %63 = vector.load %arg14[%c64, %c0_43] : memref<256x128xbf16, #tpu.memory_space<vmem>>, vector<32x128xbf16>
    %cst_44 = arith.constant dense<0.000000e+00> : vector<8x128xf32>
    %64 = tpu.matmul %54, %63, %cst_44 {dimension_numbers = #tpu.dot_dimension_numbers<[1], [0], [0], [1], [0, 0, 1, 1], [], []>} : vector<8x32xbf16>, vector<32x128xbf16>, vector<8x128xf32> -> vector<8x128xf32>
    %65 = arith.truncf %64 : vector<8x128xf32> to vector<8x128xbf16>
    %c64_45 = arith.constant 64 : index
    %c0_46 = arith.constant 0 : index
    %66 = vector.load %arg15[%c64_45, %c0_46] : memref<216x128xbf16, #tpu.memory_space<vmem>>, vector<8x128xbf16>
    tpu.vector_store %arg15[%c64_45, %c0_46], %65 {strides = array<i32>} : memref<216x128xbf16, #tpu.memory_space<vmem>>, vector<8x128xbf16>,
    %c96 = arith.constant 96 : index
    %c0_47 = arith.constant 0 : index
    %67 = vector.load %arg14[%c96, %c0_47] : memref<256x128xbf16, #tpu.memory_space<vmem>>, vector<32x128xbf16>
    %cst_48 = arith.constant dense<0.000000e+00> : vector<8x128xf32>
    %68 = tpu.matmul %54, %67, %cst_48 {dimension_numbers = #tpu.dot_dimension_numbers<[1], [0], [0], [1], [0, 0, 1, 1], [], []>} : vector<8x32xbf16>, vector<32x128xbf16>, vector<8x128xf32> -> vector<8x128xf32>
    %69 = arith.truncf %68 : vector<8x128xf32> to vector<8x128xbf16>
    %c80 = arith.constant 80 : index
    %c0_49 = arith.constant 0 : index
    %70 = vector.load %arg15[%c80, %c0_49] : memref<216x128xbf16, #tpu.memory_space<vmem>>, vector<8x128xbf16>
    tpu.vector_store %arg15[%c80, %c0_49], %69 {strides = array<i32>} : memref<216x128xbf16, #tpu.memory_space<vmem>>, vector<8x128xbf16>,
    %c128_50 = arith.constant 128 : index
    %c0_51 = arith.constant 0 : index
    %71 = vector.load %arg14[%c128_50, %c0_51] : memref<256x128xbf16, #tpu.memory_space<vmem>>, vector<32x128xbf16>
    %cst_52 = arith.constant dense<0.000000e+00> : vector<8x128xf32>
    %72 = tpu.matmul %54, %71, %cst_52 {dimension_numbers = #tpu.dot_dimension_numbers<[1], [0], [0], [1], [0, 0, 1, 1], [], []>} : vector<8x32xbf16>, vector<32x128xbf16>, vector<8x128xf32> -> vector<8x128xf32>
    %73 = arith.truncf %72 : vector<8x128xf32> to vector<8x128xbf16>
    %c96_53 = arith.constant 96 : index
    %c0_54 = arith.constant 0 : index
    %74 = vector.load %arg15[%c96_53, %c0_54] : memref<216x128xbf16, #tpu.memory_space<vmem>>, vector<8x128xbf16>
    tpu.vector_store %arg15[%c96_53, %c0_54], %73 {strides = array<i32>} : memref<216x128xbf16, #tpu.memory_space<vmem>>, vector<8x128xbf16>,
    %c160 = arith.constant 160 : index
    %c0_55 = arith.constant 0 : index
    %75 = vector.load %arg14[%c160, %c0_55] : memref<256x128xbf16, #tpu.memory_space<vmem>>, vector<32x128xbf16>
    %cst_56 = arith.constant dense<0.000000e+00> : vector<8x128xf32>
    %76 = tpu.matmul %54, %75, %cst_56 {dimension_numbers = #tpu.dot_dimension_numbers<[1], [0], [0], [1], [0, 0, 1, 1], [], []>} : vector<8x32xbf16>, vector<32x128xbf16>, vector<8x128xf32> -> vector<8x128xf32>
    %77 = arith.truncf %76 : vector<8x128xf32> to vector<8x128xbf16>
    %c112 = arith.constant 112 : index
    %c0_57 = arith.constant 0 : index
    %78 = vector.load %arg15[%c112, %c0_57] : memref<216x128xbf16, #tpu.memory_space<vmem>>, vector<8x128xbf16>
    tpu.vector_store %arg15[%c112, %c0_57], %77 {strides = array<i32>} : memref<216x128xbf16, #tpu.memory_space<vmem>>, vector<8x128xbf16>,
    %c192 = arith.constant 192 : index
    %c0_58 = arith.constant 0 : index
    %79 = vector.load %arg14[%c192, %c0_58] : memref<256x128xbf16, #tpu.memory_space<vmem>>, vector<32x128xbf16>
    %cst_59 = arith.constant dense<0.000000e+00> : vector<8x128xf32>
    %80 = tpu.matmul %54, %79, %cst_59 {dimension_numbers = #tpu.dot_dimension_numbers<[1], [0], [0], [1], [0, 0, 1, 1], [], []>} : vector<8x32xbf16>, vector<32x128xbf16>, vector<8x128xf32> -> vector<8x128xf32>
    %81 = arith.truncf %80 : vector<8x128xf32> to vector<8x128xbf16>
    %c128_60 = arith.constant 128 : index
    %c0_61 = arith.constant 0 : index
    %82 = vector.load %arg15[%c128_60, %c0_61] : memref<216x128xbf16, #tpu.memory_space<vmem>>, vector<8x128xbf16>
    tpu.vector_store %arg15[%c128_60, %c0_61], %81 {strides = array<i32>} : memref<216x128xbf16, #tpu.memory_space<vmem>>, vector<8x128xbf16>,
    %c224 = arith.constant 224 : index
    %c0_62 = arith.constant 0 : index
    %83 = vector.load %arg14[%c224, %c0_62] : memref<256x128xbf16, #tpu.memory_space<vmem>>, vector<32x128xbf16>
    %cst_63 = arith.constant dense<0.000000e+00> : vector<8x128xf32>
    %84 = tpu.matmul %54, %83, %cst_63 {dimension_numbers = #tpu.dot_dimension_numbers<[1], [0], [0], [1], [0, 0, 1, 1], [], []>} : vector<8x32xbf16>, vector<32x128xbf16>, vector<8x128xf32> -> vector<8x128xf32>
    %85 = arith.truncf %84 : vector<8x128xf32> to vector<8x128xbf16>
    %c144 = arith.constant 144 : index
    %c0_64 = arith.constant 0 : index
    %86 = vector.load %arg15[%c144, %c0_64] : memref<216x128xbf16, #tpu.memory_space<vmem>>, vector<8x128xbf16>
    tpu.vector_store %arg15[%c144, %c0_64], %85 {strides = array<i32>} : memref<216x128xbf16, #tpu.memory_space<vmem>>, vector<8x128xbf16>,
    %c0_65 = arith.constant 0 : index
    %c0_66 = arith.constant 0 : index
    %87 = vector.load %arg15[%c0_65, %c0_66] : memref<216x128xbf16, #tpu.memory_space<vmem>>, vector<128x128xbf16>
    %c0_67 = arith.constant 0 : index
    %c0_68 = arith.constant 0 : index
    %c0_69 = arith.constant 0 : index
    %88 = vector.load %arg3[%c0_67, %c0_68, %c0_69] : memref<9x128x128xbf16, #tpu.memory_space<vmem>>, vector<1x128x128xbf16>
    %89 = vector.shape_cast %88 : vector<1x128x128xbf16> to vector<128x128xbf16>
    %cst_70 = arith.constant dense<0.000000e+00> : vector<128x128xf32>
    %90 = tpu.matmul %87, %89, %cst_70 {dimension_numbers = #tpu.dot_dimension_numbers<[1], [0], [0], [1], [0, 0, 1, 1], [], []>} : vector<128x128xbf16>, vector<128x128xbf16>, vector<128x128xf32> -> vector<128x128xf32>
    %c1 = arith.constant 1 : index
    %c0_71 = arith.constant 0 : index
    %91 = vector.load %arg15[%c1, %c0_71] : memref<216x128xbf16, #tpu.memory_space<vmem>>, vector<128x128xbf16>
    %c1_72 = arith.constant 1 : index
    %c0_73 = arith.constant 0 : index
    %c0_74 = arith.constant 0 : index
    %92 = vector.load %arg3[%c1_72, %c0_73, %c0_74] : memref<9x128x128xbf16, #tpu.memory_space<vmem>>, vector<1x128x128xbf16>
    %93 = vector.shape_cast %92 : vector<1x128x128xbf16> to vector<128x128xbf16>
    %cst_75 = arith.constant dense<0.000000e+00> : vector<128x128xf32>
    %94 = tpu.matmul %91, %93, %cst_75 {dimension_numbers = #tpu.dot_dimension_numbers<[1], [0], [0], [1], [0, 0, 1, 1], [], []>} : vector<128x128xbf16>, vector<128x128xbf16>, vector<128x128xf32> -> vector<128x128xf32>
    %95 = arith.addf %90, %94 : vector<128x128xf32>
    %c2 = arith.constant 2 : index
    %c0_76 = arith.constant 0 : index
    %96 = vector.load %arg15[%c2, %c0_76] : memref<216x128xbf16, #tpu.memory_space<vmem>>, vector<128x128xbf16>
    %c2_77 = arith.constant 2 : index
    %c0_78 = arith.constant 0 : index
    %c0_79 = arith.constant 0 : index
    %97 = vector.load %arg3[%c2_77, %c0_78, %c0_79] : memref<9x128x128xbf16, #tpu.memory_space<vmem>>, vector<1x128x128xbf16>
    %98 = vector.shape_cast %97 : vector<1x128x128xbf16> to vector<128x128xbf16>
    %cst_80 = arith.constant dense<0.000000e+00> : vector<128x128xf32>
    %99 = tpu.matmul %96, %98, %cst_80 {dimension_numbers = #tpu.dot_dimension_numbers<[1], [0], [0], [1], [0, 0, 1, 1], [], []>} : vector<128x128xbf16>, vector<128x128xbf16>, vector<128x128xf32> -> vector<128x128xf32>
    %100 = arith.addf %95, %99 : vector<128x128xf32>
    %c16 = arith.constant 16 : index
    %c0_81 = arith.constant 0 : index
    %101 = vector.load %arg15[%c16, %c0_81] : memref<216x128xbf16, #tpu.memory_space<vmem>>, vector<128x128xbf16>
    %c3 = arith.constant 3 : index
    %c0_82 = arith.constant 0 : index
    %c0_83 = arith.constant 0 : index
    %102 = vector.load %arg3[%c3, %c0_82, %c0_83] : memref<9x128x128xbf16, #tpu.memory_space<vmem>>, vector<1x128x128xbf16>
    %103 = vector.shape_cast %102 : vector<1x128x128xbf16> to vector<128x128xbf16>
    %cst_84 = arith.constant dense<0.000000e+00> : vector<128x128xf32>
    %104 = tpu.matmul %101, %103, %cst_84 {dimension_numbers = #tpu.dot_dimension_numbers<[1], [0], [0], [1], [0, 0, 1, 1], [], []>} : vector<128x128xbf16>, vector<128x128xbf16>, vector<128x128xf32> -> vector<128x128xf32>
    %105 = arith.addf %100, %104 : vector<128x128xf32>
    %c17 = arith.constant 17 : index
    %c0_85 = arith.constant 0 : index
    %106 = vector.load %arg15[%c17, %c0_85] : memref<216x128xbf16, #tpu.memory_space<vmem>>, vector<128x128xbf16>
    %c4 = arith.constant 4 : index
    %c0_86 = arith.constant 0 : index
    %c0_87 = arith.constant 0 : index
    %107 = vector.load %arg3[%c4, %c0_86, %c0_87] : memref<9x128x128xbf16, #tpu.memory_space<vmem>>, vector<1x128x128xbf16>
    %108 = vector.shape_cast %107 : vector<1x128x128xbf16> to vector<128x128xbf16>
    %cst_88 = arith.constant dense<0.000000e+00> : vector<128x128xf32>
    %109 = tpu.matmul %106, %108, %cst_88 {dimension_numbers = #tpu.dot_dimension_numbers<[1], [0], [0], [1], [0, 0, 1, 1], [], []>} : vector<128x128xbf16>, vector<128x128xbf16>, vector<128x128xf32> -> vector<128x128xf32>
    %110 = arith.addf %105, %109 : vector<128x128xf32>
    %c18 = arith.constant 18 : index
    %c0_89 = arith.constant 0 : index
    %111 = vector.load %arg15[%c18, %c0_89] : memref<216x128xbf16, #tpu.memory_space<vmem>>, vector<128x128xbf16>
    %c5 = arith.constant 5 : index
    %c0_90 = arith.constant 0 : index
    %c0_91 = arith.constant 0 : index
    %112 = vector.load %arg3[%c5, %c0_90, %c0_91] : memref<9x128x128xbf16, #tpu.memory_space<vmem>>, vector<1x128x128xbf16>
    %113 = vector.shape_cast %112 : vector<1x128x128xbf16> to vector<128x128xbf16>
    %cst_92 = arith.constant dense<0.000000e+00> : vector<128x128xf32>
    %114 = tpu.matmul %111, %113, %cst_92 {dimension_numbers = #tpu.dot_dimension_numbers<[1], [0], [0], [1], [0, 0, 1, 1], [], []>} : vector<128x128xbf16>, vector<128x128xbf16>, vector<128x128xf32> -> vector<128x128xf32>
    %115 = arith.addf %110, %114 : vector<128x128xf32>
    %c32_93 = arith.constant 32 : index
    %c0_94 = arith.constant 0 : index
    %116 = vector.load %arg15[%c32_93, %c0_94] : memref<216x128xbf16, #tpu.memory_space<vmem>>, vector<128x128xbf16>
    %c6 = arith.constant 6 : index
    %c0_95 = arith.constant 0 : index
    %c0_96 = arith.constant 0 : index
    %117 = vector.load %arg3[%c6, %c0_95, %c0_96] : memref<9x128x128xbf16, #tpu.memory_space<vmem>>, vector<1x128x128xbf16>
    %118 = vector.shape_cast %117 : vector<1x128x128xbf16> to vector<128x128xbf16>
    %cst_97 = arith.constant dense<0.000000e+00> : vector<128x128xf32>
    %119 = tpu.matmul %116, %118, %cst_97 {dimension_numbers = #tpu.dot_dimension_numbers<[1], [0], [0], [1], [0, 0, 1, 1], [], []>} : vector<128x128xbf16>, vector<128x128xbf16>, vector<128x128xf32> -> vector<128x128xf32>
    %120 = arith.addf %115, %119 : vector<128x128xf32>
    %c33 = arith.constant 33 : index
    %c0_98 = arith.constant 0 : index
    %121 = vector.load %arg15[%c33, %c0_98] : memref<216x128xbf16, #tpu.memory_space<vmem>>, vector<128x128xbf16>
    %c7 = arith.constant 7 : index
    %c0_99 = arith.constant 0 : index
    %c0_100 = arith.constant 0 : index
    %122 = vector.load %arg3[%c7, %c0_99, %c0_100] : memref<9x128x128xbf16, #tpu.memory_space<vmem>>, vector<1x128x128xbf16>
    %123 = vector.shape_cast %122 : vector<1x128x128xbf16> to vector<128x128xbf16>
    %cst_101 = arith.constant dense<0.000000e+00> : vector<128x128xf32>
    %124 = tpu.matmul %121, %123, %cst_101 {dimension_numbers = #tpu.dot_dimension_numbers<[1], [0], [0], [1], [0, 0, 1, 1], [], []>} : vector<128x128xbf16>, vector<128x128xbf16>, vector<128x128xf32> -> vector<128x128xf32>
    %125 = arith.addf %120, %124 : vector<128x128xf32>
    %c34 = arith.constant 34 : index
    %c0_102 = arith.constant 0 : index
    %126 = vector.load %arg15[%c34, %c0_102] : memref<216x128xbf16, #tpu.memory_space<vmem>>, vector<128x128xbf16>
    %c8 = arith.constant 8 : index
    %c0_103 = arith.constant 0 : index
    %c0_104 = arith.constant 0 : index
    %127 = vector.load %arg3[%c8, %c0_103, %c0_104] : memref<9x128x128xbf16, #tpu.memory_space<vmem>>, vector<1x128x128xbf16>
    %128 = vector.shape_cast %127 : vector<1x128x128xbf16> to vector<128x128xbf16>
    %cst_105 = arith.constant dense<0.000000e+00> : vector<128x128xf32>
    %129 = tpu.matmul %126, %128, %cst_105 {dimension_numbers = #tpu.dot_dimension_numbers<[1], [0], [0], [1], [0, 0, 1, 1], [], []>} : vector<128x128xbf16>, vector<128x128xbf16>, vector<128x128xf32> -> vector<128x128xf32>
    %130 = arith.addf %125, %129 : vector<128x128xf32>
    %cst_106 = arith.constant 0.000000e+00 : f32
    %131 = vector.broadcast %cst_106 : f32 to vector<128x128xf32>
    %132 = arith.cmpf oge, %130, %131 : vector<128x128xf32>
    %cst_107 = arith.constant 2.000000e-01 : f32
    %133 = vector.broadcast %cst_107 : f32 to vector<128x128xf32>
    %134 = arith.mulf %133, %130 : vector<128x128xf32>
    %135 = arith.select %132, %130, %134 : vector<128x128xi1>, vector<128x128xf32>
    %136 = arith.truncf %135 : vector<128x128xf32> to vector<128x128xbf16>
    %c0_108 = arith.constant 0 : index
    %c0_109 = arith.constant 0 : index
    %137 = vector.load %arg14[%c0_108, %c0_109] : memref<256x128xbf16, #tpu.memory_space<vmem>>, vector<128x128xbf16>
    tpu.vector_store %arg14[%c0_108, %c0_109], %136 {strides = array<i32>} : memref<256x128xbf16, #tpu.memory_space<vmem>>, vector<128x128xbf16>,
    %c128_110 = arith.constant 128 : index
    %c0_111 = arith.constant 0 : index
    %138 = vector.load %arg15[%c128_110, %c0_111] : memref<216x128xbf16, #tpu.memory_space<vmem>>, vector<48x128xbf16>
    %c0_112 = arith.constant 0 : index
    %c0_113 = arith.constant 0 : index
    %c0_114 = arith.constant 0 : index
    %139 = vector.load %arg3[%c0_112, %c0_113, %c0_114] : memref<9x128x128xbf16, #tpu.memory_space<vmem>>, vector<1x128x128xbf16>
    %140 = vector.shape_cast %139 : vector<1x128x128xbf16> to vector<128x128xbf16>
    %cst_115 = arith.constant dense<0.000000e+00> : vector<48x128xf32>
    %141 = tpu.matmul %138, %140, %cst_115 {dimension_numbers = #tpu.dot_dimension_numbers<[1], [0], [0], [1], [0, 0, 1, 1], [], []>} : vector<48x128xbf16>, vector<128x128xbf16>, vector<48x128xf32> -> vector<48x128xf32>
    %c129 = arith.constant 129 : index
    %c0_116 = arith.constant 0 : index
    %142 = vector.load %arg15[%c129, %c0_116] : memref<216x128xbf16, #tpu.memory_space<vmem>>, vector<48x128xbf16>
    %c1_117 = arith.constant 1 : index
    %c0_118 = arith.constant 0 : index
    %c0_119 = arith.constant 0 : index
    %143 = vector.load %arg3[%c1_117, %c0_118, %c0_119] : memref<9x128x128xbf16, #tpu.memory_space<vmem>>, vector<1x128x128xbf16>
    %144 = vector.shape_cast %143 : vector<1x128x128xbf16> to vector<128x128xbf16>
    %cst_120 = arith.constant dense<0.000000e+00> : vector<48x128xf32>
    %145 = tpu.matmul %142, %144, %cst_120 {dimension_numbers = #tpu.dot_dimension_numbers<[1], [0], [0], [1], [0, 0, 1, 1], [], []>} : vector<48x128xbf16>, vector<128x128xbf16>, vector<48x128xf32> -> vector<48x128xf32>
    %146 = arith.addf %141, %145 : vector<48x128xf32>
    %c130 = arith.constant 130 : index
    %c0_121 = arith.constant 0 : index
    %147 = vector.load %arg15[%c130, %c0_121] : memref<216x128xbf16, #tpu.memory_space<vmem>>, vector<48x128xbf16>
    %c2_122 = arith.constant 2 : index
    %c0_123 = arith.constant 0 : index
    %c0_124 = arith.constant 0 : index
    %148 = vector.load %arg3[%c2_122, %c0_123, %c0_124] : memref<9x128x128xbf16, #tpu.memory_space<vmem>>, vector<1x128x128xbf16>
    %149 = vector.shape_cast %148 : vector<1x128x128xbf16> to vector<128x128xbf16>
    %cst_125 = arith.constant dense<0.000000e+00> : vector<48x128xf32>
    %150 = tpu.matmul %147, %149, %cst_125 {dimension_numbers = #tpu.dot_dimension_numbers<[1], [0], [0], [1], [0, 0, 1, 1], [], []>} : vector<48x128xbf16>, vector<128x128xbf16>, vector<48x128xf32> -> vector<48x128xf32>
    %151 = arith.addf %146, %150 : vector<48x128xf32>
    %c144_126 = arith.constant 144 : index
    %c0_127 = arith.constant 0 : index
    %152 = vector.load %arg15[%c144_126, %c0_127] : memref<216x128xbf16, #tpu.memory_space<vmem>>, vector<48x128xbf16>
    %c3_128 = arith.constant 3 : index
    %c0_129 = arith.constant 0 : index
    %c0_130 = arith.constant 0 : index
    %153 = vector.load %arg3[%c3_128, %c0_129, %c0_130] : memref<9x128x128xbf16, #tpu.memory_space<vmem>>, vector<1x128x128xbf16>
    %154 = vector.shape_cast %153 : vector<1x128x128xbf16> to vector<128x128xbf16>
    %cst_131 = arith.constant dense<0.000000e+00> : vector<48x128xf32>
    %155 = tpu.matmul %152, %154, %cst_131 {dimension_numbers = #tpu.dot_dimension_numbers<[1], [0], [0], [1], [0, 0, 1, 1], [], []>} : vector<48x128xbf16>, vector<128x128xbf16>, vector<48x128xf32> -> vector<48x128xf32>
    %156 = arith.addf %151, %155 : vector<48x128xf32>
    %c145 = arith.constant 145 : index
    %c0_132 = arith.constant 0 : index
    %157 = vector.load %arg15[%c145, %c0_132] : memref<216x128xbf16, #tpu.memory_space<vmem>>, vector<48x128xbf16>
    %c4_133 = arith.constant 4 : index
    %c0_134 = arith.constant 0 : index
    %c0_135 = arith.constant 0 : index
    %158 = vector.load %arg3[%c4_133, %c0_134, %c0_135] : memref<9x128x128xbf16, #tpu.memory_space<vmem>>, vector<1x128x128xbf16>
    %159 = vector.shape_cast %158 : vector<1x128x128xbf16> to vector<128x128xbf16>
    %cst_136 = arith.constant dense<0.000000e+00> : vector<48x128xf32>
    %160 = tpu.matmul %157, %159, %cst_136 {dimension_numbers = #tpu.dot_dimension_numbers<[1], [0], [0], [1], [0, 0, 1, 1], [], []>} : vector<48x128xbf16>, vector<128x128xbf16>, vector<48x128xf32> -> vector<48x128xf32>
    %161 = arith.addf %156, %160 : vector<48x128xf32>
    %c146 = arith.constant 146 : index
    %c0_137 = arith.constant 0 : index
    %162 = vector.load %arg15[%c146, %c0_137] : memref<216x128xbf16, #tpu.memory_space<vmem>>, vector<48x128xbf16>
    %c5_138 = arith.constant 5 : index
    %c0_139 = arith.constant 0 : index
    %c0_140 = arith.constant 0 : index
    %163 = vector.load %arg3[%c5_138, %c0_139, %c0_140] : memref<9x128x128xbf16, #tpu.memory_space<vmem>>, vector<1x128x128xbf16>
    %164 = vector.shape_cast %163 : vector<1x128x128xbf16> to vector<128x128xbf16>
    %cst_141 = arith.constant dense<0.000000e+00> : vector<48x128xf32>
    %165 = tpu.matmul %162, %164, %cst_141 {dimension_numbers = #tpu.dot_dimension_numbers<[1], [0], [0], [1], [0, 0, 1, 1], [], []>} : vector<48x128xbf16>, vector<128x128xbf16>, vector<48x128xf32> -> vector<48x128xf32>
    %166 = arith.addf %161, %165 : vector<48x128xf32>
    %c160_142 = arith.constant 160 : index
    %c0_143 = arith.constant 0 : index
    %167 = vector.load %arg15[%c160_142, %c0_143] : memref<216x128xbf16, #tpu.memory_space<vmem>>, vector<48x128xbf16>
    %c6_144 = arith.constant 6 : index
    %c0_145 = arith.constant 0 : index
    %c0_146 = arith.constant 0 : index
    %168 = vector.load %arg3[%c6_144, %c0_145, %c0_146] : memref<9x128x128xbf16, #tpu.memory_space<vmem>>, vector<1x128x128xbf16>
    %169 = vector.shape_cast %168 : vector<1x128x128xbf16> to vector<128x128xbf16>
    %cst_147 = arith.constant dense<0.000000e+00> : vector<48x128xf32>
    %170 = tpu.matmul %167, %169, %cst_147 {dimension_numbers = #tpu.dot_dimension_numbers<[1], [0], [0], [1], [0, 0, 1, 1], [], []>} : vector<48x128xbf16>, vector<128x128xbf16>, vector<48x128xf32> -> vector<48x128xf32>
    %171 = arith.addf %166, %170 : vector<48x128xf32>
    %c161 = arith.constant 161 : index
    %c0_148 = arith.constant 0 : index
    %172 = vector.load %arg15[%c161, %c0_148] : memref<216x128xbf16, #tpu.memory_space<vmem>>, vector<48x128xbf16>
    %c7_149 = arith.constant 7 : index
    %c0_150 = arith.constant 0 : index
    %c0_151 = arith.constant 0 : index
    %173 = vector.load %arg3[%c7_149, %c0_150, %c0_151] : memref<9x128x128xbf16, #tpu.memory_space<vmem>>, vector<1x128x128xbf16>
    %174 = vector.shape_cast %173 : vector<1x128x128xbf16> to vector<128x128xbf16>
    %cst_152 = arith.constant dense<0.000000e+00> : vector<48x128xf32>
    %175 = tpu.matmul %172, %174, %cst_152 {dimension_numbers = #tpu.dot_dimension_numbers<[1], [0], [0], [1], [0, 0, 1, 1], [], []>} : vector<48x128xbf16>, vector<128x128xbf16>, vector<48x128xf32> -> vector<48x128xf32>
    %176 = arith.addf %171, %175 : vector<48x128xf32>
    %c162 = arith.constant 162 : index
    %c0_153 = arith.constant 0 : index
    %177 = vector.load %arg15[%c162, %c0_153] : memref<216x128xbf16, #tpu.memory_space<vmem>>, vector<48x128xbf16>
    %c8_154 = arith.constant 8 : index
    %c0_155 = arith.constant 0 : index
    %c0_156 = arith.constant 0 : index
    %178 = vector.load %arg3[%c8_154, %c0_155, %c0_156] : memref<9x128x128xbf16, #tpu.memory_space<vmem>>, vector<1x128x128xbf16>
    %179 = vector.shape_cast %178 : vector<1x128x128xbf16> to vector<128x128xbf16>
    %cst_157 = arith.constant dense<0.000000e+00> : vector<48x128xf32>
    %180 = tpu.matmul %177, %179, %cst_157 {dimension_numbers = #tpu.dot_dimension_numbers<[1], [0], [0], [1], [0, 0, 1, 1], [], []>} : vector<48x128xbf16>, vector<128x128xbf16>, vector<48x128xf32> -> vector<48x128xf32>
    %181 = arith.addf %176, %180 : vector<48x128xf32>
    %cst_158 = arith.constant 0.000000e+00 : f32
    %182 = vector.broadcast %cst_158 : f32 to vector<48x128xf32>
    %183 = arith.cmpf oge, %181, %182 : vector<48x128xf32>
    %cst_159 = arith.constant 2.000000e-01 : f32
    %184 = vector.broadcast %cst_159 : f32 to vector<48x128xf32>
    %185 = arith.mulf %184, %181 : vector<48x128xf32>
    %186 = arith.select %183, %181, %185 : vector<48x128xi1>, vector<48x128xf32>
    %187 = arith.truncf %186 : vector<48x128xf32> to vector<48x128xbf16>
    %c128_160 = arith.constant 128 : index
    %c0_161 = arith.constant 0 : index
    %188 = vector.load %arg14[%c128_160, %c0_161] : memref<256x128xbf16, #tpu.memory_space<vmem>>, vector<48x128xbf16>
    tpu.vector_store %arg14[%c128_160, %c0_161], %187 {strides = array<i32>} : memref<256x128xbf16, #tpu.memory_space<vmem>>, vector<48x128xbf16>,
    %c15 = arith.constant 15 : index
    %c0_162 = arith.constant 0 : index
    %189 = vector.load %arg14[%c15, %c0_162] : memref<256x128xbf16, #tpu.memory_space<vmem>>, vector<8x128xbf16>
    %c32_163 = arith.constant 32 : index
    %c0_164 = arith.constant 0 : index
    %190 = vector.load %arg16[%c32_163, %c0_164] : memref<216x128xbf16, #tpu.memory_space<vmem>>, vector<8x128xbf16>
    tpu.vector_store %arg16[%c32_163, %c0_164], %189 {strides = array<i32>} : memref<216x128xbf16, #tpu.memory_space<vmem>>, vector<8x128xbf16>,
    %c31 = arith.constant 31 : index
    %c0_165 = arith.constant 0 : index
    %191 = vector.load %arg14[%c31, %c0_165] : memref<256x128xbf16, #tpu.memory_space<vmem>>, vector<8x128xbf16>
    %c48_166 = arith.constant 48 : index
    %c0_167 = arith.constant 0 : index
    %192 = vector.load %arg16[%c48_166, %c0_167] : memref<216x128xbf16, #tpu.memory_space<vmem>>, vector<8x128xbf16>
    tpu.vector_store %arg16[%c48_166, %c0_167], %191 {strides = array<i32>} : memref<216x128xbf16, #tpu.memory_space<vmem>>, vector<8x128xbf16>,
    %c47 = arith.constant 47 : index
    %c0_168 = arith.constant 0 : index
    %193 = vector.load %arg14[%c47, %c0_168] : memref<256x128xbf16, #tpu.memory_space<vmem>>, vector<8x128xbf16>
    %c64_169 = arith.constant 64 : index
    %c0_170 = arith.constant 0 : index
    %194 = vector.load %arg16[%c64_169, %c0_170] : memref<216x128xbf16, #tpu.memory_space<vmem>>, vector<8x128xbf16>
    tpu.vector_store %arg16[%c64_169, %c0_170], %193 {strides = array<i32>} : memref<216x128xbf16, #tpu.memory_space<vmem>>, vector<8x128xbf16>,
    %c63 = arith.constant 63 : index
    %c0_171 = arith.constant 0 : index
    %195 = vector.load %arg14[%c63, %c0_171] : memref<256x128xbf16, #tpu.memory_space<vmem>>, vector<8x128xbf16>
    %c80_172 = arith.constant 80 : index
    %c0_173 = arith.constant 0 : index
    %196 = vector.load %arg16[%c80_172, %c0_173] : memref<216x128xbf16, #tpu.memory_space<vmem>>, vector<8x128xbf16>
    tpu.vector_store %arg16[%c80_172, %c0_173], %195 {strides = array<i32>} : memref<216x128xbf16, #tpu.memory_space<vmem>>, vector<8x128xbf16>,
    %c79 = arith.constant 79 : index
    %c0_174 = arith.constant 0 : index
    %197 = vector.load %arg14[%c79, %c0_174] : memref<256x128xbf16, #tpu.memory_space<vmem>>, vector<8x128xbf16>
    %c96_175 = arith.constant 96 : index
    %c0_176 = arith.constant 0 : index
    %198 = vector.load %arg16[%c96_175, %c0_176] : memref<216x128xbf16, #tpu.memory_space<vmem>>, vector<8x128xbf16>
    tpu.vector_store %arg16[%c96_175, %c0_176], %197 {strides = array<i32>} : memref<216x128xbf16, #tpu.memory_space<vmem>>, vector<8x128xbf16>,
    %c95 = arith.constant 95 : index
    %c0_177 = arith.constant 0 : index
    %199 = vector.load %arg14[%c95, %c0_177] : memref<256x128xbf16, #tpu.memory_space<vmem>>, vector<8x128xbf16>
    %c112_178 = arith.constant 112 : index
    %c0_179 = arith.constant 0 : index
    %200 = vector.load %arg16[%c112_178, %c0_179] : memref<216x128xbf16, #tpu.memory_space<vmem>>, vector<8x128xbf16>
    tpu.vector_store %arg16[%c112_178, %c0_179], %199 {strides = array<i32>} : memref<216x128xbf16, #tpu.memory_space<vmem>>, vector<8x128xbf16>,
    %c111 = arith.constant 111 : index
    %c0_180 = arith.constant 0 : index
    %201 = vector.load %arg14[%c111, %c0_180] : memref<256x128xbf16, #tpu.memory_space<vmem>>, vector<8x128xbf16>
    %c128_181 = arith.constant 128 : index
    %c0_182 = arith.constant 0 : index
    %202 = vector.load %arg16[%c128_181, %c0_182] : memref<216x128xbf16, #tpu.memory_space<vmem>>, vector<8x128xbf16>
    tpu.vector_store %arg16[%c128_181, %c0_182], %201 {strides = array<i32>} : memref<216x128xbf16, #tpu.memory_space<vmem>>, vector<8x128xbf16>,
    %c127 = arith.constant 127 : index
    %c0_183 = arith.constant 0 : index
    %203 = vector.load %arg14[%c127, %c0_183] : memref<256x128xbf16, #tpu.memory_space<vmem>>, vector<8x128xbf16>
    %c144_184 = arith.constant 144 : index
    %c0_185 = arith.constant 0 : index
    %204 = vector.load %arg16[%c144_184, %c0_185] : memref<216x128xbf16, #tpu.memory_space<vmem>>, vector<8x128xbf16>
    tpu.vector_store %arg16[%c144_184, %c0_185], %203 {strides = array<i32>} : memref<216x128xbf16, #tpu.memory_space<vmem>>, vector<8x128xbf16>,
    %c0_186 = arith.constant 0 : index
    %c0_187 = arith.constant 0 : index
    %205 = vector.load %arg16[%c0_186, %c0_187] : memref<216x128xbf16, #tpu.memory_space<vmem>>, vector<128x128xbf16>
    %c0_188 = arith.constant 0 : index
    %c0_189 = arith.constant 0 : index
    %c0_190 = arith.constant 0 : index
    %206 = vector.load %arg4[%c0_188, %c0_189, %c0_190] : memref<9x128x128xbf16, #tpu.memory_space<vmem>>, vector<1x128x128xbf16>
    %207 = vector.shape_cast %206 : vector<1x128x128xbf16> to vector<128x128xbf16>
    %cst_191 = arith.constant dense<0.000000e+00> : vector<128x128xf32>
    %208 = tpu.matmul %205, %207, %cst_191 {dimension_numbers = #tpu.dot_dimension_numbers<[1], [0], [0], [1], [0, 0, 1, 1], [], []>} : vector<128x128xbf16>, vector<128x128xbf16>, vector<128x128xf32> -> vector<128x128xf32>
    %c1_192 = arith.constant 1 : index
    %c0_193 = arith.constant 0 : index
    %209 = vector.load %arg16[%c1_192, %c0_193] : memref<216x128xbf16, #tpu.memory_space<vmem>>, vector<128x128xbf16>
    %c1_194 = arith.constant 1 : index
    %c0_195 = arith.constant 0 : index
    %c0_196 = arith.constant 0 : index
    %210 = vector.load %arg4[%c1_194, %c0_195, %c0_196] : memref<9x128x128xbf16, #tpu.memory_space<vmem>>, vector<1x128x128xbf16>
    %211 = vector.shape_cast %210 : vector<1x128x128xbf16> to vector<128x128xbf16>
    %cst_197 = arith.constant dense<0.000000e+00> : vector<128x128xf32>
    %212 = tpu.matmul %209, %211, %cst_197 {dimension_numbers = #tpu.dot_dimension_numbers<[1], [0], [0], [1], [0, 0, 1, 1], [], []>} : vector<128x128xbf16>, vector<128x128xbf16>, vector<128x128xf32> -> vector<128x128xf32>
    %213 = arith.addf %208, %212 : vector<128x128xf32>
    %c2_198 = arith.constant 2 : index
    %c0_199 = arith.constant 0 : index
    %214 = vector.load %arg16[%c2_198, %c0_199] : memref<216x128xbf16, #tpu.memory_space<vmem>>, vector<128x128xbf16>
    %c2_200 = arith.constant 2 : index
    %c0_201 = arith.constant 0 : index
    %c0_202 = arith.constant 0 : index
    %215 = vector.load %arg4[%c2_200, %c0_201, %c0_202] : memref<9x128x128xbf16, #tpu.memory_space<vmem>>, vector<1x128x128xbf16>
    %216 = vector.shape_cast %215 : vector<1x128x128xbf16> to vector<128x128xbf16>
    %cst_203 = arith.constant dense<0.000000e+00> : vector<128x128xf32>
    %217 = tpu.matmul %214, %216, %cst_203 {dimension_numbers = #tpu.dot_dimension_numbers<[1], [0], [0], [1], [0, 0, 1, 1], [], []>} : vector<128x128xbf16>, vector<128x128xbf16>, vector<128x128xf32> -> vector<128x128xf32>
    %218 = arith.addf %213, %217 : vector<128x128xf32>
    %c16_204 = arith.constant 16 : index
    %c0_205 = arith.constant 0 : index
    %219 = vector.load %arg16[%c16_204, %c0_205] : memref<216x128xbf16, #tpu.memory_space<vmem>>, vector<128x128xbf16>
    %c3_206 = arith.constant 3 : index
    %c0_207 = arith.constant 0 : index
    %c0_208 = arith.constant 0 : index
    %220 = vector.load %arg4[%c3_206, %c0_207, %c0_208] : memref<9x128x128xbf16, #tpu.memory_space<vmem>>, vector<1x128x128xbf16>
    %221 = vector.shape_cast %220 : vector<1x128x128xbf16> to vector<128x128xbf16>
    %cst_209 = arith.constant dense<0.000000e+00> : vector<128x128xf32>
    %222 = tpu.matmul %219, %221, %cst_209 {dimension_numbers = #tpu.dot_dimension_numbers<[1], [0], [0], [1], [0, 0, 1, 1], [], []>} : vector<128x128xbf16>, vector<128x128xbf16>, vector<128x128xf32> -> vector<128x128xf32>
    %223 = arith.addf %218, %222 : vector<128x128xf32>
    %c17_210 = arith.constant 17 : index
    %c0_211 = arith.constant 0 : index
    %224 = vector.load %arg16[%c17_210, %c0_211] : memref<216x128xbf16, #tpu.memory_space<vmem>>, vector<128x128xbf16>
    %c4_212 = arith.constant 4 : index
    %c0_213 = arith.constant 0 : index
    %c0_214 = arith.constant 0 : index
    %225 = vector.load %arg4[%c4_212, %c0_213, %c0_214] : memref<9x128x128xbf16, #tpu.memory_space<vmem>>, vector<1x128x128xbf16>
    %226 = vector.shape_cast %225 : vector<1x128x128xbf16> to vector<128x128xbf16>
    %cst_215 = arith.constant dense<0.000000e+00> : vector<128x128xf32>
    %227 = tpu.matmul %224, %226, %cst_215 {dimension_numbers = #tpu.dot_dimension_numbers<[1], [0], [0], [1], [0, 0, 1, 1], [], []>} : vector<128x128xbf16>, vector<128x128xbf16>, vector<128x128xf32> -> vector<128x128xf32>
    %228 = arith.addf %223, %227 : vector<128x128xf32>
    %c18_216 = arith.constant 18 : index
    %c0_217 = arith.constant 0 : index
    %229 = vector.load %arg16[%c18_216, %c0_217] : memref<216x128xbf16, #tpu.memory_space<vmem>>, vector<128x128xbf16>
    %c5_218 = arith.constant 5 : index
    %c0_219 = arith.constant 0 : index
    %c0_220 = arith.constant 0 : index
    %230 = vector.load %arg4[%c5_218, %c0_219, %c0_220] : memref<9x128x128xbf16, #tpu.memory_space<vmem>>, vector<1x128x128xbf16>
    %231 = vector.shape_cast %230 : vector<1x128x128xbf16> to vector<128x128xbf16>
    %cst_221 = arith.constant dense<0.000000e+00> : vector<128x128xf32>
    %232 = tpu.matmul %229, %231, %cst_221 {dimension_numbers = #tpu.dot_dimension_numbers<[1], [0], [0], [1], [0, 0, 1, 1], [], []>} : vector<128x128xbf16>, vector<128x128xbf16>, vector<128x128xf32> -> vector<128x128xf32>
    %233 = arith.addf %228, %232 : vector<128x128xf32>
    %c32_222 = arith.constant 32 : index
    %c0_223 = arith.constant 0 : index
    %234 = vector.load %arg16[%c32_222, %c0_223] : memref<216x128xbf16, #tpu.memory_space<vmem>>, vector<128x128xbf16>
    %c6_224 = arith.constant 6 : index
    %c0_225 = arith.constant 0 : index
    %c0_226 = arith.constant 0 : index
    %235 = vector.load %arg4[%c6_224, %c0_225, %c0_226] : memref<9x128x128xbf16, #tpu.memory_space<vmem>>, vector<1x128x128xbf16>
    %236 = vector.shape_cast %235 : vector<1x128x128xbf16> to vector<128x128xbf16>
    %cst_227 = arith.constant dense<0.000000e+00> : vector<128x128xf32>
    %237 = tpu.matmul %234, %236, %cst_227 {dimension_numbers = #tpu.dot_dimension_numbers<[1], [0], [0], [1], [0, 0, 1, 1], [], []>} : vector<128x128xbf16>, vector<128x128xbf16>, vector<128x128xf32> -> vector<128x128xf32>
    %238 = arith.addf %233, %237 : vector<128x128xf32>
    %c33_228 = arith.constant 33 : index
    %c0_229 = arith.constant 0 : index
    %239 = vector.load %arg16[%c33_228, %c0_229] : memref<216x128xbf16, #tpu.memory_space<vmem>>, vector<128x128xbf16>
    %c7_230 = arith.constant 7 : index
    %c0_231 = arith.constant 0 : index
    %c0_232 = arith.constant 0 : index
    %240 = vector.load %arg4[%c7_230, %c0_231, %c0_232] : memref<9x128x128xbf16, #tpu.memory_space<vmem>>, vector<1x128x128xbf16>
    %241 = vector.shape_cast %240 : vector<1x128x128xbf16> to vector<128x128xbf16>
    %cst_233 = arith.constant dense<0.000000e+00> : vector<128x128xf32>
    %242 = tpu.matmul %239, %241, %cst_233 {dimension_numbers = #tpu.dot_dimension_numbers<[1], [0], [0], [1], [0, 0, 1, 1], [], []>} : vector<128x128xbf16>, vector<128x128xbf16>, vector<128x128xf32> -> vector<128x128xf32>
    %243 = arith.addf %238, %242 : vector<128x128xf32>
    %c34_234 = arith.constant 34 : index
    %c0_235 = arith.constant 0 : index
    %244 = vector.load %arg16[%c34_234, %c0_235] : memref<216x128xbf16, #tpu.memory_space<vmem>>, vector<128x128xbf16>
    %c8_236 = arith.constant 8 : index
    %c0_237 = arith.constant 0 : index
    %c0_238 = arith.constant 0 : index
    %245 = vector.load %arg4[%c8_236, %c0_237, %c0_238] : memref<9x128x128xbf16, #tpu.memory_space<vmem>>, vector<1x128x128xbf16>
    %246 = vector.shape_cast %245 : vector<1x128x128xbf16> to vector<128x128xbf16>
    %cst_239 = arith.constant dense<0.000000e+00> : vector<128x128xf32>
    %247 = tpu.matmul %244, %246, %cst_239 {dimension_numbers = #tpu.dot_dimension_numbers<[1], [0], [0], [1], [0, 0, 1, 1], [], []>} : vector<128x128xbf16>, vector<128x128xbf16>, vector<128x128xf32> -> vector<128x128xf32>
    %248 = arith.addf %243, %247 : vector<128x128xf32>
    %c17_240 = arith.constant 17 : index
    %c0_241 = arith.constant 0 : index
    %249 = vector.load %arg15[%c17_240, %c0_241] : memref<216x128xbf16, #tpu.memory_space<vmem>>, vector<128x128xbf16>
    %c0_242 = arith.constant 0 : index
    %c0_243 = arith.constant 0 : index
    %250 = vector.load %arg5[%c0_242, %c0_243] : memref<128x128xbf16, #tpu.memory_space<vmem>>, vector<128x128xbf16>
    %cst_244 = arith.constant dense<0.000000e+00> : vector<128x128xf32>
    %251 = tpu.matmul %249, %250, %cst_244 {dimension_numbers = #tpu.dot_dimension_numbers<[1], [0], [0], [1], [0, 0, 1, 1], [], []>} : vector<128x128xbf16>, vector<128x128xbf16>, vector<128x128xf32> -> vector<128x128xf32>
    %252 = arith.addf %248, %251 : vector<128x128xf32>
    %cst_245 = arith.constant 0.000000e+00 : f32
    %253 = vector.broadcast %cst_245 : f32 to vector<128x128xf32>
    %254 = arith.cmpf oge, %252, %253 : vector<128x128xf32>
    %cst_246 = arith.constant 2.000000e-01 : f32
    %255 = vector.broadcast %cst_246 : f32 to vector<128x128xf32>
    %256 = arith.mulf %255, %252 : vector<128x128xf32>
    %257 = arith.select %254, %252, %256 : vector<128x128xi1>, vector<128x128xf32>
    %258 = arith.truncf %257 : vector<128x128xf32> to vector<128x128xbf16>
    %c0_247 = arith.constant 0 : index
    %c0_248 = arith.constant 0 : index
    %259 = vector.load %arg14[%c0_247, %c0_248] : memref<256x128xbf16, #tpu.memory_space<vmem>>, vector<128x128xbf16>
    tpu.vector_store %arg14[%c0_247, %c0_248], %258 {strides = array<i32>} : memref<256x128xbf16, #tpu.memory_space<vmem>>, vector<128x128xbf16>,
    %c128_249 = arith.constant 128 : index
    %c0_250 = arith.constant 0 : index
    %260 = vector.load %arg16[%c128_249, %c0_250] : memref<216x128xbf16, #tpu.memory_space<vmem>>, vector<48x128xbf16>
    %c0_251 = arith.constant 0 : index
    %c0_252 = arith.constant 0 : index
    %c0_253 = arith.constant 0 : index
    %261 = vector.load %arg4[%c0_251, %c0_252, %c0_253] : memref<9x128x128xbf16, #tpu.memory_space<vmem>>, vector<1x128x128xbf16>
    %262 = vector.shape_cast %261 : vector<1x128x128xbf16> to vector<128x128xbf16>
    %cst_254 = arith.constant dense<0.000000e+00> : vector<48x128xf32>
    %263 = tpu.matmul %260, %262, %cst_254 {dimension_numbers = #tpu.dot_dimension_numbers<[1], [0], [0], [1], [0, 0, 1, 1], [], []>} : vector<48x128xbf16>, vector<128x128xbf16>, vector<48x128xf32> -> vector<48x128xf32>
    %c129_255 = arith.constant 129 : index
    %c0_256 = arith.constant 0 : index
    %264 = vector.load %arg16[%c129_255, %c0_256] : memref<216x128xbf16, #tpu.memory_space<vmem>>, vector<48x128xbf16>
    %c1_257 = arith.constant 1 : index
    %c0_258 = arith.constant 0 : index
    %c0_259 = arith.constant 0 : index
    %265 = vector.load %arg4[%c1_257, %c0_258, %c0_259] : memref<9x128x128xbf16, #tpu.memory_space<vmem>>, vector<1x128x128xbf16>
    %266 = vector.shape_cast %265 : vector<1x128x128xbf16> to vector<128x128xbf16>
    %cst_260 = arith.constant dense<0.000000e+00> : vector<48x128xf32>
    %267 = tpu.matmul %264, %266, %cst_260 {dimension_numbers = #tpu.dot_dimension_numbers<[1], [0], [0], [1], [0, 0, 1, 1], [], []>} : vector<48x128xbf16>, vector<128x128xbf16>, vector<48x128xf32> -> vector<48x128xf32>
    %268 = arith.addf %263, %267 : vector<48x128xf32>
    %c130_261 = arith.constant 130 : index
    %c0_262 = arith.constant 0 : index
    %269 = vector.load %arg16[%c130_261, %c0_262] : memref<216x128xbf16, #tpu.memory_space<vmem>>, vector<48x128xbf16>
    %c2_263 = arith.constant 2 : index
    %c0_264 = arith.constant 0 : index
    %c0_265 = arith.constant 0 : index
    %270 = vector.load %arg4[%c2_263, %c0_264, %c0_265] : memref<9x128x128xbf16, #tpu.memory_space<vmem>>, vector<1x128x128xbf16>
    %271 = vector.shape_cast %270 : vector<1x128x128xbf16> to vector<128x128xbf16>
    %cst_266 = arith.constant dense<0.000000e+00> : vector<48x128xf32>
    %272 = tpu.matmul %269, %271, %cst_266 {dimension_numbers = #tpu.dot_dimension_numbers<[1], [0], [0], [1], [0, 0, 1, 1], [], []>} : vector<48x128xbf16>, vector<128x128xbf16>, vector<48x128xf32> -> vector<48x128xf32>
    %273 = arith.addf %268, %272 : vector<48x128xf32>
    %c144_267 = arith.constant 144 : index
    %c0_268 = arith.constant 0 : index
    %274 = vector.load %arg16[%c144_267, %c0_268] : memref<216x128xbf16, #tpu.memory_space<vmem>>, vector<48x128xbf16>
    %c3_269 = arith.constant 3 : index
    %c0_270 = arith.constant 0 : index
    %c0_271 = arith.constant 0 : index
    %275 = vector.load %arg4[%c3_269, %c0_270, %c0_271] : memref<9x128x128xbf16, #tpu.memory_space<vmem>>, vector<1x128x128xbf16>
    %276 = vector.shape_cast %275 : vector<1x128x128xbf16> to vector<128x128xbf16>
    %cst_272 = arith.constant dense<0.000000e+00> : vector<48x128xf32>
    %277 = tpu.matmul %274, %276, %cst_272 {dimension_numbers = #tpu.dot_dimension_numbers<[1], [0], [0], [1], [0, 0, 1, 1], [], []>} : vector<48x128xbf16>, vector<128x128xbf16>, vector<48x128xf32> -> vector<48x128xf32>
    %278 = arith.addf %273, %277 : vector<48x128xf32>
    %c145_273 = arith.constant 145 : index
    %c0_274 = arith.constant 0 : index
    %279 = vector.load %arg16[%c145_273, %c0_274] : memref<216x128xbf16, #tpu.memory_space<vmem>>, vector<48x128xbf16>
    %c4_275 = arith.constant 4 : index
    %c0_276 = arith.constant 0 : index
    %c0_277 = arith.constant 0 : index
    %280 = vector.load %arg4[%c4_275, %c0_276, %c0_277] : memref<9x128x128xbf16, #tpu.memory_space<vmem>>, vector<1x128x128xbf16>
    %281 = vector.shape_cast %280 : vector<1x128x128xbf16> to vector<128x128xbf16>
    %cst_278 = arith.constant dense<0.000000e+00> : vector<48x128xf32>
    %282 = tpu.matmul %279, %281, %cst_278 {dimension_numbers = #tpu.dot_dimension_numbers<[1], [0], [0], [1], [0, 0, 1, 1], [], []>} : vector<48x128xbf16>, vector<128x128xbf16>, vector<48x128xf32> -> vector<48x128xf32>
    %283 = arith.addf %278, %282 : vector<48x128xf32>
    %c146_279 = arith.constant 146 : index
    %c0_280 = arith.constant 0 : index
    %284 = vector.load %arg16[%c146_279, %c0_280] : memref<216x128xbf16, #tpu.memory_space<vmem>>, vector<48x128xbf16>
    %c5_281 = arith.constant 5 : index
    %c0_282 = arith.constant 0 : index
    %c0_283 = arith.constant 0 : index
    %285 = vector.load %arg4[%c5_281, %c0_282, %c0_283] : memref<9x128x128xbf16, #tpu.memory_space<vmem>>, vector<1x128x128xbf16>
    %286 = vector.shape_cast %285 : vector<1x128x128xbf16> to vector<128x128xbf16>
    %cst_284 = arith.constant dense<0.000000e+00> : vector<48x128xf32>
    %287 = tpu.matmul %284, %286, %cst_284 {dimension_numbers = #tpu.dot_dimension_numbers<[1], [0], [0], [1], [0, 0, 1, 1], [], []>} : vector<48x128xbf16>, vector<128x128xbf16>, vector<48x128xf32> -> vector<48x128xf32>
    %288 = arith.addf %283, %287 : vector<48x128xf32>
    %c160_285 = arith.constant 160 : index
    %c0_286 = arith.constant 0 : index
    %289 = vector.load %arg16[%c160_285, %c0_286] : memref<216x128xbf16, #tpu.memory_space<vmem>>, vector<48x128xbf16>
    %c6_287 = arith.constant 6 : index
    %c0_288 = arith.constant 0 : index
    %c0_289 = arith.constant 0 : index
    %290 = vector.load %arg4[%c6_287, %c0_288, %c0_289] : memref<9x128x128xbf16, #tpu.memory_space<vmem>>, vector<1x128x128xbf16>
    %291 = vector.shape_cast %290 : vector<1x128x128xbf16> to vector<128x128xbf16>
    %cst_290 = arith.constant dense<0.000000e+00> : vector<48x128xf32>
    %292 = tpu.matmul %289, %291, %cst_290 {dimension_numbers = #tpu.dot_dimension_numbers<[1], [0], [0], [1], [0, 0, 1, 1], [], []>} : vector<48x128xbf16>, vector<128x128xbf16>, vector<48x128xf32> -> vector<48x128xf32>
    %293 = arith.addf %288, %292 : vector<48x128xf32>
    %c161_291 = arith.constant 161 : index
    %c0_292 = arith.constant 0 : index
    %294 = vector.load %arg16[%c161_291, %c0_292] : memref<216x128xbf16, #tpu.memory_space<vmem>>, vector<48x128xbf16>
    %c7_293 = arith.constant 7 : index
    %c0_294 = arith.constant 0 : index
    %c0_295 = arith.constant 0 : index
    %295 = vector.load %arg4[%c7_293, %c0_294, %c0_295] : memref<9x128x128xbf16, #tpu.memory_space<vmem>>, vector<1x128x128xbf16>
    %296 = vector.shape_cast %295 : vector<1x128x128xbf16> to vector<128x128xbf16>
    %cst_296 = arith.constant dense<0.000000e+00> : vector<48x128xf32>
    %297 = tpu.matmul %294, %296, %cst_296 {dimension_numbers = #tpu.dot_dimension_numbers<[1], [0], [0], [1], [0, 0, 1, 1], [], []>} : vector<48x128xbf16>, vector<128x128xbf16>, vector<48x128xf32> -> vector<48x128xf32>
    %298 = arith.addf %293, %297 : vector<48x128xf32>
    %c162_297 = arith.constant 162 : index
    %c0_298 = arith.constant 0 : index
    %299 = vector.load %arg16[%c162_297, %c0_298] : memref<216x128xbf16, #tpu.memory_space<vmem>>, vector<48x128xbf16>
    %c8_299 = arith.constant 8 : index
    %c0_300 = arith.constant 0 : index
    %c0_301 = arith.constant 0 : index
    %300 = vector.load %arg4[%c8_299, %c0_300, %c0_301] : memref<9x128x128xbf16, #tpu.memory_space<vmem>>, vector<1x128x128xbf16>
    %301 = vector.shape_cast %300 : vector<1x128x128xbf16> to vector<128x128xbf16>
    %cst_302 = arith.constant dense<0.000000e+00> : vector<48x128xf32>
    %302 = tpu.matmul %299, %301, %cst_302 {dimension_numbers = #tpu.dot_dimension_numbers<[1], [0], [0], [1], [0, 0, 1, 1], [], []>} : vector<48x128xbf16>, vector<128x128xbf16>, vector<48x128xf32> -> vector<48x128xf32>
    %303 = arith.addf %298, %302 : vector<48x128xf32>
    %c145_303 = arith.constant 145 : index
    %c0_304 = arith.constant 0 : index
    %304 = vector.load %arg15[%c145_303, %c0_304] : memref<216x128xbf16, #tpu.memory_space<vmem>>, vector<48x128xbf16>
    %c0_305 = arith.constant 0 : index
    %c0_306 = arith.constant 0 : index
    %305 = vector.load %arg5[%c0_305, %c0_306] : memref<128x128xbf16, #tpu.memory_space<vmem>>, vector<128x128xbf16>
    %cst_307 = arith.constant dense<0.000000e+00> : vector<48x128xf32>
    %306 = tpu.matmul %304, %305, %cst_307 {dimension_numbers = #tpu.dot_dimension_numbers<[1], [0], [0], [1], [0, 0, 1, 1], [], []>} : vector<48x128xbf16>, vector<128x128xbf16>, vector<48x128xf32> -> vector<48x128xf32>
    %307 = arith.addf %303, %306 : vector<48x128xf32>
    %cst_308 = arith.constant 0.000000e+00 : f32
    %308 = vector.broadcast %cst_308 : f32 to vector<48x128xf32>
    %309 = arith.cmpf oge, %307, %308 : vector<48x128xf32>
    %cst_309 = arith.constant 2.000000e-01 : f32
    %310 = vector.broadcast %cst_309 : f32 to vector<48x128xf32>
    %311 = arith.mulf %310, %307 : vector<48x128xf32>
    %312 = arith.select %309, %307, %311 : vector<48x128xi1>, vector<48x128xf32>
    %313 = arith.truncf %312 : vector<48x128xf32> to vector<48x128xbf16>
    %c128_310 = arith.constant 128 : index
    %c0_311 = arith.constant 0 : index
    %314 = vector.load %arg14[%c128_310, %c0_311] : memref<256x128xbf16, #tpu.memory_space<vmem>>, vector<48x128xbf16>
    tpu.vector_store %arg14[%c128_310, %c0_311], %313 {strides = array<i32>} : memref<256x128xbf16, #tpu.memory_space<vmem>>, vector<48x128xbf16>,
    %315 = tpu.iota {dimensions = array<i32: 0>} : vector<8x32xi32>
    %316 = tpu.iota {dimensions = array<i32: 1>} : vector<8x32xi32>
    %c2_i32_312 = arith.constant 2 : i32
    %317 = vector.broadcast %c2_i32_312 : i32 to vector<8x32xi32>
    %318 = arith.muli %317, %315 : vector<8x32xi32>
    %319 = arith.subi %316, %318 : vector<8x32xi32>
    %c0_i32_313 = arith.constant 0 : i32
    %320 = vector.broadcast %c0_i32_313 : i32 to vector<8x32xi32>
    %321 = arith.cmpi eq, %319, %320 : vector<8x32xi32>
    %c1_i32_314 = arith.constant 1 : i32
    %322 = vector.broadcast %c1_i32_314 : i32 to vector<8x32xi32>
    %323 = arith.cmpi eq, %319, %322 : vector<8x32xi32>
    %324 = arith.ori %321, %323 : vector<8x32xi1>
    %c16_i32_315 = arith.constant 16 : i32
    %325 = vector.broadcast %c16_i32_315 : i32 to vector<8x32xi32>
    %326 = arith.cmpi eq, %319, %325 : vector<8x32xi32>
    %327 = arith.ori %324, %326 : vector<8x32xi1>
    %c17_i32_316 = arith.constant 17 : i32
    %328 = vector.broadcast %c17_i32_316 : i32 to vector<8x32xi32>
    %329 = arith.cmpi eq, %319, %328 : vector<8x32xi32>
    %330 = arith.ori %327, %329 : vector<8x32xi1>
    %c4_i32 = arith.constant 4 : i32
    %331 = vector.broadcast %c4_i32 : i32 to vector<8x32xi32>
    %332 = arith.cmpi slt, %315, %331 : vector<8x32xi32>
    %333 = arith.andi %330, %332 : vector<8x32xi1>
    %cst_317 = arith.constant 2.500000e-01 : f32
    %cst_318 = arith.constant 0.000000e+00 : f32
    %334 = vector.broadcast %cst_317 : f32 to vector<8x32xf32>
    %335 = vector.broadcast %cst_318 : f32 to vector<8x32xf32>
    %336 = arith.select %333, %334, %335 : vector<8x32xi1>, vector<8x32xf32>
    %337 = arith.truncf %336 : vector<8x32xf32> to vector<8x32xbf16>
    %c15_319 = arith.constant 15 : index
    %c0_320 = arith.constant 0 : index
    %338 = vector.load %arg14[%c15_319, %c0_320] : memref<256x128xbf16, #tpu.memory_space<vmem>>, vector<32x128xbf16>
    %cst_321 = arith.constant dense<0.000000e+00> : vector<8x128xf32>
    %339 = tpu.matmul %337, %338, %cst_321 {dimension_numbers = #tpu.dot_dimension_numbers<[1], [0], [0], [1], [0, 0, 1, 1], [], []>} : vector<8x32xbf16>, vector<32x128xbf16>, vector<8x128xf32> -> vector<8x128xf32>
    %340 = arith.truncf %339 : vector<8x128xf32> to vector<8x128xbf16>
    %c16_322 = arith.constant 16 : index
    %c0_323 = arith.constant 0 : index
    %341 = vector.load %arg17[%c16_322, %c0_323] : memref<80x128xbf16, #tpu.memory_space<vmem>>, vector<8x128xbf16>
    tpu.vector_store %arg17[%c16_322, %c0_323], %340 {strides = array<i32>} : memref<80x128xbf16, #tpu.memory_space<vmem>>, vector<8x128xbf16>,
    %c47_324 = arith.constant 47 : index
    %c0_325 = arith.constant 0 : index
    %342 = vector.load %arg14[%c47_324, %c0_325] : memref<256x128xbf16, #tpu.memory_space<vmem>>, vector<32x128xbf16>
    %cst_326 = arith.constant dense<0.000000e+00> : vector<8x128xf32>
    %343 = tpu.matmul %337, %342, %cst_326 {dimension_numbers = #tpu.dot_dimension_numbers<[1], [0], [0], [1], [0, 0, 1, 1], [], []>} : vector<8x32xbf16>, vector<32x128xbf16>, vector<8x128xf32> -> vector<8x128xf32>
    %344 = arith.truncf %343 : vector<8x128xf32> to vector<8x128xbf16>
    %c24 = arith.constant 24 : index
    %c0_327 = arith.constant 0 : index
    %345 = vector.load %arg17[%c24, %c0_327] : memref<80x128xbf16, #tpu.memory_space<vmem>>, vector<8x128xbf16>
    tpu.vector_store %arg17[%c24, %c0_327], %344 {strides = array<i32>} : memref<80x128xbf16, #tpu.memory_space<vmem>>, vector<8x128xbf16>,
    %c79_328 = arith.constant 79 : index
    %c0_329 = arith.constant 0 : index
    %346 = vector.load %arg14[%c79_328, %c0_329] : memref<256x128xbf16, #tpu.memory_space<vmem>>, vector<32x128xbf16>
    %cst_330 = arith.constant dense<0.000000e+00> : vector<8x128xf32>
    %347 = tpu.matmul %337, %346, %cst_330 {dimension_numbers = #tpu.dot_dimension_numbers<[1], [0], [0], [1], [0, 0, 1, 1], [], []>} : vector<8x32xbf16>, vector<32x128xbf16>, vector<8x128xf32> -> vector<8x128xf32>
    %348 = arith.truncf %347 : vector<8x128xf32> to vector<8x128xbf16>
    %c32_331 = arith.constant 32 : index
    %c0_332 = arith.constant 0 : index
    %349 = vector.load %arg17[%c32_331, %c0_332] : memref<80x128xbf16, #tpu.memory_space<vmem>>, vector<8x128xbf16>
    tpu.vector_store %arg17[%c32_331, %c0_332], %348 {strides = array<i32>} : memref<80x128xbf16, #tpu.memory_space<vmem>>, vector<8x128xbf16>,
    %c111_333 = arith.constant 111 : index
    %c0_334 = arith.constant 0 : index
    %350 = vector.load %arg14[%c111_333, %c0_334] : memref<256x128xbf16, #tpu.memory_space<vmem>>, vector<32x128xbf16>
    %cst_335 = arith.constant dense<0.000000e+00> : vector<8x128xf32>
    %351 = tpu.matmul %337, %350, %cst_335 {dimension_numbers = #tpu.dot_dimension_numbers<[1], [0], [0], [1], [0, 0, 1, 1], [], []>} : vector<8x32xbf16>, vector<32x128xbf16>, vector<8x128xf32> -> vector<8x128xf32>
    %352 = arith.truncf %351 : vector<8x128xf32> to vector<8x128xbf16>
    %c40 = arith.constant 40 : index
    %c0_336 = arith.constant 0 : index
    %353 = vector.load %arg17[%c40, %c0_336] : memref<80x128xbf16, #tpu.memory_space<vmem>>, vector<8x128xbf16>
    tpu.vector_store %arg17[%c40, %c0_336], %352 {strides = array<i32>} : memref<80x128xbf16, #tpu.memory_space<vmem>>, vector<8x128xbf16>,
    %c0_337 = arith.constant 0 : index
    %c0_338 = arith.constant 0 : index
    %354 = vector.load %arg17[%c0_337, %c0_338] : memref<80x128xbf16, #tpu.memory_space<vmem>>, vector<56x128xbf16>
    %c0_339 = arith.constant 0 : index
    %c0_340 = arith.constant 0 : index
    %c0_341 = arith.constant 0 : index
    %355 = vector.load %arg6[%c0_339, %c0_340, %c0_341] : memref<9x128x128xbf16, #tpu.memory_space<vmem>>, vector<1x128x128xbf16>
    %356 = vector.shape_cast %355 : vector<1x128x128xbf16> to vector<128x128xbf16>
    %cst_342 = arith.constant dense<0.000000e+00> : vector<56x128xf32>
    %357 = tpu.matmul %354, %356, %cst_342 {dimension_numbers = #tpu.dot_dimension_numbers<[1], [0], [0], [1], [0, 0, 1, 1], [], []>} : vector<56x128xbf16>, vector<128x128xbf16>, vector<56x128xf32> -> vector<56x128xf32>
    %c1_343 = arith.constant 1 : index
    %c0_344 = arith.constant 0 : index
    %358 = vector.load %arg17[%c1_343, %c0_344] : memref<80x128xbf16, #tpu.memory_space<vmem>>, vector<56x128xbf16>
    %c1_345 = arith.constant 1 : index
    %c0_346 = arith.constant 0 : index
    %c0_347 = arith.constant 0 : index
    %359 = vector.load %arg6[%c1_345, %c0_346, %c0_347] : memref<9x128x128xbf16, #tpu.memory_space<vmem>>, vector<1x128x128xbf16>
    %360 = vector.shape_cast %359 : vector<1x128x128xbf16> to vector<128x128xbf16>
    %cst_348 = arith.constant dense<0.000000e+00> : vector<56x128xf32>
    %361 = tpu.matmul %358, %360, %cst_348 {dimension_numbers = #tpu.dot_dimension_numbers<[1], [0], [0], [1], [0, 0, 1, 1], [], []>} : vector<56x128xbf16>, vector<128x128xbf16>, vector<56x128xf32> -> vector<56x128xf32>
    %362 = arith.addf %357, %361 : vector<56x128xf32>
    %c2_349 = arith.constant 2 : index
    %c0_350 = arith.constant 0 : index
    %363 = vector.load %arg17[%c2_349, %c0_350] : memref<80x128xbf16, #tpu.memory_space<vmem>>, vector<56x128xbf16>
    %c2_351 = arith.constant 2 : index
    %c0_352 = arith.constant 0 : index
    %c0_353 = arith.constant 0 : index
    %364 = vector.load %arg6[%c2_351, %c0_352, %c0_353] : memref<9x128x128xbf16, #tpu.memory_space<vmem>>, vector<1x128x128xbf16>
    %365 = vector.shape_cast %364 : vector<1x128x128xbf16> to vector<128x128xbf16>
    %cst_354 = arith.constant dense<0.000000e+00> : vector<56x128xf32>
    %366 = tpu.matmul %363, %365, %cst_354 {dimension_numbers = #tpu.dot_dimension_numbers<[1], [0], [0], [1], [0, 0, 1, 1], [], []>} : vector<56x128xbf16>, vector<128x128xbf16>, vector<56x128xf32> -> vector<56x128xf32>
    %367 = arith.addf %362, %366 : vector<56x128xf32>
    %c8_355 = arith.constant 8 : index
    %c0_356 = arith.constant 0 : index
    %368 = vector.load %arg17[%c8_355, %c0_356] : memref<80x128xbf16, #tpu.memory_space<vmem>>, vector<56x128xbf16>
    %c3_357 = arith.constant 3 : index
    %c0_358 = arith.constant 0 : index
    %c0_359 = arith.constant 0 : index
    %369 = vector.load %arg6[%c3_357, %c0_358, %c0_359] : memref<9x128x128xbf16, #tpu.memory_space<vmem>>, vector<1x128x128xbf16>
    %370 = vector.shape_cast %369 : vector<1x128x128xbf16> to vector<128x128xbf16>
    %cst_360 = arith.constant dense<0.000000e+00> : vector<56x128xf32>
    %371 = tpu.matmul %368, %370, %cst_360 {dimension_numbers = #tpu.dot_dimension_numbers<[1], [0], [0], [1], [0, 0, 1, 1], [], []>} : vector<56x128xbf16>, vector<128x128xbf16>, vector<56x128xf32> -> vector<56x128xf32>
    %372 = arith.addf %367, %371 : vector<56x128xf32>
    %c9 = arith.constant 9 : index
    %c0_361 = arith.constant 0 : index
    %373 = vector.load %arg17[%c9, %c0_361] : memref<80x128xbf16, #tpu.memory_space<vmem>>, vector<56x128xbf16>
    %c4_362 = arith.constant 4 : index
    %c0_363 = arith.constant 0 : index
    %c0_364 = arith.constant 0 : index
    %374 = vector.load %arg6[%c4_362, %c0_363, %c0_364] : memref<9x128x128xbf16, #tpu.memory_space<vmem>>, vector<1x128x128xbf16>
    %375 = vector.shape_cast %374 : vector<1x128x128xbf16> to vector<128x128xbf16>
    %cst_365 = arith.constant dense<0.000000e+00> : vector<56x128xf32>
    %376 = tpu.matmul %373, %375, %cst_365 {dimension_numbers = #tpu.dot_dimension_numbers<[1], [0], [0], [1], [0, 0, 1, 1], [], []>} : vector<56x128xbf16>, vector<128x128xbf16>, vector<56x128xf32> -> vector<56x128xf32>
    %377 = arith.addf %372, %376 : vector<56x128xf32>
    %c10 = arith.constant 10 : index
    %c0_366 = arith.constant 0 : index
    %378 = vector.load %arg17[%c10, %c0_366] : memref<80x128xbf16, #tpu.memory_space<vmem>>, vector<56x128xbf16>
    %c5_367 = arith.constant 5 : index
    %c0_368 = arith.constant 0 : index
    %c0_369 = arith.constant 0 : index
    %379 = vector.load %arg6[%c5_367, %c0_368, %c0_369] : memref<9x128x128xbf16, #tpu.memory_space<vmem>>, vector<1x128x128xbf16>
    %380 = vector.shape_cast %379 : vector<1x128x128xbf16> to vector<128x128xbf16>
    %cst_370 = arith.constant dense<0.000000e+00> : vector<56x128xf32>
    %381 = tpu.matmul %378, %380, %cst_370 {dimension_numbers = #tpu.dot_dimension_numbers<[1], [0], [0], [1], [0, 0, 1, 1], [], []>} : vector<56x128xbf16>, vector<128x128xbf16>, vector<56x128xf32> -> vector<56x128xf32>
    %382 = arith.addf %377, %381 : vector<56x128xf32>
    %c16_371 = arith.constant 16 : index
    %c0_372 = arith.constant 0 : index
    %383 = vector.load %arg17[%c16_371, %c0_372] : memref<80x128xbf16, #tpu.memory_space<vmem>>, vector<56x128xbf16>
    %c6_373 = arith.constant 6 : index
    %c0_374 = arith.constant 0 : index
    %c0_375 = arith.constant 0 : index
    %384 = vector.load %arg6[%c6_373, %c0_374, %c0_375] : memref<9x128x128xbf16, #tpu.memory_space<vmem>>, vector<1x128x128xbf16>
    %385 = vector.shape_cast %384 : vector<1x128x128xbf16> to vector<128x128xbf16>
    %cst_376 = arith.constant dense<0.000000e+00> : vector<56x128xf32>
    %386 = tpu.matmul %383, %385, %cst_376 {dimension_numbers = #tpu.dot_dimension_numbers<[1], [0], [0], [1], [0, 0, 1, 1], [], []>} : vector<56x128xbf16>, vector<128x128xbf16>, vector<56x128xf32> -> vector<56x128xf32>
    %387 = arith.addf %382, %386 : vector<56x128xf32>
    %c17_377 = arith.constant 17 : index
    %c0_378 = arith.constant 0 : index
    %388 = vector.load %arg17[%c17_377, %c0_378] : memref<80x128xbf16, #tpu.memory_space<vmem>>, vector<56x128xbf16>
    %c7_379 = arith.constant 7 : index
    %c0_380 = arith.constant 0 : index
    %c0_381 = arith.constant 0 : index
    %389 = vector.load %arg6[%c7_379, %c0_380, %c0_381] : memref<9x128x128xbf16, #tpu.memory_space<vmem>>, vector<1x128x128xbf16>
    %390 = vector.shape_cast %389 : vector<1x128x128xbf16> to vector<128x128xbf16>
    %cst_382 = arith.constant dense<0.000000e+00> : vector<56x128xf32>
    %391 = tpu.matmul %388, %390, %cst_382 {dimension_numbers = #tpu.dot_dimension_numbers<[1], [0], [0], [1], [0, 0, 1, 1], [], []>} : vector<56x128xbf16>, vector<128x128xbf16>, vector<56x128xf32> -> vector<56x128xf32>
    %392 = arith.addf %387, %391 : vector<56x128xf32>
    %c18_383 = arith.constant 18 : index
    %c0_384 = arith.constant 0 : index
    %393 = vector.load %arg17[%c18_383, %c0_384] : memref<80x128xbf16, #tpu.memory_space<vmem>>, vector<56x128xbf16>
    %c8_385 = arith.constant 8 : index
    %c0_386 = arith.constant 0 : index
    %c0_387 = arith.constant 0 : index
    %394 = vector.load %arg6[%c8_385, %c0_386, %c0_387] : memref<9x128x128xbf16, #tpu.memory_space<vmem>>, vector<1x128x128xbf16>
    %395 = vector.shape_cast %394 : vector<1x128x128xbf16> to vector<128x128xbf16>
    %cst_388 = arith.constant dense<0.000000e+00> : vector<56x128xf32>
    %396 = tpu.matmul %393, %395, %cst_388 {dimension_numbers = #tpu.dot_dimension_numbers<[1], [0], [0], [1], [0, 0, 1, 1], [], []>} : vector<56x128xbf16>, vector<128x128xbf16>, vector<56x128xf32> -> vector<56x128xf32>
    %397 = arith.addf %392, %396 : vector<56x128xf32>
    %cst_389 = arith.constant 0.000000e+00 : f32
    %398 = vector.broadcast %cst_389 : f32 to vector<56x128xf32>
    %399 = arith.cmpf oge, %397, %398 : vector<56x128xf32>
    %cst_390 = arith.constant 2.000000e-01 : f32
    %400 = vector.broadcast %cst_390 : f32 to vector<56x128xf32>
    %401 = arith.mulf %400, %397 : vector<56x128xf32>
    %402 = arith.select %399, %397, %401 : vector<56x128xi1>, vector<56x128xf32>
    %403 = arith.truncf %402 : vector<56x128xf32> to vector<56x128xbf16>
    %c0_391 = arith.constant 0 : index
    %c0_392 = arith.constant 0 : index
    %404 = vector.load %arg14[%c0_391, %c0_392] : memref<256x128xbf16, #tpu.memory_space<vmem>>, vector<56x128xbf16>
    tpu.vector_store %arg14[%c0_391, %c0_392], %403 {strides = array<i32>} : memref<256x128xbf16, #tpu.memory_space<vmem>>, vector<56x128xbf16>,
    %c7_393 = arith.constant 7 : index
    %c0_394 = arith.constant 0 : index
    %405 = vector.load %arg14[%c7_393, %c0_394] : memref<256x128xbf16, #tpu.memory_space<vmem>>, vector<4x128xbf16>
    %c16_395 = arith.constant 16 : index
    %c0_396 = arith.constant 0 : index
    %406 = vector.load %arg18[%c16_395, %c0_396] : memref<80x128xbf16, #tpu.memory_space<vmem>>, vector<4x128xbf16>
    tpu.vector_store %arg18[%c16_395, %c0_396], %405 {strides = array<i32>} : memref<80x128xbf16, #tpu.memory_space<vmem>>, vector<4x128xbf16>,
    %c15_397 = arith.constant 15 : index
    %c0_398 = arith.constant 0 : index
    %407 = vector.load %arg14[%c15_397, %c0_398] : memref<256x128xbf16, #tpu.memory_space<vmem>>, vector<4x128xbf16>
    %c24_399 = arith.constant 24 : index
    %c0_400 = arith.constant 0 : index
    %408 = vector.load %arg18[%c24_399, %c0_400] : memref<80x128xbf16, #tpu.memory_space<vmem>>, vector<4x128xbf16>
    tpu.vector_store %arg18[%c24_399, %c0_400], %407 {strides = array<i32>} : memref<80x128xbf16, #tpu.memory_space<vmem>>, vector<4x128xbf16>,
    %c23 = arith.constant 23 : index
    %c0_401 = arith.constant 0 : index
    %409 = vector.load %arg14[%c23, %c0_401] : memref<256x128xbf16, #tpu.memory_space<vmem>>, vector<4x128xbf16>
    %c32_402 = arith.constant 32 : index
    %c0_403 = arith.constant 0 : index
    %410 = vector.load %arg18[%c32_402, %c0_403] : memref<80x128xbf16, #tpu.memory_space<vmem>>, vector<4x128xbf16>
    tpu.vector_store %arg18[%c32_402, %c0_403], %409 {strides = array<i32>} : memref<80x128xbf16, #tpu.memory_space<vmem>>, vector<4x128xbf16>,
    %c31_404 = arith.constant 31 : index
    %c0_405 = arith.constant 0 : index
    %411 = vector.load %arg14[%c31_404, %c0_405] : memref<256x128xbf16, #tpu.memory_space<vmem>>, vector<4x128xbf16>
    %c40_406 = arith.constant 40 : index
    %c0_407 = arith.constant 0 : index
    %412 = vector.load %arg18[%c40_406, %c0_407] : memref<80x128xbf16, #tpu.memory_space<vmem>>, vector<4x128xbf16>
    tpu.vector_store %arg18[%c40_406, %c0_407], %411 {strides = array<i32>} : memref<80x128xbf16, #tpu.memory_space<vmem>>, vector<4x128xbf16>,
    %c0_408 = arith.constant 0 : index
    %c0_409 = arith.constant 0 : index
    %413 = vector.load %arg18[%c0_408, %c0_409] : memref<80x128xbf16, #tpu.memory_space<vmem>>, vector<56x128xbf16>
    %c0_410 = arith.constant 0 : index
    %c0_411 = arith.constant 0 : index
    %c0_412 = arith.constant 0 : index
    %414 = vector.load %arg7[%c0_410, %c0_411, %c0_412] : memref<9x128x128xbf16, #tpu.memory_space<vmem>>, vector<1x128x128xbf16>
    %415 = vector.shape_cast %414 : vector<1x128x128xbf16> to vector<128x128xbf16>
    %cst_413 = arith.constant dense<0.000000e+00> : vector<56x128xf32>
    %416 = tpu.matmul %413, %415, %cst_413 {dimension_numbers = #tpu.dot_dimension_numbers<[1], [0], [0], [1], [0, 0, 1, 1], [], []>} : vector<56x128xbf16>, vector<128x128xbf16>, vector<56x128xf32> -> vector<56x128xf32>
    %c1_414 = arith.constant 1 : index
    %c0_415 = arith.constant 0 : index
    %417 = vector.load %arg18[%c1_414, %c0_415] : memref<80x128xbf16, #tpu.memory_space<vmem>>, vector<56x128xbf16>
    %c1_416 = arith.constant 1 : index
    %c0_417 = arith.constant 0 : index
    %c0_418 = arith.constant 0 : index
    %418 = vector.load %arg7[%c1_416, %c0_417, %c0_418] : memref<9x128x128xbf16, #tpu.memory_space<vmem>>, vector<1x128x128xbf16>
    %419 = vector.shape_cast %418 : vector<1x128x128xbf16> to vector<128x128xbf16>
    %cst_419 = arith.constant dense<0.000000e+00> : vector<56x128xf32>
    %420 = tpu.matmul %417, %419, %cst_419 {dimension_numbers = #tpu.dot_dimension_numbers<[1], [0], [0], [1], [0, 0, 1, 1], [], []>} : vector<56x128xbf16>, vector<128x128xbf16>, vector<56x128xf32> -> vector<56x128xf32>
    %421 = arith.addf %416, %420 : vector<56x128xf32>
    %c2_420 = arith.constant 2 : index
    %c0_421 = arith.constant 0 : index
    %422 = vector.load %arg18[%c2_420, %c0_421] : memref<80x128xbf16, #tpu.memory_space<vmem>>, vector<56x128xbf16>
    %c2_422 = arith.constant 2 : index
    %c0_423 = arith.constant 0 : index
    %c0_424 = arith.constant 0 : index
    %423 = vector.load %arg7[%c2_422, %c0_423, %c0_424] : memref<9x128x128xbf16, #tpu.memory_space<vmem>>, vector<1x128x128xbf16>
    %424 = vector.shape_cast %423 : vector<1x128x128xbf16> to vector<128x128xbf16>
    %cst_425 = arith.constant dense<0.000000e+00> : vector<56x128xf32>
    %425 = tpu.matmul %422, %424, %cst_425 {dimension_numbers = #tpu.dot_dimension_numbers<[1], [0], [0], [1], [0, 0, 1, 1], [], []>} : vector<56x128xbf16>, vector<128x128xbf16>, vector<56x128xf32> -> vector<56x128xf32>
    %426 = arith.addf %421, %425 : vector<56x128xf32>
    %c8_426 = arith.constant 8 : index
    %c0_427 = arith.constant 0 : index
    %427 = vector.load %arg18[%c8_426, %c0_427] : memref<80x128xbf16, #tpu.memory_space<vmem>>, vector<56x128xbf16>
    %c3_428 = arith.constant 3 : index
    %c0_429 = arith.constant 0 : index
    %c0_430 = arith.constant 0 : index
    %428 = vector.load %arg7[%c3_428, %c0_429, %c0_430] : memref<9x128x128xbf16, #tpu.memory_space<vmem>>, vector<1x128x128xbf16>
    %429 = vector.shape_cast %428 : vector<1x128x128xbf16> to vector<128x128xbf16>
    %cst_431 = arith.constant dense<0.000000e+00> : vector<56x128xf32>
    %430 = tpu.matmul %427, %429, %cst_431 {dimension_numbers = #tpu.dot_dimension_numbers<[1], [0], [0], [1], [0, 0, 1, 1], [], []>} : vector<56x128xbf16>, vector<128x128xbf16>, vector<56x128xf32> -> vector<56x128xf32>
    %431 = arith.addf %426, %430 : vector<56x128xf32>
    %c9_432 = arith.constant 9 : index
    %c0_433 = arith.constant 0 : index
    %432 = vector.load %arg18[%c9_432, %c0_433] : memref<80x128xbf16, #tpu.memory_space<vmem>>, vector<56x128xbf16>
    %c4_434 = arith.constant 4 : index
    %c0_435 = arith.constant 0 : index
    %c0_436 = arith.constant 0 : index
    %433 = vector.load %arg7[%c4_434, %c0_435, %c0_436] : memref<9x128x128xbf16, #tpu.memory_space<vmem>>, vector<1x128x128xbf16>
    %434 = vector.shape_cast %433 : vector<1x128x128xbf16> to vector<128x128xbf16>
    %cst_437 = arith.constant dense<0.000000e+00> : vector<56x128xf32>
    %435 = tpu.matmul %432, %434, %cst_437 {dimension_numbers = #tpu.dot_dimension_numbers<[1], [0], [0], [1], [0, 0, 1, 1], [], []>} : vector<56x128xbf16>, vector<128x128xbf16>, vector<56x128xf32> -> vector<56x128xf32>
    %436 = arith.addf %431, %435 : vector<56x128xf32>
    %c10_438 = arith.constant 10 : index
    %c0_439 = arith.constant 0 : index
    %437 = vector.load %arg18[%c10_438, %c0_439] : memref<80x128xbf16, #tpu.memory_space<vmem>>, vector<56x128xbf16>
    %c5_440 = arith.constant 5 : index
    %c0_441 = arith.constant 0 : index
    %c0_442 = arith.constant 0 : index
    %438 = vector.load %arg7[%c5_440, %c0_441, %c0_442] : memref<9x128x128xbf16, #tpu.memory_space<vmem>>, vector<1x128x128xbf16>
    %439 = vector.shape_cast %438 : vector<1x128x128xbf16> to vector<128x128xbf16>
    %cst_443 = arith.constant dense<0.000000e+00> : vector<56x128xf32>
    %440 = tpu.matmul %437, %439, %cst_443 {dimension_numbers = #tpu.dot_dimension_numbers<[1], [0], [0], [1], [0, 0, 1, 1], [], []>} : vector<56x128xbf16>, vector<128x128xbf16>, vector<56x128xf32> -> vector<56x128xf32>
    %441 = arith.addf %436, %440 : vector<56x128xf32>
    %c16_444 = arith.constant 16 : index
    %c0_445 = arith.constant 0 : index
    %442 = vector.load %arg18[%c16_444, %c0_445] : memref<80x128xbf16, #tpu.memory_space<vmem>>, vector<56x128xbf16>
    %c6_446 = arith.constant 6 : index
    %c0_447 = arith.constant 0 : index
    %c0_448 = arith.constant 0 : index
    %443 = vector.load %arg7[%c6_446, %c0_447, %c0_448] : memref<9x128x128xbf16, #tpu.memory_space<vmem>>, vector<1x128x128xbf16>
    %444 = vector.shape_cast %443 : vector<1x128x128xbf16> to vector<128x128xbf16>
    %cst_449 = arith.constant dense<0.000000e+00> : vector<56x128xf32>
    %445 = tpu.matmul %442, %444, %cst_449 {dimension_numbers = #tpu.dot_dimension_numbers<[1], [0], [0], [1], [0, 0, 1, 1], [], []>} : vector<56x128xbf16>, vector<128x128xbf16>, vector<56x128xf32> -> vector<56x128xf32>
    %446 = arith.addf %441, %445 : vector<56x128xf32>
    %c17_450 = arith.constant 17 : index
    %c0_451 = arith.constant 0 : index
    %447 = vector.load %arg18[%c17_450, %c0_451] : memref<80x128xbf16, #tpu.memory_space<vmem>>, vector<56x128xbf16>
    %c7_452 = arith.constant 7 : index
    %c0_453 = arith.constant 0 : index
    %c0_454 = arith.constant 0 : index
    %448 = vector.load %arg7[%c7_452, %c0_453, %c0_454] : memref<9x128x128xbf16, #tpu.memory_space<vmem>>, vector<1x128x128xbf16>
    %449 = vector.shape_cast %448 : vector<1x128x128xbf16> to vector<128x128xbf16>
    %cst_455 = arith.constant dense<0.000000e+00> : vector<56x128xf32>
    %450 = tpu.matmul %447, %449, %cst_455 {dimension_numbers = #tpu.dot_dimension_numbers<[1], [0], [0], [1], [0, 0, 1, 1], [], []>} : vector<56x128xbf16>, vector<128x128xbf16>, vector<56x128xf32> -> vector<56x128xf32>
    %451 = arith.addf %446, %450 : vector<56x128xf32>
    %c18_456 = arith.constant 18 : index
    %c0_457 = arith.constant 0 : index
    %452 = vector.load %arg18[%c18_456, %c0_457] : memref<80x128xbf16, #tpu.memory_space<vmem>>, vector<56x128xbf16>
    %c8_458 = arith.constant 8 : index
    %c0_459 = arith.constant 0 : index
    %c0_460 = arith.constant 0 : index
    %453 = vector.load %arg7[%c8_458, %c0_459, %c0_460] : memref<9x128x128xbf16, #tpu.memory_space<vmem>>, vector<1x128x128xbf16>
    %454 = vector.shape_cast %453 : vector<1x128x128xbf16> to vector<128x128xbf16>
    %cst_461 = arith.constant dense<0.000000e+00> : vector<56x128xf32>
    %455 = tpu.matmul %452, %454, %cst_461 {dimension_numbers = #tpu.dot_dimension_numbers<[1], [0], [0], [1], [0, 0, 1, 1], [], []>} : vector<56x128xbf16>, vector<128x128xbf16>, vector<56x128xf32> -> vector<56x128xf32>
    %456 = arith.addf %451, %455 : vector<56x128xf32>
    %c9_462 = arith.constant 9 : index
    %c0_463 = arith.constant 0 : index
    %457 = vector.load %arg17[%c9_462, %c0_463] : memref<80x128xbf16, #tpu.memory_space<vmem>>, vector<56x128xbf16>
    %c0_464 = arith.constant 0 : index
    %c0_465 = arith.constant 0 : index
    %458 = vector.load %arg8[%c0_464, %c0_465] : memref<128x128xbf16, #tpu.memory_space<vmem>>, vector<128x128xbf16>
    %cst_466 = arith.constant dense<0.000000e+00> : vector<56x128xf32>
    %459 = tpu.matmul %457, %458, %cst_466 {dimension_numbers = #tpu.dot_dimension_numbers<[1], [0], [0], [1], [0, 0, 1, 1], [], []>} : vector<56x128xbf16>, vector<128x128xbf16>, vector<56x128xf32> -> vector<56x128xf32>
    %460 = arith.addf %456, %459 : vector<56x128xf32>
    %cst_467 = arith.constant 0.000000e+00 : f32
    %461 = vector.broadcast %cst_467 : f32 to vector<56x128xf32>
    %462 = arith.cmpf oge, %460, %461 : vector<56x128xf32>
    %cst_468 = arith.constant 2.000000e-01 : f32
    %463 = vector.broadcast %cst_468 : f32 to vector<56x128xf32>
    %464 = arith.mulf %463, %460 : vector<56x128xf32>
    %465 = arith.select %462, %460, %464 : vector<56x128xi1>, vector<56x128xf32>
    %466 = arith.truncf %465 : vector<56x128xf32> to vector<56x128xbf16>
    %c0_469 = arith.constant 0 : index
    %c0_470 = arith.constant 0 : index
    %467 = vector.load %arg14[%c0_469, %c0_470] : memref<256x128xbf16, #tpu.memory_space<vmem>>, vector<56x128xbf16>
    tpu.vector_store %arg14[%c0_469, %c0_470], %466 {strides = array<i32>} : memref<256x128xbf16, #tpu.memory_space<vmem>>, vector<56x128xbf16>,
    %468 = tpu.iota {dimensions = array<i32: 0>} : vector<8x32xi32>
    %469 = tpu.iota {dimensions = array<i32: 1>} : vector<8x32xi32>
    %c2_i32_471 = arith.constant 2 : i32
    %470 = vector.broadcast %c2_i32_471 : i32 to vector<8x32xi32>
    %471 = arith.muli %470, %468 : vector<8x32xi32>
    %472 = arith.subi %469, %471 : vector<8x32xi32>
    %c0_i32_472 = arith.constant 0 : i32
    %473 = vector.broadcast %c0_i32_472 : i32 to vector<8x32xi32>
    %474 = arith.cmpi eq, %472, %473 : vector<8x32xi32>
    %c1_i32_473 = arith.constant 1 : i32
    %475 = vector.broadcast %c1_i32_473 : i32 to vector<8x32xi32>
    %476 = arith.cmpi eq, %472, %475 : vector<8x32xi32>
    %477 = arith.ori %474, %476 : vector<8x32xi1>
    %c8_i32_474 = arith.constant 8 : i32
    %478 = vector.broadcast %c8_i32_474 : i32 to vector<8x32xi32>
    %479 = arith.cmpi eq, %472, %478 : vector<8x32xi32>
    %480 = arith.ori %477, %479 : vector<8x32xi1>
    %c9_i32 = arith.constant 9 : i32
    %481 = vector.broadcast %c9_i32 : i32 to vector<8x32xi32>
    %482 = arith.cmpi eq, %472, %481 : vector<8x32xi32>
    %483 = arith.ori %480, %482 : vector<8x32xi1>
    %c2_i32_475 = arith.constant 2 : i32
    %484 = vector.broadcast %c2_i32_475 : i32 to vector<8x32xi32>
    %485 = arith.cmpi slt, %468, %484 : vector<8x32xi32>
    %486 = arith.andi %483, %485 : vector<8x32xi1>
    %cst_476 = arith.constant 2.500000e-01 : f32
    %cst_477 = arith.constant 0.000000e+00 : f32
    %487 = vector.broadcast %cst_476 : f32 to vector<8x32xf32>
    %488 = vector.broadcast %cst_477 : f32 to vector<8x32xf32>
    %489 = arith.select %486, %487, %488 : vector<8x32xi1>, vector<8x32xf32>
    %490 = arith.truncf %489 : vector<8x32xf32> to vector<8x32xbf16>
    %c7_478 = arith.constant 7 : index
    %c0_479 = arith.constant 0 : index
    %491 = vector.load %arg14[%c7_478, %c0_479] : memref<256x128xbf16, #tpu.memory_space<vmem>>, vector<32x128xbf16>
    %cst_480 = arith.constant dense<0.000000e+00> : vector<8x128xf32>
    %492 = tpu.matmul %490, %491, %cst_480 {dimension_numbers = #tpu.dot_dimension_numbers<[1], [0], [0], [1], [0, 0, 1, 1], [], []>} : vector<8x32xbf16>, vector<32x128xbf16>, vector<8x128xf32> -> vector<8x128xf32>
    %493 = arith.truncf %492 : vector<8x128xf32> to vector<8x128xbf16>
    %c16_481 = arith.constant 16 : index
    %c0_482 = arith.constant 0 : index
    %494 = vector.load %arg19[%c16_481, %c0_482] : memref<64x128xbf16, #tpu.memory_space<vmem>>, vector<8x128xbf16>
    tpu.vector_store %arg19[%c16_481, %c0_482], %493 {strides = array<i32>} : memref<64x128xbf16, #tpu.memory_space<vmem>>, vector<8x128xbf16>,
    %c23_483 = arith.constant 23 : index
    %c0_484 = arith.constant 0 : index
    %495 = vector.load %arg14[%c23_483, %c0_484] : memref<256x128xbf16, #tpu.memory_space<vmem>>, vector<32x128xbf16>
    %cst_485 = arith.constant dense<0.000000e+00> : vector<8x128xf32>
    %496 = tpu.matmul %490, %495, %cst_485 {dimension_numbers = #tpu.dot_dimension_numbers<[1], [0], [0], [1], [0, 0, 1, 1], [], []>} : vector<8x32xbf16>, vector<32x128xbf16>, vector<8x128xf32> -> vector<8x128xf32>
    %497 = arith.truncf %496 : vector<8x128xf32> to vector<8x128xbf16>
    %c24_486 = arith.constant 24 : index
    %c0_487 = arith.constant 0 : index
    %498 = vector.load %arg19[%c24_486, %c0_487] : memref<64x128xbf16, #tpu.memory_space<vmem>>, vector<8x128xbf16>
    tpu.vector_store %arg19[%c24_486, %c0_487], %497 {strides = array<i32>} : memref<64x128xbf16, #tpu.memory_space<vmem>>, vector<8x128xbf16>,
    %c0_488 = arith.constant 0 : index
    %c0_489 = arith.constant 0 : index
    %499 = vector.load %arg19[%c0_488, %c0_489] : memref<64x128xbf16, #tpu.memory_space<vmem>>, vector<40x128xbf16>
    %c0_490 = arith.constant 0 : index
    %c0_491 = arith.constant 0 : index
    %c0_492 = arith.constant 0 : index
    %500 = vector.load %arg9[%c0_490, %c0_491, %c0_492] : memref<9x128x128xbf16, #tpu.memory_space<vmem>>, vector<1x128x128xbf16>
    %501 = vector.shape_cast %500 : vector<1x128x128xbf16> to vector<128x128xbf16>
    %cst_493 = arith.constant dense<0.000000e+00> : vector<40x128xf32>
    %502 = tpu.matmul %499, %501, %cst_493 {dimension_numbers = #tpu.dot_dimension_numbers<[1], [0], [0], [1], [0, 0, 1, 1], [], []>} : vector<40x128xbf16>, vector<128x128xbf16>, vector<40x128xf32> -> vector<40x128xf32>
    %c1_494 = arith.constant 1 : index
    %c0_495 = arith.constant 0 : index
    %503 = vector.load %arg19[%c1_494, %c0_495] : memref<64x128xbf16, #tpu.memory_space<vmem>>, vector<40x128xbf16>
    %c1_496 = arith.constant 1 : index
    %c0_497 = arith.constant 0 : index
    %c0_498 = arith.constant 0 : index
    %504 = vector.load %arg9[%c1_496, %c0_497, %c0_498] : memref<9x128x128xbf16, #tpu.memory_space<vmem>>, vector<1x128x128xbf16>
    %505 = vector.shape_cast %504 : vector<1x128x128xbf16> to vector<128x128xbf16>
    %cst_499 = arith.constant dense<0.000000e+00> : vector<40x128xf32>
    %506 = tpu.matmul %503, %505, %cst_499 {dimension_numbers = #tpu.dot_dimension_numbers<[1], [0], [0], [1], [0, 0, 1, 1], [], []>} : vector<40x128xbf16>, vector<128x128xbf16>, vector<40x128xf32> -> vector<40x128xf32>
    %507 = arith.addf %502, %506 : vector<40x128xf32>
    %c2_500 = arith.constant 2 : index
    %c0_501 = arith.constant 0 : index
    %508 = vector.load %arg19[%c2_500, %c0_501] : memref<64x128xbf16, #tpu.memory_space<vmem>>, vector<40x128xbf16>
    %c2_502 = arith.constant 2 : index
    %c0_503 = arith.constant 0 : index
    %c0_504 = arith.constant 0 : index
    %509 = vector.load %arg9[%c2_502, %c0_503, %c0_504] : memref<9x128x128xbf16, #tpu.memory_space<vmem>>, vector<1x128x128xbf16>
    %510 = vector.shape_cast %509 : vector<1x128x128xbf16> to vector<128x128xbf16>
    %cst_505 = arith.constant dense<0.000000e+00> : vector<40x128xf32>
    %511 = tpu.matmul %508, %510, %cst_505 {dimension_numbers = #tpu.dot_dimension_numbers<[1], [0], [0], [1], [0, 0, 1, 1], [], []>} : vector<40x128xbf16>, vector<128x128xbf16>, vector<40x128xf32> -> vector<40x128xf32>
    %512 = arith.addf %507, %511 : vector<40x128xf32>
    %c8_506 = arith.constant 8 : index
    %c0_507 = arith.constant 0 : index
    %513 = vector.load %arg19[%c8_506, %c0_507] : memref<64x128xbf16, #tpu.memory_space<vmem>>, vector<40x128xbf16>
    %c3_508 = arith.constant 3 : index
    %c0_509 = arith.constant 0 : index
    %c0_510 = arith.constant 0 : index
    %514 = vector.load %arg9[%c3_508, %c0_509, %c0_510] : memref<9x128x128xbf16, #tpu.memory_space<vmem>>, vector<1x128x128xbf16>
    %515 = vector.shape_cast %514 : vector<1x128x128xbf16> to vector<128x128xbf16>
    %cst_511 = arith.constant dense<0.000000e+00> : vector<40x128xf32>
    %516 = tpu.matmul %513, %515, %cst_511 {dimension_numbers = #tpu.dot_dimension_numbers<[1], [0], [0], [1], [0, 0, 1, 1], [], []>} : vector<40x128xbf16>, vector<128x128xbf16>, vector<40x128xf32> -> vector<40x128xf32>
    %517 = arith.addf %512, %516 : vector<40x128xf32>
    %c9_512 = arith.constant 9 : index
    %c0_513 = arith.constant 0 : index
    %518 = vector.load %arg19[%c9_512, %c0_513] : memref<64x128xbf16, #tpu.memory_space<vmem>>, vector<40x128xbf16>
    %c4_514 = arith.constant 4 : index
    %c0_515 = arith.constant 0 : index
    %c0_516 = arith.constant 0 : index
    %519 = vector.load %arg9[%c4_514, %c0_515, %c0_516] : memref<9x128x128xbf16, #tpu.memory_space<vmem>>, vector<1x128x128xbf16>
    %520 = vector.shape_cast %519 : vector<1x128x128xbf16> to vector<128x128xbf16>
    %cst_517 = arith.constant dense<0.000000e+00> : vector<40x128xf32>
    %521 = tpu.matmul %518, %520, %cst_517 {dimension_numbers = #tpu.dot_dimension_numbers<[1], [0], [0], [1], [0, 0, 1, 1], [], []>} : vector<40x128xbf16>, vector<128x128xbf16>, vector<40x128xf32> -> vector<40x128xf32>
    %522 = arith.addf %517, %521 : vector<40x128xf32>
    %c10_518 = arith.constant 10 : index
    %c0_519 = arith.constant 0 : index
    %523 = vector.load %arg19[%c10_518, %c0_519] : memref<64x128xbf16, #tpu.memory_space<vmem>>, vector<40x128xbf16>
    %c5_520 = arith.constant 5 : index
    %c0_521 = arith.constant 0 : index
    %c0_522 = arith.constant 0 : index
    %524 = vector.load %arg9[%c5_520, %c0_521, %c0_522] : memref<9x128x128xbf16, #tpu.memory_space<vmem>>, vector<1x128x128xbf16>
    %525 = vector.shape_cast %524 : vector<1x128x128xbf16> to vector<128x128xbf16>
    %cst_523 = arith.constant dense<0.000000e+00> : vector<40x128xf32>
    %526 = tpu.matmul %523, %525, %cst_523 {dimension_numbers = #tpu.dot_dimension_numbers<[1], [0], [0], [1], [0, 0, 1, 1], [], []>} : vector<40x128xbf16>, vector<128x128xbf16>, vector<40x128xf32> -> vector<40x128xf32>
    %527 = arith.addf %522, %526 : vector<40x128xf32>
    %c16_524 = arith.constant 16 : index
    %c0_525 = arith.constant 0 : index
    %528 = vector.load %arg19[%c16_524, %c0_525] : memref<64x128xbf16, #tpu.memory_space<vmem>>, vector<40x128xbf16>
    %c6_526 = arith.constant 6 : index
    %c0_527 = arith.constant 0 : index
    %c0_528 = arith.constant 0 : index
    %529 = vector.load %arg9[%c6_526, %c0_527, %c0_528] : memref<9x128x128xbf16, #tpu.memory_space<vmem>>, vector<1x128x128xbf16>
    %530 = vector.shape_cast %529 : vector<1x128x128xbf16> to vector<128x128xbf16>
    %cst_529 = arith.constant dense<0.000000e+00> : vector<40x128xf32>
    %531 = tpu.matmul %528, %530, %cst_529 {dimension_numbers = #tpu.dot_dimension_numbers<[1], [0], [0], [1], [0, 0, 1, 1], [], []>} : vector<40x128xbf16>, vector<128x128xbf16>, vector<40x128xf32> -> vector<40x128xf32>
    %532 = arith.addf %527, %531 : vector<40x128xf32>
    %c17_530 = arith.constant 17 : index
    %c0_531 = arith.constant 0 : index
    %533 = vector.load %arg19[%c17_530, %c0_531] : memref<64x128xbf16, #tpu.memory_space<vmem>>, vector<40x128xbf16>
    %c7_532 = arith.constant 7 : index
    %c0_533 = arith.constant 0 : index
    %c0_534 = arith.constant 0 : index
    %534 = vector.load %arg9[%c7_532, %c0_533, %c0_534] : memref<9x128x128xbf16, #tpu.memory_space<vmem>>, vector<1x128x128xbf16>
    %535 = vector.shape_cast %534 : vector<1x128x128xbf16> to vector<128x128xbf16>
    %cst_535 = arith.constant dense<0.000000e+00> : vector<40x128xf32>
    %536 = tpu.matmul %533, %535, %cst_535 {dimension_numbers = #tpu.dot_dimension_numbers<[1], [0], [0], [1], [0, 0, 1, 1], [], []>} : vector<40x128xbf16>, vector<128x128xbf16>, vector<40x128xf32> -> vector<40x128xf32>
    %537 = arith.addf %532, %536 : vector<40x128xf32>
    %c18_536 = arith.constant 18 : index
    %c0_537 = arith.constant 0 : index
    %538 = vector.load %arg19[%c18_536, %c0_537] : memref<64x128xbf16, #tpu.memory_space<vmem>>, vector<40x128xbf16>
    %c8_538 = arith.constant 8 : index
    %c0_539 = arith.constant 0 : index
    %c0_540 = arith.constant 0 : index
    %539 = vector.load %arg9[%c8_538, %c0_539, %c0_540] : memref<9x128x128xbf16, #tpu.memory_space<vmem>>, vector<1x128x128xbf16>
    %540 = vector.shape_cast %539 : vector<1x128x128xbf16> to vector<128x128xbf16>
    %cst_541 = arith.constant dense<0.000000e+00> : vector<40x128xf32>
    %541 = tpu.matmul %538, %540, %cst_541 {dimension_numbers = #tpu.dot_dimension_numbers<[1], [0], [0], [1], [0, 0, 1, 1], [], []>} : vector<40x128xbf16>, vector<128x128xbf16>, vector<40x128xf32> -> vector<40x128xf32>
    %542 = arith.addf %537, %541 : vector<40x128xf32>
    %cst_542 = arith.constant 0.000000e+00 : f32
    %543 = vector.broadcast %cst_542 : f32 to vector<40x128xf32>
    %544 = arith.cmpf oge, %542, %543 : vector<40x128xf32>
    %cst_543 = arith.constant 2.000000e-01 : f32
    %545 = vector.broadcast %cst_543 : f32 to vector<40x128xf32>
    %546 = arith.mulf %545, %542 : vector<40x128xf32>
    %547 = arith.select %544, %542, %546 : vector<40x128xi1>, vector<40x128xf32>
    %548 = arith.truncf %547 : vector<40x128xf32> to vector<40x128xbf16>
    %c0_544 = arith.constant 0 : index
    %c0_545 = arith.constant 0 : index
    %549 = vector.load %arg14[%c0_544, %c0_545] : memref<256x128xbf16, #tpu.memory_space<vmem>>, vector<40x128xbf16>
    tpu.vector_store %arg14[%c0_544, %c0_545], %548 {strides = array<i32>} : memref<256x128xbf16, #tpu.memory_space<vmem>>, vector<40x128xbf16>,
    %c7_546 = arith.constant 7 : index
    %c0_547 = arith.constant 0 : index
    %550 = vector.load %arg14[%c7_546, %c0_547] : memref<256x128xbf16, #tpu.memory_space<vmem>>, vector<2x128xbf16>
    %c16_548 = arith.constant 16 : index
    %c0_549 = arith.constant 0 : index
    %551 = vector.load %arg20[%c16_548, %c0_549] : memref<64x128xbf16, #tpu.memory_space<vmem>>, vector<2x128xbf16>
    tpu.vector_store %arg20[%c16_548, %c0_549], %550 {strides = array<i32>} : memref<64x128xbf16, #tpu.memory_space<vmem>>, vector<2x128xbf16>,
    %c15_550 = arith.constant 15 : index
    %c0_551 = arith.constant 0 : index
    %552 = vector.load %arg14[%c15_550, %c0_551] : memref<256x128xbf16, #tpu.memory_space<vmem>>, vector<2x128xbf16>
    %c24_552 = arith.constant 24 : index
    %c0_553 = arith.constant 0 : index
    %553 = vector.load %arg20[%c24_552, %c0_553] : memref<64x128xbf16, #tpu.memory_space<vmem>>, vector<2x128xbf16>
    tpu.vector_store %arg20[%c24_552, %c0_553], %552 {strides = array<i32>} : memref<64x128xbf16, #tpu.memory_space<vmem>>, vector<2x128xbf16>,
    %c0_554 = arith.constant 0 : index
    %c0_555 = arith.constant 0 : index
    %554 = vector.load %arg20[%c0_554, %c0_555] : memref<64x128xbf16, #tpu.memory_space<vmem>>, vector<40x128xbf16>
    %c0_556 = arith.constant 0 : index
    %c0_557 = arith.constant 0 : index
    %c0_558 = arith.constant 0 : index
    %555 = vector.load %arg10[%c0_556, %c0_557, %c0_558] : memref<9x128x128xbf16, #tpu.memory_space<vmem>>, vector<1x128x128xbf16>
    %556 = vector.shape_cast %555 : vector<1x128x128xbf16> to vector<128x128xbf16>
    %cst_559 = arith.constant dense<0.000000e+00> : vector<40x128xf32>
    %557 = tpu.matmul %554, %556, %cst_559 {dimension_numbers = #tpu.dot_dimension_numbers<[1], [0], [0], [1], [0, 0, 1, 1], [], []>} : vector<40x128xbf16>, vector<128x128xbf16>, vector<40x128xf32> -> vector<40x128xf32>
    %c1_560 = arith.constant 1 : index
    %c0_561 = arith.constant 0 : index
    %558 = vector.load %arg20[%c1_560, %c0_561] : memref<64x128xbf16, #tpu.memory_space<vmem>>, vector<40x128xbf16>
    %c1_562 = arith.constant 1 : index
    %c0_563 = arith.constant 0 : index
    %c0_564 = arith.constant 0 : index
    %559 = vector.load %arg10[%c1_562, %c0_563, %c0_564] : memref<9x128x128xbf16, #tpu.memory_space<vmem>>, vector<1x128x128xbf16>
    %560 = vector.shape_cast %559 : vector<1x128x128xbf16> to vector<128x128xbf16>
    %cst_565 = arith.constant dense<0.000000e+00> : vector<40x128xf32>
    %561 = tpu.matmul %558, %560, %cst_565 {dimension_numbers = #tpu.dot_dimension_numbers<[1], [0], [0], [1], [0, 0, 1, 1], [], []>} : vector<40x128xbf16>, vector<128x128xbf16>, vector<40x128xf32> -> vector<40x128xf32>
    %562 = arith.addf %557, %561 : vector<40x128xf32>
    %c2_566 = arith.constant 2 : index
    %c0_567 = arith.constant 0 : index
    %563 = vector.load %arg20[%c2_566, %c0_567] : memref<64x128xbf16, #tpu.memory_space<vmem>>, vector<40x128xbf16>
    %c2_568 = arith.constant 2 : index
    %c0_569 = arith.constant 0 : index
    %c0_570 = arith.constant 0 : index
    %564 = vector.load %arg10[%c2_568, %c0_569, %c0_570] : memref<9x128x128xbf16, #tpu.memory_space<vmem>>, vector<1x128x128xbf16>
    %565 = vector.shape_cast %564 : vector<1x128x128xbf16> to vector<128x128xbf16>
    %cst_571 = arith.constant dense<0.000000e+00> : vector<40x128xf32>
    %566 = tpu.matmul %563, %565, %cst_571 {dimension_numbers = #tpu.dot_dimension_numbers<[1], [0], [0], [1], [0, 0, 1, 1], [], []>} : vector<40x128xbf16>, vector<128x128xbf16>, vector<40x128xf32> -> vector<40x128xf32>
    %567 = arith.addf %562, %566 : vector<40x128xf32>
    %c8_572 = arith.constant 8 : index
    %c0_573 = arith.constant 0 : index
    %568 = vector.load %arg20[%c8_572, %c0_573] : memref<64x128xbf16, #tpu.memory_space<vmem>>, vector<40x128xbf16>
    %c3_574 = arith.constant 3 : index
    %c0_575 = arith.constant 0 : index
    %c0_576 = arith.constant 0 : index
    %569 = vector.load %arg10[%c3_574, %c0_575, %c0_576] : memref<9x128x128xbf16, #tpu.memory_space<vmem>>, vector<1x128x128xbf16>
    %570 = vector.shape_cast %569 : vector<1x128x128xbf16> to vector<128x128xbf16>
    %cst_577 = arith.constant dense<0.000000e+00> : vector<40x128xf32>
    %571 = tpu.matmul %568, %570, %cst_577 {dimension_numbers = #tpu.dot_dimension_numbers<[1], [0], [0], [1], [0, 0, 1, 1], [], []>} : vector<40x128xbf16>, vector<128x128xbf16>, vector<40x128xf32> -> vector<40x128xf32>
    %572 = arith.addf %567, %571 : vector<40x128xf32>
    %c9_578 = arith.constant 9 : index
    %c0_579 = arith.constant 0 : index
    %573 = vector.load %arg20[%c9_578, %c0_579] : memref<64x128xbf16, #tpu.memory_space<vmem>>, vector<40x128xbf16>
    %c4_580 = arith.constant 4 : index
    %c0_581 = arith.constant 0 : index
    %c0_582 = arith.constant 0 : index
    %574 = vector.load %arg10[%c4_580, %c0_581, %c0_582] : memref<9x128x128xbf16, #tpu.memory_space<vmem>>, vector<1x128x128xbf16>
    %575 = vector.shape_cast %574 : vector<1x128x128xbf16> to vector<128x128xbf16>
    %cst_583 = arith.constant dense<0.000000e+00> : vector<40x128xf32>
    %576 = tpu.matmul %573, %575, %cst_583 {dimension_numbers = #tpu.dot_dimension_numbers<[1], [0], [0], [1], [0, 0, 1, 1], [], []>} : vector<40x128xbf16>, vector<128x128xbf16>, vector<40x128xf32> -> vector<40x128xf32>
    %577 = arith.addf %572, %576 : vector<40x128xf32>
    %c10_584 = arith.constant 10 : index
    %c0_585 = arith.constant 0 : index
    %578 = vector.load %arg20[%c10_584, %c0_585] : memref<64x128xbf16, #tpu.memory_space<vmem>>, vector<40x128xbf16>
    %c5_586 = arith.constant 5 : index
    %c0_587 = arith.constant 0 : index
    %c0_588 = arith.constant 0 : index
    %579 = vector.load %arg10[%c5_586, %c0_587, %c0_588] : memref<9x128x128xbf16, #tpu.memory_space<vmem>>, vector<1x128x128xbf16>
    %580 = vector.shape_cast %579 : vector<1x128x128xbf16> to vector<128x128xbf16>
    %cst_589 = arith.constant dense<0.000000e+00> : vector<40x128xf32>
    %581 = tpu.matmul %578, %580, %cst_589 {dimension_numbers = #tpu.dot_dimension_numbers<[1], [0], [0], [1], [0, 0, 1, 1], [], []>} : vector<40x128xbf16>, vector<128x128xbf16>, vector<40x128xf32> -> vector<40x128xf32>
    %582 = arith.addf %577, %581 : vector<40x128xf32>
    %c16_590 = arith.constant 16 : index
    %c0_591 = arith.constant 0 : index
    %583 = vector.load %arg20[%c16_590, %c0_591] : memref<64x128xbf16, #tpu.memory_space<vmem>>, vector<40x128xbf16>
    %c6_592 = arith.constant 6 : index
    %c0_593 = arith.constant 0 : index
    %c0_594 = arith.constant 0 : index
    %584 = vector.load %arg10[%c6_592, %c0_593, %c0_594] : memref<9x128x128xbf16, #tpu.memory_space<vmem>>, vector<1x128x128xbf16>
    %585 = vector.shape_cast %584 : vector<1x128x128xbf16> to vector<128x128xbf16>
    %cst_595 = arith.constant dense<0.000000e+00> : vector<40x128xf32>
    %586 = tpu.matmul %583, %585, %cst_595 {dimension_numbers = #tpu.dot_dimension_numbers<[1], [0], [0], [1], [0, 0, 1, 1], [], []>} : vector<40x128xbf16>, vector<128x128xbf16>, vector<40x128xf32> -> vector<40x128xf32>
    %587 = arith.addf %582, %586 : vector<40x128xf32>
    %c17_596 = arith.constant 17 : index
    %c0_597 = arith.constant 0 : index
    %588 = vector.load %arg20[%c17_596, %c0_597] : memref<64x128xbf16, #tpu.memory_space<vmem>>, vector<40x128xbf16>
    %c7_598 = arith.constant 7 : index
    %c0_599 = arith.constant 0 : index
    %c0_600 = arith.constant 0 : index
    %589 = vector.load %arg10[%c7_598, %c0_599, %c0_600] : memref<9x128x128xbf16, #tpu.memory_space<vmem>>, vector<1x128x128xbf16>
    %590 = vector.shape_cast %589 : vector<1x128x128xbf16> to vector<128x128xbf16>
    %cst_601 = arith.constant dense<0.000000e+00> : vector<40x128xf32>
    %591 = tpu.matmul %588, %590, %cst_601 {dimension_numbers = #tpu.dot_dimension_numbers<[1], [0], [0], [1], [0, 0, 1, 1], [], []>} : vector<40x128xbf16>, vector<128x128xbf16>, vector<40x128xf32> -> vector<40x128xf32>
    %592 = arith.addf %587, %591 : vector<40x128xf32>
    %c18_602 = arith.constant 18 : index
    %c0_603 = arith.constant 0 : index
    %593 = vector.load %arg20[%c18_602, %c0_603] : memref<64x128xbf16, #tpu.memory_space<vmem>>, vector<40x128xbf16>
    %c8_604 = arith.constant 8 : index
    %c0_605 = arith.constant 0 : index
    %c0_606 = arith.constant 0 : index
    %594 = vector.load %arg10[%c8_604, %c0_605, %c0_606] : memref<9x128x128xbf16, #tpu.memory_space<vmem>>, vector<1x128x128xbf16>
    %595 = vector.shape_cast %594 : vector<1x128x128xbf16> to vector<128x128xbf16>
    %cst_607 = arith.constant dense<0.000000e+00> : vector<40x128xf32>
    %596 = tpu.matmul %593, %595, %cst_607 {dimension_numbers = #tpu.dot_dimension_numbers<[1], [0], [0], [1], [0, 0, 1, 1], [], []>} : vector<40x128xbf16>, vector<128x128xbf16>, vector<40x128xf32> -> vector<40x128xf32>
    %597 = arith.addf %592, %596 : vector<40x128xf32>
    %c9_608 = arith.constant 9 : index
    %c0_609 = arith.constant 0 : index
    %598 = vector.load %arg19[%c9_608, %c0_609] : memref<64x128xbf16, #tpu.memory_space<vmem>>, vector<40x128xbf16>
    %599 = arith.extf %598 : vector<40x128xbf16> to vector<40x128xf32>
    %600 = arith.addf %597, %599 : vector<40x128xf32>
    %cst_610 = arith.constant 0.000000e+00 : f32
    %601 = vector.broadcast %cst_610 : f32 to vector<40x128xf32>
    %602 = arith.cmpf oge, %600, %601 : vector<40x128xf32>
    %cst_611 = arith.constant 2.000000e-01 : f32
    %603 = vector.broadcast %cst_611 : f32 to vector<40x128xf32>
    %604 = arith.mulf %603, %600 : vector<40x128xf32>
    %605 = arith.select %602, %600, %604 : vector<40x128xi1>, vector<40x128xf32>
    %606 = arith.truncf %605 : vector<40x128xf32> to vector<40x128xbf16>
    %c0_612 = arith.constant 0 : index
    %c0_613 = arith.constant 0 : index
    %607 = vector.load %arg14[%c0_612, %c0_613] : memref<256x128xbf16, #tpu.memory_space<vmem>>, vector<40x128xbf16>
    tpu.vector_store %arg14[%c0_612, %c0_613], %606 {strides = array<i32>} : memref<256x128xbf16, #tpu.memory_space<vmem>>, vector<40x128xbf16>,
    %cst_614 = arith.constant 0.000000e+00 : f32
    %608 = vector.broadcast %cst_614 : f32 to vector<8x128xf32>
    %c7_615 = arith.constant 7 : index
    %c0_616 = arith.constant 0 : index
    %609 = vector.load %arg14[%c7_615, %c0_616] : memref<256x128xbf16, #tpu.memory_space<vmem>>, vector<8x128xbf16>
    %c0_617 = arith.constant 0 : index
    %c0_618 = arith.constant 0 : index
    %c0_619 = arith.constant 0 : index
    %610 = vector.load %arg11[%c0_617, %c0_618, %c0_619] : memref<4x128x128xbf16, #tpu.memory_space<vmem>>, vector<1x128x128xbf16>
    %611 = vector.shape_cast %610 : vector<1x128x128xbf16> to vector<128x128xbf16>
    %cst_620 = arith.constant dense<0.000000e+00> : vector<8x128xf32>
    %612 = tpu.matmul %609, %611, %cst_620 {dimension_numbers = #tpu.dot_dimension_numbers<[1], [0], [0], [1], [0, 0, 1, 1], [], []>} : vector<8x128xbf16>, vector<128x128xbf16>, vector<8x128xf32> -> vector<8x128xf32>
    %613 = arith.addf %608, %612 : vector<8x128xf32>
    %c8_621 = arith.constant 8 : index
    %c0_622 = arith.constant 0 : index
    %614 = vector.load %arg14[%c8_621, %c0_622] : memref<256x128xbf16, #tpu.memory_space<vmem>>, vector<8x128xbf16>
    %c1_623 = arith.constant 1 : index
    %c0_624 = arith.constant 0 : index
    %c0_625 = arith.constant 0 : index
    %615 = vector.load %arg11[%c1_623, %c0_624, %c0_625] : memref<4x128x128xbf16, #tpu.memory_space<vmem>>, vector<1x128x128xbf16>
    %616 = vector.shape_cast %615 : vector<1x128x128xbf16> to vector<128x128xbf16>
    %cst_626 = arith.constant dense<0.000000e+00> : vector<8x128xf32>
    %617 = tpu.matmul %614, %616, %cst_626 {dimension_numbers = #tpu.dot_dimension_numbers<[1], [0], [0], [1], [0, 0, 1, 1], [], []>} : vector<8x128xbf16>, vector<128x128xbf16>, vector<8x128xf32> -> vector<8x128xf32>
    %618 = arith.addf %613, %617 : vector<8x128xf32>
    %c15_627 = arith.constant 15 : index
    %c0_628 = arith.constant 0 : index
    %619 = vector.load %arg14[%c15_627, %c0_628] : memref<256x128xbf16, #tpu.memory_space<vmem>>, vector<8x128xbf16>
    %c2_629 = arith.constant 2 : index
    %c0_630 = arith.constant 0 : index
    %c0_631 = arith.constant 0 : index
    %620 = vector.load %arg11[%c2_629, %c0_630, %c0_631] : memref<4x128x128xbf16, #tpu.memory_space<vmem>>, vector<1x128x128xbf16>
    %621 = vector.shape_cast %620 : vector<1x128x128xbf16> to vector<128x128xbf16>
    %cst_632 = arith.constant dense<0.000000e+00> : vector<8x128xf32>
    %622 = tpu.matmul %619, %621, %cst_632 {dimension_numbers = #tpu.dot_dimension_numbers<[1], [0], [0], [1], [0, 0, 1, 1], [], []>} : vector<8x128xbf16>, vector<128x128xbf16>, vector<8x128xf32> -> vector<8x128xf32>
    %623 = arith.addf %618, %622 : vector<8x128xf32>
    %c16_633 = arith.constant 16 : index
    %c0_634 = arith.constant 0 : index
    %624 = vector.load %arg14[%c16_633, %c0_634] : memref<256x128xbf16, #tpu.memory_space<vmem>>, vector<8x128xbf16>
    %c3_635 = arith.constant 3 : index
    %c0_636 = arith.constant 0 : index
    %c0_637 = arith.constant 0 : index
    %625 = vector.load %arg11[%c3_635, %c0_636, %c0_637] : memref<4x128x128xbf16, #tpu.memory_space<vmem>>, vector<1x128x128xbf16>
    %626 = vector.shape_cast %625 : vector<1x128x128xbf16> to vector<128x128xbf16>
    %cst_638 = arith.constant dense<0.000000e+00> : vector<8x128xf32>
    %627 = tpu.matmul %624, %626, %cst_638 {dimension_numbers = #tpu.dot_dimension_numbers<[1], [0], [0], [1], [0, 0, 1, 1], [], []>} : vector<8x128xbf16>, vector<128x128xbf16>, vector<8x128xf32> -> vector<8x128xf32>
    %628 = arith.addf %623, %627 : vector<8x128xf32>
    %c0_639 = arith.constant 0 : index
    %c0_640 = arith.constant 0 : index
    %629 = vector.load %arg12[%c0_639, %c0_640] : memref<1x128xf32, #tpu.memory_space<vmem>>, vector<1x128xf32>
    %630 = vector.broadcast %629 : vector<1x128xf32> to vector<8x128xf32>
    %631 = arith.addf %628, %630 : vector<8x128xf32>
    %c0_641 = arith.constant 0 : index
    %c0_642 = arith.constant 0 : index
    %632 = vector.load %arg13[%c0_641, %c0_642] : memref<8x128xf32, #tpu.memory_space<vmem>>, vector<8x128xf32>
    tpu.vector_store %arg13[%c0_641, %c0_642], %631 {strides = array<i32>} : memref<8x128xf32, #tpu.memory_space<vmem>>, vector<8x128xf32>,
    return
  }
  func.func @transform_0(%arg0: i32) -> (i32, i32) {
    %c0_i32 = arith.constant 0 : i32
    %c0_i32_0 = arith.constant 0 : i32
    return %arg0, %c0_i32 : i32, i32
  }
  func.func @transform_1(%arg0: i32) -> (i32, i32) {
    %c0_i32 = arith.constant 0 : i32
    %c0_i32_0 = arith.constant 0 : i32
    %c0_i32_1 = arith.constant 0 : i32
    return %c0_i32, %c0_i32_0 : i32, i32
  }
  func.func @transform_2(%arg0: i32) -> (i32, i32, i32) {
    %c0_i32 = arith.constant 0 : i32
    %c0_i32_0 = arith.constant 0 : i32
    %c0_i32_1 = arith.constant 0 : i32
    %c0_i32_2 = arith.constant 0 : i32
    return %c0_i32, %c0_i32_0, %c0_i32_1 : i32, i32, i32
  }
  func.func @transform_3(%arg0: i32) -> (i32, i32, i32) {
    %c0_i32 = arith.constant 0 : i32
    %c0_i32_0 = arith.constant 0 : i32
    %c0_i32_1 = arith.constant 0 : i32
    %c0_i32_2 = arith.constant 0 : i32
    return %c0_i32, %c0_i32_0, %c0_i32_1 : i32, i32, i32
  }
  func.func @transform_4(%arg0: i32) -> (i32, i32) {
    %c0_i32 = arith.constant 0 : i32
    %c0_i32_0 = arith.constant 0 : i32
    %c0_i32_1 = arith.constant 0 : i32
    return %c0_i32, %c0_i32_0 : i32, i32
  }
  func.func @transform_5(%arg0: i32) -> (i32, i32, i32) {
    %c0_i32 = arith.constant 0 : i32
    %c0_i32_0 = arith.constant 0 : i32
    %c0_i32_1 = arith.constant 0 : i32
    %c0_i32_2 = arith.constant 0 : i32
    return %c0_i32, %c0_i32_0, %c0_i32_1 : i32, i32, i32
  }
  func.func @transform_6(%arg0: i32) -> (i32, i32, i32) {
    %c0_i32 = arith.constant 0 : i32
    %c0_i32_0 = arith.constant 0 : i32
    %c0_i32_1 = arith.constant 0 : i32
    %c0_i32_2 = arith.constant 0 : i32
    return %c0_i32, %c0_i32_0, %c0_i32_1 : i32, i32, i32
  }
  func.func @transform_7(%arg0: i32) -> (i32, i32) {
    %c0_i32 = arith.constant 0 : i32
    %c0_i32_0 = arith.constant 0 : i32
    %c0_i32_1 = arith.constant 0 : i32
    return %c0_i32, %c0_i32_0 : i32, i32
  }
  func.func @transform_8(%arg0: i32) -> (i32, i32, i32) {
    %c0_i32 = arith.constant 0 : i32
    %c0_i32_0 = arith.constant 0 : i32
    %c0_i32_1 = arith.constant 0 : i32
    %c0_i32_2 = arith.constant 0 : i32
    return %c0_i32, %c0_i32_0, %c0_i32_1 : i32, i32, i32
  }
  func.func @transform_9(%arg0: i32) -> (i32, i32, i32) {
    %c0_i32 = arith.constant 0 : i32
    %c0_i32_0 = arith.constant 0 : i32
    %c0_i32_1 = arith.constant 0 : i32
    %c0_i32_2 = arith.constant 0 : i32
    return %c0_i32, %c0_i32_0, %c0_i32_1 : i32, i32, i32
  }
  func.func @transform_10(%arg0: i32) -> (i32, i32, i32) {
    %c0_i32 = arith.constant 0 : i32
    %c0_i32_0 = arith.constant 0 : i32
    %c0_i32_1 = arith.constant 0 : i32
    %c0_i32_2 = arith.constant 0 : i32
    return %c0_i32, %c0_i32_0, %c0_i32_1 : i32, i32, i32
  }
  func.func @transform_11(%arg0: i32) -> (i32, i32) {
    %c0_i32 = arith.constant 0 : i32
    %c0_i32_0 = arith.constant 0 : i32
    %c0_i32_1 = arith.constant 0 : i32
    return %c0_i32, %c0_i32_0 : i32, i32
  }
  func.func @transform_12(%arg0: i32) -> (i32, i32) {
    %c0_i32 = arith.constant 0 : i32
    %c0_i32_0 = arith.constant 0 : i32
    return %arg0, %c0_i32 : i32, i32
  }
}

</mosaic_0001>

<bundles_post_ra>
// kernel: encoder_forward.1
= control target key start
LH: loop header
LB: loop body
LE: loop exit
PB: predicated region body
PF: predicated region fallthrough
CT: control target
= control target key end

     0   :  { %s19223_s21 = smov 0   ;;  %s23047_s0 = inlined_call_operand.vmem [shape: bf16[512,128], index: 0, kind: input, shape index: {}]   ;;  %s23048_s1 = inlined_call_operand.vmem [shape: bf16[128,128], index: 1, kind: input, shape index: {}]   ;;  %s23049_s2 = inlined_call_operand.vmem [shape: bf16[9,128,128], index: 2, kind: input, shape index: {}]   ;;  %s23050_s3 = inlined_call_operand.vmem [shape: bf16[9,128,128], index: 3, kind: input, shape index: {}]   ;;  %s23051_s4 = inlined_call_operand.vmem [shape: bf16[128,128], index: 4, kind: input, shape index: {}]   ;;  %s23052_s5 = inlined_call_operand.vmem [shape: bf16[9,128,128], index: 5, kind: input, shape index: {}]   ;;  %s23053_s6 = inlined_call_operand.vmem [shape: bf16[9,128,128], index: 6, kind: input, shape index: {}]   ;;  %s23054_s7 = inlined_call_operand.vmem [shape: bf16[128,128], index: 7, kind: input, shape index: {}]   ;;  %s23055_s8 = inlined_call_operand.vmem [shape: bf16[9,128,128], index: 8, kind: input, shape index: {}]   ;;  %s23056_s9 = inlined_call_operand.vmem [shape: bf16[9,128,128], index: 9, kind: input, shape index: {}]   ;;  %s23057_s10 = inlined_call_operand.vmem [shape: bf16[4,128,128], index: 10, kind: input, shape index: {}]   ;;  %s23058_s11 = inlined_call_operand.vmem [shape: f32[1,128], index: 11, kind: input, shape index: {}]   ;;  %s23059_s12 = inlined_call_operand.vmem [shape: f32[16,128], index: 12, kind: output, shape index: {}]  }
   0x1 LB: > { %s19229_s22 = sadd.s32 4294967295, %s19154_s21   ;;  %p13341_p0 = scmp.ge.s32.totalorder %s19154_s21, 1  ;;  %s19154_s21 = sphi %s19223_s21, %s22_s21  }
   0x2   : > { %p363_p1 = scmp.lt.s32.totalorder %s19154_s21, 3 }
   0x4   : > { %p364_p2 = pnand %p13341_p0, %p363_p1 }
   0x5   : > { %s13342_s19 = sshll.u32 (!%p364_p2), %s19229_s22, 5  ;;  %p410_p4 = scmp.lt.s32.totalorder (!%p364_p2), %s19229_s22, 1 }
   0x6   : > { %367 = sbr.rel (%p364_p2) target bundleno = 3060 (0xbf4), region = 68  ;;  %p405_p3 = scmp.lt.s32.totalorder (!%p364_p2), %s13342_s19, 63 }
   0xb   : > { %v17730_v0 = vld [vmem:[%s23048_s1 + $0x38] sm:$0xff]  ;;  %v17729_v1 = vld [vmem:[%s23048_s1 + $0x30] sm:$0xff]  ;;  %v17728_v4 = vld [vmem:[%s23048_s1 + $0x28] sm:$0xff]  ;;  %s23067_s19 = smov (!%p405_p3, %s13342_s19), 63  ;;  %v1019_v46 = vlaneseq  ;;  %s23069_s22 = smov (!%p410_p4, %s19229_s22), 1 }
   0xc   : > { %633 = vmatpush.bf16.msra.mxu0 %v17730_v0  ;;  %v17746_v2 = vld [vmem:[%s23048_s1 + $0x38] sm:$0xff]  ;;  %v17745_v3 = vld [vmem:[%s23048_s1 + $0x30] sm:$0xff]  ;;  %v17744_v5 = vld [vmem:[%s23048_s1 + $0x28] sm:$0xff]  ;;  %s13343_s16 = sshll.u32 %s23067_s19, 2  ;;  %s13344_s28 = sshll.u32 %s23069_s22, 3 }
   0xd   : > { %890 = vmatpush.bf16.msra.mxu1 %v17746_v2  ;;  %v17727_v6 = vld [vmem:[%s23048_s1 + $0x20] sm:$0xff]  ;;  %v17726_v8 = vld [vmem:[%s23048_s1 + $0x18] sm:$0xff]  ;;  %v17725_v10 = vld [vmem:[%s23048_s1 + $0x10] sm:$0xff]  ;;  %s19282_s26 = scalar_lea.vmem %s23047_s0, %s13343_s16  ;;  %v19303_v48 = vshrl.u32 %v1019_v46, 7  ;;  %v1022_v50 = vand.u32 127, %v1019_v46  ;;  %s413_s15 = scalar_lea.vmem %s23059_s12, %s13344_s28 }
   0xe   : > { %v17743_v7 = vld [vmem:[%s23048_s1 + $0x20] sm:$0xff]  ;;  %v17742_v9 = vld [vmem:[%s23048_s1 + $0x18] sm:$0xff]  ;;  %v17741_v11 = vld [vmem:[%s23048_s1 + $0x10] sm:$0xff] }
   0xf   : > { %v17724_v12 = vld [vmem:[%s23048_s1 + $0x8] sm:$0xff]  ;;  %v17723_v14 = vld [vmem:[%s23048_s1] sm:$0xff]  ;;  %v17717_v20 = vld [vmem:[%s19282_s26 + $0x10] sm:$0xff]  ;;  %v1023_v51 = vmul.u32 2, %v19303_v48 }
  0x10   : > { %634 = vmatpush.bf16.msra.mxu0 %v17729_v1  ;;  %v17740_v13 = vld [vmem:[%s23048_s1 + $0x8] sm:$0xff]  ;;  %v17739_v15 = vld [vmem:[%s23048_s1] sm:$0xff]  ;;  %v17733_v21 = vld [vmem:[%s19282_s26 + $0x50] sm:$0xff] }
  0x11   : > { %891 = vmatpush.bf16.msra.mxu1 %v17745_v3  ;;  %v17715_v16 = vld [vmem:[%s19282_s26] sm:$0xff]  ;;  %v17716_v18 = vld [vmem:[%s19282_s26 + $0x8] sm:$0xff]  ;;  %v17718_v22 = vld [vmem:[%s19282_s26 + $0x18] sm:$0xff]  ;;  %v19306_v54 = vsub.s32 %v1022_v50, %v1023_v51 }
  0x12   : > { %v17731_v17 = vld [vmem:[%s19282_s26 + $0x40] sm:$0xff]  ;;  %v17732_v19 = vld [vmem:[%s19282_s26 + $0x48] sm:$0xff]  ;;  %v17734_v23 = vld [vmem:[%s19282_s26 + $0x58] sm:$0xff] }
  0x13   : > { %v17719_v24 = vld [vmem:[%s19282_s26 + $0x20] sm:$0xff]  ;;  %v17720_v26 = vld [vmem:[%s19282_s26 + $0x28] sm:$0xff]  ;;  %v17721_v28 = vld [vmem:[%s19282_s26 + $0x30] sm:$0xff]  ;;  %vm1025_vm7 = vcmp.eq.s32.totalorder %v19306_v54, 0  ;;  %vm1026_vm9 = vcmp.eq.s32.totalorder %v19306_v54, 1  ;;  %vm1028_vm11 = vcmp.eq.s32.totalorder %v19306_v54, 16 }
  0x14   : > { %635 = vmatpush.bf16.msra.mxu0 %v17728_v4  ;;  %v17735_v25 = vld [vmem:[%s19282_s26 + $0x60] sm:$0xff]  ;;  %v17736_v27 = vld [vmem:[%s19282_s26 + $0x68] sm:$0xff]  ;;  %v17737_v29 = vld [vmem:[%s19282_s26 + $0x70] sm:$0xff]  ;;  %vm1030_vm13 = vcmp.eq.s32.totalorder %v19306_v54, 17 }
  0x15   : > { %892 = vmatpush.bf16.msra.mxu1 %v17744_v5  ;;  %v17722_v30 = vld [vmem:[%s19282_s26 + $0x38] sm:$0xff]  ;;  %vm19310_vm10 = vmor %vm1025_vm7, %vm1026_vm9 }
  0x16   : > { %v17738_v31 = vld [vmem:[%s19282_s26 + $0x78] sm:$0xff]  ;;  %vm1029_vm12 = vmor %vm19310_vm10, %vm1028_vm11 }
  0x17   : > { %vm19318_vm14 = vmor %vm1029_vm12, %vm1030_vm13 }
  0x18   : > { %636 = vmatpush.bf16.msra.mxu0 %v17727_v6 }
  0x19   : > { %893 = vmatpush.bf16.msra.mxu1 %v17743_v7 }
  0x1c   : > { %637 = vmatpush.bf16.msra.mxu0 %v17726_v8  ;;  %v19156_v8 = vmov 0.0  }
  0x1d   : > { %894 = vmatpush.bf16.msra.mxu1 %v17742_v9  ;;  %v1034_v9 = vsel %vm19318_vm14, 0.25, %v19156_v8 }
  0x20   : > { %638 = vmatpush.bf16.msra.mxu0 %v17725_v10 }
  0x21   : > { %895 = vmatpush.bf16.msra.mxu1 %v17741_v11 }
  0x24   : > { %639 = vmatpush.bf16.msra.mxu0 %v17724_v12 }
  0x25   : > { %896 = vmatpush.bf16.msra.mxu1 %v17740_v13 }
  0x28   : > { %640 = vmatpush.bf16.msra.mxu0 %v17723_v14  ;;  %v19325_v14 = vpack.c.bf16 %v1034_v9, %v1034_v9 }
  0x29   : > { %897 = vmatpush.bf16.msra.mxu1 %v17739_v15 }
  0x2b   : > { %641 = vmatmul.bf16.vlgmr.msra.gmra.mxu0 %v17715_v16 }
  0x2c   : > { %898 = vmatmul.bf16.vlgmr.msra.gmra.mxu1 %v17731_v17 }
  0x3b   : > { %646 = vmatmul.bf16.gmra.mxu0 %v17716_v18 }
  0x3c   : > { %903 = vmatmul.bf16.gmra.mxu1 %v17732_v19 }
  0x4b   : > { %651 = vmatmul.bf16.gmra.mxu0 %v17717_v20 }
  0x4c   : > { %908 = vmatmul.bf16.gmra.mxu1 %v17733_v21 }
  0x5b   : > { %656 = vmatmul.bf16.gmra.mxu0 %v17718_v22 }
  0x5c   : > { %913 = vmatmul.bf16.gmra.mxu1 %v17734_v23 }
  0x6b   : > { %661 = vmatmul.bf16.gmra.mxu0 %v17719_v24 }
  0x6c   : > { %918 = vmatmul.bf16.gmra.mxu1 %v17735_v25 }
  0x7b   : > { %666 = vmatmul.bf16.gmra.mxu0 %v17720_v26 }
  0x7c   : > { %923 = vmatmul.bf16.gmra.mxu1 %v17736_v27 }
  0x8b   : > { %671 = vmatmul.bf16.gmra.mxu0 %v17721_v28 }
  0x8c   : > { %928 = vmatmul.bf16.gmra.mxu1 %v17737_v29 }
  0x9b   : > { %676 = vmatmul.bf16.gmra.mxu0 %v17722_v30 }
  0x9c   : > { %933 = vmatmul.bf16.gmra.mxu1 %v17738_v31 }
  0xa8   : > { %v642_v32 = vpop.f32.mrf.mxu0 }
  0xa9   : > { %v899_v33 = vpop.f32.mrf.mxu1  ;;  %v698_v34 = vmul.f32 0.2, %v642_v32  ;;  %vm682_vm0 = vcmp.ge.f32.partialorder %v642_v32, 0.0 }
  0xaa   : > { %v955_v35 = vmul.f32 0.2, %v899_v33  ;;  %vm939_vm1 = vcmp.ge.f32.partialorder %v899_v33, 0.0 }
  0xab   : > { %v714_v38 = vsel %vm682_vm0, %v642_v32, %v698_v34 }
  0xac   : > { %v971_v41 = vsel %vm939_vm1, %v899_v33, %v955_v35 }
  0xb0   : > { %v644_v36 = vpop.f32.mrf.mxu0 }
  0xb1   : > { %vm683_vm2 = vcmp.ge.f32.partialorder %v644_v36, 0.0  ;;  %v699_v37 = vmul.f32 0.2, %v644_v36  ;;  %v901_v39 = vpop.f32.mrf.mxu1 }
  0xb2   : > { %vm940_vm3 = vcmp.ge.f32.partialorder %v901_v39, 0.0  ;;  %v956_v42 = vmul.f32 0.2, %v901_v39 }
  0xb3   : > { %v715_v40 = vsel %vm683_vm2, %v644_v36, %v699_v37  ;;  %vm1052_vm2 = vcmask 261120  }
  0xb4   : > { %v18535_v43 = vpack.c.bf16 %v715_v40, %v714_v38  ;;  %v972_v44 = vsel %vm940_vm3, %v901_v39, %v956_v42 }
  0xb5   : > { %v18575_v45 = vpack.c.bf16 %v972_v44, %v971_v41 }
  0xb6   : > { %18536 = vst [vmem:[#allocation2] sm:$0xff] %v18535_v43  }
  0xb7   : > { %18931 = vst [vmem:[#allocation2 + $0x40] sm:$0xff] %v18575_v45  }
  0xb8   : > { %v647_v47 = vpop.f32.mrf.mxu0 }
  0xb9   : > { %v904_v49 = vpop.f32.mrf.mxu1  ;;  %v700_v52 = vmul.f32 0.2, %v647_v47  ;;  %vm684_vm4 = vcmp.ge.f32.partialorder %v647_v47, 0.0 }
  0xba   : > { %v957_v53 = vmul.f32 0.2, %v904_v49  ;;  %vm941_vm5 = vcmp.ge.f32.partialorder %v904_v49, 0.0 }
  0xbb   : > { %v716_v57 = vsel %vm684_vm4, %v647_v47, %v700_v52 }
  0xbc   : > { %v973_v58 = vsel %vm941_vm5, %v904_v49, %v957_v53 }
  0xbd   : > { %v17747_v12 = vld [vmem:[#allocation2] sm:$0xff] }
  0xc0   : > { %v649_v55 = vpop.f32.mrf.mxu0 }
  0xc1   : > { %vm685_vm6 = vcmp.ge.f32.partialorder %v649_v55, 0.0  ;;  %v701_v56 = vmul.f32 0.2, %v649_v55  ;;  %v906_v59 = vpop.f32.mrf.mxu1 }
  0xc2   : > { %vm942_vm8 = vcmp.ge.f32.partialorder %v906_v59, 0.0  ;;  %v958_v61 = vmul.f32 0.2, %v906_v59 }
  0xc3   : > { %v717_v60 = vsel %vm685_vm6, %v649_v55, %v701_v56 }
  0xc4   : > { %v18540_v62 = vpack.c.bf16 %v717_v60, %v716_v57  ;;  %v974_v63 = vsel %vm942_vm8, %v906_v59, %v958_v61 }
  0xc5   : > { %v18580_v0 = vpack.c.bf16 %v974_v63, %v973_v58 }
  0xc6   : > { %18924 = vst [vmem:[#allocation2 + $0x8] sm:$0xff] %v18540_v62  }
  0xc7   : > { %18932 = vst [vmem:[#allocation2 + $0x48] sm:$0xff] %v18580_v0  }
  0xc8   : > { %v652_v2 = vpop.f32.mrf.mxu0 }
  0xc9   : > { %v909_v3 = vpop.f32.mrf.mxu1  ;;  %v702_v6 = vmul.f32 0.2, %v652_v2  ;;  %vm686_vm15 = vcmp.ge.f32.partialorder %v652_v2, 0.0 }
  0xca   : > { %v959_v7 = vmul.f32 0.2, %v909_v3  ;;  %vm943_vm0 = vcmp.ge.f32.partialorder %v909_v3, 0.0 }
  0xcb   : > { %v718_v13 = vsel %vm686_vm15, %v652_v2, %v702_v6 }
  0xcc   : > { %v975_v17 = vsel %vm943_vm0, %v909_v3, %v959_v7 }
  0xcd   : > { %v17748_v5 = vld [vmem:[#allocation2 + $0x8] sm:$0xff] }
  0xce   : > { %1062 = vmatpush.bf16.msra.mxu2 %v17748_v5 }
  0xd0   : > { %v654_v10 = vpop.f32.mrf.mxu0 }
  0xd1   : > { %vm687_vm1 = vcmp.ge.f32.partialorder %v654_v10, 0.0  ;;  %v703_v11 = vmul.f32 0.2, %v654_v10  ;;  %v911_v15 = vpop.f32.mrf.mxu1 }
  0xd2   : > { %1063 = vmatpush.bf16.msra.mxu2 %v17747_v12  ;;  %vm944_vm3 = vcmp.ge.f32.partialorder %v911_v15, 0.0  ;;  %v960_v18 = vmul.f32 0.2, %v911_v15 }
  0xd3   : > { %v719_v16 = vsel %vm687_vm1, %v654_v10, %v703_v11 }
  0xd4   : > { %v18545_v19 = vpack.c.bf16 %v719_v16, %v718_v13  ;;  %v976_v20 = vsel %vm944_vm3, %v911_v15, %v960_v18 }
  0xd5   : > { %13481 = vmatmul.msk.bf16.vlgmr.msra.gmra.mxu2 %vm1052_vm2, %v19325_v14  ;;  %v18585_v21 = vpack.c.bf16 %v976_v20, %v975_v17  ;;  %v17756_v17 = vld [vmem:[#allocation2 + $0x48] sm:$0xff] }
  0xd6   : > { %18925 = vst [vmem:[#allocation2 + $0x10] sm:$0xff] %v18545_v19  }
  0xd7   : > { %18933 = vst [vmem:[#allocation2 + $0x50] sm:$0xff] %v18585_v21  }
  0xd8   : > { %v657_v22 = vpop.f32.mrf.mxu0 }
  0xd9   : > { %v914_v23 = vpop.f32.mrf.mxu1  ;;  %v704_v24 = vmul.f32 0.2, %v657_v22  ;;  %vm688_vm4 = vcmp.ge.f32.partialorder %v657_v22, 0.0 }
  0xda   : > { %v961_v25 = vmul.f32 0.2, %v914_v23  ;;  %vm945_vm5 = vcmp.ge.f32.partialorder %v914_v23, 0.0 }
  0xdb   : > { %v720_v28 = vsel %vm688_vm4, %v657_v22, %v704_v24 }
  0xdc   : > { %v977_v31 = vsel %vm945_vm5, %v914_v23, %v961_v25  ;;  %v17755_v25 = vld [vmem:[#allocation2 + $0x40] sm:$0xff] }
  0xdd   : > { %v17749_v43 = vld [vmem:[#allocation2 + $0x10] sm:$0xff] }
  0xe0   : > { %v659_v26 = vpop.f32.mrf.mxu0 }
  0xe1   : > { %vm689_vm6 = vcmp.ge.f32.partialorder %v659_v26, 0.0  ;;  %v705_v27 = vmul.f32 0.2, %v659_v26  ;;  %v916_v29 = vpop.f32.mrf.mxu1 }
  0xe2   : > { %vm946_vm7 = vcmp.ge.f32.partialorder %v916_v29, 0.0  ;;  %v962_v32 = vmul.f32 0.2, %v916_v29 }
  0xe3   : > { %v721_v30 = vsel %vm689_vm6, %v659_v26, %v705_v27 }
  0xe4   : > { %v18550_v33 = vpack.c.bf16 %v721_v30, %v720_v28  ;;  %v978_v34 = vsel %vm946_vm7, %v916_v29, %v962_v32 }
  0xe5   : > { %v18590_v35 = vpack.c.bf16 %v978_v34, %v977_v31 }
  0xe6   : > { %18926 = vst [vmem:[#allocation2 + $0x18] sm:$0xff] %v18550_v33  }
  0xe7   : > { %18934 = vst [vmem:[#allocation2 + $0x58] sm:$0xff] %v18590_v35  }
  0xe8   : > { %v662_v36 = vpop.f32.mrf.mxu0 }
  0xe9   : > { %v919_v37 = vpop.f32.mrf.mxu1  ;;  %v706_v39 = vmul.f32 0.2, %v662_v36  ;;  %vm690_vm8 = vcmp.ge.f32.partialorder %v662_v36, 0.0 }
  0xea   : > { %v963_v40 = vmul.f32 0.2, %v919_v37  ;;  %vm947_vm9 = vcmp.ge.f32.partialorder %v919_v37, 0.0 }
  0xeb   : > { %v722_v44 = vsel %vm690_vm8, %v662_v36, %v706_v39 }
  0xec   : > { %v979_v47 = vsel %vm947_vm9, %v919_v37, %v963_v40 }
  0xed   : > { %v17750_v38 = vld [vmem:[#allocation2 + $0x18] sm:$0xff] }
  0xee   : > { %1093 = vmatpush.bf16.msra.mxu3 %v17750_v38 }
  0xf0   : > { %v664_v41 = vpop.f32.mrf.mxu0 }
  0xf1   : > { %vm691_vm11 = vcmp.ge.f32.partialorder %v664_v41, 0.0  ;;  %v707_v42 = vmul.f32 0.2, %v664_v41  ;;  %v921_v45 = vpop.f32.mrf.mxu1 }
  0xf2   : > { %1094 = vmatpush.bf16.msra.mxu3 %v17749_v43  ;;  %vm948_vm12 = vcmp.ge.f32.partialorder %v921_v45, 0.0  ;;  %v964_v49 = vmul.f32 0.2, %v921_v45  ;;  %v17784_v43 = vld [vmem:[%s23049_s2 + $0x70] sm:$0xff] }
  0xf3   : > { %v723_v46 = vsel %vm691_vm11, %v664_v41, %v707_v42  ;;  %v17785_v42 = vld [vmem:[%s23049_s2 + $0x78] sm:$0xff] }
  0xf4   : > { %v18555_v50 = vpack.c.bf16 %v723_v46, %v722_v44  ;;  %v980_v51 = vsel %vm948_vm12, %v921_v45, %v964_v49  ;;  %v17793_v44 = vld [vmem:[%s23049_s2 + $0xb8] sm:$0xff]  ;;  %v17783_v45 = vld [vmem:[%s23049_s2 + $0x68] sm:$0xff]  ;;  %vm1381_vm12 = vsmask.f32 7424 }
  0xf5   : > { %13490 = vmatmul.msk.bf16.vlgmr.msra.gmra.mxu3 %vm1052_vm2, %v19325_v14  ;;  %v18595_v52 = vpack.c.bf16 %v980_v51, %v979_v47  ;;  %1755 = vmatpush.bf16.msrb.mxu0 %v17793_v44  ;;  %v17792_v47 = vld [vmem:[%s23049_s2 + $0xb0] sm:$0xff]  ;;  %v17809_v49 = vld [vmem:[%s23049_s2 + $0xf8] sm:$0xff] }
  0xf6   : > { %18927 = vst [vmem:[#allocation2 + $0x20] sm:$0xff] %v18555_v50   ;;  %v17782_v50 = vld [vmem:[%s23049_s2 + $0x60] sm:$0xff]  ;;  %1949 = vmatpush.bf16.msrb.mxu1 %v17809_v49 }
  0xf7   : > { %18935 = vst [vmem:[#allocation2 + $0x60] sm:$0xff] %v18595_v52   ;;  %v17758_v52 = vld [vmem:[#allocation2 + $0x58] sm:$0xff] }
  0xf8   : > { %v667_v53 = vpop.f32.mrf.mxu0 }
  0xf9   : > { %v924_v55 = vpop.f32.mrf.mxu1  ;;  %v708_v56 = vmul.f32 0.2, %v667_v53  ;;  %vm692_vm13 = vcmp.ge.f32.partialorder %v667_v53, 0.0  ;;  %1756 = vmatpush.bf16.msrb.mxu0 %v17792_v47 }
  0xfa   : > { %v965_v57 = vmul.f32 0.2, %v924_v55  ;;  %vm949_vm15 = vcmp.ge.f32.partialorder %v924_v55, 0.0 }
  0xfb   : > { %v724_v60 = vsel %vm692_vm13, %v667_v53, %v708_v56  ;;  %v17791_v53 = vld [vmem:[%s23049_s2 + $0xa8] sm:$0xff]  ;;  %vm1681_vm13 = vcmask 1046528  }
  0xfc   : > { %v981_v63 = vsel %vm949_vm15, %v924_v55, %v965_v57  ;;  %v17808_v55 = vld [vmem:[%s23049_s2 + $0xf0] sm:$0xff] }
  0xfd   : > { %v17751_v15 = vld [vmem:[#allocation2 + $0x20] sm:$0xff]  ;;  %1757 = vmatpush.bf16.msrb.mxu0 %v17791_v53  ;;  %1950 = vmatpush.bf16.msrb.mxu1 %v17808_v55  ;;  %v17757_v57 = vld [vmem:[#allocation2 + $0x50] sm:$0xff] }
  0xfe   : > { %v17759_v28 = vld [vmem:[#allocation2 + $0x60] sm:$0xff] }
 0x100   : > { %v669_v58 = vpop.f32.mrf.mxu0 }
 0x101   : > { %vm693_vm0 = vcmp.ge.f32.partialorder %v669_v58, 0.0  ;;  %v709_v59 = vmul.f32 0.2, %v669_v58  ;;  %v926_v61 = vpop.f32.mrf.mxu1 }
 0x102   : > { %vm950_vm1 = vcmp.ge.f32.partialorder %v926_v61, 0.0  ;;  %v966_v0 = vmul.f32 0.2, %v926_v61 }
 0x103   : > { %v725_v62 = vsel %vm693_vm0, %v669_v58, %v709_v59  ;;  %v17781_v58 = vld [vmem:[%s23049_s2 + $0x58] sm:$0xff]  ;;  %v17790_v59 = vld [vmem:[%s23049_s2 + $0xa0] sm:$0xff] }
 0x104   : > { %v18560_v2 = vpack.c.bf16 %v725_v62, %v724_v60  ;;  %v982_v3 = vsel %vm950_vm1, %v926_v61, %v966_v0  ;;  %v17807_v60 = vld [vmem:[%s23049_s2 + $0xe8] sm:$0xff]  ;;  %v17780_v61 = vld [vmem:[%s23049_s2 + $0x50] sm:$0xff]  ;;  %1758 = vmatpush.bf16.msrb.mxu0 %v17790_v59  ;;  %v17806_v0 = vld [vmem:[%s23049_s2 + $0xe0] sm:$0xff] }
 0x105   : > { %v18600_v5 = vpack.c.bf16 %v982_v3, %v981_v63  ;;  %1951 = vmatpush.bf16.msrb.mxu1 %v17807_v60  ;;  %v17789_v63 = vld [vmem:[%s23049_s2 + $0x98] sm:$0xff]  ;;  %v17779_v3 = vld [vmem:[%s23049_s2 + $0x48] sm:$0xff] }
 0x106   : > { %18928 = vst [vmem:[#allocation2 + $0x28] sm:$0xff] %v18560_v2   ;;  %v19157_v2 = vmov 0  }
 0x107   : > { %18936 = vst [vmem:[#allocation2 + $0x68] sm:$0xff] %v18600_v5   ;;  %v17788_v5 = vld [vmem:[%s23049_s2 + $0x90] sm:$0xff] }
 0x108   : > { %v672_v6 = vpop.f32.mrf.mxu0  ;;  %419 = vst [vmem:[#allocation3 + $0x10] sm:$0xf] %v19157_v2  ;;  %1759 = vmatpush.bf16.msrb.mxu0 %v17789_v63 }
 0x109   : > { %v929_v7 = vpop.f32.mrf.mxu1  ;;  %v710_v10 = vmul.f32 0.2, %v672_v6  ;;  %vm694_vm3 = vcmp.ge.f32.partialorder %v672_v6, 0.0  ;;  %415 = vst [vmem:[#allocation3] sm:$0xf] %v19157_v2  ;;  %1952 = vmatpush.bf16.msrb.mxu1 %v17806_v0 }
 0x10a   : > { %v967_v11 = vmul.f32 0.2, %v929_v7  ;;  %vm951_vm4 = vcmp.ge.f32.partialorder %v929_v7, 0.0  ;;  %416 = vst [vmem:[#allocation3 + $0x4] sm:$0xf] %v19157_v2 }
 0x10b   : > { %v726_v16 = vsel %vm694_vm3, %v672_v6, %v710_v10  ;;  %417 = vst [vmem:[#allocation3 + $0x8] sm:$0xf] %v19157_v2  ;;  %v17805_v6 = vld [vmem:[%s23049_s2 + $0xd8] sm:$0xff] }
 0x10c   : > { %v983_v20 = vsel %vm951_vm4, %v929_v7, %v967_v11  ;;  %418 = vst [vmem:[#allocation3 + $0xc] sm:$0xf] %v19157_v2  ;;  %v17778_v7 = vld [vmem:[%s23049_s2 + $0x40] sm:$0xff]  ;;  %1760 = vmatpush.bf16.msrb.mxu0 %v17788_v5  ;;  %vm4265_vm4 = vsmask.f32 256 }
 0x10d   : > { %v17752_v9 = vld [vmem:[#allocation2 + $0x28] sm:$0xff]  ;;  %420 = vst [vmem:[#allocation3 + $0x14] sm:$0xf] %v19157_v2  ;;  %1953 = vmatpush.bf16.msrb.mxu1 %v17805_v6 }
 0x10e   : > { %1124 = vmatpush.bf16.msrb.mxu2 %v17752_v9  ;;  %v17760_v24 = vld [vmem:[#allocation2 + $0x68] sm:$0xff]  ;;  %421 = vst [vmem:[#allocation3 + $0x18] sm:$0xf] %v19157_v2  ;;  %v17777_v9 = vld [vmem:[%s23049_s2 + $0x38] sm:$0xff] }
 0x10f   : > { %422 = vst [vmem:[#allocation3 + $0x1c] sm:$0xf] %v19157_v2 }
 0x110   : > { %v674_v12 = vpop.f32.mrf.mxu0  ;;  %423 = vst [vmem:[#allocation3 + $0x20] sm:$0xf] %v19157_v2 }
 0x111   : > { %vm695_vm5 = vcmp.ge.f32.partialorder %v674_v12, 0.0  ;;  %v711_v13 = vmul.f32 0.2, %v674_v12  ;;  %v931_v18 = vpop.f32.mrf.mxu1  ;;  %424 = vst [vmem:[#allocation3 + $0x24] sm:$0xf] %v19157_v2  ;;  %v19409_v10 = vld [vmem:[#allocation3] sm:$0xff]  }
 0x112   : > { %1125 = vmatpush.bf16.msrb.mxu2 %v17751_v15  ;;  %vm952_vm6 = vcmp.ge.f32.partialorder %v931_v18, 0.0  ;;  %v968_v21 = vmul.f32 0.2, %v931_v18  ;;  %425 = vst [vmem:[#allocation3 + $0x28] sm:$0xf] %v19157_v2  ;;  %v1383_v11 = vshrl.u32 %v19409_v10, 16 }
 0x113   : > { %v727_v19 = vsel %vm695_vm5, %v674_v12, %v711_v13  ;;  %v1385_v12 = vshll.u32 %v19409_v10, 16  ;;  %426 = vst [vmem:[#allocation3 + $0x2c] sm:$0xf] %v19157_v2  ;;  %v19417_v13 = vld [vmem:[#allocation3 + $0x8] sm:$0xff]  ;;  %v17776_v15 = vld [vmem:[%s23049_s2 + $0x30] sm:$0xff] }
 0x114   : > { %v18565_v22 = vpack.c.bf16 %v727_v19, %v726_v16  ;;  %v984_v23 = vsel %vm952_vm6, %v931_v18, %v968_v21  ;;  %427 = vst [vmem:[#allocation3 + $0x30] sm:$0xf] %v19157_v2  ;;  %v17787_v16 = vld [vmem:[%s23049_s2 + $0x88] sm:$0xff]  ;;  %v1390_v19 = vshll.u32 %v19417_v13, 16  ;;  %vm4266_vm5 = vsmask.f32 4368 }
 0x115   : > { %13499 = vmatmul.msk.bf16.vlgmr.msrb.gmra.mxu2 %vm1052_vm2, %v19325_v14  ;;  %v18605_v26 = vpack.c.bf16 %v984_v23, %v983_v20  ;;  %v1387_v18 = vrot.slane %v1385_v12, 1  ;;  %428 = vst [vmem:[#allocation3 + $0x34] sm:$0xf] %v19157_v2  ;;  %1761 = vmatpush.bf16.msrb.mxu0 %v17787_v16  ;;  %v17775_v21 = vld [vmem:[%s23049_s2 + $0x28] sm:$0xff]  ;;  %v18939_v23 = vld [vmem:[#allocation3] sm:$0xf0] }
 0x116   : > { %1186 = vmatpush.bf16.msra.mxu2 %v17756_v17  ;;  %18929 = vst [vmem:[#allocation2 + $0x30] sm:$0xff] %v18565_v22   ;;  %v17804_v17 = vld [vmem:[%s23049_s2 + $0xd0] sm:$0xff]  ;;  %v19436_v22 = vrot.slane %v1390_v19, 1 }
 0x117   : > { %18937 = vst [vmem:[#allocation2 + $0x70] sm:$0xff] %v18605_v26   ;;  %1954 = vmatpush.bf16.msrb.mxu1 %v17804_v17  ;;  %v1388_v20 = vor.u32 %v1387_v18, %v1383_v11  ;;  %v18940_v26 = vld [vmem:[#allocation3] sm:$0xe] }
 0x118   : > { %v677_v27 = vpop.f32.mrf.mxu0  ;;  %429 = vst [vmem:[#allocation3 + $0x38] sm:$0xf] %v19157_v2 }
 0x119   : > { %v934_v29 = vpop.f32.mrf.mxu1  ;;  %v712_v30 = vmul.f32 0.2, %v677_v27  ;;  %vm696_vm7 = vcmp.ge.f32.partialorder %v677_v27, 0.0  ;;  %430 = vst [vmem:[#allocation3 + $0x3c] sm:$0xf] %v19157_v2 }
 0x11a   : > { %1187 = vmatpush.bf16.msra.mxu2 %v17755_v25  ;;  %v969_v31 = vmul.f32 0.2, %v934_v29  ;;  %vm953_vm8 = vcmp.ge.f32.partialorder %v934_v29, 0.0  ;;  %431 = vst [vmem:[#allocation3 + $0x40] sm:$0xf] %v19157_v2  ;;  %v17803_v25 = vld [vmem:[%s23049_s2 + $0xc8] sm:$0xff] }
 0x11b   : > { %v728_v34 = vsel %vm696_vm7, %v677_v27, %v712_v30  ;;  %432 = vst [vmem:[#allocation3 + $0x44] sm:$0xf] %v19157_v2  ;;  %v1393_v27 = vsel %vm1381_vm12, %v1388_v20, %v19436_v22  ;;  %1955 = vmatpush.bf16.msrb.mxu1 %v17803_v25  ;;  %v17832_v20 = vld [vmem:[%s23049_s2 + $0x178] sm:$0xff] }
 0x11c   : > { %v985_v37 = vsel %vm953_vm8, %v934_v29, %v969_v31  ;;  %433 = vst [vmem:[#allocation3 + $0x48] sm:$0xf] %v19157_v2  ;;  %v1683_v29 = vrot.slane %v19417_v13, 1  ;;  %v17774_v31 = vld [vmem:[%s23049_s2 + $0x20] sm:$0xff]  ;;  %vm20436_vm8 = vmor %vm4265_vm4, %vm4266_vm5 }
 0x11d   : > { %v17753_v51 = vld [vmem:[#allocation2 + $0x30] sm:$0xff]  ;;  %434 = vst [vmem:[#allocation3 + $0x4c] sm:$0xf] %v19157_v2 }
 0x11e   : > { %1248 = vmatpush.bf16.msrb.mxu2 %v17760_v24  ;;  %v17761_v62 = vld [vmem:[#allocation2 + $0x70] sm:$0xff]  ;;  %v17786_v24 = vld [vmem:[%s23049_s2 + $0x80] sm:$0xff]  ;;  %435 = vst [vmem:[#allocation3 + $0x50] sm:$0xf] %v19157_v2 }
 0x11f   : > { %1762 = vmatpush.bf16.msrb.mxu0 %v17786_v24  ;;  %436 = vst [vmem:[#allocation3 + $0x54] sm:$0xf] %v19157_v2 }
 0x120   : > { %v679_v32 = vpop.f32.mrf.mxu0  ;;  %437 = vst [vmem:[#allocation3 + $0x58] sm:$0xf] %v19157_v2 }
 0x121   : > { %vm697_vm9 = vcmp.ge.f32.partialorder %v679_v32, 0.0  ;;  %v713_v33 = vmul.f32 0.2, %v679_v32  ;;  %v936_v35 = vpop.f32.mrf.mxu1  ;;  %438 = vst [vmem:[#allocation3 + $0x5c] sm:$0xf] %v19157_v2 }
 0x122   : > { %1249 = vmatpush.bf16.msrb.mxu2 %v17759_v28  ;;  %vm954_vm11 = vcmp.ge.f32.partialorder %v936_v35, 0.0  ;;  %v970_v38 = vmul.f32 0.2, %v936_v35  ;;  %v18941_v28 = vor.u32 %v18940_v26, %v18939_v23  ;;  %439 = vst [vmem:[#allocation3 + $0x60] sm:$0xf] %v19157_v2 }
 0x123   : > { %v729_v36 = vsel %vm697_vm9, %v679_v32, %v713_v33  ;;  %v17802_v32 = vld [vmem:[%s23049_s2 + $0xc0] sm:$0xff]  ;;  %440 = vst [vmem:[#allocation3 + $0x64] sm:$0xf] %v19157_v2 }
 0x124   : > { %v18570_v39 = vpack.c.bf16 %v729_v36, %v728_v34  ;;  %v986_v40 = vsel %vm954_vm11, %v936_v35, %v970_v38  ;;  %v1682_v30 = vrot.slane %v18941_v28, 1  ;;  %1956 = vmatpush.bf16.msrb.mxu1 %v17802_v32  ;;  %v17794_v34 = vld [vmem:[#allocation3 + $0x8] sm:$0xff]  ;;  %v17773_v35 = vld [vmem:[%s23049_s2 + $0x18] sm:$0xff]  ;;  %441 = vst [vmem:[#allocation3 + $0x68] sm:$0xf] %v19157_v2  ;;  %v17772_v36 = vld [vmem:[%s23049_s2 + $0x10] sm:$0xff] }
 0x125   : > { %13517 = vmatmul.msk.bf16.vlgmr.msra.gmra.mxu2 %vm1052_vm2, %v19325_v14  ;;  %v18610_v41 = vpack.c.bf16 %v986_v40, %v985_v37  ;;  %442 = vst [vmem:[#allocation4] sm:$0xf] %v19157_v2  ;;  %v17830_v32 = vld [vmem:[%s23049_s2 + $0x168] sm:$0xff] }
 0x126   : > { %18930 = vst [vmem:[#allocation2 + $0x38] sm:$0xff] %v18570_v39   ;;  %1506 = vmatpush.bf16.msra.mxu2 %v17785_v42  ;;  %v1684_v33 = vsel %vm1681_vm13, %v1682_v30, %v1683_v29  ;;  %v17770_v39 = vld [vmem:[%s23049_s2] sm:$0xff]  ;;  %v1394_v42 = vshrl.u32 %v19417_v13, 16 }
 0x127   : > { %18938 = vst [vmem:[#allocation2 + $0x78] sm:$0xff] %v18610_v41   ;;  %1763 = vmatmul.bf16.vlgmr.msrb.gmra.mxu0 %v1684_v33  ;;  %1957 = vmatmul.bf16.vlgmr.msrb.gmra.mxu1 %v17794_v34  ;;  %v17822_v33 = vld [vmem:[%s23049_s2 + $0x128] sm:$0xff]  ;;  %v17829_v34 = vld [vmem:[%s23049_s2 + $0x160] sm:$0xff] }
 0x128   : > { %443 = vst [vmem:[#allocation4 + $0x4] sm:$0xf] %v19157_v2  ;;  %v1396_v44 = vor.u32 %v1394_v42, %v19436_v22  ;;  %v17828_v42 = vld [vmem:[%s23049_s2 + $0x158] sm:$0xff] }
 0x129   : > { %444 = vst [vmem:[#allocation4 + $0x8] sm:$0xf] %v19157_v2 }
 0x12a   : > { %1507 = vmatpush.bf16.msra.mxu2 %v17784_v43  ;;  %445 = vst [vmem:[#allocation4 + $0xc] sm:$0xf] %v19157_v2 }
 0x12b   : > { %446 = vst [vmem:[#allocation4 + $0x10] sm:$0xf] %v19157_v2 }
 0x12c   : > { %447 = vst [vmem:[#allocation4 + $0x14] sm:$0xf] %v19157_v2 }
 0x12d   : > { %v17754_v46 = vld [vmem:[#allocation2 + $0x38] sm:$0xff]  ;;  %448 = vst [vmem:[#allocation4 + $0x18] sm:$0xf] %v19157_v2 }
 0x12e   : > { %1155 = vmatpush.bf16.msrb.mxu3 %v17754_v46  ;;  %1508 = vmatpush.bf16.msra.mxu2 %v17783_v45  ;;  %v17762_v56 = vld [vmem:[#allocation2 + $0x78] sm:$0xff]  ;;  %449 = vst [vmem:[#allocation4 + $0x1c] sm:$0xf] %v19157_v2 }
 0x12f   : > { %450 = vst [vmem:[#allocation4 + $0x20] sm:$0xf] %v19157_v2 }
 0x130   : > { %451 = vst [vmem:[#allocation4 + $0x24] sm:$0xf] %v19157_v2 }
 0x131   : > { %452 = vst [vmem:[#allocation4 + $0x28] sm:$0xf] %v19157_v2 }
 0x132   : > { %1156 = vmatpush.bf16.msrb.mxu3 %v17753_v51  ;;  %1509 = vmatpush.bf16.msra.mxu2 %v17782_v50  ;;  %453 = vst [vmem:[#allocation4 + $0x2c] sm:$0xf] %v19157_v2 }
 0x133   : > { %454 = vst [vmem:[#allocation4 + $0x30] sm:$0xf] %v19157_v2 }
 0x134   : > { %455 = vst [vmem:[#allocation4 + $0x34] sm:$0xf] %v19157_v2 }
 0x135   : > { %13508 = vmatmul.msk.bf16.vlgmr.msrb.gmra.mxu3 %vm1052_vm2, %v19325_v14  ;;  %13535 = vmatmul.msk.bf16.vlgmr.msrb.gmra.mxu2 %vm1052_vm2, %v19325_v14  ;;  %456 = vst [vmem:[#allocation4 + $0x38] sm:$0xf] %v19157_v2 }
 0x136   : > { %1217 = vmatpush.bf16.msra.mxu3 %v17758_v52  ;;  %1510 = vmatpush.bf16.msra.mxu2 %v17781_v58  ;;  %457 = vst [vmem:[#allocation4 + $0x3c] sm:$0xf] %v19157_v2 }
 0x137   : > { %458 = vst [vmem:[#allocation4 + $0x40] sm:$0xf] %v19157_v2 }
 0x138   : > { %459 = vst [vmem:[#allocation4 + $0x44] sm:$0xf] %v19157_v2 }
 0x139   : > { %460 = vst [vmem:[#allocation4 + $0x48] sm:$0xf] %v19157_v2 }
 0x13a   : > { %1218 = vmatpush.bf16.msra.mxu3 %v17757_v57  ;;  %1511 = vmatpush.bf16.msra.mxu2 %v17780_v61  ;;  %461 = vst [vmem:[#allocation4 + $0x4c] sm:$0xf] %v19157_v2 }
 0x13b   : > { %462 = vst [vmem:[#allocation4 + $0x50] sm:$0xf] %v19157_v2 }
 0x13c   : > { %463 = vst [vmem:[#allocation4 + $0x54] sm:$0xf] %v19157_v2 }
 0x13d   : > { %464 = vst [vmem:[#allocation4 + $0x58] sm:$0xf] %v19157_v2 }
 0x13e   : > { %1279 = vmatpush.bf16.msrb.mxu3 %v17762_v56  ;;  %1512 = vmatpush.bf16.msra.mxu2 %v17779_v3  ;;  %465 = vst [vmem:[#allocation4 + $0x5c] sm:$0xf] %v19157_v2 }
 0x13f   : > { %466 = vst [vmem:[#allocation4 + $0x60] sm:$0xf] %v19157_v2 }
 0x140   : > { %467 = vst [vmem:[#allocation4 + $0x64] sm:$0xf] %v19157_v2 }
 0x141   : > { %468 = vst [vmem:[#allocation4 + $0x68] sm:$0xf] %v19157_v2 }
 0x142   : > { %1280 = vmatpush.bf16.msrb.mxu3 %v17761_v62  ;;  %1513 = vmatpush.bf16.msra.mxu2 %v17778_v7  ;;  %469 = vst [vmem:[#allocation5] sm:$0xf] %v19157_v2 }
 0x143   : > { %470 = vst [vmem:[#allocation5 + $0x4] sm:$0xf] %v19157_v2 }
 0x144   : > { %471 = vst [vmem:[#allocation5 + $0x8] sm:$0xf] %v19157_v2 }
 0x145   : > { %13526 = vmatmul.msk.bf16.vlgmr.msra.gmra.mxu3 %vm1052_vm2, %v19325_v14  ;;  %1514 = vmatmul.bf16.vlgmr.msra.gmra.mxu2 %v1393_v27  ;;  %472 = vst [vmem:[#allocation5 + $0xc] sm:$0xf] %v19157_v2 }
 0x146   : > { %1611 = vmatpush.bf16.msra.mxu3 %v17777_v9  ;;  %473 = vst [vmem:[#allocation5 + $0x10] sm:$0xf] %v19157_v2 }
 0x147   : > { %474 = vst [vmem:[#allocation5 + $0x14] sm:$0xf] %v19157_v2 }
 0x148   : > { %475 = vst [vmem:[#allocation5 + $0x18] sm:$0xf] %v19157_v2 }
 0x149   : > { %476 = vst [vmem:[#allocation5 + $0x1c] sm:$0xf] %v19157_v2 }
 0x14a   : > { %1612 = vmatpush.bf16.msra.mxu3 %v17776_v15  ;;  %477 = vst [vmem:[#allocation5 + $0x20] sm:$0xf] %v19157_v2 }
 0x14b   : > { %478 = vst [vmem:[#allocation5 + $0x24] sm:$0xf] %v19157_v2 }
 0x14c   : > { %479 = vst [vmem:[#allocation6] sm:$0xf] %v19157_v2 }
 0x14d   : > { %480 = vst [vmem:[#allocation6 + $0x4] sm:$0xf] %v19157_v2 }
 0x14e   : > { %1613 = vmatpush.bf16.msra.mxu3 %v17775_v21  ;;  %481 = vst [vmem:[#allocation6 + $0x8] sm:$0xf] %v19157_v2  ;;  %v17823_v21 = vld [vmem:[%s23049_s2 + $0x130] sm:$0xff] }
 0x14f   : > { %482 = vst [vmem:[#allocation6 + $0xc] sm:$0xf] %v19157_v2 }
 0x150   : > { %483 = vst [vmem:[#allocation6 + $0x10] sm:$0xf] %v19157_v2 }
 0x151   : > { %484 = vst [vmem:[#allocation6 + $0x14] sm:$0xf] %v19157_v2 }
 0x152   : > { %1614 = vmatpush.bf16.msra.mxu3 %v17774_v31  ;;  %485 = vst [vmem:[#allocation6 + $0x18] sm:$0xf] %v19157_v2  ;;  %v17831_v31 = vld [vmem:[%s23049_s2 + $0x170] sm:$0xff] }
 0x153   : > { %486 = vst [vmem:[#allocation6 + $0x1c] sm:$0xf] %v19157_v2 }
 0x154   : > { %487 = vst [vmem:[#allocation6 + $0x20] sm:$0xf] %v19157_v2 }
 0x155   : > { %13544 = vmatmul.msk.bf16.vlgmr.msrb.gmra.mxu3 %vm1052_vm2, %v19325_v14  ;;  %v17771_v14 = vld [vmem:[%s23049_s2 + $0x8] sm:$0xff]  ;;  %488 = vst [vmem:[#allocation6 + $0x24] sm:$0xf] %v19157_v2 }
 0x156   : > { %1615 = vmatpush.bf16.msra.mxu3 %v17773_v35  ;;  %489 = vst [vmem:[#allocation7] sm:$0xf] %v19157_v2 }
 0x157   : > { %490 = vst [vmem:[#allocation7 + $0x4] sm:$0xf] %v19157_v2 }
 0x158   : > { %v1065_v37 = vpop.f32.mrf.mxu2  ;;  %491 = vst [vmem:[#allocation7 + $0x8] sm:$0xf] %v19157_v2 }
 0x159   : > { %v1069_v38 = vpack.c.bf16 %v1065_v37, %v1065_v37  ;;  %492 = vst [vmem:[#allocation7 + $0xc] sm:$0xf] %v19157_v2 }
 0x15a   : > { %1616 = vmatpush.bf16.msra.mxu3 %v17772_v36  ;;  %493 = vst [vmem:[#allocation7 + $0x10] sm:$0xf] %v19157_v2 }
 0x15b   : > { %1070 = vst [vmem:[#allocation3 + $0x10] sm:$0xf] %v1069_v38 }
 0x15c   : > { %494 = vst [vmem:[#allocation7 + $0x14] sm:$0xf] %v19157_v2 }
 0x15d   : > { %495 = vst [vmem:[#allocation7 + $0x18] sm:$0xf] %v19157_v2 }
 0x15e   : > { %1617 = vmatpush.bf16.msra.mxu3 %v17771_v14  ;;  %496 = vst [vmem:[#allocation7 + $0x1c] sm:$0xf] %v19157_v2 }
 0x15f   : > { %497 = vst [vmem:[#allocation8] sm:$0xf] %v19157_v2 }
 0x160   : > { %v1067_v40 = vpop.f32.mrf.mxu2  ;;  %498 = vst [vmem:[#allocation8 + $0x4] sm:$0xf] %v19157_v2 }
 0x161   : > { %499 = vst [vmem:[#allocation8 + $0x8] sm:$0xf] %v19157_v2 }
 0x162   : > { %1618 = vmatpush.bf16.msra.mxu3 %v17770_v39  ;;  %v19505_v41 = vld [vmem:[#allocation3 + $0x10] sm:$0xff]  ;;  %500 = vst [vmem:[#allocation8 + $0xc] sm:$0xf] %v19157_v2 }
 0x163   : > { %v1398_v43 = vshll.u32 %v19505_v41, 16  ;;  %v1685_v47 = vrot.slane %v19505_v41, 1  ;;  %v17795_v49 = vld [vmem:[#allocation3 + $0x10] sm:$0xff]  ;;  %501 = vst [vmem:[#allocation8 + $0x10] sm:$0xf] %v19157_v2  ;;  %v1402_v57 = vshrl.u32 %v19505_v41, 16 }
 0x164   : > { %1962 = vmatmul.bf16.gmra.mxu1 %v17795_v49  ;;  %502 = vst [vmem:[#allocation8 + $0x14] sm:$0xf] %v19157_v2  ;;  %v17848_v49 = vld [vmem:[%s23049_s2 + $0x1b8] sm:$0xff] }
 0x165   : > { %1619 = vmatmul.bf16.vlgmr.msra.gmra.mxu3 %v19409_v10  ;;  %v1400_v45 = vrot.slane %v1398_v43, 1  ;;  %v1686_v50 = vsel %vm1681_vm13, %v1683_v29, %v1685_v47  ;;  %503 = vst [vmem:[#allocation8 + $0x18] sm:$0xf] %v19157_v2  ;;  %v17863_v43 = vld [vmem:[%s23049_s2 + $0x1f8] sm:$0xff]  ;;  %2568 = vmatpush.bf16.msra.mxu0 %v17848_v49 }
 0x166   : > { %1768 = vmatmul.bf16.gmra.mxu0 %v1686_v50  ;;  %504 = vst [vmem:[#allocation8 + $0x1c] sm:$0xf] %v19157_v2  ;;  %v17824_v2 = vld [vmem:[%s23049_s2 + $0x138] sm:$0xff]  ;;  %2374 = vmatpush.bf16.msrb.mxu3 %v17832_v20  ;;  %v17845_v20 = vld [vmem:[%s23049_s2 + $0x1a0] sm:$0xff] }
 0x167   : > { %v1401_v46 = vsel %vm1381_vm12, %v1396_v44, %v1400_v45  ;;  %v1404_v60 = vor.u32 %v1402_v57, %v1400_v45  ;;  %2215 = vmatpush.bf16.msrb.mxu2 %v17824_v2  ;;  %2834 = vmatpush.bf16.msra.mxu1 %v17863_v43  ;;  %v17862_v57 = vld [vmem:[%s23049_s2 + $0x1f0] sm:$0xff]  ;;  %v17825_v2 = vld [vmem:[%s23049_s2 + $0x140] sm:$0xff] }
 0x168   : > { %1519 = vmatmul.bf16.gmra.mxu2 %v1401_v46 }
 0x16a   : > { %2375 = vmatpush.bf16.msrb.mxu3 %v17831_v31  ;;  %v17843_v31 = vld [vmem:[%s23049_s2 + $0x190] sm:$0xff] }
 0x16b   : > { %2216 = vmatpush.bf16.msrb.mxu2 %v17823_v21  ;;  %2835 = vmatpush.bf16.msra.mxu1 %v17862_v57  ;;  %v17859_v21 = vld [vmem:[%s23049_s2 + $0x1d8] sm:$0xff] }
 0x16e   : > { %2376 = vmatpush.bf16.msrb.mxu3 %v17830_v32  ;;  %v17857_v32 = vld [vmem:[%s23049_s2 + $0x1c8] sm:$0xff] }
 0x16f   : > { %2217 = vmatpush.bf16.msrb.mxu2 %v17822_v33  ;;  %v17819_v33 = vld [vmem:[%s23049_s2 + $0x110] sm:$0xff] }
 0x172   : > { %2377 = vmatpush.bf16.msrb.mxu3 %v17829_v34 }
 0x175   : > { %1624 = vmatmul.bf16.gmra.mxu3 %v19417_v13 }
 0x176   : > { %2378 = vmatpush.bf16.msrb.mxu3 %v17828_v42 }
 0x178   : > { %v1096_v51 = vpop.f32.mrf.mxu3 }
 0x179   : > { %v1100_v53 = vpack.c.bf16 %v1096_v51, %v1096_v51 }
 0x17b   : > { %1101 = vst [vmem:[#allocation3 + $0x18] sm:$0xf] %v1100_v53 }
 0x180   : > { %v1098_v52 = vpop.f32.mrf.mxu3 }
 0x182   : > { %v17765_v58 = vld [vmem:[#allocation3 + $0x18] sm:$0xff] }
 0x183   : > { %v17796_v59 = vld [vmem:[#allocation3 + $0x18] sm:$0xff]  ;;  %v1406_v61 = vshll.u32 %v17765_v58, 16  ;;  %v1687_v62 = vrot.slane %v17765_v58, 1  ;;  %v1410_v13 = vshrl.u32 %v17765_v58, 16 }
 0x184   : > { %1967 = vmatmul.bf16.gmra.mxu1 %v17796_v59  ;;  %v19563_v6 = vld [vmem:[#allocation3 + $0x18] sm:$0xff]  ;;  %v17826_v59 = vld [vmem:[%s23049_s2 + $0x148] sm:$0xff] }
 0x185   : > { %1629 = vmatmul.bf16.gmra.mxu3 %v19505_v41  ;;  %v1408_v63 = vrot.slane %v1406_v61, 1  ;;  %v1688_v0 = vsel %vm1681_vm13, %v1685_v47, %v1687_v62  ;;  %v2921_v10 = vrot.slane %v19563_v6, 1 }
 0x186   : > { %1773 = vmatmul.bf16.gmra.mxu0 %v1688_v0 }
 0x187   : > { %v1409_v5 = vsel %vm1381_vm12, %v1404_v60, %v1408_v63  ;;  %v1412_v22 = vor.u32 %v1410_v13, %v1408_v63  ;;  %v17861_v60 = vld [vmem:[%s23049_s2 + $0x1e8] sm:$0xff] }
 0x188   : > { %1524 = vmatmul.bf16.gmra.mxu2 %v1409_v5  ;;  %v17846_v63 = vld [vmem:[%s23049_s2 + $0x1a8] sm:$0xff]  ;;  %2836 = vmatpush.bf16.msra.mxu1 %v17861_v60  ;;  %v17860_v5 = vld [vmem:[%s23049_s2 + $0x1e0] sm:$0xff] }
 0x189   : > { %v18943_v60 = vld [vmem:[#allocation3 + $0x8] sm:$0xf0] }
 0x18c   : > { %2837 = vmatpush.bf16.msra.mxu1 %v17860_v5 }
 0x190   : > { %2838 = vmatpush.bf16.msra.mxu1 %v17859_v21 }
 0x195   : > { %1634 = vmatmul.bf16.gmra.mxu3 %v17765_v58  ;;  %v17847_v58 = vld [vmem:[%s23049_s2 + $0x1b0] sm:$0xff] }
 0x196   : > { %2569 = vmatpush.bf16.msra.mxu0 %v17847_v58 }
 0x198   : > { %v1127_v55 = vpop.f32.mrf.mxu2 }
 0x199   : > { %v1131_v56 = vpack.c.bf16 %v1127_v55, %v1127_v55 }
 0x19a   : > { %2570 = vmatpush.bf16.msra.mxu0 %v17846_v63  ;;  %v18944_v63 = vld [vmem:[#allocation3 + $0x8] sm:$0xe] }
 0x19b   : > { %1132 = vst [vmem:[#allocation3 + $0x20] sm:$0xf] %v1131_v56  ;;  %v17827_v56 = vld [vmem:[%s23049_s2 + $0x150] sm:$0xff]  ;;  %v18945_v5 = vor.u32 %v18944_v63, %v18943_v60 }
 0x19c   : > { %2379 = vmatpush.bf16.msrb.mxu3 %v17827_v56 }
 0x19e   : > { %2571 = vmatpush.bf16.msra.mxu0 %v17845_v20 }
 0x1a0   : > { %v1129_v3 = vpop.f32.mrf.mxu2  ;;  %2380 = vmatpush.bf16.msrb.mxu3 %v17826_v59 }
 0x1a1   : > { %v17821_v3 = vld [vmem:[%s23049_s2 + $0x120] sm:$0xff] }
 0x1a2   : > { %v19565_v7 = vld [vmem:[#allocation3 + $0x20] sm:$0xff]  ;;  %2218 = vmatpush.bf16.msrb.mxu2 %v17821_v3 }
 0x1a3   : > { %v17766_v9 = vld [vmem:[#allocation3 + $0x20] sm:$0xff]  ;;  %v2923_v11 = vrot.slane %v19565_v7, 1 }
 0x1a4   : > { %v1414_v15 = vshll.u32 %v17766_v9, 16  ;;  %v1689_v18 = vrot.slane %v17766_v9, 1  ;;  %v17797_v19 = vld [vmem:[#allocation3 + $0x20] sm:$0xff]  ;;  %v1418_v14 = vshrl.u32 %v17766_v9, 16  ;;  %2381 = vmatpush.bf16.msrb.mxu3 %v17825_v2  ;;  %v1764_v56 = vpop.f32.mrf.mxu0  ;;  %v1958_v59 = vpop.f32.mrf.mxu1 }
 0x1a5   : > { %v19574_v12 = vsel %vm1681_vm13, %v2921_v10, %v2923_v11  ;;  %1639 = vmatmul.bf16.gmra.mxu3 %v17766_v9  ;;  %1972 = vmatmul.bf16.gmra.mxu1 %v17797_v19 }
 0x1a6   : > { %v1416_v23 = vrot.slane %v1414_v15, 1  ;;  %v1690_v24 = vsel %vm1681_vm13, %v1687_v62, %v1689_v18 }
 0x1a7   : > { %1778 = vmatmul.bf16.gmra.mxu0 %v1690_v24  ;;  %v17844_v24 = vld [vmem:[%s23049_s2 + $0x198] sm:$0xff] }
 0x1a8   : > { %v1189_v16 = vpop.f32.mrf.mxu2  ;;  %v1417_v25 = vsel %vm1381_vm12, %v1412_v22, %v1416_v23  ;;  %v1420_v46 = vor.u32 %v1418_v14, %v1416_v23  ;;  %2572 = vmatpush.bf16.msra.mxu0 %v17844_v24 }
 0x1a9   : > { %v1193_v17 = vpack.c.bf16 %v1189_v16, %v1189_v16  ;;  %1529 = vmatmul.bf16.gmra.mxu2 %v1417_v25 }
 0x1ab   : > { %1194 = vst [vmem:[#allocation3 + $0x30] sm:$0xf] %v1193_v17 }
 0x1ac   : > { %2573 = vmatpush.bf16.msra.mxu0 %v17843_v31 }
 0x1b0   : > { %v1191_v26 = vpop.f32.mrf.mxu2 }
 0x1b2   : > { %v19596_v39 = vld [vmem:[#allocation3 + $0x30] sm:$0xff] }
 0x1b3   : > { %v2927_v50 = vrot.slane %v19596_v39, 1  ;;  %v19639_v0 = vld [vmem:[#allocation3 + $0x30] sm:$0xff] }
 0x1b4   : > { %v1430_v13 = vshll.u32 %v19639_v0, 16  ;;  %v1693_v15 = vrot.slane %v19639_v0, 1  ;;  %v1434_v42 = vshrl.u32 %v19639_v0, 16 }
 0x1b6   : > { %v1432_v19 = vrot.slane %v1430_v13, 1 }
 0x1b8   : > { %v1158_v27 = vpop.f32.mrf.mxu3  ;;  %v1251_v28 = vpop.f32.mrf.mxu2 }
 0x1b9   : > { %v1162_v29 = vpack.c.bf16 %v1158_v27, %v1158_v27  ;;  %v1255_v30 = vpack.c.bf16 %v1251_v28, %v1251_v28 }
 0x1bb   : > { %1163 = vst [vmem:[#allocation3 + $0x28] sm:$0xf] %v1162_v29  ;;  %v17858_v29 = vld [vmem:[%s23049_s2 + $0x1d0] sm:$0xff] }
 0x1bc   : > { %1256 = vst [vmem:[#allocation3 + $0x40] sm:$0xf] %v1255_v30  ;;  %v17820_v30 = vld [vmem:[%s23049_s2 + $0x118] sm:$0xff]  ;;  %2839 = vmatpush.bf16.msra.mxu1 %v17858_v29  ;;  %v19734_v29 = vpop.f32.mrf.mxu1 }
 0x1bd   : > { %2219 = vmatpush.bf16.msrb.mxu2 %v17820_v30 }
 0x1c0   : > { %v1160_v35 = vpop.f32.mrf.mxu3  ;;  %v1253_v36 = vpop.f32.mrf.mxu2  ;;  %2840 = vmatpush.bf16.msra.mxu1 %v17857_v32 }
 0x1c1   : > { %v17842_v36 = vld [vmem:[%s23049_s2 + $0x188] sm:$0xff]  ;;  %2220 = vmatpush.bf16.msrb.mxu2 %v17819_v33  ;;  %v18946_v33 = vld [vmem:[#allocation3 + $0x10] sm:$0xff]  }
 0x1c2   : > { %v17767_v37 = vld [vmem:[#allocation3 + $0x28] sm:$0xff]  ;;  %2574 = vmatpush.bf16.msra.mxu0 %v17842_v36 }
 0x1c3   : > { %v17798_v38 = vld [vmem:[#allocation3 + $0x28] sm:$0xff]  ;;  %1644 = vmatmul.bf16.gmra.mxu3 %v17767_v37  ;;  %v1691_v40 = vrot.slane %v17767_v37, 1  ;;  %v1422_v41 = vshll.u32 %v17767_v37, 16  ;;  %v1426_v16 = vshrl.u32 %v17767_v37, 16  ;;  %v19687_v35 = vld [vmem:[#allocation3 + $0x40] sm:$0xff] }
 0x1c4   : > { %1977 = vmatmul.bf16.gmra.mxu1 %v17798_v38  ;;  %v19604_v44 = vld [vmem:[#allocation3 + $0x28] sm:$0xff]  ;;  %v17856_v37 = vld [vmem:[%s23049_s2 + $0x1c0] sm:$0xff]  ;;  %v2931_v14 = vrot.slane %v19687_v35, 1 }
 0x1c5   : > { %v1692_v45 = vsel %vm1681_vm13, %v1689_v18, %v1691_v40  ;;  %v1424_v47 = vrot.slane %v1422_v41, 1  ;;  %v2925_v53 = vrot.slane %v19604_v44, 1  ;;  %v1694_v22 = vsel %vm1681_vm13, %v1691_v40, %v1693_v15  ;;  %v17818_v38 = vld [vmem:[%s23049_s2 + $0x108] sm:$0xff]  ;;  %2841 = vmatpush.bf16.msra.mxu1 %v17856_v37 }
 0x1c6   : > { %1783 = vmatmul.bf16.gmra.mxu0 %v1692_v45  ;;  %2221 = vmatpush.bf16.msrb.mxu2 %v17818_v38 }
 0x1c7   : > { %v1425_v52 = vsel %vm1381_vm12, %v1420_v46, %v1424_v47  ;;  %v19631_v61 = vsel %vm1681_vm13, %v2923_v11, %v2925_v53  ;;  %v19634_v62 = vsel %vm1681_vm13, %v2925_v53, %v2927_v50  ;;  %v17799_v11 = vld [vmem:[#allocation3 + $0x30] sm:$0xff]  ;;  %v1428_v18 = vor.u32 %v1426_v16, %v1424_v47  ;;  %v1320_v53 = vld [vmem:[#allocation3 + $0x40] sm:$0x1] }
 0x1c8   : > { %v1220_v51 = vpop.f32.mrf.mxu3  ;;  %1534 = vmatmul.bf16.gmra.mxu2 %v1425_v52  ;;  %v1436_v47 = vor.u32 %v1434_v42, %v1432_v19  ;;  %v17817_v52 = vld [vmem:[%s23049_s2 + $0x100] sm:$0xff] }
 0x1c9   : > { %v1224_v55 = vpack.c.bf16 %v1220_v51, %v1220_v51  ;;  %v1433_v25 = vsel %vm1381_vm12, %v1428_v18, %v1432_v19  ;;  %v17841_v51 = vld [vmem:[%s23049_s2 + $0x180] sm:$0xff]  ;;  %v2301_v18 = vrot.slane %v18945_v5, 1  ;;  %v17833_v5 = vld [vmem:[#allocation3 + $0x10] sm:$0xff] }
 0x1ca   : > { %2575 = vmatpush.bf16.msra.mxu0 %v17841_v51  ;;  %2222 = vmatpush.bf16.msrb.mxu2 %v17817_v52 }
 0x1cb   : > { %1225 = vst [vmem:[#allocation3 + $0x38] sm:$0xf] %v1224_v55 }
 0x1d0   : > { %v1222_v9 = vpop.f32.mrf.mxu3 }
 0x1d2   : > { %v19652_v17 = vld [vmem:[#allocation3 + $0x38] sm:$0xff] }
 0x1d3   : > { %1649 = vmatmul.bf16.gmra.mxu3 %v19639_v0  ;;  %v2929_v23 = vrot.slane %v19652_v17, 1  ;;  %v19685_v34 = vld [vmem:[#allocation3 + $0x38] sm:$0xff]  ;;  %v1371_v0 = vunpack.c.l.b16 %v1320_v53 }
 0x1d4   : > { %1982 = vmatmul.bf16.gmra.mxu1 %v17799_v11  ;;  %v17800_v41 = vld [vmem:[#allocation3 + $0x38] sm:$0xff]  ;;  %v1438_v43 = vshll.u32 %v19685_v34, 16  ;;  %v1695_v46 = vrot.slane %v19685_v34, 1 }
 0x1d5   : > { %v19668_v27 = vsel %vm1681_vm13, %v2927_v50, %v2929_v23  ;;  %v19702_v45 = vsel %vm1681_vm13, %v2929_v23, %v2931_v14  ;;  %v1515_v50 = vpop.f32.mrf.mxu2  ;;  %v1380_v11 = vpack.c.b16 %v1371_v0, %v1371_v0  ;;  %v1442_v23 = vshrl.u32 %v19685_v34, 16 }
 0x1d6   : > { %1788 = vmatmul.bf16.gmra.mxu0 %v1694_v22  ;;  %v1440_v49 = vrot.slane %v1438_v43, 1  ;;  %v1696_v55 = vsel %vm1681_vm13, %v1693_v15, %v1695_v46  ;;  %v19718_v15 = vld [vmem:[#allocation3 + $0x10] sm:$0xff]  ;;  %v19726_v22 = vpop.f32.mrf.mxu0 }
 0x1d7   : > { %v2302_v19 = vrot.slane %v19718_v15, 1  ;;  %v1446_v24 = vshll.u32 %v1380_v11, 16  ;;  %v2099_v60 = vshll.u32 %v19718_v15, 16 }
 0x1d8   : > { %v1282_v26 = vpop.f32.mrf.mxu3  ;;  %1539 = vmatmul.bf16.gmra.mxu2 %v1433_v25  ;;  %v1441_v57 = vsel %vm1381_vm12, %v1436_v47, %v1440_v49  ;;  %v1444_v31 = vor.u32 %v1442_v23, %v1440_v49  ;;  %v19739_v47 = vld [vmem:[#allocation3 + $0x18] sm:$0xff]  ;;  %v2718_v49 = vshll.u32 %v19563_v6, 16  ;;  %v19751_v23 = vld [vmem:[#allocation3 + $0x20] sm:$0xff] }
 0x1d9   : > { %v1286_v28 = vpack.c.bf16 %v1282_v26, %v1282_v26  ;;  %v17801_v26 = vld [vmem:[#allocation3 + $0x40] sm:$0xff]  ;;  %v2303_v30 = vsel %vm1681_vm13, %v2301_v18, %v2302_v19  ;;  %v1448_v32 = vrot.slane %v1446_v24, 1  ;;  %v2722_v24 = vshrl.u32 %v19563_v6, 16 }
 0x1db   : > { %1287 = vst [vmem:[#allocation3 + $0x48] sm:$0xf] %v1286_v28  ;;  %v1697_v28 = vrot.slane %v1380_v11, 1  ;;  %v1449_v37 = vsel %vm1381_vm12, %v1444_v31, %v1448_v32  ;;  %v2101_v11 = vrot.slane %v2099_v60, 1  ;;  %v2306_v31 = vrot.slane %v19751_v23, 1 }
 0x1dd   : > { %v19720_v16 = vpop.f32.mrf.mxu2  ;;  %v1698_v36 = vsel %vm1681_vm13, %v1695_v46, %v1697_v28 }
 0x1e0   : > { %v1284_v40 = vpop.f32.mrf.mxu3 }
 0x1e1   : > { %v1963_v52 = vpop.f32.mrf.mxu1 }
 0x1e2   : > { %v19714_v9 = vld [vmem:[#allocation3 + $0x48] sm:$0xff] }
 0x1e3   : > { %1654 = vmatmul.bf16.gmra.mxu3 %v19685_v34  ;;  %v2933_v20 = vrot.slane %v19714_v9, 1  ;;  %v2713_v34 = vshll.u32 %v18946_v33, 16  ;;  %v1769_v42 = vpop.f32.mrf.mxu0 }
 0x1e4   : > { %1987 = vmatmul.bf16.gmra.mxu1 %v17800_v41  ;;  %v18942_v41 = vld [vmem:[#allocation3 + $0x8] sm:$0xff]  }
 0x1e5   : > { %v19732_v25 = vsel %vm1681_vm13, %v2931_v14, %v2933_v20  ;;  %v2715_v51 = vrot.slane %v2713_v34, 1  ;;  %v2094_v53 = vshll.u32 %v18942_v41, 16  ;;  %v2107_v34 = vshll.u32 %v19739_v47, 16 }
 0x1e6   : > { %1793 = vmatmul.bf16.gmra.mxu0 %v1696_v55  ;;  %v2304_v55 = vrot.slane %v19739_v47, 1 }
 0x1e8   : > { %v1620_v58 = vpop.f32.mrf.mxu3  ;;  %1544 = vmatmul.bf16.gmra.mxu2 %v1441_v57  ;;  %v2720_v57 = vrot.slane %v2718_v49, 1  ;;  %v2305_v63 = vsel %vm1681_vm13, %v2302_v19, %v2304_v55  ;;  %v2649_v19 = vld [vmem:[#allocation3 + $0x50] sm:$0x1] }
 0x1e9   : > { %v1621_v3 = vadd.f32 %v1620_v58, %v1515_v50  ;;  %v2711_v50 = vshrl.u32 %v18946_v33, 16  ;;  %v2092_v58 = vshrl.u32 %v18942_v41, 16  ;;  %v2700_v28 = vunpack.c.l.b16 %v2649_v19  ;;  %v17835_v19 = vld [vmem:[#allocation3 + $0x20] sm:$0xff] }
 0x1ea   : > { %v2724_v32 = vor.u32 %v2722_v24, %v2720_v57 }
 0x1eb   : > { %v1804_v2 = vadd.f32 %v1764_v56, %v1621_v3  ;;  %v1520_v38 = vpop.f32.mrf.mxu2  ;;  %v2716_v56 = vor.u32 %v2715_v51, %v2711_v50  ;;  %v17834_v50 = vld [vmem:[#allocation3 + $0x18] sm:$0xff]  ;;  %v19765_v51 = vpop.f32.mrf.mxu0 }
 0x1ed   : > { %v19716_v13 = vadd.f32 %v1958_v59, %v1804_v2  ;;  %v2096_v59 = vrot.slane %v2094_v53, 1  ;;  %v2721_v0 = vsel %vm1381_vm12, %v2716_v56, %v2720_v57  ;;  %v19773_v53 = vld [vmem:[#allocation3 + $0x28] sm:$0xff] }
 0x1ef   : > { %v2097_v3 = vor.u32 %v2096_v59, %v2092_v58  ;;  %v2730_v58 = vshrl.u32 %v19565_v7, 16  ;;  %v2308_v59 = vrot.slane %v19773_v53, 1 }
 0x1f0   : > { %v19724_v21 = vpop.f32.mrf.mxu3 }
 0x1f1   : > { %v2102_v18 = vsel %vm1381_vm12, %v2097_v3, %v2101_v11 }
 0x1f3   : > { %2382 = vmatmul.bf16.vlgmr.msrb.gmra.mxu3 %v2303_v30  ;;  %v19776_v56 = vpop.f32.mrf.mxu2 }
 0x1f4   : > { %1992 = vmatmul.bf16.gmra.mxu1 %v17801_v26  ;;  %v2726_v26 = vshll.u32 %v19565_v7, 16 }
 0x1f6   : > { %1798 = vmatmul.bf16.gmra.mxu0 %v1698_v36  ;;  %v2728_v33 = vrot.slane %v2726_v26, 1  ;;  %v2103_v36 = vshrl.u32 %v19718_v15, 16 }
 0x1f8   : > { %v1625_v14 = vpop.f32.mrf.mxu3  ;;  %1549 = vmatmul.bf16.gmra.mxu2 %v1449_v37  ;;  %v19758_v37 = vpack.c.b16 %v2700_v28, %v2700_v28  ;;  %v2105_v41 = vor.u32 %v2103_v36, %v2101_v11  ;;  %v17871_v11 = vld [vmem:[%s23049_s2 + $0x238] sm:$0xff] }
 0x1f9   : > { %v1626_v40 = vadd.f32 %v1625_v14, %v1520_v38  ;;  %v19760_v38 = vpop.f32.mrf.mxu1  ;;  %v2307_v14 = vsel %vm1681_vm13, %v2304_v55, %v2306_v31  ;;  %v2734_v55 = vshll.u32 %v19604_v44, 16  ;;  %2993 = vmatpush.bf16.msra.mxu2 %v17871_v11 }
 0x1fb   : > { %v1806_v43 = vadd.f32 %v1769_v42, %v1626_v40  ;;  %v2729_v40 = vsel %vm1381_vm12, %v2724_v32, %v2728_v33  ;;  %v2109_v42 = vrot.slane %v2107_v34, 1  ;;  %v2736_v60 = vrot.slane %v2734_v55, 1 }
 0x1fd   : > { %v19742_v46 = vadd.f32 %v1963_v52, %v1806_v43  ;;  %v2935_v43 = vrot.slane %v19758_v37, 1  ;;  %v2110_v49 = vsel %vm1381_vm12, %v2105_v41, %v2109_v42  ;;  %v2742_v41 = vshll.u32 %v19596_v39, 16 }
 0x1ff   : > { %v19770_v15 = vsel %vm1681_vm13, %v2933_v20, %v2935_v43  ;;  %v2111_v20 = vshrl.u32 %v19739_v47, 16 }
 0x200   : > { %v19748_v2 = vpop.f32.mrf.mxu3 }
 0x201   : > { %v1968_v57 = vpop.f32.mrf.mxu1  ;;  %v2113_v7 = vor.u32 %v2111_v20, %v2109_v42  ;;  %v2738_v42 = vshrl.u32 %v19604_v44, 16  ;;  %v2119_v44 = vshrl.u32 %v19751_v23, 16 }
 0x203   : > { %2387 = vmatmul.bf16.gmra.mxu3 %v2305_v63  ;;  %v1774_v63 = vpop.f32.mrf.mxu0  ;;  %v2740_v55 = vor.u32 %v2738_v42, %v2736_v60 }
 0x204   : > { %2842 = vmatmul.bf16.vlgmr.msra.gmra.mxu1 %v2721_v0  ;;  %v2115_v0 = vshll.u32 %v19751_v23, 16 }
 0x206   : > { %2576 = vmatmul.bf16.vlgmr.msra.gmra.mxu0 %v17833_v5  ;;  %v2732_v5 = vor.u32 %v2730_v58, %v2728_v33  ;;  %v2117_v26 = vrot.slane %v2115_v0, 1  ;;  %v2744_v58 = vrot.slane %v2742_v41, 1  ;;  %v17870_v0 = vld [vmem:[%s23049_s2 + $0x230] sm:$0xff]  ;;  %v2750_v41 = vshll.u32 %v19652_v17, 16 }
 0x207   : > { %2994 = vmatpush.bf16.msra.mxu2 %v17870_v0 }
 0x208   : > { %2223 = vmatmul.bf16.vlgmr.msrb.gmra.mxu2 %v2102_v18  ;;  %v1630_v30 = vpop.f32.mrf.mxu3  ;;  %v2309_v18 = vsel %vm1681_vm13, %v2306_v31, %v2308_v59  ;;  %v2737_v24 = vsel %vm1381_vm12, %v2732_v5, %v2736_v60  ;;  %v2118_v33 = vsel %vm1381_vm12, %v2113_v7, %v2117_v26  ;;  %v2745_v60 = vsel %vm1381_vm12, %v2740_v55, %v2744_v58  ;;  %v17836_v7 = vld [vmem:[#allocation3 + $0x28] sm:$0xff] }
 0x209   : > { %v1970_v32 = vpop.f32.mrf.mxu1 }
 0x20b   : > { %v1525_v28 = vpop.f32.mrf.mxu2  ;;  %v1776_v34 = vpop.f32.mrf.mxu0 }
 0x20c   : > { %v1631_v47 = vadd.f32 %v1630_v30, %v1525_v28  ;;  %v2121_v28 = vor.u32 %v2119_v44, %v2117_v26 }
 0x20e   : > { %v1808_v36 = vadd.f32 %v1774_v63, %v1631_v47  ;;  %v2123_v63 = vshll.u32 %v19773_v53, 16 }
 0x210   : > { %v1632_v52 = vpop.f32.mrf.mxu3 }
 0x213   : > { %2392 = vmatmul.bf16.gmra.mxu3 %v2307_v14  ;;  %v19788_v14 = vadd.f32 %v1968_v57, %v1808_v36  ;;  %v1527_v43 = vpop.f32.mrf.mxu2  ;;  %v17889_v57 = vld [vmem:[%s23049_s2 + $0x78] sm:$0xff] }
 0x214   : > { %2847 = vmatmul.bf16.gmra.mxu1 %v2729_v40  ;;  %v19790_v40 = vld [vmem:[#allocation3 + $0x30] sm:$0xff]  ;;  %3274 = vmatpush.bf16.msra.mxu3 %v17889_v57  ;;  %v19811_v36 = vld [vmem:[#allocation3 + $0x38] sm:$0xff]  ;;  %v17887_v57 = vld [vmem:[%s23049_s2 + $0x68] sm:$0xff] }
 0x215   : > { %v2310_v30 = vrot.slane %v19790_v40, 1  ;;  %v2312_v55 = vrot.slane %v19811_v36, 1 }
 0x216   : > { %2581 = vmatmul.bf16.gmra.mxu0 %v17834_v50  ;;  %v1633_v50 = vadd.f32 %v1632_v52, %v1527_v43 }
 0x217   : > { %v2311_v11 = vsel %vm1681_vm13, %v2308_v59, %v2310_v30  ;;  %v17888_v59 = vld [vmem:[%s23049_s2 + $0x70] sm:$0xff]  ;;  %v2313_v44 = vsel %vm1681_vm13, %v2310_v30, %v2312_v55  ;;  %v17908_v30 = vld [vmem:[%s23049_s2 + $0xf8] sm:$0xff] }
 0x218   : > { %2228 = vmatmul.bf16.gmra.mxu2 %v2110_v49  ;;  %v1635_v3 = vpop.f32.mrf.mxu3  ;;  %v1809_v20 = vadd.f32 %v1776_v34, %v1633_v50  ;;  %v2746_v34 = vshrl.u32 %v19596_v39, 16  ;;  %3275 = vmatpush.bf16.msra.mxu3 %v17888_v59  ;;  %v2131_v39 = vshll.u32 %v19790_v40, 16  ;;  %v17884_v59 = vld [vmem:[%s23049_s2 + $0x50] sm:$0xff] }
 0x219   : > { %3569 = vmatpush.bf16.msrb.mxu1 %v17908_v30 }
 0x21a   : > { %v19803_v52 = vadd.f32 %v1970_v32, %v1809_v20  ;;  %v2752_v20 = vrot.slane %v2750_v41, 1  ;;  %v19855_v41 = vld [vmem:[#allocation3 + $0x40] sm:$0xff] }
 0x21c   : > { %3276 = vmatpush.bf16.msra.mxu3 %v17887_v57 }
 0x220   : > { %v1637_v31 = vpop.f32.mrf.mxu3 }
 0x222   : > { %v1973_v49 = vpop.f32.mrf.mxu1 }
 0x223   : > { %2397 = vmatmul.bf16.gmra.mxu3 %v2309_v18  ;;  %v2125_v18 = vrot.slane %v2123_v63, 1  ;;  %v2748_v63 = vor.u32 %v2746_v34, %v2744_v58  ;;  %v2127_v58 = vshrl.u32 %v19773_v53, 16  ;;  %v17885_v53 = vld [vmem:[%s23049_s2 + $0x58] sm:$0xff]  ;;  %v17907_v34 = vld [vmem:[%s23049_s2 + $0xf0] sm:$0xff] }
 0x224   : > { %2852 = vmatmul.bf16.gmra.mxu1 %v2737_v24  ;;  %v1779_v5 = vpop.f32.mrf.mxu0 }
 0x225   : > { %3570 = vmatpush.bf16.msrb.mxu1 %v17907_v34 }
 0x226   : > { %2586 = vmatmul.bf16.gmra.mxu0 %v17835_v19 }
 0x228   : > { %2233 = vmatmul.bf16.gmra.mxu2 %v2118_v33  ;;  %v1640_v24 = vpop.f32.mrf.mxu3  ;;  %v2126_v33 = vsel %vm1381_vm12, %v2121_v28, %v2125_v18  ;;  %v2133_v28 = vrot.slane %v2131_v39, 1 }
 0x22a   : > { %v1975_v32 = vpop.f32.mrf.mxu1 }
 0x22c   : > { %v1530_v19 = vpop.f32.mrf.mxu2 }
 0x22d   : > { %v1636_v47 = vadd.f32 %v1635_v3, %v1530_v19  ;;  %v1781_v3 = vpop.f32.mrf.mxu0  ;;  %v2129_v19 = vor.u32 %v2127_v58, %v2125_v18 }
 0x22f   : > { %v1810_v23 = vadd.f32 %v1779_v5, %v1636_v47  ;;  %v17837_v47 = vld [vmem:[#allocation3 + $0x30] sm:$0xff]  ;;  %v2134_v18 = vsel %vm1381_vm12, %v2129_v19, %v2133_v28 }
 0x230   : > { %v19817_v50 = vpop.f32.mrf.mxu3 }
 0x231   : > { %v19815_v42 = vadd.f32 %v1973_v49, %v1810_v23  ;;  %v17886_v49 = vld [vmem:[%s23049_s2 + $0x60] sm:$0xff]  ;;  %v17897_v23 = vld [vmem:[%s23049_s2 + $0xb8] sm:$0xff] }
 0x232   : > { %3277 = vmatpush.bf16.msra.mxu3 %v17886_v49  ;;  %3451 = vmatpush.bf16.msrb.mxu0 %v17897_v23  ;;  %v2314_v49 = vrot.slane %v19855_v41, 1 }
 0x233   : > { %2402 = vmatmul.bf16.gmra.mxu3 %v2311_v11  ;;  %v2753_v11 = vsel %vm1381_vm12, %v2748_v63, %v2752_v20 }
 0x234   : > { %2857 = vmatmul.bf16.gmra.mxu1 %v2745_v60  ;;  %v1532_v26 = vpop.f32.mrf.mxu2  ;;  %v2315_v23 = vsel %vm1681_vm13, %v2312_v55, %v2314_v49 }
 0x235   : > { %v1638_v43 = vadd.f32 %v1637_v31, %v1532_v26  ;;  %v17869_v31 = vld [vmem:[%s23049_s2 + $0x228] sm:$0xff]  ;;  %v2758_v26 = vshll.u32 %v19687_v35, 16 }
 0x236   : > { %2591 = vmatmul.bf16.gmra.mxu0 %v17836_v7  ;;  %2995 = vmatpush.bf16.msra.mxu2 %v17869_v31 }
 0x237   : > { %v1811_v0 = vadd.f32 %v1781_v3, %v1638_v43  ;;  %3278 = vmatpush.bf16.msra.mxu3 %v17885_v53  ;;  %v2754_v3 = vshrl.u32 %v19652_v17, 16  ;;  %v2760_v58 = vrot.slane %v2758_v26, 1  ;;  %v17883_v17 = vld [vmem:[%s23049_s2 + $0x48] sm:$0xff]  ;;  %v17868_v53 = vld [vmem:[%s23049_s2 + $0x220] sm:$0xff] }
 0x238   : > { %2238 = vmatmul.bf16.gmra.mxu2 %v2126_v33  ;;  %v2030_v26 = vld [vmem:[#allocation3 + $0x48] sm:$0x1] }
 0x239   : > { %v19835_v60 = vadd.f32 %v1975_v32, %v1811_v0  ;;  %v2756_v31 = vor.u32 %v2754_v3, %v2752_v20  ;;  %v17895_v20 = vld [vmem:[%s23049_s2 + $0xa8] sm:$0xff]  ;;  %v2081_v55 = vunpack.c.l.b16 %v2030_v26 }
 0x23a   : > { %2996 = vmatpush.bf16.msra.mxu2 %v17868_v53  ;;  %v2766_v53 = vshll.u32 %v19714_v9, 16 }
 0x23b   : > { %3279 = vmatpush.bf16.msra.mxu3 %v17884_v59 }
 0x23f   : > { %3280 = vmatpush.bf16.msra.mxu3 %v17883_v17 }
 0x241   : > { %v1978_v5 = vpop.f32.mrf.mxu1 }
 0x243   : > { %v1784_v7 = vpop.f32.mrf.mxu0  ;;  %2407 = vmatmul.bf16.gmra.mxu3 %v2313_v44  ;;  %v17896_v44 = vld [vmem:[%s23049_s2 + $0xb0] sm:$0xff] }
 0x244   : > { %2862 = vmatmul.bf16.gmra.mxu1 %v2753_v11  ;;  %v2135_v11 = vshrl.u32 %v19790_v40, 16  ;;  %3452 = vmatpush.bf16.msrb.mxu0 %v17896_v44  ;;  %v17905_v40 = vld [vmem:[%s23049_s2 + $0xe0] sm:$0xff] }
 0x246   : > { %v19837_v33 = vpop.f32.mrf.mxu3  ;;  %2596 = vmatmul.bf16.gmra.mxu0 %v17837_v47  ;;  %v17882_v47 = vld [vmem:[%s23049_s2 + $0x40] sm:$0xff] }
 0x247   : > { %3281 = vmatpush.bf16.msra.mxu3 %v17882_v47  ;;  %v2762_v47 = vshrl.u32 %v19687_v35, 16  ;;  %v17892_v35 = vld [vmem:[%s23049_s2 + $0x90] sm:$0xff] }
 0x248   : > { %2243 = vmatmul.bf16.gmra.mxu2 %v2134_v18  ;;  %v2761_v18 = vsel %vm1381_vm12, %v2756_v31, %v2760_v58  ;;  %3453 = vmatpush.bf16.msrb.mxu0 %v17895_v20  ;;  %v17894_v31 = vld [vmem:[%s23049_s2 + $0xa0] sm:$0xff]  ;;  %v19916_v20 = vpack.c.b16 %v2081_v55, %v2081_v55 }
 0x249   : > { %v1980_v32 = vpop.f32.mrf.mxu1  ;;  %v2764_v26 = vor.u32 %v2762_v47, %v2760_v58  ;;  %v17891_v58 = vld [vmem:[%s23049_s2 + $0x88] sm:$0xff] }
 0x24b   : > { %v1535_v43 = vpop.f32.mrf.mxu2  ;;  %v1786_v63 = vpop.f32.mrf.mxu0 }
 0x24c   : > { %v1641_v57 = vadd.f32 %v1640_v24, %v1535_v43  ;;  %v17906_v24 = vld [vmem:[%s23049_s2 + $0xe8] sm:$0xff]  ;;  %3454 = vmatpush.bf16.msrb.mxu0 %v17894_v31 }
 0x24d   : > { %3571 = vmatpush.bf16.msrb.mxu1 %v17906_v24  ;;  %v17867_v24 = vld [vmem:[%s23049_s2 + $0x218] sm:$0xff]  ;;  %v17865_v31 = vld [vmem:[%s23049_s2 + $0x208] sm:$0xff] }
 0x24e   : > { %v1812_v39 = vadd.f32 %v1784_v7, %v1641_v57  ;;  %v19859_v0 = vpop.f32.mrf.mxu3  ;;  %v2139_v7 = vshll.u32 %v19811_v36, 16  ;;  %v17838_v57 = vld [vmem:[#allocation3 + $0x38] sm:$0xff]  ;;  %2997 = vmatpush.bf16.msra.mxu2 %v17867_v24  ;;  %v19951_v24 = vld [vmem:[#allocation3 + $0x40] sm:$0xff]  }
 0x250   : > { %v19884_v30 = vadd.f32 %v1978_v5, %v1812_v39  ;;  %v2137_v5 = vor.u32 %v2135_v11, %v2133_v28  ;;  %v2141_v3 = vrot.slane %v2139_v7, 1  ;;  %v17904_v28 = vld [vmem:[%s23049_s2 + $0xd8] sm:$0xff]  ;;  %v17903_v7 = vld [vmem:[%s23049_s2 + $0xd0] sm:$0xff] }
 0x251   : > { %v19873_v19 = vpop.f32.mrf.mxu1  ;;  %3572 = vmatpush.bf16.msrb.mxu1 %v17905_v40 }
 0x252   : > { %v2142_v17 = vsel %vm1381_vm12, %v2137_v5, %v2141_v3  ;;  %v2316_v5 = vrot.slane %v19916_v20, 1 }
 0x253   : > { %v1537_v59 = vpop.f32.mrf.mxu2  ;;  %v1789_v34 = vpop.f32.mrf.mxu0  ;;  %2412 = vmatmul.bf16.gmra.mxu3 %v2315_v23 }
 0x254   : > { %2867 = vmatmul.bf16.gmra.mxu1 %v2761_v18  ;;  %v1643_v43 = vadd.f32 %v19817_v50, %v1537_v59 }
 0x255   : > { %3573 = vmatpush.bf16.msrb.mxu1 %v17904_v28 }
 0x256   : > { %v1813_v39 = vadd.f32 %v1786_v63, %v1643_v43  ;;  %v19896_v44 = vpop.f32.mrf.mxu3  ;;  %2601 = vmatmul.bf16.gmra.mxu0 %v17838_v57  ;;  %v17893_v63 = vld [vmem:[%s23049_s2 + $0x98] sm:$0xff]  ;;  %v2768_v43 = vrot.slane %v2766_v53, 1  ;;  %v17902_v57 = vld [vmem:[%s23049_s2 + $0xc8] sm:$0xff] }
 0x257   : > { %3455 = vmatpush.bf16.msrb.mxu0 %v17893_v63 }
 0x258   : > { %2248 = vmatmul.bf16.gmra.mxu2 %v2142_v17  ;;  %v19911_v11 = vadd.f32 %v1980_v32, %v1813_v39  ;;  %v2147_v39 = vshll.u32 %v19855_v41, 16  ;;  %v2317_v17 = vsel %vm1681_vm13, %v2314_v49, %v2316_v5  ;;  %v2769_v63 = vsel %vm1381_vm12, %v2764_v26, %v2768_v43  ;;  %v17890_v26 = vld [vmem:[%s23049_s2 + $0x80] sm:$0xff] }
 0x259   : > { %v1985_v50 = vpop.f32.mrf.mxu1  ;;  %3574 = vmatpush.bf16.msrb.mxu1 %v17903_v7 }
 0x25b   : > { %v1540_v40 = vpop.f32.mrf.mxu2  ;;  %v1791_v23 = vpop.f32.mrf.mxu0  ;;  %3456 = vmatpush.bf16.msrb.mxu0 %v17892_v35  ;;  %v3198_v35 = vshll.u32 %v19951_v24, 16 }
 0x25c   : > { %v1646_v18 = vadd.f32 %v19837_v33, %v1540_v40  ;;  %v17866_v33 = vld [vmem:[%s23049_s2 + $0x210] sm:$0xff] }
 0x25d   : > { %2998 = vmatpush.bf16.msra.mxu2 %v17866_v33  ;;  %3575 = vmatpush.bf16.msrb.mxu1 %v17902_v57 }
 0x25e   : > { %v1814_v32 = vadd.f32 %v1789_v34, %v1646_v18  ;;  %v19921_v59 = vpop.f32.mrf.mxu3  ;;  %v2143_v34 = vshrl.u32 %v19811_v36, 16  ;;  %v17901_v36 = vld [vmem:[%s23049_s2 + $0xc0] sm:$0xff] }
 0x25f   : > { %v17839_v18 = vld [vmem:[#allocation3 + $0x40] sm:$0xff]  ;;  %3457 = vmatpush.bf16.msrb.mxu0 %v17891_v58  ;;  %v17880_v58 = vld [vmem:[%s23049_s2 + $0x30] sm:$0xff] }
 0x260   : > { %v19942_v28 = vadd.f32 %v19873_v19, %v1814_v32  ;;  %v2145_v53 = vor.u32 %v2143_v34, %v2141_v3  ;;  %v2149_v19 = vrot.slane %v2147_v39, 1  ;;  %v19954_v32 = vld [vmem:[#allocation3 + $0x48] sm:$0xff]  ;;  %v17864_v3 = vld [vmem:[%s23049_s2 + $0x200] sm:$0xff]  ;;  %v3196_v34 = vshrl.u32 %v19951_v24, 16 }
 0x261   : > { %v1988_v55 = vpop.f32.mrf.mxu1  ;;  %2999 = vmatpush.bf16.msra.mxu2 %v17865_v31  ;;  %3576 = vmatpush.bf16.msrb.mxu1 %v17901_v36  ;;  %v3200_v39 = vrot.slane %v3198_v35, 1  ;;  %v2770_v31 = vshrl.u32 %v19714_v9, 16  ;;  %v2774_v36 = vshll.u32 %v19758_v37, 16  ;;  %v17879_v9 = vld [vmem:[%s23049_s2 + $0x28] sm:$0xff]  ;;  %v2151_v37 = vshrl.u32 %v19855_v41, 16 }
 0x262   : > { %v2150_v57 = vsel %vm1381_vm12, %v2145_v53, %v2149_v19 }
 0x263   : > { %v1542_v7 = vpop.f32.mrf.mxu2  ;;  %v1794_v47 = vpop.f32.mrf.mxu0  ;;  %2417 = vmatmul.bf16.gmra.mxu3 %v2317_v17  ;;  %3458 = vmatpush.bf16.msrb.mxu0 %v17890_v26  ;;  %v3203_v17 = vshll.u32 %v19954_v32, 16  ;;  %v3201_v53 = vor.u32 %v3200_v39, %v3196_v34  ;;  %v2772_v35 = vor.u32 %v2770_v31, %v2768_v43  ;;  %v17840_v31 = vld [vmem:[#allocation3 + $0x48] sm:$0xff] }
 0x264   : > { %2872 = vmatmul.bf16.gmra.mxu1 %v2769_v63  ;;  %v1648_v40 = vadd.f32 %v19859_v0, %v1542_v7  ;;  %v17881_v0 = vld [vmem:[%s23049_s2 + $0x38] sm:$0xff] }
 0x265   : > { %3349 = vmatpush.bf16.msrb.mxu3 %v17881_v0  ;;  %3000 = vmatpush.bf16.msra.mxu2 %v17864_v3  ;;  %v3205_v26 = vrot.slane %v3203_v17, 1  ;;  %v2155_v0 = vshll.u32 %v19916_v20, 16  ;;  %v19996_v17 = vld [vmem:[#allocation3 + $0x50] sm:$0xff] }
 0x266   : > { %v1815_v49 = vadd.f32 %v1791_v23, %v1648_v40  ;;  %v19957_v5 = vpop.f32.mrf.mxu3  ;;  %2606 = vmatmul.bf16.gmra.mxu0 %v17839_v18 }
 0x267   : > { %v2157_v41 = vrot.slane %v2155_v0, 1 }
 0x268   : > { %2253 = vmatmul.bf16.gmra.mxu2 %v2150_v57  ;;  %v19969_v23 = vadd.f32 %v1985_v50, %v1815_v49  ;;  %v2776_v49 = vrot.slane %v2774_v36, 1 }
 0x269   : > { %v1990_v33 = vpop.f32.mrf.mxu1  ;;  %3350 = vmatpush.bf16.msrb.mxu3 %v17880_v58  ;;  %v2153_v58 = vor.u32 %v2151_v37, %v2149_v19 }
 0x26a   : > { %v2777_v43 = vsel %vm1381_vm12, %v2772_v35, %v2776_v49  ;;  %v3211_v35 = vshll.u32 %v19996_v17, 16  ;;  %v18958_v49 = vld [vmem:[#allocation3 + $0x40] sm:$0xf0] }
 0x26b   : > { %v1545_v63 = vpop.f32.mrf.mxu2  ;;  %v1796_v7 = vpop.f32.mrf.mxu0  ;;  %v2158_v19 = vsel %vm1381_vm12, %v2153_v58, %v2157_v41 }
 0x26c   : > { %v1651_v50 = vadd.f32 %v19896_v44, %v1545_v63  ;;  %v17878_v44 = vld [vmem:[%s23049_s2 + $0x20] sm:$0xff]  ;;  %v17877_v63 = vld [vmem:[%s23049_s2 + $0x18] sm:$0xff] }
 0x26d   : > { %3351 = vmatpush.bf16.msrb.mxu3 %v17879_v9  ;;  %v18959_v9 = vld [vmem:[#allocation3 + $0x40] sm:$0xe] }
 0x26e   : > { %v1816_v40 = vadd.f32 %v1794_v47, %v1651_v50  ;;  %v19979_v18 = vpop.f32.mrf.mxu3  ;;  %v3206_v47 = vsel %vm1381_vm12, %v3201_v53, %v3205_v26  ;;  %v17926_v50 = vld [vmem:[%s23049_s2 + $0x178] sm:$0xff] }
 0x26f   : > { %3827 = vmatpush.bf16.msra.mxu0 %v17926_v50 }
 0x270   : > { %v19986_v57 = vadd.f32 %v1988_v55, %v1816_v40  ;;  %v3207_v40 = vshrl.u32 %v19954_v32, 16 }
 0x271   : > { %v1993_v3 = vpop.f32.mrf.mxu1  ;;  %3352 = vmatpush.bf16.msrb.mxu3 %v17878_v44 }
 0x273   : > { %v1547_v34 = vpop.f32.mrf.mxu2  ;;  %v1799_v39 = vpop.f32.mrf.mxu0  ;;  %3282 = vmatmul.bf16.vlgmr.msra.gmra.mxu3 %v3206_v47  ;;  %v18948_v47 = vld [vmem:[#allocation3 + $0x10] sm:$0xe] }
 0x274   : > { %2877 = vmatmul.bf16.gmra.mxu1 %v2777_v43  ;;  %v1653_v20 = vadd.f32 %v19921_v59, %v1547_v34  ;;  %v18947_v43 = vld [vmem:[#allocation3 + $0x10] sm:$0xf0]  ;;  %v18960_v34 = vor.u32 %v18959_v9, %v18958_v49  ;;  %v17874_v49 = vld [vmem:[%s23049_s2] sm:$0xff] }
 0x275   : > { %3353 = vmatpush.bf16.msrb.mxu3 %v17877_v63  ;;  %v17875_v63 = vld [vmem:[%s23049_s2 + $0x8] sm:$0xff]  ;;  %v18949_v50 = vor.u32 %v18948_v47, %v18947_v43 }
 0x276   : > { %v1817_v55 = vadd.f32 %v1796_v7, %v1653_v20  ;;  %v19994_v36 = vpop.f32.mrf.mxu3  ;;  %2611 = vmatmul.bf16.gmra.mxu0 %v17840_v31  ;;  %v17876_v7 = vld [vmem:[%s23049_s2 + $0x10] sm:$0xff]  ;;  %v3209_v20 = vor.u32 %v3207_v40, %v3205_v26  ;;  %v3213_v31 = vrot.slane %v3211_v35, 1  ;;  %v17898_v26 = vld [vmem:[#allocation3 + $0x48] sm:$0xff]  ;;  %v3393_v40 = vrot.slane %v18960_v34, 1 }
 0x277   : > { %v3394_v35 = vrot.slane %v19954_v32, 1  ;;  %v2920_v43 = vrot.slane %v18949_v50, 1 }
 0x278   : > { %2258 = vmatmul.bf16.gmra.mxu2 %v2158_v19  ;;  %v20005_v59 = vadd.f32 %v1990_v33, %v1817_v55  ;;  %v3160_v33 = vld [vmem:[#allocation3 + $0x58] sm:$0x1]  ;;  %v17925_v55 = vld [vmem:[%s23049_s2 + $0x170] sm:$0xff]  ;;  %v3214_v9 = vsel %vm1381_vm12, %v3209_v20, %v3213_v31  ;;  %v17923_v20 = vld [vmem:[%s23049_s2 + $0x160] sm:$0xff] }
 0x279   : > { %v1995_v53 = vpop.f32.mrf.mxu1  ;;  %3354 = vmatpush.bf16.msrb.mxu3 %v17876_v7  ;;  %v3190_v19 = vunpack.c.l.b16 %v3160_v33  ;;  %3828 = vmatpush.bf16.msra.mxu0 %v17925_v55  ;;  %v3395_v34 = vsel %vm1681_vm13, %v3393_v40, %v3394_v35  ;;  %v2922_v55 = vsel %vm1681_vm13, %v2920_v43, %v2921_v10 }
 0x27b   : > { %v1550_v37 = vpop.f32.mrf.mxu2  ;;  %v1801_v0 = vpop.f32.mrf.mxu0 }
 0x27c   : > { %v1656_v44 = vadd.f32 %v19957_v5, %v1550_v37 }
 0x27d   : > { %3355 = vmatpush.bf16.msrb.mxu3 %v17875_v63 }
 0x27e   : > { %v1818_v58 = vadd.f32 %v1799_v39, %v1656_v44  ;;  %v20013_v41 = vpop.f32.mrf.mxu3  ;;  %v17924_v39 = vld [vmem:[%s23049_s2 + $0x168] sm:$0xff] }
 0x27f   : > { %3829 = vmatpush.bf16.msra.mxu0 %v17924_v39  ;;  %v1623_v39 = vadd.f32 %v19724_v21, %v19720_v16  ;;  %v3396_v21 = vrot.slane %v19996_v17, 1 }
 0x280   : > { %v20024_v7 = vadd.f32 %v1993_v3, %v1818_v58  ;;  %v20032_v3 = vpack.c.b16 %v3190_v19, %v3190_v19 }
 0x281   : > { %v2843_v5 = vpop.f32.mrf.mxu1  ;;  %3356 = vmatpush.bf16.msrb.mxu3 %v17874_v49 }
 0x282   : > { %v3219_v50 = vshll.u32 %v20032_v3, 16 }
 0x283   : > { %v1552_v37 = vpop.f32.mrf.mxu2  ;;  %v2577_v44 = vpop.f32.mrf.mxu0  ;;  %3287 = vmatmul.bf16.gmra.mxu3 %v3214_v9  ;;  %3830 = vmatpush.bf16.msra.mxu0 %v17923_v20  ;;  %v1805_v9 = vadd.f32 %v19726_v22, %v1623_v39 }
 0x284   : > { %3577 = vmatmul.bf16.vlgmr.msrb.gmra.mxu1 %v17898_v26  ;;  %v1658_v47 = vadd.f32 %v19979_v18, %v1552_v37  ;;  %v3215_v18 = vshrl.u32 %v19996_v17, 16  ;;  %v3221_v49 = vrot.slane %v3219_v50, 1 }
 0x285   : > { %v1999_v22 = vadd.f32 %v19734_v29, %v1805_v9  ;;  %v17918_v29 = vld [vmem:[%s23049_s2 + $0x138] sm:$0xff] }
 0x286   : > { %v1819_v33 = vadd.f32 %v1801_v0, %v1658_v47  ;;  %v2388_v58 = vpop.f32.mrf.mxu3  ;;  %3459 = vmatmul.bf16.vlgmr.msrb.gmra.mxu0 %v3395_v34  ;;  %v17922_v0 = vld [vmem:[%s23049_s2 + $0x158] sm:$0xff]  ;;  %v3217_v40 = vor.u32 %v3215_v18, %v3213_v31  ;;  %3719 = vmatpush.bf16.msra.mxu3 %v17918_v29 }
 0x287   : > { %3831 = vmatpush.bf16.msra.mxu0 %v17922_v0 }
 0x288   : > { %3001 = vmatmul.bf16.vlgmr.msra.gmra.mxu2 %v2922_v55  ;;  %v20046_v19 = vadd.f32 %v1995_v53, %v1819_v33  ;;  %v17921_v53 = vld [vmem:[%s23049_s2 + $0x150] sm:$0xff]  ;;  %v3222_v34 = vsel %vm1381_vm12, %v3217_v40, %v3221_v49  ;;  %v3397_v55 = vsel %vm1681_vm13, %v3394_v35, %v3396_v21  ;;  %v1628_v35 = vadd.f32 %v19748_v2, %v19776_v56  ;;  %v17937_v2 = vld [vmem:[%s23049_s2 + $0x1b8] sm:$0xff] }
 0x289   : > { %v2845_v63 = vpop.f32.mrf.mxu1  ;;  %v3398_v56 = vrot.slane %v20032_v3, 1  ;;  %3945 = vmatpush.bf16.msra.mxu1 %v17937_v2  ;;  %v17932_v2 = vld [vmem:[%s23049_s2 + $0x190] sm:$0xff] }
 0x28a   : > { %v1807_v49 = vadd.f32 %v19765_v51, %v1628_v35  ;;  %v17915_v51 = vld [vmem:[%s23049_s2 + $0x120] sm:$0xff] }
 0x28b   : > { %v2224_v26 = vpop.f32.mrf.mxu2  ;;  %v2579_v6 = vpop.f32.mrf.mxu0  ;;  %3832 = vmatpush.bf16.msra.mxu0 %v17921_v53  ;;  %v3399_v3 = vsel %vm1681_vm13, %v3396_v21, %v3398_v56  ;;  %v17934_v21 = vld [vmem:[%s23049_s2 + $0x1a0] sm:$0xff] }
 0x28c   : > { %v2264_v10 = vadd.f32 %v2224_v26, %v19716_v13  ;;  %v17920_v13 = vld [vmem:[%s23049_s2 + $0x148] sm:$0xff]  ;;  %v2001_v53 = vadd.f32 %v19760_v38, %v1807_v49  ;;  %v20128_v49 = vld [vmem:[#allocation3 + $0x50] sm:$0xff] }
 0x28d   : > { %v17935_v38 = vld [vmem:[%s23049_s2 + $0x1a8] sm:$0xff] }
 0x28e   : > { %v2423_v37 = vadd.f32 %v19994_v36, %v2264_v10  ;;  %v2390_v43 = vpop.f32.mrf.mxu3 }
 0x28f   : > { %3833 = vmatpush.bf16.msra.mxu0 %v17920_v13 }
 0x290   : > { %v2617_v16 = vadd.f32 %v2577_v44, %v2423_v37  ;;  %v17919_v44 = vld [vmem:[%s23049_s2 + $0x140] sm:$0xff]  ;;  %v17899_v37 = vld [vmem:[#allocation3 + $0x50] sm:$0xff] }
 0x291   : > { %v2848_v47 = vpop.f32.mrf.mxu1 }
 0x292   : > { %v20062_v31 = vadd.f32 %v2843_v5, %v2617_v16 }
 0x293   : > { %v2226_v36 = vpop.f32.mrf.mxu2  ;;  %v2582_v33 = vpop.f32.mrf.mxu0  ;;  %3292 = vmatmul.bf16.gmra.mxu3 %v3222_v34  ;;  %3834 = vmatpush.bf16.msra.mxu0 %v17919_v44 }
 0x294   : > { %v2265_v20 = vadd.f32 %v2226_v36, %v1999_v22  ;;  %3582 = vmatmul.bf16.gmra.mxu1 %v17899_v37  ;;  %v3770_v37 = vrot.slane %v20128_v49, 1 }
 0x296   : > { %v2424_v18 = vadd.f32 %v20013_v41, %v2265_v20  ;;  %v2393_v50 = vpop.f32.mrf.mxu3  ;;  %3464 = vmatmul.bf16.gmra.mxu0 %v3397_v55  ;;  %v17917_v41 = vld [vmem:[%s23049_s2 + $0x130] sm:$0xff]  ;;  %v17914_v20 = vld [vmem:[%s23049_s2 + $0x118] sm:$0xff]  ;;  %v18962_v55 = vld [vmem:[#allocation3 + $0x48] sm:$0xf0] }
 0x297   : > { %3720 = vmatpush.bf16.msra.mxu3 %v17917_v41 }
 0x298   : > { %3006 = vmatmul.bf16.gmra.mxu2 %v19574_v12  ;;  %v2618_v0 = vadd.f32 %v2579_v6, %v2424_v18  ;;  %v17916_v6 = vld [vmem:[%s23049_s2 + $0x128] sm:$0xff] }
 0x299   : > { %v2850_v5 = vpop.f32.mrf.mxu1  ;;  %v18963_v18 = vld [vmem:[#allocation3 + $0x48] sm:$0xe] }
 0x29a   : > { %v20078_v39 = vadd.f32 %v2845_v63, %v2618_v0  ;;  %v18964_v41 = vor.u32 %v18963_v18, %v18962_v55  ;;  %v18961_v18 = vld [vmem:[#allocation3 + $0x48] sm:$0xff]  }
 0x29b   : > { %v2229_v26 = vpop.f32.mrf.mxu2  ;;  %v2584_v10 = vpop.f32.mrf.mxu0  ;;  %3721 = vmatpush.bf16.msra.mxu3 %v17916_v6 }
 0x29c   : > { %v2266_v40 = vadd.f32 %v2229_v26, %v19742_v46 }
 0x29e   : > { %v2425_v12 = vadd.f32 %v2388_v58, %v2266_v40  ;;  %v20082_v9 = vpop.f32.mrf.mxu3  ;;  %v17936_v58 = vld [vmem:[%s23049_s2 + $0x1b0] sm:$0xff]  ;;  %v17900_v40 = vld [vmem:[#allocation3 + $0x58] sm:$0xff] }
 0x29f   : > { %3722 = vmatpush.bf16.msra.mxu3 %v17915_v51  ;;  %3946 = vmatpush.bf16.msra.mxu1 %v17936_v58 }
 0x2a0   : > { %v2619_v46 = vadd.f32 %v2582_v33, %v2425_v12 }
 0x2a1   : > { %v2853_v63 = vpop.f32.mrf.mxu1 }
 0x2a2   : > { %v20098_v34 = vadd.f32 %v2848_v47, %v2619_v46 }
 0x2a3   : > { %v2231_v13 = vpop.f32.mrf.mxu2  ;;  %v2587_v16 = vpop.f32.mrf.mxu0  ;;  %3357 = vmatmul.bf16.vlgmr.msrb.gmra.mxu3 %v19951_v24  ;;  %3947 = vmatpush.bf16.msra.mxu1 %v17935_v38  ;;  %v17927_v38 = vld [vmem:[#allocation3 + $0x50] sm:$0xff] }
 0x2a4   : > { %v2267_v22 = vadd.f32 %v2231_v13, %v2001_v53  ;;  %3723 = vmatpush.bf16.msra.mxu3 %v17914_v20  ;;  %3587 = vmatmul.bf16.gmra.mxu1 %v17900_v40  ;;  %v3648_v40 = vshll.u32 %v20128_v49, 16 }
 0x2a6   : > { %v2426_v36 = vadd.f32 %v2390_v43, %v2267_v22  ;;  %v2398_v33 = vpop.f32.mrf.mxu3  ;;  %3469 = vmatmul.bf16.gmra.mxu0 %v3399_v3  ;;  %v17913_v43 = vld [vmem:[%s23049_s2 + $0x110] sm:$0xff] }
 0x2a7   : > { %3948 = vmatpush.bf16.msra.mxu1 %v17934_v21 }
 0x2a8   : > { %3011 = vmatmul.bf16.gmra.mxu2 %v19631_v61  ;;  %v2620_v24 = vadd.f32 %v2584_v10, %v2426_v36  ;;  %3724 = vmatpush.bf16.msra.mxu3 %v17913_v43  ;;  %v17912_v10 = vld [vmem:[%s23049_s2 + $0x108] sm:$0xff] }
 0x2a9   : > { %v20108_v47 = vpop.f32.mrf.mxu1 }
 0x2aa   : > { %v20117_v44 = vadd.f32 %v2850_v5, %v2620_v24  ;;  %v17933_v5 = vld [vmem:[%s23049_s2 + $0x198] sm:$0xff] }
 0x2ab   : > { %v2234_v29 = vpop.f32.mrf.mxu2  ;;  %v20119_v0 = vpop.f32.mrf.mxu0  ;;  %3949 = vmatpush.bf16.msra.mxu1 %v17933_v5 }
 0x2ac   : > { %v2268_v61 = vadd.f32 %v2234_v29, %v19788_v14  ;;  %v3769_v14 = vrot.slane %v18964_v41, 1  ;;  %3725 = vmatpush.bf16.msra.mxu3 %v17912_v10 }
 0x2ae   : > { %v2427_v35 = vadd.f32 %v2393_v50, %v2268_v61  ;;  %v2400_v26 = vpop.f32.mrf.mxu3  ;;  %v17911_v50 = vld [vmem:[%s23049_s2 + $0x100] sm:$0xff]  ;;  %v3771_v53 = vsel %vm1681_vm13, %v3769_v14, %v3770_v37 }
 0x2af   : > { %3950 = vmatpush.bf16.msra.mxu1 %v17932_v2 }
 0x2b0   : > { %v2621_v6 = vadd.f32 %v2587_v16, %v2427_v35  ;;  %3726 = vmatpush.bf16.msra.mxu3 %v17911_v50 }
 0x2b1   : > { %v2858_v12 = vpop.f32.mrf.mxu1 }
 0x2b2   : > { %v20137_v56 = vadd.f32 %v2853_v63, %v2621_v6  ;;  %v17931_v63 = vld [vmem:[%s23049_s2 + $0x188] sm:$0xff] }
 0x2b3   : > { %v2236_v46 = vpop.f32.mrf.mxu2  ;;  %v2592_v51 = vpop.f32.mrf.mxu0  ;;  %3362 = vmatmul.bf16.gmra.mxu3 %v19954_v32  ;;  %3951 = vmatpush.bf16.msra.mxu1 %v17931_v63  ;;  %v17953_v63 = vld [vmem:[%s23049_s2 + $0x228] sm:$0xff] }
 0x2b4   : > { %v2269_v58 = vadd.f32 %v2236_v46, %v19803_v52  ;;  %v17930_v52 = vld [vmem:[%s23049_s2 + $0x180] sm:$0xff]  ;;  %v3650_v46 = vrot.slane %v3648_v40, 1 }
 0x2b6   : > { %v20145_v13 = vadd.f32 %v20082_v9, %v2269_v58  ;;  %v2403_v16 = vpop.f32.mrf.mxu3  ;;  %3835 = vmatmul.bf16.vlgmr.msra.gmra.mxu0 %v3771_v53  ;;  %v17928_v58 = vld [vmem:[#allocation3 + $0x58] sm:$0xff]  ;;  %v17946_v53 = vld [vmem:[%s23049_s2 + $0x1f0] sm:$0xff] }
 0x2b7   : > { %3952 = vmatpush.bf16.msra.mxu1 %v17930_v52  ;;  %v17945_v52 = vld [vmem:[%s23049_s2 + $0x1e8] sm:$0xff] }
 0x2b8   : > { %3016 = vmatmul.bf16.gmra.mxu2 %v19634_v62 }
 0x2b9   : > { %v20150_v3 = vpop.f32.mrf.mxu1 }
 0x2ba   : > { %3953 = vmatmul.bf16.vlgmr.msra.gmra.mxu1 %v17927_v38 }
 0x2bb   : > { %v2239_v32 = vpop.f32.mrf.mxu2  ;;  %v20156_v22 = vpop.f32.mrf.mxu0 }
 0x2bc   : > { %v2270_v9 = vadd.f32 %v2239_v32, %v19815_v42  ;;  %v3643_v42 = vshll.u32 %v18961_v18, 16 }
 0x2be   : > { %v2429_v36 = vadd.f32 %v2398_v33, %v2270_v9  ;;  %v2405_v20 = vpop.f32.mrf.mxu3  ;;  %v17955_v33 = vld [vmem:[%s23049_s2 + $0x238] sm:$0xff]  ;;  %v3645_v10 = vrot.slane %v3643_v42, 1  ;;  %v17952_v9 = vld [vmem:[%s23049_s2 + $0x220] sm:$0xff] }
 0x2bf   : > { %4203 = vmatpush.bf16.msrb.mxu3 %v17955_v33  ;;  %v17944_v42 = vld [vmem:[%s23049_s2 + $0x1e0] sm:$0xff] }
 0x2c0   : > { %v2623_v43 = vadd.f32 %v2592_v51, %v2429_v36 }
 0x2c1   : > { %v2863_v24 = vpop.f32.mrf.mxu1 }
 0x2c2   : > { %v20159_v21 = vadd.f32 %v2858_v12, %v2623_v43 }
 0x2c3   : > { %v2241_v62 = vpop.f32.mrf.mxu2  ;;  %v2597_v55 = vpop.f32.mrf.mxu0  ;;  %3367 = vmatmul.bf16.gmra.mxu3 %v19996_v17  ;;  %v17947_v17 = vld [vmem:[%s23049_s2 + $0x1f8] sm:$0xff] }
 0x2c4   : > { %v2271_v29 = vadd.f32 %v2241_v62, %v19835_v60  ;;  %v17954_v60 = vld [vmem:[%s23049_s2 + $0x230] sm:$0xff]  ;;  %4095 = vmatpush.bf16.msrb.mxu2 %v17947_v17 }
 0x2c5   : > { %4204 = vmatpush.bf16.msrb.mxu3 %v17954_v60  ;;  %v17943_v60 = vld [vmem:[%s23049_s2 + $0x1d8] sm:$0xff] }
 0x2c6   : > { %v20163_v61 = vadd.f32 %v2400_v26, %v2271_v29  ;;  %v20165_v41 = vpop.f32.mrf.mxu3  ;;  %v3641_v26 = vshrl.u32 %v18961_v18, 16  ;;  %v3605_v29 = vld [vmem:[#allocation3 + $0x60] sm:$0x1] }
 0x2c8   : > { %3021 = vmatmul.bf16.gmra.mxu2 %v19668_v27  ;;  %v20183_v27 = vld [vmem:[#allocation3 + $0x58] sm:$0xff]  ;;  %v3646_v2 = vor.u32 %v3645_v10, %v3641_v26  ;;  %v17950_v26 = vld [vmem:[%s23049_s2 + $0x210] sm:$0xff] }
 0x2c9   : > { %v20170_v35 = vpop.f32.mrf.mxu1  ;;  %v3772_v51 = vrot.slane %v20183_v27, 1  ;;  %4096 = vmatpush.bf16.msrb.mxu2 %v17946_v53  ;;  %4205 = vmatpush.bf16.msrb.mxu3 %v17953_v63  ;;  %v3656_v17 = vshll.u32 %v20183_v27, 16  ;;  %v17929_v53 = vld [vmem:[#allocation3 + $0x60] sm:$0xff]  ;;  %v17942_v63 = vld [vmem:[%s23049_s2 + $0x1d0] sm:$0xff] }
 0x2ca   : > { %3958 = vmatmul.bf16.gmra.mxu1 %v17928_v58  ;;  %v3651_v36 = vsel %vm1381_vm12, %v3646_v2, %v3650_v46 }
 0x2cb   : > { %v2244_v5 = vpop.f32.mrf.mxu2  ;;  %v20180_v12 = vpop.f32.mrf.mxu0 }
 0x2cc   : > { %v2272_v6 = vadd.f32 %v2244_v5, %v19884_v30 }
 0x2cd   : > { %4097 = vmatpush.bf16.msrb.mxu2 %v17945_v52  ;;  %4206 = vmatpush.bf16.msrb.mxu3 %v17952_v9  ;;  %v17948_v9 = vld [vmem:[%s23049_s2 + $0x200] sm:$0xff] }
 0x2ce   : > { %v2431_v14 = vadd.f32 %v2403_v16, %v2272_v6  ;;  %v20185_v50 = vpop.f32.mrf.mxu3  ;;  %v3773_v16 = vsel %vm1681_vm13, %v3770_v37, %v3772_v51 }
 0x2cf   : > { %3840 = vmatmul.bf16.gmra.mxu0 %v3773_v16  ;;  %v17949_v16 = vld [vmem:[%s23049_s2 + $0x208] sm:$0xff] }
 0x2d0   : > { %v2625_v32 = vadd.f32 %v2597_v55, %v2431_v14 }
 0x2d1   : > { %v2868_v30 = vpop.f32.mrf.mxu1  ;;  %4098 = vmatpush.bf16.msrb.mxu2 %v17944_v42  ;;  %v17940_v42 = vld [vmem:[%s23049_s2 + $0x1c0] sm:$0xff] }
 0x2d2   : > { %v20204_v38 = vadd.f32 %v2863_v24, %v2625_v32  ;;  %v17951_v24 = vld [vmem:[%s23049_s2 + $0x218] sm:$0xff] }
 0x2d3   : > { %v2246_v43 = vpop.f32.mrf.mxu2  ;;  %v2602_v62 = vpop.f32.mrf.mxu0  ;;  %3727 = vmatmul.bf16.vlgmr.msra.gmra.mxu3 %v3651_v36 }
 0x2d4   : > { %v2273_v37 = vadd.f32 %v2246_v43, %v19911_v11  ;;  %v3652_v11 = vshrl.u32 %v20128_v49, 16  ;;  %4207 = vmatpush.bf16.msrb.mxu3 %v17951_v24  ;;  %v3658_v49 = vrot.slane %v3656_v17, 1  ;;  %v3660_v24 = vshrl.u32 %v20183_v27, 16 }
 0x2d5   : > { %4099 = vmatpush.bf16.msrb.mxu2 %v17943_v60 }
 0x2d6   : > { %v20207_v18 = vadd.f32 %v2405_v20, %v2273_v37  ;;  %v2413_v55 = vpop.f32.mrf.mxu3  ;;  %v3635_v20 = vunpack.c.l.b16 %v3605_v29  ;;  %v3654_v5 = vor.u32 %v3652_v11, %v3650_v46 }
 0x2d8   : > { %3026 = vmatmul.bf16.gmra.mxu2 %v19702_v45  ;;  %v3639_v6 = vpack.c.b16 %v3635_v20, %v3635_v20  ;;  %4208 = vmatpush.bf16.msrb.mxu3 %v17950_v26  ;;  %v3662_v26 = vor.u32 %v3660_v24, %v3658_v49 }
 0x2d9   : > { %v20215_v33 = vpop.f32.mrf.mxu1  ;;  %4100 = vmatpush.bf16.msrb.mxu2 %v17942_v63  ;;  %v18967_v63 = vld [vmem:[#allocation3 + $0x50] sm:$0xe] }
 0x2da   : > { %v3774_v58 = vrot.slane %v3639_v6, 1  ;;  %3963 = vmatmul.bf16.gmra.mxu1 %v17929_v53  ;;  %v3664_v11 = vshll.u32 %v3639_v6, 16  ;;  %v18966_v53 = vld [vmem:[#allocation3 + $0x50] sm:$0xf0] }
 0x2db   : > { %v2249_v10 = vpop.f32.mrf.mxu2  ;;  %v20226_v40 = vpop.f32.mrf.mxu0 }
 0x2dc   : > { %v2274_v45 = vadd.f32 %v2249_v10, %v19942_v28  ;;  %v3659_v28 = vsel %vm1381_vm12, %v3654_v5, %v3658_v49  ;;  %v3775_v46 = vsel %vm1681_vm13, %v3772_v51, %v3774_v58  ;;  %4209 = vmatpush.bf16.msrb.mxu3 %v17949_v16  ;;  %v3666_v10 = vrot.slane %v3664_v11, 1  ;;  %v17968_v5 = vld [vmem:[%s23050_s3 + $0x28] sm:$0xff] }
 0x2de   : > { %v2433_v14 = vadd.f32 %v20165_v41, %v2274_v45  ;;  %v2415_v2 = vpop.f32.mrf.mxu3  ;;  %v17941_v41 = vld [vmem:[%s23049_s2 + $0x1c8] sm:$0xff]  ;;  %v3667_v27 = vsel %vm1381_vm12, %v3662_v26, %v3666_v10 }
 0x2df   : > { %3845 = vmatmul.bf16.gmra.mxu0 %v3775_v46  ;;  %4101 = vmatpush.bf16.msrb.mxu2 %v17941_v41  ;;  %v20281_v41 = vld [vmem:[#allocation3 + $0x58] sm:$0xff] }
 0x2e0   : > { %v2627_v52 = vadd.f32 %v2602_v62, %v2433_v14  ;;  %4210 = vmatpush.bf16.msrb.mxu3 %v17948_v9  ;;  %v17967_v14 = vld [vmem:[%s23050_s3 + $0x20] sm:$0xff]  ;;  %v4024_v24 = vshll.u32 %v20281_v41, 16 }
 0x2e1   : > { %v2873_v32 = vpop.f32.mrf.mxu1 }
 0x2e2   : > { %v20244_v36 = vadd.f32 %v2868_v30, %v2627_v52  ;;  %v17970_v30 = vld [vmem:[%s23050_s3 + $0x38] sm:$0xff]  ;;  %v18965_v52 = vld [vmem:[#allocation3 + $0x50] sm:$0xff]   ;;  %v4026_v10 = vrot.slane %v4024_v24, 1 }
 0x2e3   : > { %v2251_v43 = vpop.f32.mrf.mxu2  ;;  %v2607_v37 = vpop.f32.mrf.mxu0  ;;  %3732 = vmatmul.bf16.gmra.mxu3 %v3659_v28  ;;  %4102 = vmatpush.bf16.msrb.mxu2 %v17940_v42  ;;  %v4019_v9 = vshll.u32 %v18965_v52, 16  ;;  %v4146_v42 = vrot.slane %v20281_v41, 1 }
 0x2e4   : > { %v2275_v51 = vadd.f32 %v2251_v43, %v19969_v23  ;;  %4724 = vmatpush.bf16.msrb.mxu1 %v17970_v30  ;;  %v17969_v23 = vld [vmem:[%s23050_s3 + $0x30] sm:$0xff] }
 0x2e5   : > { %v4021_v30 = vrot.slane %v4019_v9, 1  ;;  %v17976_v9 = vld [vmem:[%s23050_s3 + $0x68] sm:$0xff] }
 0x2e6   : > { %v20248_v62 = vadd.f32 %v20185_v50, %v2275_v51  ;;  %v2418_v29 = vpop.f32.mrf.mxu3 }
 0x2e8   : > { %3031 = vmatmul.bf16.gmra.mxu2 %v19732_v25  ;;  %4725 = vmatpush.bf16.msrb.mxu1 %v17969_v23 }
 0x2e9   : > { %v20263_v20 = vpop.f32.mrf.mxu1 }
 0x2eb   : > { %v2254_v50 = vpop.f32.mrf.mxu2  ;;  %v20261_v17 = vpop.f32.mrf.mxu0 }
 0x2ec   : > { %v2276_v60 = vadd.f32 %v2254_v50, %v19986_v57  ;;  %4726 = vmatpush.bf16.msrb.mxu1 %v17968_v5 }
 0x2ee   : > { %v2435_v25 = vadd.f32 %v2413_v55, %v2276_v60  ;;  %v2420_v45 = vpop.f32.mrf.mxu3 }
 0x2f0   : > { %v2629_v6 = vadd.f32 %v2607_v37, %v2435_v25  ;;  %4727 = vmatpush.bf16.msrb.mxu1 %v17967_v14  ;;  %v17966_v25 = vld [vmem:[%s23050_s3 + $0x18] sm:$0xff] }
 0x2f1   : > { %v2878_v16 = vpop.f32.mrf.mxu1 }
 0x2f2   : > { %v20273_v58 = vadd.f32 %v2873_v32, %v2629_v6  ;;  %v18968_v32 = vor.u32 %v18967_v63, %v18966_v53  ;;  %v18002_v6 = vld [vmem:[%s23050_s3 + $0xf8] sm:$0xff]  ;;  %v17965_v53 = vld [vmem:[%s23050_s3 + $0x10] sm:$0xff] }
 0x2f3   : > { %v2256_v57 = vpop.f32.mrf.mxu2  ;;  %v2612_v49 = vpop.f32.mrf.mxu0  ;;  %3737 = vmatmul.bf16.gmra.mxu3 %v3667_v27 }
 0x2f4   : > { %v2277_v55 = vadd.f32 %v2256_v57, %v20005_v59  ;;  %v4145_v51 = vrot.slane %v18968_v32, 1  ;;  %4728 = vmatpush.bf16.msrb.mxu1 %v17966_v25  ;;  %v17977_v57 = vld [vmem:[%s23050_s3 + $0x70] sm:$0xff]  ;;  %5061 = vmatpush.bf16.msra.mxu3 %v18002_v6  ;;  %v20325_v32 = vld [vmem:[#allocation3 + $0x60] sm:$0xff] }
 0x2f5   : > { %v4148_v24 = vrot.slane %v20325_v32, 1 }
 0x2f6   : > { %v20276_v28 = vadd.f32 %v2415_v2, %v2277_v55  ;;  %v20278_v46 = vpop.f32.mrf.mxu3  ;;  %v4017_v2 = vshrl.u32 %v18965_v52, 16  ;;  %v4147_v50 = vsel %vm1681_vm13, %v4145_v51, %v4146_v42  ;;  %v17985_v52 = vld [vmem:[%s23050_s3 + $0xb0] sm:$0xff]  ;;  %v17984_v51 = vld [vmem:[%s23050_s3 + $0xa8] sm:$0xff] }
 0x2f8   : > { %3036 = vmatmul.bf16.gmra.mxu2 %v19770_v15  ;;  %v4022_v26 = vor.u32 %v4021_v30, %v4017_v2  ;;  %4729 = vmatpush.bf16.msrb.mxu1 %v17965_v53 }
 0x2f9   : > { %v20290_v15 = vpop.f32.mrf.mxu1 }
 0x2fa   : > { %v4027_v55 = vsel %vm1381_vm12, %v4022_v26, %v4026_v10  ;;  %v17963_v26 = vld [vmem:[%s23050_s3] sm:$0xff] }
 0x2fb   : > { %v2259_v43 = vpop.f32.mrf.mxu2  ;;  %v20283_v37 = vpop.f32.mrf.mxu0 }
 0x2fc   : > { %v2278_v59 = vadd.f32 %v2259_v43, %v20024_v7  ;;  %v17978_v7 = vld [vmem:[%s23050_s3 + $0x78] sm:$0xff]  ;;  %v18000_v43 = vld [vmem:[%s23050_s3 + $0xe8] sm:$0xff] }
 0x2fd   : > { %4619 = vmatpush.bf16.msrb.mxu0 %v17978_v7  ;;  %v17999_v7 = vld [vmem:[%s23050_s3 + $0xe0] sm:$0xff] }
 0x2fe   : > { %v2437_v11 = vadd.f32 %v2418_v29, %v2278_v59  ;;  %v20288_v23 = vpop.f32.mrf.mxu3 }
 0x300   : > { %v2631_v60 = vadd.f32 %v2612_v49, %v2437_v11  ;;  %v17986_v49 = vld [vmem:[%s23050_s3 + $0xb8] sm:$0xff]  ;;  %v17975_v11 = vld [vmem:[%s23050_s3 + $0x60] sm:$0xff] }
 0x301   : > { %4867 = vmatpush.bf16.msra.mxu2 %v17986_v49  ;;  %4620 = vmatpush.bf16.msrb.mxu0 %v17977_v57  ;;  %v20336_v59 = vpop.f32.mrf.mxu1  ;;  %v3981_v57 = vld [vmem:[#allocation3 + $0x68] sm:$0x1]  ;;  %v17974_v49 = vld [vmem:[%s23050_s3 + $0x58] sm:$0xff] }
 0x302   : > { %v20299_v27 = vadd.f32 %v2878_v16, %v2631_v60  ;;  %v4032_v60 = vshll.u32 %v20325_v32, 16 }
 0x303   : > { %v2261_v29 = vpop.f32.mrf.mxu2  ;;  %v20301_v5 = vpop.f32.mrf.mxu0  ;;  %4211 = vmatmul.bf16.vlgmr.msrb.gmra.mxu3 %v4147_v50  ;;  %v4028_v50 = vshrl.u32 %v20281_v41, 16  ;;  %v4149_v41 = vsel %vm1681_vm13, %v4146_v42, %v4148_v24  ;;  %v17998_v42 = vld [vmem:[%s23050_s3 + $0xd8] sm:$0xff] }
 0x304   : > { %v2279_v14 = vadd.f32 %v2261_v29, %v20046_v19  ;;  %v18001_v19 = vld [vmem:[%s23050_s3 + $0xf0] sm:$0xff] }
 0x305   : > { %5062 = vmatpush.bf16.msra.mxu3 %v18001_v19  ;;  %4868 = vmatpush.bf16.msra.mxu2 %v17985_v52  ;;  %v4030_v6 = vor.u32 %v4028_v50, %v4026_v10  ;;  %v4011_v52 = vunpack.c.l.b16 %v3981_v57 }
 0x306   : > { %v20320_v63 = vadd.f32 %v2420_v45, %v2279_v14  ;;  %v3288_v16 = vpop.f32.mrf.mxu3  ;;  %v17964_v45 = vld [vmem:[%s23050_s3 + $0x8] sm:$0xff]  ;;  %4621 = vmatpush.bf16.msrb.mxu0 %v17976_v9  ;;  %v4034_v14 = vrot.slane %v4032_v60, 1  ;;  %v17973_v9 = vld [vmem:[%s23050_s3 + $0x50] sm:$0xff] }
 0x307   : > { %4730 = vmatpush.bf16.msrb.mxu1 %v17964_v45 }
 0x308   : > { %4103 = vmatmul.bf16.vlgmr.msrb.gmra.mxu2 %v4027_v55  ;;  %v20362_v55 = vld [vmem:[#allocation4] sm:$0xff]  }
 0x309   : > { %5063 = vmatpush.bf16.msra.mxu3 %v18000_v43  ;;  %4869 = vmatpush.bf16.msra.mxu2 %v17984_v51  ;;  %v20375_v45 = vpop.f32.mrf.mxu1  ;;  %v4035_v43 = vsel %vm1381_vm12, %v4030_v6, %v4034_v14  ;;  %v17982_v51 = vld [vmem:[%s23050_s3 + $0x98] sm:$0xff]  ;;  %v17996_v6 = vld [vmem:[%s23050_s3 + $0xc8] sm:$0xff] }
 0x30a   : > { %4622 = vmatpush.bf16.msrb.mxu0 %v17975_v11 }
 0x30b   : > { %v3002_v2 = vpop.f32.mrf.mxu2  ;;  %v20341_v30 = vpop.f32.mrf.mxu0  ;;  %4731 = vmatpush.bf16.msrb.mxu1 %v17963_v26  ;;  %v4015_v26 = vpack.c.b16 %v4011_v52, %v4011_v52 }
 0x30c   : > { %v3042_v29 = vadd.f32 %v3002_v2, %v20062_v31  ;;  %v17983_v31 = vld [vmem:[%s23050_s3 + $0xa0] sm:$0xff] }
 0x30d   : > { %5064 = vmatpush.bf16.msra.mxu3 %v17999_v7  ;;  %4870 = vmatpush.bf16.msra.mxu2 %v17983_v31  ;;  %v17972_v7 = vld [vmem:[%s23050_s3 + $0x48] sm:$0xff]  ;;  %v4036_v31 = vshrl.u32 %v20325_v32, 16 }
 0x30e   : > { %v3290_v25 = vpop.f32.mrf.mxu3  ;;  %v3074_v10 = vmul.f32 0.2, %v3042_v29  ;;  %4623 = vmatpush.bf16.msrb.mxu0 %v17974_v49  ;;  %4732 = vmatmul.bf16.vlgmr.msrb.gmra.mxu1 %v20362_v55  ;;  %vm3058_vm15 = vcmp.ge.f32.partialorder %v3042_v29, 0.0  ;;  %v4150_v49 = vrot.slane %v4015_v26, 1 }
 0x310   : > { %v3090_v50 = vsel %vm3058_vm15, %v3042_v29, %v3074_v10  ;;  %v17980_v10 = vld [vmem:[%s23050_s3 + $0x88] sm:$0xff] }
 0x311   : > { %5065 = vmatpush.bf16.msra.mxu3 %v17998_v42  ;;  %4871 = vmatpush.bf16.msra.mxu2 %v17982_v51  ;;  %v4040_v42 = vshll.u32 %v4015_v26, 16  ;;  %v3583_v52 = vpop.f32.mrf.mxu1  ;;  %v4151_v51 = vsel %vm1681_vm13, %v4148_v24, %v4150_v49 }
 0x312   : > { %4624 = vmatpush.bf16.msrb.mxu0 %v17973_v9 }
 0x313   : > { %v3004_v53 = vpop.f32.mrf.mxu2  ;;  %v3465_v19 = vpop.f32.mrf.mxu0  ;;  %4216 = vmatmul.bf16.gmra.mxu3 %v4149_v41  ;;  %v17981_v41 = vld [vmem:[%s23050_s3 + $0x90] sm:$0xff] }
 0x314   : > { %v3043_v16 = vadd.f32 %v3004_v53, %v20078_v39  ;;  %v17997_v39 = vld [vmem:[%s23050_s3 + $0xd0] sm:$0xff]  ;;  %v4498_v53 = vshll.u32 %v20362_v55, 16  ;;  %v17971_v19 = vld [vmem:[%s23050_s3 + $0x40] sm:$0xff] }
 0x315   : > { %5066 = vmatpush.bf16.msra.mxu3 %v17997_v39  ;;  %4872 = vmatpush.bf16.msra.mxu2 %v17981_v41  ;;  %v4496_v39 = vshrl.u32 %v20362_v55, 16 }
 0x316   : > { %vm3059_vm0 = vcmp.ge.f32.partialorder %v3043_v16, 0.0  ;;  %v3075_v2 = vmul.f32 0.2, %v3043_v16  ;;  %v3293_v11 = vpop.f32.mrf.mxu3  ;;  %4625 = vmatpush.bf16.msrb.mxu0 %v17972_v7 }
 0x317   : > { %v4038_v11 = vor.u32 %v4036_v31, %v4034_v14 }
 0x318   : > { %v3091_v60 = vsel %vm3059_vm0, %v3043_v16, %v3075_v2  ;;  %4108 = vmatmul.bf16.gmra.mxu2 %v4035_v43  ;;  %v17995_v16 = vld [vmem:[%s23050_s3 + $0xc0] sm:$0xff]  ;;  %v4500_v2 = vrot.slane %v4498_v53, 1 }
 0x319   : > { %v18627_v25 = vpack.c.bf16 %v3091_v60, %v3090_v50  ;;  %5067 = vmatpush.bf16.msra.mxu3 %v17996_v6  ;;  %v4042_v50 = vrot.slane %v4040_v42, 1  ;;  %4873 = vmatpush.bf16.msra.mxu2 %v17980_v10  ;;  %v20409_v60 = vld [vmem:[#allocation4 + $0x8] sm:$0xff]  ;;  %v3585_v41 = vpop.f32.mrf.mxu1  ;;  %v18972_v10 = vld [vmem:[#allocation4] sm:$0xf0] }
 0x31a   : > { %4626 = vmatpush.bf16.msrb.mxu0 %v17971_v19  ;;  %v4503_v55 = vshll.u32 %v20409_v60, 16 }
 0x31b   : > { %18628 = vst [vmem:[#allocation2] sm:$0xff] %v18627_v25   ;;  %v3007_v29 = vpop.f32.mrf.mxu2  ;;  %v3467_v57 = vpop.f32.mrf.mxu0  ;;  %v4501_v25 = vor.u32 %v4500_v2, %v4496_v39  ;;  %v4043_v14 = vsel %vm1381_vm12, %v4038_v11, %v4042_v50  ;;  %v2622_v2 = vadd.f32 %v20119_v0, %v20145_v13  ;;  %v17987_v50 = vld [vmem:[#allocation4 + $0x8] sm:$0xff] }
 0x31c   : > { %v3044_v43 = vadd.f32 %v3007_v29, %v20098_v34  ;;  %v17979_v34 = vld [vmem:[%s23050_s3 + $0x80] sm:$0xff]  ;;  %v20418_v57 = vrot.slane %v4503_v55, 1 }
 0x31d   : > { %5068 = vmatpush.bf16.msra.mxu3 %v17995_v16  ;;  %4874 = vmatpush.bf16.msra.mxu2 %v17979_v34  ;;  %v18973_v16 = vld [vmem:[#allocation4] sm:$0xe]  ;;  %v4795_v34 = vrot.slane %v20409_v60, 1 }
 0x31e   : > { %v3295_v9 = vpop.f32.mrf.mxu3  ;;  %v3076_v32 = vmul.f32 0.2, %v3044_v43  ;;  %4737 = vmatmul.bf16.gmra.mxu1 %v20409_v60  ;;  %vm3060_vm1 = vcmp.ge.f32.partialorder %v3044_v43, 0.0  ;;  %v18974_v39 = vor.u32 %v18973_v16, %v18972_v10 }
 0x320   : > { %v3092_v53 = vsel %vm3060_vm1, %v3044_v43, %v3076_v32 }
 0x323   : > { %v3009_v26 = vpop.f32.mrf.mxu2  ;;  %v3470_v7 = vpop.f32.mrf.mxu0  ;;  %4221 = vmatmul.bf16.gmra.mxu3 %v4151_v51 }
 0x324   : > { %v3045_v24 = vadd.f32 %v3009_v26, %v20117_v44  ;;  %v4506_v44 = vsel %vm1381_vm12, %v4501_v25, %v20418_v57  ;;  %v4794_v7 = vrot.slane %v18974_v39, 1 }
 0x325   : > { %4627 = vmatmul.bf16.vlgmr.msrb.gmra.mxu0 %v4506_v44 }
 0x326   : > { %vm3061_vm3 = vcmp.ge.f32.partialorder %v3045_v24, 0.0  ;;  %v3077_v6 = vmul.f32 0.2, %v3045_v24  ;;  %v3358_v29 = vpop.f32.mrf.mxu3 }
 0x327   : > { %v3359_v49 = vadd.f32 %v3358_v29, %v20278_v46  ;;  %v3588_v46 = vpop.f32.mrf.mxu1 }
 0x328   : > { %v3093_v19 = vsel %vm3061_vm3, %v3045_v24, %v3077_v6  ;;  %4113 = vmatmul.bf16.gmra.mxu2 %v4043_v14  ;;  %v4507_v46 = vshrl.u32 %v20409_v60, 16 }
 0x329   : > { %v18632_v31 = vpack.c.bf16 %v3093_v19, %v3092_v53  ;;  %v3475_v42 = vadd.f32 %v20301_v5, %v3359_v49  ;;  %v4263_v5 = vld [vmem:[#allocation2 + $0x4] sm:$0x8] }
 0x32a   : > { %v4269_v25 = vshrl.u32 %v4263_v5, 16 }
 0x32b   : > { %18950 = vst [vmem:[#allocation2 + $0x8] sm:$0xff] %v18632_v31   ;;  %v3012_v52 = vpop.f32.mrf.mxu2  ;;  %v3472_v9 = vpop.f32.mrf.mxu0  ;;  %v20425_v51 = vadd.f32 %v20336_v59, %v3475_v42  ;;  %v2888_v59 = vadd.f32 %v20108_v47, %v2622_v2 }
 0x32c   : > { %v3046_v26 = vadd.f32 %v3012_v52, %v20137_v56  ;;  %v14573_v47 = vrot.slane %v4269_v25, 11  ;;  %v2624_v9 = vadd.f32 %v20156_v22, %v20163_v61  ;;  %v4509_v61 = vor.u32 %v4507_v46, %v20418_v57 }
 0x32e   : > { %v3360_v43 = vpop.f32.mrf.mxu3  ;;  %v3078_v0 = vmul.f32 0.2, %v3046_v26  ;;  %vm3062_vm6 = vcmp.ge.f32.partialorder %v3046_v26, 0.0 }
 0x32f   : > { %v20430_v11 = vadd.f32 %v3360_v43, %v20288_v23  ;;  %v4796_v23 = vsel %vm1681_vm13, %v4794_v7, %v4795_v34  ;;  %v3590_v56 = vpop.f32.mrf.mxu1 }
 0x330   : > { %v3094_v19 = vsel %vm3062_vm6, %v3046_v26, %v3078_v0  ;;  %v2890_v26 = vadd.f32 %v20150_v3, %v2624_v9 }
 0x332   : > { %v4264_v32 = vld [vmem:[#allocation2 + $0x8] sm:$0xf]  ;;  %v4283_v39 = vld [vmem:[#allocation2 + $0xc] sm:$0x8] }
 0x333   : > { %v3014_v24 = vpop.f32.mrf.mxu2  ;;  %5069 = vmatmul.bf16.vlgmr.msra.gmra.mxu3 %v17987_v50  ;;  %v4274_v55 = vshrl.u32 %v4264_v32, 16  ;;  %v4277_v41 = vshll.u32 %v4264_v32, 16  ;;  %v20442_v16 = vpop.f32.mrf.mxu0  ;;  %v4286_v7 = vshrl.u32 %v4283_v39, 16 }
 0x334   : > { %v3047_v13 = vadd.f32 %v3014_v24, %v2888_v59 }
 0x335   : > { %v4276_v14 = vrot.slane %v4274_v55, 7 }
 0x336   : > { %vm3063_vm7 = vcmp.ge.f32.partialorder %v3047_v13, 0.0  ;;  %v3079_v6 = vmul.f32 0.2, %v3047_v13  ;;  %v3363_v29 = vpop.f32.mrf.mxu3 }
 0x337   : > { %v4279_v53 = vor.u32 %v4277_v41, %v4276_v14  ;;  %v20451_v32 = vpop.f32.mrf.mxu1 }
 0x338   : > { %v3095_v44 = vsel %vm3063_vm7, %v3047_v13, %v3079_v6  ;;  %4875 = vmatmul.bf16.vlgmr.msra.gmra.mxu2 %v4796_v23  ;;  %v14574_v6 = vrot.slane %v4286_v7, 11 }
 0x339   : > { %v18637_v31 = vpack.c.bf16 %v3095_v44, %v3094_v19  ;;  %v4280_v42 = vsel %vm20436_vm8, %v14573_v47, %v4279_v53 }
 0x33a   : > { %4282 = vst [vmem:[#allocation4 + $0x10] sm:$0xf] %v4280_v42 }
 0x33b   : > { %18951 = vst [vmem:[#allocation2 + $0x10] sm:$0xff] %v18637_v31   ;;  %v3017_v10 = vpop.f32.mrf.mxu2  ;;  %v20457_v13 = vpop.f32.mrf.mxu0 }
 0x33c   : > { %v3048_v43 = vadd.f32 %v3017_v10, %v20159_v21 }
 0x33e   : > { %v3365_v52 = vpop.f32.mrf.mxu3  ;;  %v3080_v24 = vmul.f32 0.2, %v3048_v43  ;;  %vm3064_vm9 = vcmp.ge.f32.partialorder %v3048_v43, 0.0 }
 0x33f   : > { %v20463_v44 = vpop.f32.mrf.mxu1 }
 0x340   : > { %v3096_v29 = vsel %vm3064_vm9, %v3048_v43, %v3080_v24 }
 0x341   : > { %v20448_v2 = vld [vmem:[#allocation4 + $0x10] sm:$0xff] }
 0x342   : > { %v17988_v50 = vld [vmem:[#allocation4 + $0x10] sm:$0xff]  ;;  %v4284_v5 = vld [vmem:[#allocation2 + $0x10] sm:$0xf]  ;;  %4742 = vmatmul.bf16.gmra.mxu1 %v20448_v2  ;;  %v4797_v22 = vrot.slane %v20448_v2, 1  ;;  %v4511_v60 = vshll.u32 %v20448_v2, 16 }
 0x343   : > { %v3019_v59 = vpop.f32.mrf.mxu2  ;;  %5074 = vmatmul.bf16.gmra.mxu3 %v17988_v50  ;;  %v4291_v21 = vshrl.u32 %v4284_v5, 16  ;;  %v4294_v3 = vshll.u32 %v4284_v5, 16  ;;  %v4300_v52 = vld [vmem:[#allocation2 + $0x14] sm:$0x8]  ;;  %v4515_v5 = vshrl.u32 %v20448_v2, 16 }
 0x344   : > { %v3049_v25 = vadd.f32 %v3019_v59, %v2890_v26  ;;  %v4513_v55 = vrot.slane %v4511_v60, 1  ;;  %v4798_v41 = vsel %vm1681_vm13, %v4795_v34, %v4797_v22  ;;  %v2626_v34 = vadd.f32 %v20180_v12, %v20207_v18 }
 0x345   : > { %v4293_v0 = vrot.slane %v4291_v21, 7  ;;  %v4303_v26 = vshrl.u32 %v4300_v52, 16 }
 0x346   : > { %vm3065_vm11 = vcmp.ge.f32.partialorder %v3049_v25, 0.0  ;;  %v3081_v23 = vmul.f32 0.2, %v3049_v25  ;;  %v3368_v14 = vpop.f32.mrf.mxu3  ;;  %v4514_v56 = vsel %vm1381_vm12, %v4509_v61, %v4513_v55  ;;  %v2892_v50 = vadd.f32 %v20170_v35, %v2626_v34 }
 0x347   : > { %v4296_v57 = vor.u32 %v4294_v3, %v4293_v0  ;;  %4632 = vmatmul.bf16.gmra.mxu0 %v4514_v56  ;;  %v3959_v7 = vpop.f32.mrf.mxu1  ;;  %v4517_v21 = vor.u32 %v4515_v5, %v4513_v55  ;;  %v14575_v3 = vrot.slane %v4303_v26, 11 }
 0x348   : > { %v3097_v47 = vsel %vm3065_vm11, %v3049_v25, %v3081_v23  ;;  %4880 = vmatmul.bf16.gmra.mxu2 %v4798_v41 }
 0x349   : > { %v18642_v53 = vpack.c.bf16 %v3097_v47, %v3096_v29  ;;  %v4297_v19 = vsel %vm20436_vm8, %v14574_v6, %v4296_v57 }
 0x34a   : > { %4299 = vst [vmem:[#allocation4 + $0x18] sm:$0xf] %v4297_v19 }
 0x34b   : > { %18952 = vst [vmem:[#allocation2 + $0x18] sm:$0xff] %v18642_v53   ;;  %v3022_v31 = vpop.f32.mrf.mxu2 }
 0x34c   : > { %v3841_v10 = vpop.f32.mrf.mxu0  ;;  %v3050_v9 = vadd.f32 %v3022_v31, %v20204_v38 }
 0x34e   : > { %v3370_v42 = vpop.f32.mrf.mxu3  ;;  %v3082_v38 = vmul.f32 0.2, %v3050_v9  ;;  %vm3066_vm15 = vcmp.ge.f32.partialorder %v3050_v9, 0.0 }
 0x34f   : > { %v3961_v19 = vpop.f32.mrf.mxu1  ;;  %v2628_v42 = vadd.f32 %v20226_v40, %v20248_v62 }
 0x350   : > { %v3098_v57 = vsel %vm3066_vm15, %v3050_v9, %v3082_v38  ;;  %v2630_v19 = vadd.f32 %v20261_v17, %v20276_v28 }
 0x351   : > { %v20468_v39 = vld [vmem:[#allocation4 + $0x18] sm:$0xff] }
 0x352   : > { %v17989_v46 = vld [vmem:[#allocation4 + $0x18] sm:$0xff]  ;;  %v4301_v43 = vld [vmem:[#allocation2 + $0x18] sm:$0xf]  ;;  %4747 = vmatmul.bf16.gmra.mxu1 %v20468_v39  ;;  %v4799_v12 = vrot.slane %v20468_v39, 1  ;;  %v4519_v18 = vshll.u32 %v20468_v39, 16 }
 0x353   : > { %v3024_v59 = vpop.f32.mrf.mxu2  ;;  %5079 = vmatmul.bf16.gmra.mxu3 %v17989_v46  ;;  %v4308_v61 = vshrl.u32 %v4301_v43, 16  ;;  %v4311_v35 = vshll.u32 %v4301_v43, 16  ;;  %v4317_v10 = vld [vmem:[#allocation2 + $0x1c] sm:$0x8]  ;;  %v2894_v43 = vadd.f32 %v20215_v33, %v2628_v42 }
 0x354   : > { %v3051_v60 = vadd.f32 %v3024_v59, %v2892_v50  ;;  %v4521_v24 = vrot.slane %v4519_v18, 1  ;;  %v3843_v23 = vpop.f32.mrf.mxu0  ;;  %v4800_v41 = vsel %vm1681_vm13, %v4797_v22, %v4799_v12  ;;  %v4523_v50 = vshrl.u32 %v20468_v39, 16 }
 0x355   : > { %v4310_v25 = vrot.slane %v4308_v61, 7  ;;  %v4320_v62 = vshrl.u32 %v4317_v10, 16 }
 0x356   : > { %vm3067_vm0 = vcmp.ge.f32.partialorder %v3051_v60, 0.0  ;;  %v3083_v2 = vmul.f32 0.2, %v3051_v60  ;;  %v3728_v0 = vpop.f32.mrf.mxu3  ;;  %v4522_v56 = vsel %vm1381_vm12, %v4517_v21, %v4521_v24  ;;  %v4525_v33 = vor.u32 %v4523_v50, %v4521_v24  ;;  %v20501_v21 = vld [vmem:[#allocation4 + $0x18] sm:$0xff] }
 0x357   : > { %v3743_v14 = vadd.f32 %v3728_v0, %v20425_v51  ;;  %v4313_v6 = vor.u32 %v4311_v35, %v4310_v25  ;;  %4637 = vmatmul.bf16.gmra.mxu0 %v4522_v56  ;;  %v3964_v5 = vpop.f32.mrf.mxu1  ;;  %v14576_v23 = vrot.slane %v4320_v62, 11  ;;  %v18056_v62 = vld [vmem:[%s23050_s3 + $0x1f8] sm:$0xff] }
 0x358   : > { %v3099_v55 = vsel %vm3067_vm0, %v3051_v60, %v3083_v2  ;;  %4885 = vmatmul.bf16.gmra.mxu2 %v4800_v41  ;;  %5946 = vmatpush.bf16.msrb.mxu3 %v18056_v62 }
 0x359   : > { %v18647_v29 = vpack.c.bf16 %v3099_v55, %v3098_v57  ;;  %v3851_v47 = vadd.f32 %v20442_v16, %v3743_v14  ;;  %v4314_v53 = vsel %vm20436_vm8, %v14575_v3, %v4313_v6  ;;  %v6033_v55 = vrot.slane %v20501_v21, 1 }
 0x35a   : > { %4316 = vst [vmem:[#allocation4 + $0x20] sm:$0xf] %v4314_v53 }
 0x35b   : > { %18953 = vst [vmem:[#allocation2 + $0x20] sm:$0xff] %v18647_v29   ;;  %v20484_v51 = vadd.f32 %v20451_v32, %v3851_v47  ;;  %v3027_v22 = vpop.f32.mrf.mxu2  ;;  %v18017_v32 = vld [vmem:[%s23050_s3 + $0x138] sm:$0xff] }
 0x35c   : > { %v3846_v34 = vpop.f32.mrf.mxu0  ;;  %v3052_v52 = vadd.f32 %v3027_v22, %v20244_v36  ;;  %5327 = vmatpush.bf16.msra.mxu0 %v18017_v32 }
 0x35e   : > { %v20486_v31 = vpop.f32.mrf.mxu3  ;;  %v3084_v59 = vmul.f32 0.2, %v3052_v52  ;;  %vm3068_vm1 = vcmp.ge.f32.partialorder %v3052_v52, 0.0 }
 0x35f   : > { %v3966_v39 = vpop.f32.mrf.mxu1 }
 0x360   : > { %v3100_v41 = vsel %vm3068_vm1, %v3052_v52, %v3084_v59 }
 0x361   : > { %v20491_v16 = vld [vmem:[#allocation4 + $0x20] sm:$0xff] }
 0x362   : > { %v17990_v9 = vld [vmem:[#allocation4 + $0x20] sm:$0xff]  ;;  %v4318_v46 = vld [vmem:[#allocation2 + $0x20] sm:$0xf]  ;;  %4752 = vmatmul.bf16.gmra.mxu1 %v20491_v16  ;;  %v4801_v40 = vrot.slane %v20491_v16, 1  ;;  %v4527_v36 = vshll.u32 %v20491_v16, 16 }
 0x363   : > { %v3029_v26 = vpop.f32.mrf.mxu2  ;;  %5084 = vmatmul.bf16.gmra.mxu3 %v17990_v9  ;;  %v4325_v7 = vshrl.u32 %v4318_v46, 16  ;;  %v4328_v60 = vshll.u32 %v4318_v46, 16  ;;  %v20503_v25 = vld [vmem:[#allocation4 + $0x20] sm:$0xff]  ;;  %v4334_v22 = vld [vmem:[#allocation2 + $0x24] sm:$0x8]  ;;  %v2896_v9 = vadd.f32 %v20263_v20, %v2630_v19  ;;  %v4531_v46 = vshrl.u32 %v20491_v16, 16 }
 0x364   : > { %v3053_v18 = vadd.f32 %v3029_v26, %v2894_v43  ;;  %v4529_v61 = vrot.slane %v4527_v36, 1  ;;  %v3848_v0 = vpop.f32.mrf.mxu0  ;;  %v4802_v3 = vsel %vm1681_vm13, %v4799_v12, %v4801_v40  ;;  %v6035_v29 = vrot.slane %v20503_v25, 1  ;;  %v18016_v43 = vld [vmem:[%s23050_s3 + $0x130] sm:$0xff]  ;;  %v18025_v20 = vld [vmem:[%s23050_s3 + $0x178] sm:$0xff] }
 0x365   : > { %v4327_v38 = vrot.slane %v4325_v7, 7  ;;  %v4337_v28 = vshrl.u32 %v4334_v22, 16  ;;  %5328 = vmatpush.bf16.msra.mxu0 %v18016_v43  ;;  %5486 = vmatpush.bf16.msra.mxu1 %v18025_v20 }
 0x366   : > { %vm3069_vm3 = vcmp.ge.f32.partialorder %v3053_v18, 0.0  ;;  %v3085_v35 = vmul.f32 0.2, %v3053_v18  ;;  %v3733_v2 = vpop.f32.mrf.mxu3  ;;  %v4530_v24 = vsel %vm1381_vm12, %v4525_v33, %v4529_v61  ;;  %v20518_v47 = vsel %vm1681_vm13, %v6033_v55, %v6035_v29  ;;  %v18024_v33 = vld [vmem:[%s23050_s3 + $0x170] sm:$0xff] }
 0x367   : > { %v4330_v14 = vor.u32 %v4328_v60, %v4327_v38  ;;  %4642 = vmatmul.bf16.gmra.mxu0 %v4530_v24  ;;  %v4533_v36 = vor.u32 %v4531_v46, %v4529_v61  ;;  %v14577_v0 = vrot.slane %v4337_v28, 11  ;;  %v18021_v28 = vld [vmem:[%s23050_s3 + $0x158] sm:$0xff] }
 0x368   : > { %v3101_v56 = vsel %vm3069_vm3, %v3053_v18, %v3085_v35  ;;  %4890 = vmatmul.bf16.gmra.mxu2 %v4802_v3 }
 0x369   : > { %v18652_v6 = vpack.c.bf16 %v3101_v56, %v3100_v41  ;;  %v4331_v57 = vsel %vm20436_vm8, %v14576_v23, %v4330_v14  ;;  %5487 = vmatpush.bf16.msra.mxu1 %v18024_v33  ;;  %v18023_v56 = vld [vmem:[%s23050_s3 + $0x168] sm:$0xff] }
 0x36a   : > { %4333 = vst [vmem:[#allocation4 + $0x28] sm:$0xf] %v4331_v57  ;;  %v18022_v57 = vld [vmem:[%s23050_s3 + $0x160] sm:$0xff] }
 0x36b   : > { %18954 = vst [vmem:[#allocation2 + $0x28] sm:$0xff] %v18652_v6   ;;  %v3032_v12 = vpop.f32.mrf.mxu2 }
 0x36c   : > { %v3054_v42 = vadd.f32 %v3032_v12, %v20273_v58  ;;  %v2632_v12 = vadd.f32 %v20283_v37, %v20320_v63 }
 0x36d   : > { %5488 = vmatpush.bf16.msra.mxu1 %v18023_v56 }
 0x36e   : > { %v3735_v53 = vpop.f32.mrf.mxu3  ;;  %v3086_v5 = vmul.f32 0.2, %v3054_v42  ;;  %vm3070_vm4 = vcmp.ge.f32.partialorder %v3054_v42, 0.0 }
 0x370   : > { %v3102_v24 = vsel %vm3070_vm4, %v3054_v42, %v3086_v5 }
 0x371   : > { %v20523_v34 = vld [vmem:[#allocation4 + $0x28] sm:$0xff]  ;;  %5489 = vmatpush.bf16.msra.mxu1 %v18022_v57  ;;  %v18039_v57 = vld [vmem:[%s23050_s3 + $0x1a8] sm:$0xff] }
 0x372   : > { %v17991_v10 = vld [vmem:[#allocation4 + $0x28] sm:$0xff]  ;;  %v4335_v52 = vld [vmem:[#allocation2 + $0x28] sm:$0xf]  ;;  %4757 = vmatmul.bf16.gmra.mxu1 %v20523_v34  ;;  %v4803_v17 = vrot.slane %v20523_v34, 1  ;;  %v4535_v58 = vshll.u32 %v20523_v34, 16 }
 0x373   : > { %v3034_v50 = vpop.f32.mrf.mxu2  ;;  %5089 = vmatmul.bf16.gmra.mxu3 %v17991_v10  ;;  %v4342_v32 = vshrl.u32 %v4335_v52, 16  ;;  %v4345_v18 = vshll.u32 %v4335_v52, 16  ;;  %v20542_v38 = vld [vmem:[#allocation4 + $0x28] sm:$0xff]  ;;  %v4351_v53 = vld [vmem:[#allocation2 + $0x2c] sm:$0x8]  ;;  %v4539_v52 = vshrl.u32 %v20523_v34, 16 }
 0x374   : > { %v3055_v26 = vadd.f32 %v3034_v50, %v2896_v9  ;;  %v4537_v7 = vrot.slane %v4535_v58, 1  ;;  %v4804_v61 = vsel %vm1681_vm13, %v4801_v40, %v4803_v17  ;;  %v6037_v16 = vrot.slane %v20542_v38, 1  ;;  %v18014_v34 = vld [vmem:[%s23050_s3 + $0x120] sm:$0xff] }
 0x375   : > { %v4344_v59 = vrot.slane %v4342_v32, 7  ;;  %v4354_v63 = vshrl.u32 %v4351_v53, 16  ;;  %5490 = vmatpush.bf16.msra.mxu1 %v18021_v28 }
 0x376   : > { %vm3071_vm5 = vcmp.ge.f32.partialorder %v3055_v26, 0.0  ;;  %v3087_v60 = vmul.f32 0.2, %v3055_v26  ;;  %v3738_v35 = vpop.f32.mrf.mxu3  ;;  %v4538_v2 = vsel %vm1381_vm12, %v4533_v36, %v4537_v7  ;;  %v20559_v6 = vsel %vm1681_vm13, %v6035_v29, %v6037_v16 }
 0x377   : > { %v4347_v3 = vor.u32 %v4345_v18, %v4344_v59  ;;  %4647 = vmatmul.bf16.gmra.mxu0 %v4538_v2  ;;  %v2898_v29 = vadd.f32 %v20290_v15, %v2632_v12  ;;  %v18015_v15 = vld [vmem:[%s23050_s3 + $0x128] sm:$0xff]  ;;  %v4541_v32 = vor.u32 %v4539_v52, %v4537_v7  ;;  %v18020_v7 = vld [vmem:[%s23050_s3 + $0x150] sm:$0xff] }
 0x378   : > { %v3103_v23 = vsel %vm3071_vm5, %v3055_v26, %v3087_v60  ;;  %4895 = vmatmul.bf16.gmra.mxu2 %v4804_v61  ;;  %5329 = vmatpush.bf16.msra.mxu0 %v18015_v15  ;;  %v14578_v60 = vrot.slane %v4354_v63, 11  ;;  %v18054_v61 = vld [vmem:[%s23050_s3 + $0x1e8] sm:$0xff]  ;;  %v18040_v2 = vld [vmem:[%s23050_s3 + $0x1b0] sm:$0xff] }
 0x379   : > { %v18657_v14 = vpack.c.bf16 %v3103_v23, %v3102_v24  ;;  %v4348_v41 = vsel %vm20436_vm8, %v14577_v0, %v4347_v3  ;;  %5491 = vmatpush.bf16.msra.mxu1 %v18020_v7 }
 0x37a   : > { %4350 = vst [vmem:[#allocation4 + $0x30] sm:$0xf] %v4348_v41 }
 0x37b   : > { %18955 = vst [vmem:[#allocation2 + $0x30] sm:$0xff] %v18657_v14   ;;  %v3037_v40 = vpop.f32.mrf.mxu2 }
 0x37c   : > { %v3056_v19 = vadd.f32 %v3037_v40, %v20299_v27  ;;  %v3476_v27 = vadd.f32 %v20341_v30, %v20430_v11  ;;  %v18055_v30 = vld [vmem:[%s23050_s3 + $0x1f0] sm:$0xff]  ;;  %v18041_v11 = vld [vmem:[%s23050_s3 + $0x1b8] sm:$0xff]  ;;  %5330 = vmatpush.bf16.msra.mxu0 %v18014_v34  ;;  %v18053_v40 = vld [vmem:[%s23050_s3 + $0x1e0] sm:$0xff] }
 0x37d   : > { %5947 = vmatpush.bf16.msrb.mxu3 %v18055_v30  ;;  %5680 = vmatpush.bf16.msrb.mxu2 %v18041_v11 }
 0x37e   : > { %v3740_v39 = vpop.f32.mrf.mxu3  ;;  %vm3072_vm6 = vcmp.ge.f32.partialorder %v3056_v19, 0.0  ;;  %v3088_v50 = vmul.f32 0.2, %v3056_v19 }
 0x380   : > { %v3104_v0 = vsel %vm3072_vm6, %v3056_v19, %v3088_v50 }
 0x381   : > { %v20567_v22 = vld [vmem:[#allocation4 + $0x30] sm:$0xff]  ;;  %5948 = vmatpush.bf16.msrb.mxu3 %v18054_v61  ;;  %5681 = vmatpush.bf16.msrb.mxu2 %v18040_v2 }
 0x382   : > { %v17992_v42 = vld [vmem:[#allocation4 + $0x30] sm:$0xff]  ;;  %v4352_v10 = vld [vmem:[#allocation2 + $0x30] sm:$0xf]  ;;  %4762 = vmatmul.bf16.gmra.mxu1 %v20567_v22  ;;  %v4805_v46 = vrot.slane %v20567_v22, 1  ;;  %v4543_v37 = vshll.u32 %v20567_v22, 16 }
 0x383   : > { %v3039_v9 = vpop.f32.mrf.mxu2  ;;  %5094 = vmatmul.bf16.gmra.mxu3 %v17992_v42  ;;  %v4359_v43 = vshrl.u32 %v4352_v10, 16  ;;  %v4362_v26 = vshll.u32 %v4352_v10, 16  ;;  %v20590_v36 = vld [vmem:[#allocation4 + $0x30] sm:$0xff]  ;;  %v18012_v10 = vld [vmem:[%s23050_s3 + $0x110] sm:$0xff] }
 0x384   : > { %v3057_v58 = vadd.f32 %v3039_v9, %v2898_v29  ;;  %v20582_v20 = vrot.slane %v4543_v37, 1  ;;  %v4806_v18 = vsel %vm1681_vm13, %v4803_v17, %v4805_v46  ;;  %v3594_v17 = vadd.f32 %v20375_v45, %v3476_v27  ;;  %v18019_v45 = vld [vmem:[%s23050_s3 + $0x148] sm:$0xff]  ;;  %v18018_v42 = vld [vmem:[%s23050_s3 + $0x140] sm:$0xff]  ;;  %v4368_v29 = vld [vmem:[#allocation2 + $0x34] sm:$0x8] }
 0x385   : > { %v4361_v5 = vrot.slane %v4359_v43, 7  ;;  %v6039_v14 = vrot.slane %v20590_v36, 1  ;;  %5492 = vmatpush.bf16.msra.mxu1 %v18019_v45  ;;  %5949 = vmatpush.bf16.msrb.mxu3 %v18053_v40  ;;  %v4371_v43 = vshrl.u32 %v4368_v29, 16 }
 0x386   : > { %vm3073_vm7 = vcmp.ge.f32.partialorder %v3057_v58, 0.0  ;;  %v3089_v62 = vmul.f32 0.2, %v3057_v58  ;;  %v4212_v59 = vpop.f32.mrf.mxu3  ;;  %v4546_v33 = vsel %vm1381_vm12, %v4541_v32, %v20582_v20  ;;  %v3744_v41 = vadd.f32 %v20486_v31, %v3594_v17  ;;  %v18013_v31 = vld [vmem:[%s23050_s3 + $0x118] sm:$0xff]  ;;  %5682 = vmatpush.bf16.msrb.mxu2 %v18039_v57 }
 0x387   : > { %v4364_v35 = vor.u32 %v4362_v26, %v4361_v5  ;;  %4652 = vmatmul.bf16.gmra.mxu0 %v4546_v33  ;;  %v20635_v39 = vsel %vm1681_vm13, %v6037_v16, %v6039_v14  ;;  %v18976_v17 = vld [vmem:[#allocation4 + $0x8] sm:$0xf0] }
 0x388   : > { %v3105_v3 = vsel %vm3073_vm7, %v3057_v58, %v3089_v62  ;;  %4900 = vmatmul.bf16.gmra.mxu2 %v4806_v18  ;;  %v3852_v12 = vadd.f32 %v20457_v13, %v3744_v41  ;;  %5331 = vmatpush.bf16.msra.mxu0 %v18013_v31  ;;  %v18052_v13 = vld [vmem:[%s23050_s3 + $0x1d8] sm:$0xff]  ;;  %v4547_v58 = vshrl.u32 %v20567_v22, 16  ;;  %v18051_v62 = vld [vmem:[%s23050_s3 + $0x1d0] sm:$0xff]  ;;  %v18050_v22 = vld [vmem:[%s23050_s3 + $0x1c8] sm:$0xff] }
 0x389   : > { %v18662_v24 = vpack.c.bf16 %v3105_v3, %v3104_v0  ;;  %v4365_v23 = vsel %vm20436_vm8, %v14578_v60, %v4364_v35  ;;  %5493 = vmatpush.bf16.msra.mxu1 %v18018_v42  ;;  %5950 = vmatpush.bf16.msrb.mxu3 %v18052_v13  ;;  %v14579_v60 = vrot.slane %v4371_v43, 11  ;;  %v18977_v0 = vld [vmem:[#allocation4 + $0x8] sm:$0xe]  ;;  %v18035_v42 = vld [vmem:[%s23050_s3 + $0x188] sm:$0xff] }
 0x38a   : > { %4367 = vst [vmem:[#allocation4 + $0x38] sm:$0xf] %v4365_v23  ;;  %v3970_v9 = vadd.f32 %v20463_v44, %v3852_v12  ;;  %v18011_v44 = vld [vmem:[%s23050_s3 + $0x108] sm:$0xff]  ;;  %v4549_v5 = vor.u32 %v4547_v58, %v20582_v20  ;;  %v18010_v20 = vld [vmem:[%s23050_s3 + $0x100] sm:$0xff]  ;;  %v18978_v40 = vor.u32 %v18977_v0, %v18976_v17 }
 0x38b   : > { %18956 = vst [vmem:[#allocation2 + $0x38] sm:$0xff] %v18662_v24   ;;  %v4104_v56 = vpop.f32.mrf.mxu2  ;;  %v4733_v24 = vpop.f32.mrf.mxu1 }
 0x38c   : > { %v4119_v53 = vadd.f32 %v4104_v56, %v20484_v51  ;;  %v18038_v51 = vld [vmem:[%s23050_s3 + $0x1a0] sm:$0xff]  ;;  %5332 = vmatpush.bf16.msra.mxu0 %v18012_v10  ;;  %v5413_v29 = vrot.slane %v18978_v40, 1  ;;  %v5761_v40 = vld [vmem:[#allocation4 + $0x50] sm:$0x1] }
 0x38d   : > { %5683 = vmatpush.bf16.msrb.mxu2 %v18038_v51  ;;  %5951 = vmatpush.bf16.msrb.mxu3 %v18051_v62  ;;  %v20691_v56 = vld [vmem:[#allocation4 + $0x10] sm:$0xff] }
 0x38e   : > { %v4214_v19 = vpop.f32.mrf.mxu3  ;;  %v4227_v37 = vadd.f32 %v4212_v59, %v4119_v53  ;;  %v18037_v59 = vld [vmem:[%s23050_s3 + $0x198] sm:$0xff]  ;;  %v5414_v13 = vrot.slane %v20691_v56, 1 }
 0x390   : > { %v4239_v7 = vmul.f32 0.2, %v4227_v37  ;;  %5333 = vmatpush.bf16.msra.mxu0 %v18011_v44  ;;  %vm4233_vm9 = vcmp.ge.f32.partialorder %v4227_v37, 0.0 }
 0x391   : > { %v20651_v16 = vld [vmem:[#allocation4 + $0x38] sm:$0xff]  ;;  %5684 = vmatpush.bf16.msrb.mxu2 %v18037_v59  ;;  %5952 = vmatpush.bf16.msrb.mxu3 %v18050_v22 }
 0x392   : > { %v17993_v52 = vld [vmem:[#allocation4 + $0x38] sm:$0xff]  ;;  %v4369_v63 = vld [vmem:[#allocation2 + $0x38] sm:$0xf]  ;;  %4767 = vmatmul.bf16.gmra.mxu1 %v20651_v16  ;;  %v4807_v50 = vrot.slane %v20651_v16, 1  ;;  %v4551_v15 = vshll.u32 %v20651_v16, 16  ;;  %v4245_v41 = vsel %vm4233_vm9, %v4227_v37, %v4239_v7  ;;  %v5415_v37 = vsel %vm1681_vm13, %v5413_v29, %v5414_v13 }
 0x393   : > { %v4106_v27 = vpop.f32.mrf.mxu2  ;;  %5099 = vmatmul.bf16.gmra.mxu3 %v17993_v52  ;;  %v4376_v28 = vshrl.u32 %v4369_v63, 16  ;;  %v4379_v11 = vshll.u32 %v4369_v63, 16  ;;  %v20673_v35 = vld [vmem:[#allocation4 + $0x38] sm:$0xff]  ;;  %v20710_v63 = vpop.f32.mrf.mxu1  ;;  %v4555_v62 = vshrl.u32 %v20651_v16, 16  ;;  %v18975_v16 = vld [vmem:[#allocation4 + $0x8] sm:$0xff]   ;;  %v5812_v29 = vunpack.c.l.b16 %v5761_v40 }
 0x394   : > { %v4120_v32 = vadd.f32 %v4106_v27, %v3970_v9  ;;  %v20662_v26 = vrot.slane %v4551_v15, 1  ;;  %v4808_v61 = vsel %vm1681_vm13, %v4805_v46, %v4807_v50  ;;  %v18036_v46 = vld [vmem:[%s23050_s3 + $0x190] sm:$0xff]  ;;  %5334 = vmatpush.bf16.msra.mxu0 %v18010_v20  ;;  %v6041_v57 = vrot.slane %v20673_v35, 1  ;;  %v4385_v9 = vld [vmem:[#allocation2 + $0x3c] sm:$0x8]  ;;  %v20721_v22 = vld [vmem:[#allocation4 + $0x18] sm:$0xff] }
 0x395   : > { %v4378_v30 = vrot.slane %v4376_v28, 7  ;;  %5685 = vmatpush.bf16.msrb.mxu2 %v18036_v46  ;;  %v18979_v28 = vld [vmem:[#allocation4 + $0x10] sm:$0xff]   ;;  %v5219_v40 = vshll.u32 %v20721_v22, 16  ;;  %vm7812_vm9 = vsmask.f32 4352 }
 0x396   : > { %v4228_v18 = vadd.f32 %v4214_v19, %v4120_v32  ;;  %v4217_v33 = vpop.f32.mrf.mxu3  ;;  %v4554_v2 = vsel %vm1381_vm12, %v4549_v5, %v20662_v26  ;;  %v20697_v53 = vsel %vm1681_vm13, %v6039_v14, %v6041_v57  ;;  %v18049_v19 = vld [vmem:[%s23050_s3 + $0x1c0] sm:$0xff]  ;;  %v4388_v32 = vshrl.u32 %v4385_v9, 16 }
 0x397   : > { %v4381_v34 = vor.u32 %v4379_v11, %v4378_v30  ;;  %4657 = vmatmul.bf16.gmra.mxu0 %v4554_v2  ;;  %5953 = vmatpush.bf16.msrb.mxu3 %v18049_v19  ;;  %v18034_v14 = vld [vmem:[%s23050_s3 + $0x180] sm:$0xff]  ;;  %v5823_v19 = vshrl.u32 %v18979_v28, 16 }
 0x398   : > { %vm4234_vm11 = vcmp.ge.f32.partialorder %v4228_v18, 0.0  ;;  %v4240_v3 = vmul.f32 0.2, %v4228_v18  ;;  %4905 = vmatmul.bf16.gmra.mxu2 %v4808_v61  ;;  %v4557_v61 = vor.u32 %v4555_v62, %v20662_v26  ;;  %v14580_v17 = vrot.slane %v4388_v32, 11 }
 0x399   : > { %v4382_v23 = vsel %vm20436_vm8, %v14579_v60, %v4381_v34  ;;  %5686 = vmatpush.bf16.msrb.mxu2 %v18035_v42  ;;  %v5825_v34 = vshll.u32 %v18979_v28, 16 }
 0x39a   : > { %v4246_v45 = vsel %vm4234_vm11, %v4228_v18, %v4240_v3  ;;  %4384 = vst [vmem:[#allocation4 + $0x40] sm:$0xf] %v4382_v23 }
 0x39b   : > { %v18679_v31 = vpack.c.bf16 %v4246_v45, %v4245_v41  ;;  %v4109_v12 = vpop.f32.mrf.mxu2  ;;  %v4738_v41 = vpop.f32.mrf.mxu1  ;;  %v5827_v45 = vrot.slane %v5825_v34, 1 }
 0x39c   : > { %v5416_v12 = vrot.slane %v20721_v22, 1 }
 0x39d   : > { %18969 = vst [vmem:[#allocation2 + $0x40] sm:$0xff] %v18679_v31   ;;  %5687 = vmatpush.bf16.msrb.mxu2 %v18034_v14 }
 0x39e   : > { %v4219_v10 = vpop.f32.mrf.mxu3  ;;  %v5417_v14 = vsel %vm1681_vm13, %v5414_v13, %v5416_v12 }
 0x39f   : > { %v5206_v10 = vshll.u32 %v18975_v16, 16 }
 0x3a1   : > { %v17994_v51 = vld [vmem:[#allocation4 + $0x40] sm:$0xff] }
 0x3a2   : > { %v4434_v52 = vld [vmem:[#allocation4 + $0x40] sm:$0x1]  ;;  %5494 = vmatmul.bf16.vlgmr.msra.gmra.mxu1 %v5415_v37  ;;  %v4628_v7 = vpop.f32.mrf.mxu0  ;;  %v5208_v37 = vrot.slane %v5206_v10, 1 }
 0x3a3   : > { %v4485_v43 = vunpack.c.l.b16 %v4434_v52  ;;  %v4111_v27 = vpop.f32.mrf.mxu2  ;;  %5104 = vmatmul.bf16.gmra.mxu3 %v17994_v51  ;;  %v20712_v44 = vld [vmem:[#allocation4 + $0x40] sm:$0xff]  ;;  %v4734_v18 = vadd.f32 %v4733_v24, %v4628_v7  ;;  %v5830_v24 = vshll.u32 %v20501_v21, 16  ;;  %v5828_v51 = vor.u32 %v5827_v45, %v5823_v19  ;;  %v4740_v28 = vpop.f32.mrf.mxu1 }
 0x3a4   : > { %v4386_v58 = vld [vmem:[#allocation2 + $0x40] sm:$0xf]  ;;  %v6043_v3 = vrot.slane %v20712_v44, 1  ;;  %v5204_v52 = vshrl.u32 %v18975_v16, 16  ;;  %v5838_v7 = vshll.u32 %v20503_v25, 16 }
 0x3a5   : > { %v4494_v15 = vpack.c.b16 %v4485_v43, %v4485_v43  ;;  %v4393_v5 = vshrl.u32 %v4386_v58, 16  ;;  %v4396_v60 = vshll.u32 %v4386_v58, 16  ;;  %v5832_v42 = vrot.slane %v5830_v24, 1 }
 0x3a6   : > { %v4222_v30 = vpop.f32.mrf.mxu3  ;;  %v20727_v26 = vsel %vm1681_vm13, %v6041_v57, %v6043_v3  ;;  %v5211_v57 = vshll.u32 %v20691_v56, 16  ;;  %v20735_v58 = vpack.c.b16 %v5812_v29, %v5812_v29  ;;  %v5209_v32 = vor.u32 %v5208_v37, %v5204_v52  ;;  %v20761_v37 = vld [vmem:[#allocation4 + $0x28] sm:$0xff] }
 0x3a7   : > { %v4809_v11 = vrot.slane %v4494_v15, 1  ;;  %v4559_v59 = vshll.u32 %v4494_v15, 16  ;;  %v4395_v33 = vrot.slane %v4393_v5, 7  ;;  %v5833_v9 = vsel %vm1381_vm12, %v5828_v51, %v5832_v42  ;;  %v18026_v30 = vld [vmem:[#allocation4 + $0x10] sm:$0xff] }
 0x3a8   : > { %v5213_v5 = vrot.slane %v5211_v57, 1  ;;  %v6047_v13 = vrot.slane %v20735_v58, 1  ;;  %v5215_v51 = vshrl.u32 %v20691_v56, 16  ;;  %v5221_v52 = vrot.slane %v5219_v40, 1 }
 0x3a9   : > { %v4810_v20 = vsel %vm1681_vm13, %v4807_v50, %v4809_v11  ;;  %v4561_v2 = vrot.slane %v4559_v59, 1  ;;  %v4398_v0 = vor.u32 %v4396_v60, %v4395_v33  ;;  %v20740_v59 = vld [vmem:[#allocation4 + $0x20] sm:$0xff]  ;;  %v5846_v57 = vshll.u32 %v20542_v38, 16 }
 0x3aa   : > { %4910 = vmatmul.bf16.gmra.mxu2 %v4810_v20  ;;  %v5214_v62 = vsel %vm1381_vm12, %v5209_v32, %v5213_v5  ;;  %v5842_v32 = vshrl.u32 %v20503_v25, 16  ;;  %v18064_v25 = vld [vmem:[%s23050_s3 + $0x238] sm:$0xff] }
 0x3ab   : > { %v4562_v23 = vsel %vm1381_vm12, %v4557_v61, %v4561_v2  ;;  %v4114_v46 = vpop.f32.mrf.mxu2  ;;  %v4399_v50 = vsel %vm20436_vm8, %v14580_v17, %v4398_v0  ;;  %v4630_v2 = vpop.f32.mrf.mxu0  ;;  %v5418_v17 = vrot.slane %v20740_v59, 1  ;;  %v5834_v0 = vshrl.u32 %v20501_v21, 16  ;;  %6105 = vmatpush.bf16.msrb.mxu0 %v18064_v25  ;;  %v18101_v21 = vld [vmem:[%s23050_s3 + $0x90] sm:$0xff] }
 0x3ac   : > { %4662 = vmatmul.bf16.gmra.mxu0 %v4562_v23  ;;  %4401 = vst [vmem:[#allocation4 + $0x48] sm:$0xf] %v4399_v50  ;;  %v5840_v23 = vrot.slane %v5838_v7, 1  ;;  %v4736_v50 = vadd.f32 %v20710_v63, %v4630_v2  ;;  %v5227_v2 = vshll.u32 %v20740_v59, 16 }
 0x3ad   : > { %v5836_v16 = vor.u32 %v5834_v0, %v5832_v42  ;;  %v18027_v42 = vld [vmem:[#allocation4 + $0x18] sm:$0xff] }
 0x3ae   : > { %v4224_v31 = vpop.f32.mrf.mxu3  ;;  %v5844_v7 = vor.u32 %v5842_v32, %v5840_v23 }
 0x3af   : > { %v5841_v45 = vsel %vm1381_vm12, %v5836_v16, %v5840_v23  ;;  %v5229_v23 = vrot.slane %v5227_v2, 1 }
 0x3b2   : > { %5499 = vmatmul.bf16.gmra.mxu1 %v5417_v14 }
 0x3b3   : > { %v4116_v43 = vpop.f32.mrf.mxu2  ;;  %5954 = vmatmul.bf16.vlgmr.msrb.gmra.mxu3 %v5833_v9  ;;  %v20733_v27 = vld [vmem:[#allocation4 + $0x48] sm:$0xff]  ;;  %v5217_v9 = vor.u32 %v5215_v51, %v5213_v5 }
 0x3b4   : > { %v6045_v11 = vrot.slane %v20733_v27, 1 }
 0x3b6   : > { %v5070_v15 = vpop.f32.mrf.mxu3  ;;  %v20744_v60 = vsel %vm1681_vm13, %v6043_v3, %v6045_v11  ;;  %v20747_v20 = vsel %vm1681_vm13, %v6045_v11, %v6047_v13  ;;  %v5419_v3 = vsel %vm1681_vm13, %v5416_v12, %v5418_v17  ;;  %v5222_v12 = vsel %vm1381_vm12, %v5217_v9, %v5221_v52 }
 0x3b7   : > { %v5420_v11 = vrot.slane %v20761_v37, 1  ;;  %v5848_v13 = vrot.slane %v5846_v57, 1 }
 0x3ba   : > { %5688 = vmatmul.bf16.vlgmr.msrb.gmra.mxu2 %v18026_v30 }
 0x3bb   : > { %v4876_v33 = vpop.f32.mrf.mxu2 }
 0x3bc   : > { %5335 = vmatmul.bf16.vlgmr.msra.gmra.mxu0 %v5214_v62  ;;  %v4916_v61 = vadd.f32 %v4876_v33, %v4734_v18  ;;  %v5421_v33 = vsel %vm1681_vm13, %v5418_v17, %v5420_v11 }
 0x3be   : > { %v5072_v34 = vpop.f32.mrf.mxu3  ;;  %v20751_v24 = vadd.f32 %v5070_v15, %v4916_v61  ;;  %v5849_v61 = vsel %vm1381_vm12, %v5844_v7, %v5848_v13 }
 0x3bf   : > { %v4743_v46 = vpop.f32.mrf.mxu1 }
 0x3c2   : > { %5504 = vmatmul.bf16.gmra.mxu1 %v5419_v3  ;;  %v5223_v3 = vshrl.u32 %v20721_v22, 16  ;;  %v5850_v22 = vshrl.u32 %v20542_v38, 16  ;;  %v18063_v38 = vld [vmem:[%s23050_s3 + $0x230] sm:$0xff] }
 0x3c3   : > { %v4878_v18 = vpop.f32.mrf.mxu2  ;;  %5959 = vmatmul.bf16.gmra.mxu3 %v5841_v45  ;;  %v18028_v45 = vld [vmem:[#allocation4 + $0x20] sm:$0xff]  ;;  %6106 = vmatpush.bf16.msrb.mxu0 %v18063_v38 }
 0x3c4   : > { %v4917_v31 = vadd.f32 %v4878_v18, %v4736_v50  ;;  %v4633_v19 = vpop.f32.mrf.mxu0  ;;  %v5225_v18 = vor.u32 %v5223_v3, %v5221_v52 }
 0x3c5   : > { %v4739_v10 = vadd.f32 %v4738_v41, %v4633_v19  ;;  %v20778_v19 = vld [vmem:[#allocation4 + $0x30] sm:$0xff] }
 0x3c6   : > { %v5075_v29 = vpop.f32.mrf.mxu3  ;;  %v20758_v14 = vadd.f32 %v5072_v34, %v4917_v31  ;;  %v5230_v31 = vsel %vm1381_vm12, %v5225_v18, %v5229_v23  ;;  %v18078_v18 = vld [vmem:[%s23051_s4 + $0x28] sm:$0xff] }
 0x3c7   : > { %v4745_v63 = vpop.f32.mrf.mxu1 }
 0x3ca   : > { %5693 = vmatmul.bf16.gmra.mxu2 %v18027_v42 }
 0x3cb   : > { %v4881_v43 = vpop.f32.mrf.mxu2 }
 0x3cc   : > { %5340 = vmatmul.bf16.gmra.mxu0 %v5222_v12  ;;  %v4918_v15 = vadd.f32 %v4881_v43, %v4739_v10  ;;  %v4635_v41 = vpop.f32.mrf.mxu0  ;;  %v5854_v10 = vshll.u32 %v20590_v36, 16  ;;  %v5422_v12 = vrot.slane %v20778_v19, 1 }
 0x3cd   : > { %v4741_v56 = vadd.f32 %v4740_v28, %v4635_v41 }
 0x3ce   : > { %v5077_v30 = vpop.f32.mrf.mxu3  ;;  %v20766_v62 = vadd.f32 %v5075_v29, %v4918_v15  ;;  %v5856_v57 = vrot.slane %v5854_v10, 1  ;;  %v5852_v15 = vor.u32 %v5850_v22, %v5848_v13  ;;  %v5423_v41 = vsel %vm1681_vm13, %v5420_v11, %v5422_v12  ;;  %v18090_v22 = vld [vmem:[%s23050_s3 + $0x38] sm:$0xff] }
 0x3cf   : > { %v4748_v5 = vpop.f32.mrf.mxu1  ;;  %v5231_v11 = vshrl.u32 %v20740_v59, 16  ;;  %v5862_v59 = vshll.u32 %v20673_v35, 16  ;;  %6726 = vmatpush.bf16.msra.mxu3 %v18090_v22 }
 0x3d0   : > { %v5857_v32 = vsel %vm1381_vm12, %v5852_v15, %v5856_v57 }
 0x3d2   : > { %5509 = vmatmul.bf16.gmra.mxu1 %v5421_v33 }
 0x3d3   : > { %v4883_v34 = vpop.f32.mrf.mxu2  ;;  %5964 = vmatmul.bf16.gmra.mxu3 %v5849_v61 }
 0x3d4   : > { %v4919_v0 = vadd.f32 %v4883_v34, %v4741_v56  ;;  %v4638_v28 = vpop.f32.mrf.mxu0  ;;  %v5235_v56 = vshll.u32 %v20761_v37, 16 }
 0x3d5   : > { %v4744_v16 = vadd.f32 %v4743_v46, %v4638_v28  ;;  %v5233_v28 = vor.u32 %v5231_v11, %v5229_v23  ;;  %v18030_v11 = vld [vmem:[#allocation4 + $0x30] sm:$0xff] }
 0x3d6   : > { %v5080_v50 = vpop.f32.mrf.mxu3  ;;  %v20775_v17 = vadd.f32 %v5077_v30, %v4919_v0  ;;  %v5237_v2 = vrot.slane %v5235_v56, 1  ;;  %v18029_v0 = vld [vmem:[#allocation4 + $0x28] sm:$0xff] }
 0x3d7   : > { %v4750_v40 = vpop.f32.mrf.mxu1 }
 0x3da   : > { %5698 = vmatmul.bf16.gmra.mxu2 %v18028_v45 }
 0x3db   : > { %v4886_v29 = vpop.f32.mrf.mxu2 }
 0x3dc   : > { %5345 = vmatmul.bf16.gmra.mxu0 %v5230_v31  ;;  %v4920_v46 = vadd.f32 %v4886_v29, %v4744_v16  ;;  %v4640_v51 = vpop.f32.mrf.mxu0  ;;  %v18079_v16 = vld [vmem:[%s23051_s4 + $0x30] sm:$0xff]  ;;  %v5858_v31 = vshrl.u32 %v20590_v36, 16  ;;  %v18077_v36 = vld [vmem:[%s23051_s4 + $0x20] sm:$0xff] }
 0x3dd   : > { %v4746_v42 = vadd.f32 %v4745_v63, %v4640_v51  ;;  %v18080_v63 = vld [vmem:[%s23051_s4 + $0x38] sm:$0xff]  ;;  %v5864_v51 = vrot.slane %v5862_v59, 1  ;;  %v20845_v59 = vld [vmem:[#allocation4 + $0x40] sm:$0xff] }
 0x3de   : > { %v5082_v9 = vpop.f32.mrf.mxu3  ;;  %v20783_v43 = vadd.f32 %v5080_v50, %v4920_v46  ;;  %6370 = vmatpush.bf16.msrb.mxu1 %v18080_v63  ;;  %v5238_v50 = vsel %vm1381_vm12, %v5233_v28, %v5237_v2  ;;  %v5860_v15 = vor.u32 %v5858_v31, %v5856_v57  ;;  %v18062_v57 = vld [vmem:[%s23050_s3 + $0x228] sm:$0xff] }
 0x3df   : > { %v4753_v52 = vpop.f32.mrf.mxu1  ;;  %6107 = vmatpush.bf16.msrb.mxu0 %v18062_v57 }
 0x3e2   : > { %5514 = vmatmul.bf16.gmra.mxu1 %v5423_v41  ;;  %v5865_v41 = vsel %vm1381_vm12, %v5860_v15, %v5864_v51  ;;  %v5426_v15 = vrot.slane %v20845_v59, 1 }
 0x3e3   : > { %v4888_v30 = vpop.f32.mrf.mxu2  ;;  %5969 = vmatmul.bf16.gmra.mxu3 %v5857_v32  ;;  %6371 = vmatpush.bf16.msrb.mxu1 %v18079_v16  ;;  %v5243_v32 = vshll.u32 %v20778_v19, 16  ;;  %v18075_v16 = vld [vmem:[%s23051_s4 + $0x10] sm:$0xff] }
 0x3e4   : > { %v4921_v7 = vadd.f32 %v4888_v30, %v4746_v42  ;;  %v4643_v33 = vpop.f32.mrf.mxu0 }
 0x3e5   : > { %v4749_v13 = vadd.f32 %v4748_v5, %v4643_v33  ;;  %v20803_v5 = vld [vmem:[#allocation4 + $0x38] sm:$0xff]  ;;  %v5239_v33 = vshrl.u32 %v20761_v37, 16  ;;  %v18098_v37 = vld [vmem:[%s23050_s3 + $0x78] sm:$0xff] }
 0x3e6   : > { %v5085_v61 = vpop.f32.mrf.mxu3  ;;  %v20795_v34 = vadd.f32 %v5082_v9, %v4921_v7  ;;  %v5424_v46 = vrot.slane %v20803_v5, 1  ;;  %v18076_v7 = vld [vmem:[%s23051_s4 + $0x18] sm:$0xff]  ;;  %6651 = vmatpush.bf16.msra.mxu2 %v18098_v37 }
 0x3e7   : > { %v20797_v25 = vpop.f32.mrf.mxu1  ;;  %6372 = vmatpush.bf16.msrb.mxu1 %v18078_v18  ;;  %v5241_v28 = vor.u32 %v5239_v33, %v5237_v2  ;;  %v5870_v2 = vshll.u32 %v20712_v44, 16  ;;  %v18074_v18 = vld [vmem:[%s23051_s4 + $0x8] sm:$0xff]  ;;  %v18061_v33 = vld [vmem:[%s23050_s3 + $0x220] sm:$0xff] }
 0x3e8   : > { %v5427_v57 = vsel %vm1681_vm13, %v5424_v46, %v5426_v15  ;;  %6108 = vmatpush.bf16.msrb.mxu0 %v18061_v33  ;;  %v18065_v33 = vld [vmem:[#allocation3 + $0x8] sm:$0xff] }
 0x3ea   : > { %5703 = vmatmul.bf16.gmra.mxu2 %v18029_v0 }
 0x3eb   : > { %v4891_v3 = vpop.f32.mrf.mxu2  ;;  %6373 = vmatpush.bf16.msrb.mxu1 %v18077_v36  ;;  %v5872_v36 = vrot.slane %v5870_v2, 1  ;;  %v18095_v2 = vld [vmem:[%s23050_s3 + $0x60] sm:$0xff] }
 0x3ec   : > { %5350 = vmatmul.bf16.gmra.mxu0 %v5238_v50  ;;  %v4922_v45 = vadd.f32 %v4891_v3, %v4749_v13  ;;  %v4645_v23 = vpop.f32.mrf.mxu0  ;;  %v5245_v13 = vrot.slane %v5243_v32, 1 }
 0x3ed   : > { %v4751_v10 = vadd.f32 %v4750_v40, %v4645_v23  ;;  %v5425_v40 = vsel %vm1681_vm13, %v5422_v12, %v5424_v46  ;;  %v18088_v23 = vld [vmem:[%s23050_s3 + $0x28] sm:$0xff] }
 0x3ee   : > { %v5087_v29 = vpop.f32.mrf.mxu3  ;;  %v20814_v42 = vadd.f32 %v5085_v61, %v4922_v45  ;;  %v5246_v50 = vsel %vm1381_vm12, %v5241_v28, %v5245_v13  ;;  %v5247_v28 = vshrl.u32 %v20778_v19, 16  ;;  %v18085_v19 = vld [vmem:[%s23050_s3 + $0x10] sm:$0xff] }
 0x3ef   : > { %v20816_v9 = vpop.f32.mrf.mxu1  ;;  %6374 = vmatpush.bf16.msrb.mxu1 %v18076_v7  ;;  %v5251_v7 = vshll.u32 %v20803_v5, 16 }
 0x3f1   : > { %v5253_v37 = vrot.slane %v5251_v7, 1 }
 0x3f2   : > { %5519 = vmatmul.bf16.gmra.mxu1 %v5425_v40  ;;  %v18097_v40 = vld [vmem:[%s23050_s3 + $0x70] sm:$0xff] }
 0x3f3   : > { %v4893_v56 = vpop.f32.mrf.mxu2  ;;  %5974 = vmatmul.bf16.gmra.mxu3 %v5865_v41  ;;  %6375 = vmatpush.bf16.msrb.mxu1 %v18075_v16 }
 0x3f4   : > { %v4923_v30 = vadd.f32 %v4893_v56, %v4751_v10  ;;  %v4648_v38 = vpop.f32.mrf.mxu0  ;;  %v5866_v10 = vshrl.u32 %v20673_v35, 16  ;;  %6652 = vmatpush.bf16.msra.mxu2 %v18097_v40  ;;  %v18073_v35 = vld [vmem:[%s23051_s4] sm:$0xff] }
 0x3f5   : > { %v4754_v63 = vadd.f32 %v4753_v52, %v4648_v38  ;;  %v18089_v52 = vld [vmem:[%s23050_s3 + $0x30] sm:$0xff] }
 0x3f6   : > { %v5090_v12 = vpop.f32.mrf.mxu3  ;;  %v20831_v61 = vadd.f32 %v5087_v29, %v4923_v30  ;;  %6727 = vmatpush.bf16.msra.mxu3 %v18089_v52  ;;  %v5868_v56 = vor.u32 %v5866_v10, %v5864_v51  ;;  %v18096_v30 = vld [vmem:[%s23050_s3 + $0x68] sm:$0xff]  ;;  %v5878_v10 = vshll.u32 %v20733_v27, 16 }
 0x3f7   : > { %v20833_v0 = vpop.f32.mrf.mxu1  ;;  %6376 = vmatpush.bf16.msrb.mxu1 %v18074_v18 }
 0x3f8   : > { %v5873_v51 = vsel %vm1381_vm12, %v5868_v56, %v5872_v36  ;;  %6653 = vmatpush.bf16.msra.mxu2 %v18096_v30  ;;  %v5874_v56 = vshrl.u32 %v20712_v44, 16  ;;  %v5880_v7 = vrot.slane %v5878_v10, 1 }
 0x3fa   : > { %5708 = vmatmul.bf16.gmra.mxu2 %v18030_v11  ;;  %6728 = vmatpush.bf16.msra.mxu3 %v18088_v23  ;;  %v18086_v11 = vld [vmem:[%s23050_s3 + $0x18] sm:$0xff]  ;;  %v5249_v23 = vor.u32 %v5247_v28, %v5245_v13 }
 0x3fb   : > { %v4896_v3 = vpop.f32.mrf.mxu2  ;;  %6377 = vmatpush.bf16.msrb.mxu1 %v18073_v35  ;;  %v18060_v35 = vld [vmem:[%s23050_s3 + $0x218] sm:$0xff] }
 0x3fc   : > { %5355 = vmatmul.bf16.gmra.mxu0 %v5246_v50  ;;  %v4924_v45 = vadd.f32 %v4896_v3, %v4754_v63  ;;  %v4650_v31 = vpop.f32.mrf.mxu0  ;;  %v5142_v63 = vld [vmem:[#allocation4 + $0x48] sm:$0x1]  ;;  %6654 = vmatpush.bf16.msra.mxu2 %v18095_v2 }
 0x3fd   : > { %v4756_v29 = vadd.f32 %v20797_v25, %v4650_v31  ;;  %v18087_v25 = vld [vmem:[%s23050_s3 + $0x20] sm:$0xff]  ;;  %v5193_v50 = vunpack.c.l.b16 %v5142_v63  ;;  %6109 = vmatpush.bf16.msrb.mxu0 %v18060_v35  ;;  %v18066_v35 = vld [vmem:[#allocation3 + $0x10] sm:$0xff] }
 0x3fe   : > { %v5092_v22 = vpop.f32.mrf.mxu3  ;;  %v20860_v41 = vadd.f32 %v5090_v12, %v4924_v45  ;;  %6729 = vmatpush.bf16.msra.mxu3 %v18087_v25  ;;  %v18031_v45 = vld [vmem:[#allocation4 + $0x38] sm:$0xff] }
 0x3ff   : > { %v20862_v32 = vpop.f32.mrf.mxu1  ;;  %v20897_v31 = vpack.c.b16 %v5193_v50, %v5193_v50  ;;  %v18084_v25 = vld [vmem:[%s23050_s3 + $0x8] sm:$0xff] }
 0x402   : > { %5524 = vmatmul.bf16.gmra.mxu1 %v5427_v57  ;;  %6730 = vmatpush.bf16.msra.mxu3 %v18086_v11  ;;  %v18083_v11 = vld [vmem:[%s23050_s3] sm:$0xff] }
 0x403   : > { %v4898_v38 = vpop.f32.mrf.mxu2  ;;  %5979 = vmatmul.bf16.gmra.mxu3 %v5873_v51  ;;  %v5428_v51 = vrot.slane %v20897_v31, 1 }
 0x404   : > { %v4925_v12 = vadd.f32 %v4898_v38, %v4756_v29  ;;  %v4653_v46 = vpop.f32.mrf.mxu0  ;;  %v18094_v29 = vld [vmem:[%s23050_s3 + $0x58] sm:$0xff]  ;;  %v18093_v38 = vld [vmem:[%s23050_s3 + $0x50] sm:$0xff] }
 0x405   : > { %v4759_v16 = vadd.f32 %v20816_v9, %v4653_v46  ;;  %v5254_v9 = vsel %vm1381_vm12, %v5249_v23, %v5253_v37  ;;  %6655 = vmatpush.bf16.msra.mxu2 %v18094_v29  ;;  %v5429_v46 = vsel %vm1681_vm13, %v5426_v15, %v5428_v51  ;;  %v18058_v15 = vld [vmem:[%s23050_s3 + $0x208] sm:$0xff]  ;;  %v18091_v29 = vld [vmem:[%s23050_s3 + $0x40] sm:$0xff]  ;;  %v5886_v51 = vshll.u32 %v20735_v58, 16 }
 0x406   : > { %v5095_v52 = vpop.f32.mrf.mxu3  ;;  %v20889_v3 = vadd.f32 %v5092_v22, %v4925_v12  ;;  %6731 = vmatpush.bf16.msra.mxu3 %v18085_v19  ;;  %v5876_v12 = vor.u32 %v5874_v56, %v5872_v36  ;;  %v18092_v36 = vld [vmem:[%s23050_s3 + $0x48] sm:$0xff] }
 0x407   : > { %v20891_v18 = vpop.f32.mrf.mxu1 }
 0x408   : > { %v5881_v28 = vsel %vm1381_vm12, %v5876_v12, %v5880_v7  ;;  %v5882_v12 = vshrl.u32 %v20733_v27, 16  ;;  %v5267_v27 = vshll.u32 %v20897_v31, 16 }
 0x409   : > { %6656 = vmatpush.bf16.msra.mxu2 %v18093_v38 }
 0x40a   : > { %5713 = vmatmul.bf16.gmra.mxu2 %v18031_v45  ;;  %6732 = vmatpush.bf16.msra.mxu3 %v18084_v25  ;;  %v6249_v45 = vshll.u32 %v18065_v33, 16  ;;  %v6247_v25 = vshrl.u32 %v18065_v33, 16 }
 0x40b   : > { %v4901_v22 = vpop.f32.mrf.mxu2 }
 0x40c   : > { %5360 = vmatmul.bf16.gmra.mxu0 %v5254_v9  ;;  %v4926_v13 = vadd.f32 %v4901_v22, %v4759_v16  ;;  %v4655_v40 = vpop.f32.mrf.mxu0  ;;  %v5259_v16 = vshll.u32 %v20845_v59, 16  ;;  %v5255_v9 = vshrl.u32 %v20803_v5, 16  ;;  %v18057_v5 = vld [vmem:[%s23050_s3 + $0x200] sm:$0xff] }
 0x40d   : > { %v4761_v30 = vadd.f32 %v20833_v0, %v4655_v40  ;;  %v18059_v0 = vld [vmem:[%s23050_s3 + $0x210] sm:$0xff]  ;;  %6657 = vmatpush.bf16.msra.mxu2 %v18092_v36 }
 0x40e   : > { %v5097_v57 = vpop.f32.mrf.mxu3  ;;  %v20915_v44 = vadd.f32 %v5095_v52, %v4926_v13  ;;  %6110 = vmatpush.bf16.msrb.mxu0 %v18059_v0  ;;  %6733 = vmatpush.bf16.msra.mxu3 %v18083_v11  ;;  %v5261_v10 = vrot.slane %v5259_v16, 1  ;;  %v18032_v13 = vld [vmem:[#allocation4 + $0x40] sm:$0xff]  ;;  %v5257_v56 = vor.u32 %v5255_v9, %v5253_v37  ;;  %v6254_v37 = vshll.u32 %v18066_v35, 16  ;;  %v20963_v9 = vld [vmem:[#allocation3 + $0x18] sm:$0xff] }
 0x40f   : > { %v20917_v63 = vpop.f32.mrf.mxu1  ;;  %v5888_v16 = vrot.slane %v5886_v51, 1  ;;  %v6258_v51 = vshrl.u32 %v18066_v35, 16 }
 0x410   : > { %v6256_v58 = vrot.slane %v6254_v37, 1  ;;  %v18115_v37 = vld [vmem:[%s23050_s3 + $0xe8] sm:$0xff] }
 0x411   : > { %6658 = vmatpush.bf16.msra.mxu2 %v18091_v29 }
 0x412   : > { %5529 = vmatmul.bf16.gmra.mxu1 %v5429_v46  ;;  %6111 = vmatpush.bf16.msrb.mxu0 %v18058_v15  ;;  %v6260_v35 = vor.u32 %v6258_v51, %v6256_v58  ;;  %v21005_v51 = vld [vmem:[#allocation3 + $0x20] sm:$0xff] }
 0x413   : > { %v4903_v52 = vpop.f32.mrf.mxu2  ;;  %5984 = vmatmul.bf16.gmra.mxu3 %v5881_v28  ;;  %v5884_v28 = vor.u32 %v5882_v12, %v5880_v7  ;;  %v20978_v12 = vld [vmem:[#allocation4 + $0x48] sm:$0xff] }
 0x414   : > { %v4927_v50 = vadd.f32 %v4903_v52, %v4761_v30  ;;  %v4658_v2 = vpop.f32.mrf.mxu0  ;;  %v5262_v30 = vsel %vm1381_vm12, %v5257_v56, %v5261_v10 }
 0x415   : > { %v4764_v23 = vadd.f32 %v20862_v32, %v4658_v2  ;;  %v6251_v32 = vrot.slane %v6249_v45, 1 }
 0x416   : > { %v5100_v19 = vpop.f32.mrf.mxu3  ;;  %v20941_v22 = vadd.f32 %v5097_v57, %v4927_v50  ;;  %6112 = vmatpush.bf16.msrb.mxu0 %v18057_v5  ;;  %v5889_v50 = vsel %vm1381_vm12, %v5884_v28, %v5888_v16  ;;  %v18116_v5 = vld [vmem:[%s23050_s3 + $0xf0] sm:$0xff] }
 0x417   : > { %v20943_v40 = vpop.f32.mrf.mxu1  ;;  %v6252_v11 = vor.u32 %v6251_v32, %v6247_v25 }
 0x419   : > { %v6257_v2 = vsel %vm1381_vm12, %v6252_v11, %v6256_v58  ;;  %v18104_v58 = vld [vmem:[%s23050_s3 + $0xa8] sm:$0xff] }
 0x41a   : > { %5718 = vmatmul.bf16.gmra.mxu2 %v18032_v13  ;;  %v18033_v13 = vld [vmem:[#allocation4 + $0x48] sm:$0xff] }
 0x41b   : > { %v4906_v57 = vpop.f32.mrf.mxu2 }
 0x41c   : > { %5365 = vmatmul.bf16.gmra.mxu0 %v5262_v30  ;;  %v4928_v38 = vadd.f32 %v4906_v57, %v4764_v23  ;;  %v4660_v0 = vpop.f32.mrf.mxu0  ;;  %v5263_v23 = vshrl.u32 %v20845_v59, 16  ;;  %v18106_v59 = vld [vmem:[%s23050_s3 + $0xb8] sm:$0xff]  ;;  %v6262_v57 = vshll.u32 %v20963_v9, 16 }
 0x41d   : > { %v4766_v33 = vadd.f32 %v20891_v18, %v4660_v0  ;;  %v18117_v18 = vld [vmem:[%s23050_s3 + $0xf8] sm:$0xff]  ;;  %6828 = vmatpush.bf16.msrb.mxu2 %v18106_v59  ;;  %v18105_v0 = vld [vmem:[%s23050_s3 + $0xb0] sm:$0xff] }
 0x41e   : > { %v5102_v46 = vpop.f32.mrf.mxu3  ;;  %v20952_v36 = vadd.f32 %v5100_v19, %v4928_v38  ;;  %v5269_v19 = vrot.slane %v5267_v27, 1  ;;  %6946 = vmatpush.bf16.msrb.mxu3 %v18117_v18  ;;  %v5265_v25 = vor.u32 %v5263_v23, %v5261_v10  ;;  %v18990_v38 = vld [vmem:[#allocation4 + $0x40] sm:$0xff]   ;;  %v18980_v27 = vld [vmem:[#allocation4 + $0x10] sm:$0xf0] }
 0x41f   : > { %v20954_v52 = vpop.f32.mrf.mxu1  ;;  %v18114_v18 = vld [vmem:[%s23050_s3 + $0xe0] sm:$0xff] }
 0x420   : > { %v5270_v30 = vsel %vm1381_vm12, %v5265_v25, %v5269_v19 }
 0x421   : > { %6829 = vmatpush.bf16.msrb.mxu2 %v18105_v0 }
 0x422   : > { %6378 = vmatmul.bf16.vlgmr.msrb.gmra.mxu1 %v6257_v2  ;;  %6947 = vmatpush.bf16.msrb.mxu3 %v18116_v5  ;;  %v6580_v2 = vshll.u32 %v20978_v12, 16  ;;  %v18103_v5 = vld [vmem:[%s23050_s3 + $0xa0] sm:$0xff] }
 0x423   : > { %v4908_v45 = vpop.f32.mrf.mxu2  ;;  %5989 = vmatmul.bf16.gmra.mxu3 %v5889_v50 }
 0x424   : > { %v4929_v15 = vadd.f32 %v4908_v45, %v4766_v33  ;;  %v6264_v33 = vrot.slane %v6262_v57, 1 }
 0x425   : > { %6830 = vmatpush.bf16.msrb.mxu2 %v18104_v58  ;;  %v21031_v58 = vld [vmem:[#allocation4 + $0x50] sm:$0xff] }
 0x426   : > { %v5105_v7 = vpop.f32.mrf.mxu3  ;;  %v20965_v29 = vadd.f32 %v5102_v46, %v4929_v15  ;;  %v6575_v46 = vshll.u32 %v18990_v38, 16  ;;  %6948 = vmatpush.bf16.msrb.mxu3 %v18115_v37  ;;  %v18981_v15 = vld [vmem:[#allocation4 + $0x10] sm:$0xe] }
 0x427   : > { %v20967_v31 = vpop.f32.mrf.mxu1  ;;  %v18982_v25 = vor.u32 %v18981_v15, %v18980_v27  ;;  %v18111_v15 = vld [vmem:[%s23050_s3 + $0xc8] sm:$0xff] }
 0x428   : > { %v6577_v23 = vrot.slane %v6575_v46, 1 }
 0x429   : > { %v4663_v56 = vpop.f32.mrf.mxu0  ;;  %v6032_v37 = vrot.slane %v18982_v25, 1  ;;  %6831 = vmatpush.bf16.msrb.mxu2 %v18103_v5  ;;  %v18110_v25 = vld [vmem:[%s23050_s3 + $0xc0] sm:$0xff] }
 0x42a   : > { %v4769_v32 = vadd.f32 %v20917_v63, %v4663_v56  ;;  %5723 = vmatmul.bf16.gmra.mxu2 %v18033_v13  ;;  %v6573_v13 = vshrl.u32 %v18990_v38, 16  ;;  %v6582_v56 = vrot.slane %v6580_v2, 1  ;;  %6949 = vmatpush.bf16.msrb.mxu3 %v18114_v18  ;;  %v6270_v2 = vshll.u32 %v21005_v51, 16 }
 0x42b   : > { %v6034_v46 = vsel %vm1681_vm13, %v6032_v37, %v6033_v55  ;;  %v18099_v37 = vld [vmem:[%s23050_s3 + $0x80] sm:$0xff] }
 0x42c   : > { %5370 = vmatmul.bf16.gmra.mxu0 %v5270_v30  ;;  %v6578_v59 = vor.u32 %v6577_v23, %v6573_v13 }
 0x42d   : > { %v4911_v10 = vpop.f32.mrf.mxu2 }
 0x42e   : > { %v4930_v63 = vadd.f32 %v4911_v10, %v4769_v32  ;;  %v5107_v11 = vpop.f32.mrf.mxu3  ;;  %v18113_v32 = vld [vmem:[%s23050_s3 + $0xd8] sm:$0xff] }
 0x42f   : > { %v20988_v50 = vpop.f32.mrf.mxu1  ;;  %6950 = vmatpush.bf16.msrb.mxu3 %v18113_v32  ;;  %v6584_v32 = vshrl.u32 %v20978_v12, 16 }
 0x430   : > { %v20986_v28 = vadd.f32 %v5105_v7, %v4930_v63  ;;  %v6265_v7 = vsel %vm1381_vm12, %v6260_v35, %v6264_v33  ;;  %v6583_v63 = vsel %vm1381_vm12, %v6578_v59, %v6582_v56  ;;  %v18112_v35 = vld [vmem:[%s23050_s3 + $0xd0] sm:$0xff]  ;;  %v6537_v59 = vld [vmem:[#allocation4 + $0x58] sm:$0x1] }
 0x431   : > { %v4665_v16 = vpop.f32.mrf.mxu0 }
 0x432   : > { %v4771_v45 = vadd.f32 %v20943_v40, %v4665_v16  ;;  %6383 = vmatmul.bf16.gmra.mxu1 %v6265_v7  ;;  %v6266_v16 = vshrl.u32 %v20963_v9, 16  ;;  %v6272_v9 = vrot.slane %v6270_v2, 1 }
 0x433   : > { %6734 = vmatmul.bf16.vlgmr.msra.gmra.mxu3 %v18990_v38 }
 0x434   : > { %6951 = vmatpush.bf16.msrb.mxu3 %v18112_v35  ;;  %v6268_v18 = vor.u32 %v6266_v16, %v6264_v33  ;;  %v18100_v33 = vld [vmem:[%s23050_s3 + $0x88] sm:$0xff] }
 0x435   : > { %v4913_v19 = vpop.f32.mrf.mxu2  ;;  %v18069_v35 = vld [vmem:[#allocation3 + $0x28] sm:$0xff] }
 0x436   : > { %v4931_v40 = vadd.f32 %v4913_v19, %v4771_v45  ;;  %v5955_v30 = vpop.f32.mrf.mxu3  ;;  %v6588_v19 = vshll.u32 %v21031_v58, 16 }
 0x437   : > { %v21009_v10 = vpop.f32.mrf.mxu1 }
 0x438   : > { %v21007_v57 = vadd.f32 %v5107_v11, %v4931_v40  ;;  %v18102_v11 = vld [vmem:[%s23050_s3 + $0x98] sm:$0xff]  ;;  %6952 = vmatpush.bf16.msrb.mxu3 %v18111_v15  ;;  %v6273_v40 = vsel %vm1381_vm12, %v6268_v18, %v6272_v9 }
 0x439   : > { %v5336_v38 = vpop.f32.mrf.mxu0  ;;  %6832 = vmatpush.bf16.msrb.mxu2 %v18102_v11  ;;  %v6567_v11 = vunpack.c.l.b16 %v6537_v59 }
 0x43a   : > { %v5376_v0 = vadd.f32 %v5336_v38, %v20751_v24  ;;  %6659 = vmatmul.bf16.vlgmr.msra.gmra.mxu2 %v6583_v63  ;;  %v6590_v38 = vrot.slane %v6588_v19, 1  ;;  %v6592_v19 = vshrl.u32 %v21031_v58, 16 }
 0x43c   : > { %6113 = vmatmul.bf16.vlgmr.msrb.gmra.mxu0 %v6034_v46  ;;  %v5535_v24 = vadd.f32 %v20954_v52, %v5376_v0  ;;  %6953 = vmatpush.bf16.msrb.mxu3 %v18110_v25 }
 0x43d   : > { %v5689_v27 = vpop.f32.mrf.mxu2  ;;  %6833 = vmatpush.bf16.msrb.mxu2 %v18101_v21  ;;  %v6274_v21 = vshrl.u32 %v21005_v51, 16 }
 0x43e   : > { %v5729_v45 = vadd.f32 %v5689_v27, %v5535_v24  ;;  %v5957_v55 = vpop.f32.mrf.mxu3  ;;  %v6278_v24 = vshll.u32 %v18069_v35, 16  ;;  %v21058_v27 = vpack.c.b16 %v6567_v11, %v6567_v11 }
 0x43f   : > { %v21035_v23 = vpop.f32.mrf.mxu1 }
 0x440   : > { %v21033_v7 = vadd.f32 %v5955_v30, %v5729_v45 }
 0x441   : > { %v5338_v52 = vpop.f32.mrf.mxu0  ;;  %6834 = vmatpush.bf16.msrb.mxu2 %v18100_v33 }
 0x442   : > { %v5377_v13 = vadd.f32 %v5338_v52, %v20758_v14  ;;  %6388 = vmatmul.bf16.gmra.mxu1 %v6273_v40  ;;  %v6586_v14 = vor.u32 %v6584_v32, %v6582_v56  ;;  %v6280_v52 = vrot.slane %v6278_v24, 1  ;;  %v6276_v40 = vor.u32 %v6274_v21, %v6272_v9  ;;  %v18135_v9 = vld [vmem:[%s23050_s3 + $0x178] sm:$0xff]  ;;  %v18133_v21 = vld [vmem:[%s23050_s3 + $0x168] sm:$0xff] }
 0x443   : > { %6739 = vmatmul.bf16.gmra.mxu3 %v20978_v12  ;;  %v6594_v32 = vor.u32 %v6592_v19, %v6590_v38 }
 0x444   : > { %v5536_v5 = vadd.f32 %v20967_v31, %v5377_v13  ;;  %v6591_v2 = vsel %vm1381_vm12, %v6586_v14, %v6590_v38  ;;  %v6596_v13 = vshll.u32 %v21058_v27, 16  ;;  %v18146_v14 = vld [vmem:[%s23050_s3 + $0x1b8] sm:$0xff]  ;;  %v21080_v38 = vld [vmem:[#allocation3 + $0x30] sm:$0xff]  ;;  %7204 = vmatpush.bf16.msra.mxu3 %v18135_v9 }
 0x445   : > { %v5691_v30 = vpop.f32.mrf.mxu2  ;;  %6835 = vmatpush.bf16.msrb.mxu2 %v18099_v37  ;;  %7322 = vmatpush.bf16.msra.mxu0 %v18146_v14  ;;  %v6771_v14 = vrot.slane %v20978_v12, 1  ;;  %v18145_v9 = vld [vmem:[%s23050_s3 + $0x1b0] sm:$0xff] }
 0x446   : > { %v5730_v63 = vadd.f32 %v5691_v30, %v5536_v5  ;;  %v5960_v0 = vpop.f32.mrf.mxu3  ;;  %v6598_v5 = vrot.slane %v6596_v13, 1 }
 0x447   : > { %v21054_v16 = vpop.f32.mrf.mxu1 }
 0x448   : > { %v21052_v46 = vadd.f32 %v5957_v55, %v5730_v63  ;;  %v6599_v63 = vsel %vm1381_vm12, %v6594_v32, %v6598_v5  ;;  %v18132_v32 = vld [vmem:[%s23050_s3 + $0x160] sm:$0xff] }
 0x449   : > { %v5341_v31 = vpop.f32.mrf.mxu0  ;;  %7323 = vmatpush.bf16.msra.mxu0 %v18145_v9  ;;  %v18120_v9 = vld [vmem:[%s23050_s3 + $0x100] sm:$0xff] }
 0x44a   : > { %v5378_v56 = vadd.f32 %v5341_v31, %v20766_v62  ;;  %6664 = vmatmul.bf16.gmra.mxu2 %v6591_v2  ;;  %v18134_v31 = vld [vmem:[%s23050_s3 + $0x170] sm:$0xff]  ;;  %v18127_v2 = vld [vmem:[%s23050_s3 + $0x138] sm:$0xff] }
 0x44b   : > { %7205 = vmatpush.bf16.msra.mxu3 %v18134_v31  ;;  %7096 = vmatpush.bf16.msra.mxu2 %v18127_v2 }
 0x44c   : > { %6118 = vmatmul.bf16.gmra.mxu0 %v20518_v47  ;;  %v5537_v45 = vadd.f32 %v20988_v50, %v5378_v56  ;;  %v6281_v50 = vsel %vm1381_vm12, %v6276_v40, %v6280_v52  ;;  %v6286_v56 = vshll.u32 %v21080_v38, 16 }
 0x44d   : > { %v5694_v15 = vpop.f32.mrf.mxu2 }
 0x44e   : > { %v5731_v55 = vadd.f32 %v5694_v15, %v5537_v45  ;;  %v5962_v18 = vpop.f32.mrf.mxu3  ;;  %v6282_v15 = vshrl.u32 %v18069_v35, 16  ;;  %v6288_v13 = vrot.slane %v6286_v56, 1 }
 0x44f   : > { %v21067_v33 = vpop.f32.mrf.mxu1  ;;  %7206 = vmatpush.bf16.msra.mxu3 %v18133_v21 }
 0x450   : > { %v21065_v25 = vadd.f32 %v5960_v0, %v5731_v55  ;;  %v18126_v55 = vld [vmem:[%s23050_s3 + $0x130] sm:$0xff]  ;;  %v6284_v19 = vor.u32 %v6282_v15, %v6280_v52  ;;  %v18125_v52 = vld [vmem:[%s23050_s3 + $0x128] sm:$0xff]  ;;  %v18123_v15 = vld [vmem:[%s23050_s3 + $0x118] sm:$0xff] }
 0x451   : > { %v5343_v62 = vpop.f32.mrf.mxu0  ;;  %7097 = vmatpush.bf16.msra.mxu2 %v18126_v55 }
 0x452   : > { %v5379_v47 = vadd.f32 %v5343_v62, %v20775_v17  ;;  %6393 = vmatmul.bf16.gmra.mxu1 %v6281_v50  ;;  %v18991_v62 = vld [vmem:[#allocation4 + $0x40] sm:$0xf0]  ;;  %v18107_v50 = vld [vmem:[#allocation4 + $0x48] sm:$0xff]  ;;  %v6289_v5 = vsel %vm1381_vm12, %v6284_v19, %v6288_v13  ;;  %v18129_v19 = vld [vmem:[%s23050_s3 + $0x148] sm:$0xff] }
 0x453   : > { %6744 = vmatmul.bf16.gmra.mxu3 %v21031_v58 }
 0x454   : > { %v5538_v51 = vadd.f32 %v21009_v10, %v5379_v47  ;;  %7207 = vmatpush.bf16.msra.mxu3 %v18132_v32 }
 0x455   : > { %v5696_v59 = vpop.f32.mrf.mxu2  ;;  %7098 = vmatpush.bf16.msra.mxu2 %v18125_v52  ;;  %v18128_v52 = vld [vmem:[%s23050_s3 + $0x140] sm:$0xff] }
 0x456   : > { %v5732_v30 = vadd.f32 %v5696_v59, %v5538_v51  ;;  %v5965_v17 = vpop.f32.mrf.mxu3 }
 0x457   : > { %v21084_v0 = vpop.f32.mrf.mxu1 }
 0x458   : > { %v21082_v10 = vadd.f32 %v5962_v18, %v5732_v30 }
 0x459   : > { %v5346_v37 = vpop.f32.mrf.mxu0 }
 0x45a   : > { %v5380_v11 = vadd.f32 %v5346_v37, %v20783_v43  ;;  %6669 = vmatmul.bf16.gmra.mxu2 %v6599_v63 }
 0x45c   : > { %6123 = vmatmul.bf16.gmra.mxu0 %v20559_v6  ;;  %v5539_v24 = vadd.f32 %v21035_v23, %v5380_v11  ;;  %v18992_v6 = vld [vmem:[#allocation4 + $0x40] sm:$0xe]  ;;  %v21122_v11 = vld [vmem:[#allocation3 + $0x38] sm:$0xff] }
 0x45d   : > { %v5699_v45 = vpop.f32.mrf.mxu2  ;;  %v18993_v51 = vor.u32 %v18992_v6, %v18991_v62  ;;  %v6294_v21 = vshll.u32 %v21122_v11, 16  ;;  %v18122_v62 = vld [vmem:[%s23050_s3 + $0x110] sm:$0xff] }
 0x45e   : > { %v5733_v43 = vadd.f32 %v5699_v45, %v5539_v24  ;;  %v5967_v18 = vpop.f32.mrf.mxu3  ;;  %v18130_v45 = vld [vmem:[%s23050_s3 + $0x150] sm:$0xff] }
 0x45f   : > { %v21104_v35 = vpop.f32.mrf.mxu1  ;;  %v6770_v37 = vrot.slane %v18993_v51, 1 }
 0x460   : > { %v21102_v23 = vadd.f32 %v5965_v17, %v5733_v43  ;;  %v18131_v17 = vld [vmem:[%s23050_s3 + $0x158] sm:$0xff]  ;;  %v6290_v43 = vshrl.u32 %v21080_v38, 16 }
 0x461   : > { %v5348_v40 = vpop.f32.mrf.mxu0  ;;  %v6772_v56 = vsel %vm1681_vm13, %v6770_v37, %v6771_v14  ;;  %7208 = vmatpush.bf16.msra.mxu3 %v18131_v17 }
 0x462   : > { %v5381_v47 = vadd.f32 %v5348_v40, %v20795_v34  ;;  %6398 = vmatmul.bf16.gmra.mxu1 %v6289_v5  ;;  %v6292_v38 = vor.u32 %v6290_v43, %v6288_v13  ;;  %v6296_v40 = vrot.slane %v6294_v21, 1  ;;  %v18121_v5 = vld [vmem:[%s23050_s3 + $0x108] sm:$0xff]  ;;  %v18156_v21 = vld [vmem:[%s23050_s3 + $0x1f8] sm:$0xff] }
 0x463   : > { %6954 = vmatmul.bf16.vlgmr.msrb.gmra.mxu3 %v18107_v50  ;;  %7472 = vmatpush.bf16.msra.mxu1 %v18156_v21 }
 0x464   : > { %v5540_v59 = vadd.f32 %v21054_v16, %v5381_v47  ;;  %v18124_v16 = vld [vmem:[%s23050_s3 + $0x120] sm:$0xff]  ;;  %v6297_v13 = vsel %vm1381_vm12, %v6292_v38, %v6296_v40  ;;  %v6775_v38 = vrot.slane %v21058_v27, 1 }
 0x465   : > { %v5701_v30 = vpop.f32.mrf.mxu2  ;;  %7099 = vmatpush.bf16.msra.mxu2 %v18124_v16  ;;  %7209 = vmatpush.bf16.msra.mxu3 %v18130_v45  ;;  %v18108_v47 = vld [vmem:[#allocation4 + $0x50] sm:$0xff] }
 0x466   : > { %v5734_v34 = vadd.f32 %v5701_v30, %v5540_v59  ;;  %v5970_v63 = vpop.f32.mrf.mxu3  ;;  %v6773_v30 = vrot.slane %v21031_v58, 1 }
 0x467   : > { %v21129_v2 = vpop.f32.mrf.mxu1 }
 0x468   : > { %v21127_v12 = vadd.f32 %v5967_v18, %v5734_v34  ;;  %v18144_v34 = vld [vmem:[%s23050_s3 + $0x1a8] sm:$0xff]  ;;  %v6774_v58 = vsel %vm1681_vm13, %v6771_v14, %v6773_v30 }
 0x469   : > { %v5351_v31 = vpop.f32.mrf.mxu0  ;;  %7100 = vmatpush.bf16.msra.mxu2 %v18123_v15  ;;  %7210 = vmatpush.bf16.msra.mxu3 %v18129_v19 }
 0x46a   : > { %v5382_v24 = vadd.f32 %v5351_v31, %v20814_v42  ;;  %6836 = vmatmul.bf16.vlgmr.msrb.gmra.mxu2 %v6772_v56  ;;  %7324 = vmatpush.bf16.msra.mxu0 %v18144_v34  ;;  %v6298_v56 = vshrl.u32 %v21122_v11, 16 }
 0x46c   : > { %6128 = vmatmul.bf16.gmra.mxu0 %v20635_v39  ;;  %v5541_v55 = vadd.f32 %v21067_v33, %v5382_v24  ;;  %v6300_v14 = vor.u32 %v6298_v56, %v6296_v40 }
 0x46d   : > { %v5704_v18 = vpop.f32.mrf.mxu2  ;;  %7101 = vmatpush.bf16.msra.mxu2 %v18122_v62  ;;  %7211 = vmatpush.bf16.msra.mxu3 %v18128_v52  ;;  %v18175_v52 = vld [vmem:[%s23051_s4 + $0x38] sm:$0xff] }
 0x46e   : > { %v5735_v42 = vadd.f32 %v5704_v18, %v5541_v55  ;;  %v5972_v6 = vpop.f32.mrf.mxu3 }
 0x46f   : > { %v21151_v33 = vpop.f32.mrf.mxu1 }
 0x470   : > { %v21149_v50 = vadd.f32 %v5970_v63, %v5735_v42  ;;  %v21169_v63 = vld [vmem:[#allocation3 + $0x40] sm:$0xff] }
 0x471   : > { %v5353_v39 = vpop.f32.mrf.mxu0  ;;  %7102 = vmatpush.bf16.msra.mxu2 %v18121_v5  ;;  %v6302_v24 = vshll.u32 %v21169_v63, 16  ;;  %v18109_v42 = vld [vmem:[#allocation4 + $0x58] sm:$0xff]  ;;  %7730 = vmatpush.bf16.msrb.mxu3 %v18175_v52  ;;  %v6306_v56 = vshrl.u32 %v21169_v63, 16  ;;  %v18151_v52 = vld [vmem:[%s23050_s3 + $0x1d0] sm:$0xff] }
 0x472   : > { %v5383_v32 = vadd.f32 %v5353_v39, %v20831_v61  ;;  %6403 = vmatmul.bf16.gmra.mxu1 %v6297_v13  ;;  %v6776_v13 = vsel %vm1681_vm13, %v6773_v30, %v6775_v38  ;;  %v18174_v30 = vld [vmem:[%s23051_s4 + $0x30] sm:$0xff]  ;;  %v18173_v63 = vld [vmem:[%s23051_s4 + $0x28] sm:$0xff] }
 0x473   : > { %6959 = vmatmul.bf16.gmra.mxu3 %v18108_v47  ;;  %v6304_v18 = vrot.slane %v6302_v24, 1 }
 0x474   : > { %v5542_v51 = vadd.f32 %v21084_v0, %v5383_v32 }
 0x475   : > { %v5706_v59 = vpop.f32.mrf.mxu2  ;;  %7103 = vmatpush.bf16.msra.mxu2 %v18120_v9  ;;  %7731 = vmatpush.bf16.msrb.mxu3 %v18174_v30  ;;  %v18171_v30 = vld [vmem:[%s23051_s4 + $0x18] sm:$0xff] }
 0x476   : > { %v5736_v61 = vadd.f32 %v5706_v59, %v5542_v51  ;;  %v5975_v17 = vpop.f32.mrf.mxu3  ;;  %v18995_v51 = vld [vmem:[#allocation4 + $0x48] sm:$0xf0]  ;;  %v18996_v59 = vld [vmem:[#allocation4 + $0x48] sm:$0xe] }
 0x477   : > { %v21173_v16 = vpop.f32.mrf.mxu1 }
 0x478   : > { %v21171_v0 = vadd.f32 %v5972_v6, %v5736_v61  ;;  %v6305_v6 = vsel %vm1381_vm12, %v6300_v14, %v6304_v18  ;;  %v18142_v14 = vld [vmem:[%s23050_s3 + $0x198] sm:$0xff] }
 0x479   : > { %v5356_v37 = vpop.f32.mrf.mxu0  ;;  %7732 = vmatpush.bf16.msrb.mxu3 %v18173_v63 }
 0x47a   : > { %v5384_v31 = vadd.f32 %v5356_v37, %v20860_v41  ;;  %6841 = vmatmul.bf16.gmra.mxu2 %v6774_v58  ;;  %v6186_v41 = vld [vmem:[#allocation3 + $0x48] sm:$0x1]  ;;  %v18153_v58 = vld [vmem:[%s23050_s3 + $0x1e0] sm:$0xff] }
 0x47b   : > { %v6236_v40 = vunpack.c.l.b16 %v6186_v41 }
 0x47c   : > { %6133 = vmatmul.bf16.gmra.mxu0 %v20697_v53  ;;  %v5543_v45 = vadd.f32 %v21104_v35, %v5384_v31  ;;  %v18155_v35 = vld [vmem:[%s23050_s3 + $0x1f0] sm:$0xff]  ;;  %v21219_v31 = vld [vmem:[%s23050_s3 + $0x238] sm:$0xff] }
 0x47d   : > { %v5709_v15 = vpop.f32.mrf.mxu2  ;;  %7473 = vmatpush.bf16.msra.mxu1 %v18155_v35  ;;  %v6245_v27 = vpack.c.b16 %v6236_v40, %v6236_v40  ;;  %19109 = vmatpush.bf16.msrb.mxu2 %v21219_v31  ;;  %v21240_v35 = vld [vmem:[%s23050_s3 + $0x230] sm:$0xff] }
 0x47e   : > { %v5737_v43 = vadd.f32 %v5709_v15, %v5543_v45  ;;  %v5977_v55 = vpop.f32.mrf.mxu3  ;;  %v21222_v45 = vld [vmem:[#allocation4 + $0x50] sm:$0xff] }
 0x47f   : > { %v21186_v62 = vpop.f32.mrf.mxu1  ;;  %v6310_v24 = vshll.u32 %v6245_v27, 16 }
 0x480   : > { %v21184_v19 = vadd.f32 %v5975_v17, %v5737_v43  ;;  %v18994_v17 = vld [vmem:[#allocation4 + $0x48] sm:$0xff]  }
 0x481   : > { %v5358_v11 = vpop.f32.mrf.mxu0  ;;  %v7020_v21 = vshll.u32 %v18994_v17, 16  ;;  %v6312_v41 = vrot.slane %v6310_v24, 1  ;;  %19110 = vmatpush.bf16.msrb.mxu2 %v21240_v35  ;;  %v7018_v27 = vshrl.u32 %v18994_v17, 16  ;;  %v18140_v17 = vld [vmem:[%s23050_s3 + $0x188] sm:$0xff] }
 0x482   : > { %v5385_v53 = vadd.f32 %v5358_v11, %v20889_v3  ;;  %6408 = vmatmul.bf16.gmra.mxu1 %v6305_v6  ;;  %v18143_v3 = vld [vmem:[%s23050_s3 + $0x1a0] sm:$0xff] }
 0x483   : > { %6964 = vmatmul.bf16.gmra.mxu3 %v18109_v42  ;;  %7325 = vmatpush.bf16.msra.mxu0 %v18143_v3  ;;  %v6308_v42 = vor.u32 %v6306_v56, %v6304_v18  ;;  %v18172_v3 = vld [vmem:[%s23051_s4 + $0x20] sm:$0xff] }
 0x484   : > { %v5544_v47 = vadd.f32 %v21129_v2, %v5385_v53  ;;  %v18154_v2 = vld [vmem:[%s23050_s3 + $0x1e8] sm:$0xff]  ;;  %v7147_v53 = vrot.slane %v21222_v45, 1  ;;  %7733 = vmatpush.bf16.msrb.mxu3 %v18172_v3  ;;  %v21279_v56 = vld [vmem:[%s23050_s3 + $0x220] sm:$0xff] }
 0x485   : > { %v5711_v39 = vpop.f32.mrf.mxu2  ;;  %7474 = vmatpush.bf16.msra.mxu1 %v18154_v2 }
 0x486   : > { %v5738_v32 = vadd.f32 %v5711_v39, %v5544_v47  ;;  %v5980_v5 = vpop.f32.mrf.mxu3  ;;  %v7022_v47 = vrot.slane %v7020_v21, 1  ;;  %v7025_v39 = vshll.u32 %v21222_v45, 16  ;;  %v21286_v21 = vld [vmem:[#allocation4 + $0x58] sm:$0xff] }
 0x487   : > { %v21207_v9 = vpop.f32.mrf.mxu1  ;;  %7326 = vmatpush.bf16.msra.mxu0 %v18142_v14 }
 0x488   : > { %v21205_v61 = vadd.f32 %v5977_v55, %v5738_v32  ;;  %v18141_v32 = vld [vmem:[%s23050_s3 + $0x190] sm:$0xff]  ;;  %7734 = vmatpush.bf16.msrb.mxu3 %v18171_v30 }
 0x489   : > { %v5361_v34 = vpop.f32.mrf.mxu0  ;;  %7475 = vmatpush.bf16.msra.mxu1 %v18153_v58  ;;  %v18150_v58 = vld [vmem:[%s23050_s3 + $0x1c8] sm:$0xff] }
 0x48a   : > { %v5386_v37 = vadd.f32 %v5361_v34, %v20915_v44  ;;  %6846 = vmatmul.bf16.gmra.mxu2 %v6776_v13  ;;  %v18997_v44 = vor.u32 %v18996_v59, %v18995_v51  ;;  %v7023_v59 = vor.u32 %v7022_v47, %v7018_v27  ;;  %v7027_v34 = vrot.slane %v7025_v39, 1 }
 0x48b   : > { %7327 = vmatpush.bf16.msra.mxu0 %v18141_v32  ;;  %v18998_v32 = vld [vmem:[#allocation4 + $0x50] sm:$0xff]  }
 0x48c   : > { %6138 = vmatmul.bf16.gmra.mxu0 %v20727_v26  ;;  %v5545_v15 = vadd.f32 %v21151_v33, %v5386_v37  ;;  %v18152_v26 = vld [vmem:[%s23050_s3 + $0x1d8] sm:$0xff]  ;;  %v7146_v11 = vrot.slane %v18997_v44, 1 }
 0x48d   : > { %v5714_v43 = vpop.f32.mrf.mxu2  ;;  %7476 = vmatpush.bf16.msra.mxu1 %v18152_v26  ;;  %v7149_v26 = vrot.slane %v21286_v21, 1 }
 0x48e   : > { %v5739_v55 = vadd.f32 %v5714_v43, %v5545_v15  ;;  %v5982_v33 = vpop.f32.mrf.mxu3  ;;  %v7148_v13 = vsel %vm1681_vm13, %v7146_v11, %v7147_v53  ;;  %v7028_v43 = vsel %vm1381_vm12, %v7023_v59, %v7027_v34  ;;  %v7033_v11 = vshll.u32 %v21286_v21, 16 }
 0x48f   : > { %v21244_v40 = vpop.f32.mrf.mxu1  ;;  %7328 = vmatpush.bf16.msra.mxu0 %v18140_v17 }
 0x490   : > { %v21242_v6 = vadd.f32 %v5980_v5, %v5739_v55  ;;  %v6313_v5 = vsel %vm1381_vm12, %v6308_v42, %v6312_v41  ;;  %v7029_v41 = vshrl.u32 %v21222_v45, 16  ;;  %v7150_v45 = vsel %vm1681_vm13, %v7147_v53, %v7149_v26 }
 0x491   : > { %v5363_v38 = vpop.f32.mrf.mxu0  ;;  %7477 = vmatpush.bf16.msra.mxu1 %v18151_v52  ;;  %v6982_v52 = vld [vmem:[#allocation4 + $0x60] sm:$0x1]  ;;  %v7394_v53 = vshrl.u32 %v18998_v32, 16 }
 0x492   : > { %v5387_v18 = vadd.f32 %v5363_v38, %v20941_v22  ;;  %v21263_v22 = vld [vmem:[%s23050_s3 + $0x228] sm:$0xff]  ;;  %6413 = vmatmul.bf16.gmra.mxu1 %v6313_v5  ;;  %v18170_v38 = vld [vmem:[%s23051_s4 + $0x10] sm:$0xff]  ;;  %v7031_v27 = vor.u32 %v7029_v41, %v7027_v34  ;;  %v7012_v34 = vunpack.c.l.b16 %v6982_v52 }
 0x493   : > { %7212 = vmatmul.bf16.vlgmr.msra.gmra.mxu3 %v7148_v13  ;;  %19111 = vmatpush.bf16.msrb.mxu2 %v21263_v22  ;;  %v21317_v5 = vld [vmem:[#allocation4 + $0x58] sm:$0xff] }
 0x494   : > { %v5546_v2 = vadd.f32 %v21173_v16, %v5387_v18  ;;  %v21314_v18 = vld [vmem:[%s23050_s3 + $0x218] sm:$0xff]  ;;  %7735 = vmatpush.bf16.msrb.mxu3 %v18170_v38  ;;  %v18169_v13 = vld [vmem:[%s23051_s4 + $0x8] sm:$0xff] }
 0x495   : > { %v5716_v51 = vpop.f32.mrf.mxu2  ;;  %7478 = vmatpush.bf16.msra.mxu1 %v18150_v58 }
 0x496   : > { %v5740_v37 = vadd.f32 %v5716_v51, %v5546_v2  ;;  %v5985_v16 = vpop.f32.mrf.mxu3  ;;  %v7035_v2 = vrot.slane %v7033_v11, 1  ;;  %v7396_v51 = vshll.u32 %v18998_v32, 16  ;;  %v18168_v11 = vld [vmem:[%s23051_s4] sm:$0xff] }
 0x497   : > { %v21283_v15 = vpop.f32.mrf.mxu1  ;;  %19112 = vmatpush.bf16.msrb.mxu2 %v21279_v56 }
 0x498   : > { %v21281_v24 = vadd.f32 %v5982_v33, %v5740_v37  ;;  %v7401_v37 = vshll.u32 %v21317_v5, 16  ;;  %v7398_v30 = vrot.slane %v7396_v51, 1  ;;  %7736 = vmatpush.bf16.msrb.mxu3 %v18169_v13 }
 0x499   : > { %v5366_v44 = vpop.f32.mrf.mxu0 }
 0x49a   : > { %v5388_v55 = vadd.f32 %v5366_v44, %v20952_v36  ;;  %7104 = vmatmul.bf16.vlgmr.msra.gmra.mxu2 %v7028_v43  ;;  %v18139_v36 = vld [vmem:[%s23050_s3 + $0x180] sm:$0xff]  ;;  %v7403_v58 = vrot.slane %v7401_v37, 1  ;;  %v7036_v43 = vsel %vm1381_vm12, %v7031_v27, %v7035_v2  ;;  %v18165_v37 = vld [vmem:[#allocation3 + $0x48] sm:$0xff] }
 0x49b   : > { %7329 = vmatpush.bf16.msra.mxu0 %v18139_v36  ;;  %19113 = vmatpush.bf16.msrb.mxu2 %v21314_v18 }
 0x49c   : > { %6143 = vmatmul.bf16.gmra.mxu0 %v20744_v60  ;;  %v5547_v14 = vadd.f32 %v21186_v62, %v5388_v55  ;;  %v18149_v60 = vld [vmem:[%s23050_s3 + $0x1c0] sm:$0xff]  ;;  %v7399_v55 = vor.u32 %v7398_v30, %v7394_v53  ;;  %7737 = vmatpush.bf16.msrb.mxu3 %v18168_v11 }
 0x49d   : > { %v5719_v63 = vpop.f32.mrf.mxu2  ;;  %7479 = vmatpush.bf16.msra.mxu1 %v18149_v60 }
 0x49e   : > { %v5741_v33 = vadd.f32 %v5719_v63, %v5547_v14  ;;  %v5987_v42 = vpop.f32.mrf.mxu3 }
 0x49f   : > { %v21306_v39 = vpop.f32.mrf.mxu1  ;;  %7580 = vmatpush.bf16.msrb.mxu0 %v21219_v31  ;;  %v7016_v31 = vpack.c.b16 %v7012_v34, %v7012_v34 }
 0x4a0   : > { %v21304_v62 = vadd.f32 %v5985_v16, %v5741_v33  ;;  %v7404_v33 = vsel %vm1381_vm12, %v7399_v55, %v7403_v58 }
 0x4a1   : > { %v5368_v47 = vpop.f32.mrf.mxu0  ;;  %v7151_v38 = vrot.slane %v7016_v31, 1  ;;  %v7041_v32 = vshll.u32 %v7016_v31, 16 }
 0x4a2   : > { %v5389_v3 = vadd.f32 %v5368_v47, %v20965_v29  ;;  %v21326_v29 = vld [vmem:[%s23050_s3 + $0x210] sm:$0xff]  ;;  %7480 = vmatmul.bf16.vlgmr.msra.gmra.mxu1 %v7404_v33 }
 0x4a3   : > { %7217 = vmatmul.bf16.gmra.mxu3 %v7150_v45  ;;  %19114 = vmatpush.bf16.msrb.mxu2 %v21326_v29  ;;  %v7037_v45 = vshrl.u32 %v21286_v21, 16  ;;  %v7152_v27 = vsel %vm1681_vm13, %v7149_v26, %v7151_v38 }
 0x4a4   : > { %v5548_v59 = vadd.f32 %v21207_v9, %v5389_v3  ;;  %7581 = vmatpush.bf16.msrb.mxu0 %v21240_v35  ;;  %v18158_v35 = vld [vmem:[%s23050_s3 + $0x208] sm:$0xff] }
 0x4a5   : > { %v5721_v17 = vpop.f32.mrf.mxu2  ;;  %v21353_v3 = vld [vmem:[#allocation4 + $0x60] sm:$0xff]  ;;  %v7039_v51 = vor.u32 %v7037_v45, %v7035_v2 }
 0x4a6   : > { %v5742_v16 = vadd.f32 %v5721_v17, %v5548_v59  ;;  %v5990_v44 = vpop.f32.mrf.mxu3  ;;  %v7409_v53 = vshll.u32 %v21353_v3, 16  ;;  %v7043_v59 = vrot.slane %v7041_v32, 1 }
 0x4a7   : > { %v21336_v63 = vpop.f32.mrf.mxu1  ;;  %19115 = vmatpush.bf16.msrb.mxu2 %v18158_v35 }
 0x4a8   : > { %v21334_v9 = vadd.f32 %v5987_v42, %v5742_v16  ;;  %7582 = vmatpush.bf16.msrb.mxu0 %v21263_v22  ;;  %v7411_v30 = vrot.slane %v7409_v53, 1  ;;  %v7044_v26 = vsel %vm1381_vm12, %v7039_v51, %v7043_v59  ;;  %v18167_v59 = vld [vmem:[#allocation3 + $0x58] sm:$0xff] }
 0x4a9   : > { %v5371_v14 = vpop.f32.mrf.mxu0 }
 0x4aa   : > { %v5390_v41 = vadd.f32 %v5371_v14, %v20986_v28  ;;  %7109 = vmatmul.bf16.gmra.mxu2 %v7036_v43  ;;  %v18157_v28 = vld [vmem:[%s23050_s3 + $0x200] sm:$0xff]  ;;  %v7654_v43 = vshll.u32 %v18165_v37, 16 }
 0x4ab   : > { %19116 = vmatpush.bf16.msrb.mxu2 %v18157_v28 }
 0x4ac   : > { %6148 = vmatmul.bf16.gmra.mxu0 %v20747_v20  ;;  %v5549_v42 = vadd.f32 %v21244_v40, %v5390_v41  ;;  %v7405_v20 = vshrl.u32 %v21317_v5, 16  ;;  %v7656_v31 = vrot.slane %v7654_v43, 1 }
 0x4ad   : > { %v5724_v36 = vpop.f32.mrf.mxu2  ;;  %7583 = vmatpush.bf16.msrb.mxu0 %v21279_v56  ;;  %v18136_v56 = vld [vmem:[#allocation4 + $0x50] sm:$0xff] }
 0x4ae   : > { %v5743_v60 = vadd.f32 %v5724_v36, %v5549_v42  ;;  %v5992_v47 = vpop.f32.mrf.mxu3  ;;  %v7407_v17 = vor.u32 %v7405_v20, %v7403_v58 }
 0x4af   : > { %v21358_v13 = vpop.f32.mrf.mxu1 }
 0x4b0   : > { %v21356_v40 = vadd.f32 %v5990_v44, %v5743_v60  ;;  %v7412_v55 = vsel %vm1381_vm12, %v7407_v17, %v7411_v30 }
 0x4b1   : > { %v5373_v52 = vpop.f32.mrf.mxu0  ;;  %7584 = vmatpush.bf16.msrb.mxu0 %v21314_v18 }
 0x4b2   : > { %v5391_v22 = vadd.f32 %v5373_v52, %v21007_v57  ;;  %v18166_v57 = vld [vmem:[#allocation3 + $0x50] sm:$0xff]  ;;  %7485 = vmatmul.bf16.gmra.mxu1 %v7412_v55 }
 0x4b3   : > { %7222 = vmatmul.bf16.gmra.mxu3 %v7152_v27  ;;  %v7659_v33 = vshll.u32 %v18166_v57, 16  ;;  %v7523_v27 = vrot.slane %v21317_v5, 1  ;;  %v7663_v55 = vshrl.u32 %v18166_v57, 16 }
 0x4b4   : > { %v5550_v34 = vadd.f32 %v21283_v15, %v5391_v22  ;;  %v7652_v15 = vshrl.u32 %v18165_v37, 16  ;;  %v7525_v22 = vrot.slane %v21353_v3, 1 }
 0x4b5   : > { %v5726_v16 = vpop.f32.mrf.mxu2  ;;  %7585 = vmatpush.bf16.msrb.mxu0 %v21326_v29  ;;  %v7661_v38 = vrot.slane %v7659_v33, 1  ;;  %v7413_v29 = vshrl.u32 %v21353_v3, 16 }
 0x4b6   : > { %v5744_v44 = vadd.f32 %v5726_v16, %v5550_v34  ;;  %v6735_v21 = vpop.f32.mrf.mxu3  ;;  %v7657_v36 = vor.u32 %v7656_v31, %v7652_v15  ;;  %v7526_v16 = vsel %vm1681_vm13, %v7523_v27, %v7525_v22 }
 0x4b7   : > { %v21372_v58 = vpop.f32.mrf.mxu1  ;;  %v7415_v37 = vor.u32 %v7413_v29, %v7411_v30  ;;  %v7665_v31 = vor.u32 %v7663_v55, %v7661_v38  ;;  %v18999_v55 = vld [vmem:[#allocation4 + $0x50] sm:$0xf0] }
 0x4b8   : > { %v21370_v2 = vadd.f32 %v5992_v47, %v5744_v44  ;;  %v7358_v47 = vld [vmem:[#allocation4 + $0x68] sm:$0x1]  ;;  %v7662_v52 = vsel %vm1381_vm12, %v7657_v36, %v7661_v38 }
 0x4b9   : > { %v6114_v14 = vpop.f32.mrf.mxu0  ;;  %7586 = vmatpush.bf16.msrb.mxu0 %v18158_v35  ;;  %v7388_v20 = vunpack.c.l.b16 %v7358_v47 }
 0x4ba   : > { %7114 = vmatmul.bf16.gmra.mxu2 %v7044_v26  ;;  %v6154_v18 = vadd.f32 %v6114_v14, %v21033_v7 }
 0x4bb   : > { %v7392_v53 = vpack.c.b16 %v7388_v20, %v7388_v20 }
 0x4bc   : > { %7330 = vmatmul.bf16.vlgmr.msra.gmra.mxu0 %v18136_v56  ;;  %v6419_v60 = vadd.f32 %v21306_v39, %v6154_v18  ;;  %v7667_v56 = vshll.u32 %v18167_v59, 16 }
 0x4bd   : > { %v6660_v41 = vpop.f32.mrf.mxu2  ;;  %7587 = vmatpush.bf16.msrb.mxu0 %v18157_v28  ;;  %v7417_v17 = vshll.u32 %v7392_v53, 16 }
 0x4be   : > { %v21376_v11 = vadd.f32 %v6735_v21, %v6660_v41  ;;  %v21378_v42 = vpop.f32.mrf.mxu3  ;;  %v6451_v35 = vmul.f32 0.2, %v6419_v60  ;;  %vm6435_vm15 = vcmp.ge.f32.partialorder %v6419_v60, 0.0  ;;  %v18137_v21 = vld [vmem:[#allocation4 + $0x58] sm:$0xff]  ;;  %v7669_v33 = vrot.slane %v7667_v56, 1 }
 0x4bf   : > { %v21381_v32 = vpop.f32.mrf.mxu1  ;;  %v7419_v3 = vrot.slane %v7417_v17, 1  ;;  %v7616_v41 = vld [vmem:[#allocation3 + $0x60] sm:$0x1] }
 0x4c0   : > { %v6467_v44 = vsel %vm6435_vm15, %v6419_v60, %v6451_v35  ;;  %v7670_v47 = vsel %vm1381_vm12, %v7665_v31, %v7669_v33 }
 0x4c1   : > { %v6116_v45 = vpop.f32.mrf.mxu0  ;;  %v7420_v14 = vsel %vm1381_vm12, %v7415_v37, %v7419_v3  ;;  %v7671_v3 = vshrl.u32 %v18167_v59, 16 }
 0x4c2   : > { %v6155_v7 = vadd.f32 %v6116_v45, %v21052_v46  ;;  %7490 = vmatmul.bf16.gmra.mxu1 %v7420_v14  ;;  %v7646_v45 = vunpack.c.l.b16 %v7616_v41 }
 0x4c3   : > { %7738 = vmatmul.bf16.vlgmr.msrb.gmra.mxu3 %v7662_v52 }
 0x4c4   : > { %v6420_v39 = vadd.f32 %v21336_v63, %v6155_v7  ;;  %v7527_v7 = vrot.slane %v7392_v53, 1  ;;  %v7650_v35 = vpack.c.b16 %v7646_v45, %v7646_v45 }
 0x4c5   : > { %v21389_v51 = vpop.f32.mrf.mxu2 }
 0x4c6   : > { %vm6436_vm0 = vcmp.ge.f32.partialorder %v6420_v39, 0.0  ;;  %v6452_v46 = vmul.f32 0.2, %v6420_v39  ;;  %v6740_v34 = vpop.f32.mrf.mxu3  ;;  %v7675_v53 = vshll.u32 %v7650_v35, 16 }
 0x4c7   : > { %v6391_v43 = vpop.f32.mrf.mxu1 }
 0x4c8   : > { %v6468_v28 = vsel %vm6436_vm0, %v6420_v39, %v6452_v46 }
 0x4c9   : > { %v18706_v26 = vpack.c.bf16 %v6468_v28, %v6467_v44  ;;  %v6119_v63 = vpop.f32.mrf.mxu0 }
 0x4ca   : > { %7593 = vmatmul.bf16.vlgmr.msrb.gmra.mxu2 %v7526_v16  ;;  %v6156_v30 = vadd.f32 %v6119_v63, %v21065_v25 }
 0x4cb   : > { %18707 = vst [vmem:[#allocation2] sm:$0xff] %v18706_v26   ;;  %v7677_v26 = vrot.slane %v7675_v53, 1 }
 0x4cc   : > { %7335 = vmatmul.bf16.gmra.mxu0 %v18137_v21  ;;  %v6421_v60 = vadd.f32 %v21358_v13, %v6156_v30  ;;  %v7528_v13 = vsel %vm1681_vm13, %v7525_v22, %v7527_v7  ;;  %v7673_v21 = vor.u32 %v7671_v3, %v7669_v33  ;;  %v19000_v22 = vld [vmem:[#allocation4 + $0x50] sm:$0xe] }
 0x4cd   : > { %v6665_v15 = vpop.f32.mrf.mxu2 }
 0x4ce   : > { %v21396_v18 = vadd.f32 %v6740_v34, %v6665_v15  ;;  %v21398_v36 = vpop.f32.mrf.mxu3  ;;  %v6453_v25 = vmul.f32 0.2, %v6421_v60  ;;  %vm6437_vm1 = vcmp.ge.f32.partialorder %v6421_v60, 0.0  ;;  %v18138_v34 = vld [vmem:[#allocation4 + $0x60] sm:$0xff]  ;;  %v7678_v59 = vsel %vm1381_vm12, %v7673_v21, %v7677_v26 }
 0x4cf   : > { %v6394_v29 = vpop.f32.mrf.mxu1  ;;  %v19001_v15 = vor.u32 %v19000_v22, %v18999_v55 }
 0x4d0   : > { %v6469_v17 = vsel %vm6437_vm1, %v6421_v60, %v6453_v25 }
 0x4d1   : > { %v6121_v57 = vpop.f32.mrf.mxu0  ;;  %v7522_v60 = vrot.slane %v19001_v15, 1 }
 0x4d2   : > { %v6157_v20 = vadd.f32 %v6121_v57, %v21082_v10 }
 0x4d3   : > { %7743 = vmatmul.bf16.gmra.mxu3 %v7670_v47 }
 0x4d4   : > { %v6422_v52 = vadd.f32 %v21372_v58, %v6157_v20 }
 0x4d5   : > { %v21404_v38 = vpop.f32.mrf.mxu2 }
 0x4d6   : > { %vm6438_vm3 = vcmp.ge.f32.partialorder %v6422_v52, 0.0  ;;  %v6454_v39 = vmul.f32 0.2, %v6422_v52  ;;  %v6745_v37 = vpop.f32.mrf.mxu3 }
 0x4d7   : > { %v6396_v44 = vpop.f32.mrf.mxu1 }
 0x4d8   : > { %v6470_v46 = vsel %vm6438_vm3, %v6422_v52, %v6454_v39  ;;  %v7524_v52 = vsel %vm1681_vm13, %v7522_v60, %v7523_v27 }
 0x4d9   : > { %v18711_v16 = vpack.c.bf16 %v6470_v46, %v6469_v17  ;;  %v6124_v10 = vpop.f32.mrf.mxu0 }
 0x4da   : > { %7598 = vmatmul.bf16.gmra.mxu2 %v7528_v13  ;;  %v6158_v58 = vadd.f32 %v6124_v10, %v21102_v23 }
 0x4db   : > { %18983 = vst [vmem:[#allocation2 + $0x8] sm:$0xff] %v18711_v16   ;;  %v15719_v16 = vld [vmem:[#allocation2 + $0x4] sm:$0x8] }
 0x4dc   : > { %7340 = vmatmul.bf16.gmra.mxu0 %v18138_v34  ;;  %v6423_v14 = vadd.f32 %v21381_v32, %v6158_v58 }
 0x4dd   : > { %v6670_v28 = vpop.f32.mrf.mxu2 }
 0x4de   : > { %v21408_v63 = vadd.f32 %v6745_v37, %v6670_v28  ;;  %v21410_v56 = vpop.f32.mrf.mxu3  ;;  %v6455_v23 = vmul.f32 0.2, %v6423_v14  ;;  %vm6439_vm4 = vcmp.ge.f32.partialorder %v6423_v14, 0.0 }
 0x4df   : > { %v6399_v47 = vpop.f32.mrf.mxu1 }
 0x4e0   : > { %v6471_v20 = vsel %vm6439_vm4, %v6423_v14, %v6455_v23 }
 0x4e1   : > { %v6126_v30 = vpop.f32.mrf.mxu0 }
 0x4e2   : > { %v6159_v31 = vadd.f32 %v6126_v30, %v21127_v12  ;;  %v18176_v37 = vld [vmem:[#allocation2 + $0x4] sm:$0xf0] }
 0x4e3   : > { %7748 = vmatmul.bf16.gmra.mxu3 %v7678_v59  ;;  %v15720_v3 = vor.u32 %v18176_v37, %v15719_v16 }
 0x4e4   : > { %v6424_v41 = vadd.f32 %v6391_v43, %v6159_v31 }
 0x4e5   : > { %v21415_v33 = vpop.f32.mrf.mxu2  ;;  %v7814_v55 = vshrl.u32 %v15720_v3, 16  ;;  %v7817_v22 = vshll.u32 %v15720_v3, 16 }
 0x4e6   : > { %vm6440_vm5 = vcmp.ge.f32.partialorder %v6424_v41, 0.0  ;;  %v6456_v57 = vmul.f32 0.2, %v6424_v41  ;;  %v6955_v45 = vpop.f32.mrf.mxu3  ;;  %v6748_v4 = vadd.f32 %v21410_v56, %v21415_v33 }
 0x4e7   : > { %v6401_v46 = vpop.f32.mrf.mxu1 }
 0x4e8   : > { %v6472_v7 = vsel %vm6440_vm5, %v6424_v41, %v6456_v57 }
 0x4e9   : > { %v18716_v32 = vpack.c.bf16 %v6472_v7, %v6471_v20  ;;  %v6129_v25 = vpop.f32.mrf.mxu0 }
 0x4ea   : > { %v6160_v12 = vadd.f32 %v6129_v25, %v21149_v50  ;;  %v7819_v25 = vrot.slane %v7817_v22, 4 }
 0x4eb   : > { %18984 = vst [vmem:[#allocation2 + $0x10] sm:$0xff] %v18716_v32   ;;  %v7816_v32 = vrot.slane %v7814_v55, 3 }
 0x4ec   : > { %7588 = vmatmul.bf16.vlgmr.msrb.gmra.mxu0 %v7524_v52  ;;  %v6425_v13 = vadd.f32 %v6394_v29, %v6160_v12 }
 0x4ed   : > { %v6837_v43 = vpop.f32.mrf.mxu2 }
 0x4ee   : > { %v6852_v35 = vadd.f32 %v6837_v43, %v21376_v11  ;;  %v21422_v39 = vpop.f32.mrf.mxu3  ;;  %v6457_v50 = vmul.f32 0.2, %v6425_v13  ;;  %vm6441_vm6 = vcmp.ge.f32.partialorder %v6425_v13, 0.0 }
 0x4f0   : > { %v21424_v17 = vadd.f32 %v6955_v45, %v6852_v35  ;;  %v6473_v31 = vsel %vm6441_vm6, %v6425_v13, %v6457_v50  ;;  %v6404_v45 = vpop.f32.mrf.mxu1  ;;  %v7820_v13 = vor.u32 %v7819_v25, %v7816_v32 }
 0x4f1   : > { %v6131_v34 = vpop.f32.mrf.mxu0 }
 0x4f2   : > { %v6161_v5 = vadd.f32 %v6131_v34, %v21171_v0  ;;  %v18177_v10 = vld [vmem:[#allocation2 + $0xc] sm:$0xff]  ;;  %v7798_v27 = vld [vmem:[#allocation2 + $0x14] sm:$0xf] }
 0x4f3   : > { %v7808_v53 = vunpack.c.l.b16 %v7798_v27  ;;  %v7822_v28 = vshrl.u32 %v18177_v10, 16  ;;  %v7825_v21 = vshll.u32 %v18177_v10, 16 }
 0x4f4   : > { %v6426_v58 = vadd.f32 %v6396_v44, %v6161_v5 }
 0x4f5   : > { %v21427_v11 = vpop.f32.mrf.mxu2  ;;  %v7811_v26 = vpack.c.b16 %v7808_v53, %v7808_v53  ;;  %v7824_v30 = vrot.slane %v7822_v28, 3  ;;  %v7827_v59 = vrot.slane %v7825_v21, 4 }
 0x4f6   : > { %vm6442_vm7 = vcmp.ge.f32.partialorder %v6426_v58, 0.0  ;;  %v6458_v29 = vmul.f32 0.2, %v6426_v58  ;;  %v6960_v14 = vpop.f32.mrf.mxu3 }
 0x4f7   : > { %v7831_v0 = vshrl.u32 %v7811_v26, 16  ;;  %v7834_v15 = vshll.u32 %v7811_v26, 16  ;;  %v7828_v20 = vor.u32 %v7827_v59, %v7824_v30 }
 0x4f8   : > { %v6474_v23 = vsel %vm6442_vm7, %v6426_v58, %v6458_v29  ;;  %v6406_v53 = vpop.f32.mrf.mxu1  ;;  %vm7790_vm7 = vcmp.lt.s32.totalorder %v19303_v48, 4 }
 0x4f9   : > { %v18721_v41 = vpack.c.bf16 %v6474_v23, %v6473_v31  ;;  %v6134_v60 = vpop.f32.mrf.mxu0  ;;  %v7833_v44 = vrot.slane %v7831_v0, 3  ;;  %v7836_v57 = vrot.slane %v7834_v15, 4  ;;  %v7829_v10 = vsel %vm7812_vm9, %v7820_v13, %v7828_v20  ;;  %v15728_v15 = vld [vmem:[#allocation2 + $0x14] sm:$0x8] }
 0x4fa   : > { %v6162_v52 = vadd.f32 %v6134_v60, %v21184_v19 }
 0x4fb   : > { %18985 = vst [vmem:[#allocation2 + $0x18] sm:$0xff] %v18721_v41   ;;  %v7837_v7 = vor.u32 %v7836_v57, %v7833_v44 }
 0x4fc   : > { %v6427_v34 = vadd.f32 %v6399_v47, %v6162_v52 }
 0x4fd   : > { %v6842_v12 = vpop.f32.mrf.mxu2  ;;  %v7838_v43 = vsel %vm7812_vm9, %v7828_v20, %v7837_v7 }
 0x4fe   : > { %v6854_v35 = vadd.f32 %v6842_v12, %v21396_v18  ;;  %7850 = vmatpush.bf16.msra.mxu0 %v7838_v43  ;;  %v21432_v37 = vpop.f32.mrf.mxu3  ;;  %v6459_v19 = vmul.f32 0.2, %v6427_v34  ;;  %vm6443_vm11 = vcmp.ge.f32.partialorder %v6427_v34, 0.0 }
 0x500   : > { %v21434_v16 = vadd.f32 %v6960_v14, %v6854_v35  ;;  %v6475_v28 = vsel %vm6443_vm11, %v6427_v34, %v6459_v19  ;;  %v6409_v22 = vpop.f32.mrf.mxu1  ;;  %vm7791_vm11 = vmand %vm19318_vm14, %vm7790_vm7 }
 0x501   : > { %v6136_v5 = vpop.f32.mrf.mxu0 }
 0x502   : > { %v6163_v27 = vadd.f32 %v6136_v5, %v21205_v61  ;;  %7851 = vmatpush.bf16.msra.mxu0 %v7829_v10 }
 0x504   : > { %v6428_v3 = vadd.f32 %v6401_v46, %v6163_v27  ;;  %v18178_v46 = vld [vmem:[#allocation2 + $0x14] sm:$0xf0] }
 0x505   : > { %v21438_v50 = vpop.f32.mrf.mxu2  ;;  %v15729_v60 = vor.u32 %v18178_v46, %v15728_v15 }
 0x506   : > { %vm6444_vm15 = vcmp.ge.f32.partialorder %v6428_v3, 0.0  ;;  %v6460_v18 = vmul.f32 0.2, %v6428_v3  ;;  %v6965_v58 = vpop.f32.mrf.mxu3 }
 0x507   : > { %v7878_v25 = vshrl.u32 %v15729_v60, 16  ;;  %v7881_v52 = vshll.u32 %v15729_v60, 16 }
 0x508   : > { %v6476_v21 = vsel %vm6444_vm15, %v6428_v3, %v6460_v18  ;;  %v6411_v10 = vpop.f32.mrf.mxu1 }
 0x509   : > { %v18726_v47 = vpack.c.bf16 %v6476_v21, %v6475_v28  ;;  %v6139_v26 = vpop.f32.mrf.mxu0  ;;  %v7880_v28 = vrot.slane %v7878_v25, 3  ;;  %v7883_v21 = vrot.slane %v7881_v52, 4 }
 0x50a   : > { %v6164_v29 = vadd.f32 %v6139_v26, %v21242_v6 }
 0x50b   : > { %18986 = vst [vmem:[#allocation2 + $0x20] sm:$0xff] %v18726_v47   ;;  %v7884_v46 = vor.u32 %v7883_v21, %v7880_v28 }
 0x50c   : > { %v6429_v30 = vadd.f32 %v6404_v45, %v6164_v29 }
 0x50d   : > { %v6847_v55 = vpop.f32.mrf.mxu2 }
 0x50e   : > { %v6856_v61 = vadd.f32 %v6847_v55, %v21408_v63  ;;  %v21442_v14 = vpop.f32.mrf.mxu3  ;;  %v6461_v57 = vmul.f32 0.2, %v6429_v30  ;;  %vm6445_vm0 = vcmp.ge.f32.partialorder %v6429_v30, 0.0 }
 0x510   : > { %v21444_v59 = vadd.f32 %v6965_v58, %v6856_v61  ;;  %v6477_v34 = vsel %vm6445_vm0, %v6429_v30, %v6461_v57 }
 0x511   : > { %v6141_v0 = vpop.f32.mrf.mxu0 }
 0x512   : > { %v6165_v31 = vadd.f32 %v6141_v0, %v21281_v24  ;;  %v18179_v23 = vld [vmem:[#allocation2 + $0x1c] sm:$0xff]  ;;  %v7863_v41 = vld [vmem:[#allocation2 + $0x24] sm:$0xf] }
 0x513   : > { %v7873_v44 = vunpack.c.l.b16 %v7863_v41  ;;  %v7886_v20 = vshrl.u32 %v18179_v23, 16  ;;  %v7889_v7 = vshll.u32 %v18179_v23, 16  ;;  %v6414_v41 = vpop.f32.mrf.mxu1 }
 0x514   : > { %v6430_v6 = vadd.f32 %v6406_v53, %v6165_v31 }
 0x515   : > { %v21447_v63 = vpop.f32.mrf.mxu2  ;;  %v7876_v32 = vpack.c.b16 %v7873_v44, %v7873_v44  ;;  %v7888_v43 = vrot.slane %v7886_v20, 3  ;;  %v7891_v35 = vrot.slane %v7889_v7, 4 }
 0x516   : > { %vm6446_vm1 = vcmp.ge.f32.partialorder %v6430_v6, 0.0  ;;  %v6462_v45 = vmul.f32 0.2, %v6430_v6  ;;  %v7213_v12 = vpop.f32.mrf.mxu3 }
 0x517   : > { %v7895_v24 = vshrl.u32 %v7876_v32, 16  ;;  %v7898_v13 = vshll.u32 %v7876_v32, 16  ;;  %v7892_v18 = vor.u32 %v7891_v35, %v7888_v43  ;;  %v15737_v35 = vld [vmem:[#allocation2 + $0x24] sm:$0x8] }
 0x518   : > { %v6478_v5 = vsel %vm6446_vm1, %v6430_v6, %v6462_v45 }
 0x519   : > { %v18731_v27 = vpack.c.bf16 %v6478_v5, %v6477_v34  ;;  %v6144_v19 = vpop.f32.mrf.mxu0  ;;  %v7897_v3 = vrot.slane %v7895_v24, 3  ;;  %v7900_v53 = vrot.slane %v7898_v13, 4  ;;  %v7893_v31 = vsel %vm7812_vm9, %v7884_v46, %v7892_v18 }
 0x51a   : > { %v6166_v47 = vadd.f32 %v6144_v19, %v21304_v62 }
 0x51b   : > { %18987 = vst [vmem:[#allocation2 + $0x28] sm:$0xff] %v18731_v27   ;;  %v7901_v58 = vor.u32 %v7900_v53, %v7897_v3  ;;  %v6416_v45 = vpop.f32.mrf.mxu1 }
 0x51c   : > { %v6431_v30 = vadd.f32 %v6409_v22, %v6166_v47 }
 0x51d   : > { %v7105_v26 = vpop.f32.mrf.mxu2  ;;  %v7902_v29 = vsel %vm7812_vm9, %v7892_v18, %v7901_v58 }
 0x51e   : > { %v7120_v55 = vadd.f32 %v7105_v26, %v21424_v17  ;;  %7911 = vmatpush.bf16.msrb.mxu1 %v7902_v29  ;;  %v21452_v61 = vpop.f32.mrf.mxu3  ;;  %v6463_v62 = vmul.f32 0.2, %v6431_v30  ;;  %vm6447_vm3 = vcmp.ge.f32.partialorder %v6431_v30, 0.0 }
 0x520   : > { %v21454_v0 = vadd.f32 %v7213_v12, %v7120_v55  ;;  %v6479_v6 = vsel %vm6447_vm3, %v6431_v30, %v6463_v62 }
 0x521   : > { %v6146_v15 = vpop.f32.mrf.mxu0 }
 0x522   : > { %v6167_v23 = vadd.f32 %v6146_v15, %v21334_v9  ;;  %7912 = vmatpush.bf16.msrb.mxu1 %v7893_v31  ;;  %v18180_v52 = vld [vmem:[#allocation2 + $0x24] sm:$0xf0] }
 0x523   : > { %v15738_v5 = vor.u32 %v18180_v52, %v15737_v35  ;;  %v21466_v18 = vpop.f32.mrf.mxu1 }
 0x524   : > { %v6432_v60 = vadd.f32 %v6411_v10, %v6167_v23 }
 0x525   : > { %v21458_v44 = vpop.f32.mrf.mxu2  ;;  %v7939_v21 = vshrl.u32 %v15738_v5, 16  ;;  %v7942_v47 = vshll.u32 %v15738_v5, 16 }
 0x526   : > { %vm6448_vm4 = vcmp.ge.f32.partialorder %v6432_v60, 0.0  ;;  %v6464_v17 = vmul.f32 0.2, %v6432_v60  ;;  %v21460_v57 = vpop.f32.mrf.mxu3 }
 0x528   : > { %v6480_v22 = vsel %vm6448_vm4, %v6432_v60, %v6464_v17 }
 0x529   : > { %v18736_v20 = vpack.c.bf16 %v6480_v22, %v6479_v6  ;;  %v6149_v7 = vpop.f32.mrf.mxu0  ;;  %v7941_v6 = vrot.slane %v7939_v21, 3  ;;  %v7944_v22 = vrot.slane %v7942_v47, 4 }
 0x52a   : > { %v6168_v32 = vadd.f32 %v6149_v7, %v21356_v40 }
 0x52b   : > { %18988 = vst [vmem:[#allocation2 + $0x30] sm:$0xff] %v18736_v20   ;;  %v21473_v52 = vpop.f32.mrf.mxu1 }
 0x52c   : > { %v6433_v12 = vadd.f32 %v6414_v41, %v6168_v32 }
 0x52d   : > { %v7110_v9 = vpop.f32.mrf.mxu2 }
 0x52e   : > { %v21463_v25 = vpop.f32.mrf.mxu3  ;;  %v6465_v27 = vmul.f32 0.2, %v6433_v12  ;;  %vm6449_vm5 = vcmp.ge.f32.partialorder %v6433_v12, 0.0 }
 0x530   : > { %v6481_v30 = vsel %vm6449_vm5, %v6433_v12, %v6465_v27  ;;  %v7122_v27 = vadd.f32 %v7110_v9, %v21434_v16 }
 0x531   : > { %v6151_v43 = vpop.f32.mrf.mxu0 }
 0x532   : > { %v6169_v24 = vadd.f32 %v6151_v43, %v21370_v2  ;;  %v18181_v13 = vld [vmem:[#allocation2 + $0x2c] sm:$0xff]  ;;  %v7924_v34 = vld [vmem:[#allocation2 + $0x34] sm:$0xf] }
 0x533   : > { %v7934_v10 = vunpack.c.l.b16 %v7924_v34  ;;  %v7947_v3 = vshrl.u32 %v18181_v13, 16  ;;  %v7950_v53 = vshll.u32 %v18181_v13, 16  ;;  %v6743_v13 = vadd.f32 %v21398_v36, %v21404_v38  ;;  %v7486_v5 = vpop.f32.mrf.mxu1 }
 0x534   : > { %v6434_v19 = vadd.f32 %v6416_v45, %v6169_v24  ;;  %v7945_v45 = vor.u32 %v7944_v22, %v7941_v6  ;;  %v7792_v38 = vsel %vm7791_vm11, 0.25, %v19156_v8 }
 0x535   : > { %v7112_v40 = vpop.f32.mrf.mxu2  ;;  %v7937_v58 = vpack.c.b16 %v7934_v10, %v7934_v10  ;;  %v7949_v2 = vrot.slane %v7947_v3, 3  ;;  %v7952_v29 = vrot.slane %v7950_v53, 4  ;;  %v6855_v10 = vadd.f32 %v21438_v50, %v6743_v13 }
 0x536   : > { %vm6450_vm6 = vcmp.ge.f32.partialorder %v6434_v19, 0.0  ;;  %v6466_v28 = vmul.f32 0.2, %v6434_v19  ;;  %v21468_v26 = vpop.f32.mrf.mxu3  ;;  %v21492_v47 = vpack.c.bf16 %v7792_v38, %v7792_v38 }
 0x537   : > { %v7956_v55 = vshrl.u32 %v7937_v58, 16  ;;  %v7959_v46 = vshll.u32 %v7937_v58, 16  ;;  %v7953_v60 = vor.u32 %v7952_v29, %v7949_v2  ;;  %v6973_v3 = vadd.f32 %v21432_v37, %v6855_v10 }
 0x538   : > { %v6482_v15 = vsel %vm6450_vm6, %v6434_v19, %v6466_v28  ;;  %v7230_v28 = vadd.f32 %v21460_v57, %v7122_v27  ;;  %15725 = vmatmul.msk.bf16.vlgmr.msra.gmra.mxu0 %vm1052_vm2, %v21492_v47  ;;  %15734 = vmatmul.msk.bf16.vlgmr.msrb.gmra.mxu1 %vm1052_vm2, %v21492_v47  ;;  %v6857_v29 = vadd.f32 %v21447_v63, %v6748_v4 }
 0x539   : > { %v18741_v31 = vpack.c.bf16 %v6482_v15, %v6481_v30  ;;  %v21470_v23 = vpop.f32.mrf.mxu0  ;;  %v7958_v41 = vrot.slane %v7956_v55, 3  ;;  %v7961_v62 = vrot.slane %v7959_v46, 4  ;;  %v7954_v43 = vsel %vm7812_vm9, %v7945_v45, %v7953_v60 }
 0x53a   : > { %v7123_v58 = vadd.f32 %v7112_v40, %v6973_v3  ;;  %v6738_v15 = vadd.f32 %v21378_v42, %v21389_v51 }
 0x53b   : > { %18989 = vst [vmem:[#allocation2 + $0x38] sm:$0xff] %v18741_v31   ;;  %v7962_v17 = vor.u32 %v7961_v62, %v7958_v41  ;;  %v7488_v50 = vpop.f32.mrf.mxu1  ;;  %v6975_v41 = vadd.f32 %v21442_v14, %v6857_v29 }
 0x53c   : > { %v7231_v16 = vadd.f32 %v21463_v25, %v7123_v58 }
 0x53d   : > { %v7115_v20 = vpop.f32.mrf.mxu2  ;;  %v7963_v7 = vsel %vm7812_vm9, %v7953_v60, %v7962_v17  ;;  %v6853_v60 = vadd.f32 %v21427_v11, %v6738_v15  ;;  %v18188_v15 = vld [vmem:[%s23052_s5 + $0x20] sm:$0xff] }
 0x53e   : > { %7972 = vmatpush.bf16.msrb.mxu0 %v7963_v7  ;;  %v7225_v32 = vpop.f32.mrf.mxu3  ;;  %v7124_v25 = vadd.f32 %v7115_v20, %v21444_v59 }
 0x53f   : > { %v6971_v42 = vadd.f32 %v21422_v39, %v6853_v60 }
 0x540   : > { %v7232_v33 = vadd.f32 %v21468_v26, %v7124_v25  ;;  %v7346_v26 = vadd.f32 %v21470_v23, %v21454_v0  ;;  %v18198_v25 = vld [vmem:[%s23052_s5 + $0x70] sm:$0xff] }
 0x541   : > { %v21475_v12 = vpop.f32.mrf.mxu0  ;;  %v7121_v11 = vadd.f32 %v21458_v44, %v6971_v42 }
 0x542   : > { %7973 = vmatpush.bf16.msrb.mxu0 %v7954_v43  ;;  %v7496_v39 = vadd.f32 %v21466_v18, %v7346_v26 }
 0x543   : > { %v7491_v31 = vpop.f32.mrf.mxu1  ;;  %v7229_v27 = vadd.f32 %v21452_v61, %v7121_v11 }
 0x545   : > { %v7117_v35 = vpop.f32.mrf.mxu2  ;;  %v7347_v58 = vadd.f32 %v21475_v12, %v7229_v27  ;;  %v18213_v27 = vld [vmem:[%s23052_s5 + $0xe8] sm:$0xff] }
 0x546   : > { %v21478_v24 = vpop.f32.mrf.mxu3  ;;  %v7125_v6 = vadd.f32 %v7117_v35, %v6975_v41 }
 0x547   : > { %v7497_v0 = vadd.f32 %v21473_v52, %v7347_v58  ;;  %v18191_v52 = vld [vmem:[%s23052_s5 + $0x38] sm:$0xff]  ;;  %v18186_v58 = vld [vmem:[%s23052_s5 + $0x10] sm:$0xff] }
 0x548   : > { %v7233_v14 = vadd.f32 %v7225_v32, %v7125_v6  ;;  %15743 = vmatmul.msk.bf16.vlgmr.msrb.gmra.mxu0 %vm1052_vm2, %v21492_v47  ;;  %8267 = vmatpush.bf16.msra.mxu3 %v18191_v52  ;;  %v18187_v6 = vld [vmem:[%s23052_s5 + $0x18] sm:$0xff]  ;;  %v18201_v52 = vld [vmem:[%s23052_s5 + $0x88] sm:$0xff] }
 0x549   : > { %v7336_v34 = vpop.f32.mrf.mxu0 }
 0x54a   : > { %v7348_v36 = vadd.f32 %v7336_v34, %v7230_v28 }
 0x54b   : > { %v7493_v34 = vpop.f32.mrf.mxu1 }
 0x54c   : > { %v7498_v37 = vadd.f32 %v7486_v5, %v7348_v36 }
 0x54d   : > { %v7594_v19 = vpop.f32.mrf.mxu2 }
 0x54e   : > { %v21485_v53 = vpop.f32.mrf.mxu3  ;;  %v7606_v55 = vadd.f32 %v7594_v19, %v7498_v37 }
 0x551   : > { %v7338_v21 = vpop.f32.mrf.mxu0 }
 0x552   : > { %v7349_v57 = vadd.f32 %v7338_v21, %v7231_v16 }
 0x554   : > { %v7499_v46 = vadd.f32 %v7488_v50, %v7349_v57 }
 0x555   : > { %v7596_v9 = vpop.f32.mrf.mxu2 }
 0x556   : > { %v7744_v40 = vpop.f32.mrf.mxu3  ;;  %v7607_v62 = vadd.f32 %v7596_v9, %v7499_v46  ;;  %v18189_v46 = vld [vmem:[%s23052_s5 + $0x28] sm:$0xff] }
 0x557   : > { %v7756_v30 = vadd.f32 %v7744_v40, %v7606_v55 }
 0x559   : > { %v7341_v2 = vpop.f32.mrf.mxu0  ;;  %v7768_v56 = vmul.f32 0.2, %v7756_v30  ;;  %vm7762_vm14 = vcmp.ge.f32.partialorder %v7756_v30, 0.0 }
 0x55a   : > { %v7350_v59 = vadd.f32 %v7341_v2, %v7232_v33  ;;  %v18199_v2 = vld [vmem:[%s23052_s5 + $0x78] sm:$0xff] }
 0x55b   : > { %v7774_v51 = vsel %vm7762_vm14, %v7756_v30, %v7768_v56  ;;  %8186 = vmatpush.bf16.msra.mxu2 %v18199_v2  ;;  %v18182_v30 = vld [vmem:[#allocation2 + $0x34] sm:$0xf0] }
 0x55c   : > { %v7500_v35 = vadd.f32 %v7491_v31, %v7350_v59  ;;  %v15746_v31 = vld [vmem:[#allocation2 + $0x34] sm:$0x8] }
 0x55d   : > { %v7599_v22 = vpop.f32.mrf.mxu2  ;;  %v15747_v60 = vor.u32 %v18182_v30, %v15746_v31 }
 0x55e   : > { %v7746_v17 = vpop.f32.mrf.mxu3  ;;  %v7608_v32 = vadd.f32 %v7599_v22, %v7500_v35 }
 0x55f   : > { %v7757_v63 = vadd.f32 %v7746_v17, %v7607_v62  ;;  %8187 = vmatpush.bf16.msra.mxu2 %v18198_v25  ;;  %v8000_v22 = vshrl.u32 %v15747_v60, 16 }
 0x561   : > { %v7343_v7 = vpop.f32.mrf.mxu0  ;;  %vm7763_vm15 = vcmp.ge.f32.partialorder %v7757_v63, 0.0  ;;  %v7769_v20 = vmul.f32 0.2, %v7757_v63  ;;  %v8002_v26 = vrot.slane %v8000_v22, 3 }
 0x562   : > { %v7351_v13 = vadd.f32 %v7343_v7, %v7233_v14  ;;  %v8003_v7 = vshll.u32 %v15747_v60, 16 }
 0x563   : > { %v7775_v45 = vsel %vm7763_vm15, %v7757_v63, %v7769_v20 }
 0x564   : > { %v18763_v43 = vpack.c.bf16 %v7775_v45, %v7774_v51  ;;  %v7501_v19 = vadd.f32 %v7493_v34, %v7351_v13  ;;  %v8005_v35 = vrot.slane %v8003_v7, 4 }
 0x565   : > { %v7601_v3 = vpop.f32.mrf.mxu2 }
 0x566   : > { %19003 = vst [vmem:[#allocation2 + $0x48] sm:$0xff] %v18763_v43   ;;  %v7749_v5 = vpop.f32.mrf.mxu3  ;;  %v7609_v21 = vadd.f32 %v7601_v3, %v7501_v19  ;;  %v8006_v34 = vor.u32 %v8005_v35, %v8002_v26  ;;  %v18197_v19 = vld [vmem:[%s23052_s5 + $0x68] sm:$0xff]  ;;  %v18207_v3 = vld [vmem:[%s23052_s5 + $0xb8] sm:$0xff]  ;;  %v18230_v26 = vld [vmem:[%s23052_s5 + $0x170] sm:$0xff] }
 0x567   : > { %v7758_v28 = vadd.f32 %v7749_v5, %v7608_v32  ;;  %v18215_v5 = vld [vmem:[%s23052_s5 + $0xf8] sm:$0xff]  ;;  %v18212_v32 = vld [vmem:[%s23052_s5 + $0xe0] sm:$0xff]  ;;  %8188 = vmatpush.bf16.msra.mxu2 %v18197_v19  ;;  %8375 = vmatpush.bf16.msra.mxu0 %v18207_v3  ;;  %v18226_v3 = vld [vmem:[%s23052_s5 + $0x150] sm:$0xff] }
 0x568   : > { %v18250_v35 = vld [vmem:[%s23052_s5 + $0x1f8] sm:$0xff] }
 0x569   : > { %v7589_v10 = vpop.f32.mrf.mxu0  ;;  %v7770_v23 = vmul.f32 0.2, %v7758_v28  ;;  %vm7764_vm0 = vcmp.ge.f32.partialorder %v7758_v28, 0.0 }
 0x56a   : > { %v7604_v44 = vadd.f32 %v7589_v10, %v7496_v39  ;;  %v18214_v39 = vld [vmem:[%s23052_s5 + $0xf0] sm:$0xff] }
 0x56b   : > { %v7776_v37 = vsel %vm7764_vm0, %v7758_v28, %v7770_v23  ;;  %v18196_v28 = vld [vmem:[%s23052_s5 + $0x60] sm:$0xff]  ;;  %v18205_v23 = vld [vmem:[%s23052_s5 + $0xa8] sm:$0xff] }
 0x56c   : > { %v7754_v38 = vadd.f32 %v21478_v24, %v7604_v44  ;;  %v18190_v24 = vld [vmem:[%s23052_s5 + $0x30] sm:$0xff]  ;;  %8189 = vmatpush.bf16.msra.mxu2 %v18196_v28 }
 0x56d   : > { %8268 = vmatpush.bf16.msra.mxu3 %v18190_v24  ;;  %v18206_v44 = vld [vmem:[%s23052_s5 + $0xb0] sm:$0xff]  ;;  %v8295_v24 = vld [vmem:[#allocation5] sm:$0xe] }
 0x56e   : > { %v7751_v36 = vpop.f32.mrf.mxu3  ;;  %v7766_v57 = vmul.f32 0.2, %v7754_v38  ;;  %vm7760_vm3 = vcmp.ge.f32.partialorder %v7754_v38, 0.0  ;;  %8376 = vmatpush.bf16.msra.mxu0 %v18206_v44  ;;  %v18238_v44 = vld [vmem:[%s23052_s5 + $0x1b0] sm:$0xff] }
 0x56f   : > { %v7759_v50 = vadd.f32 %v7751_v36, %v7609_v21  ;;  %v18210_v21 = vld [vmem:[%s23052_s5 + $0xd0] sm:$0xff]  ;;  %v18185_v36 = vld [vmem:[%s23052_s5 + $0x8] sm:$0xff] }
 0x570   : > { %v7772_v29 = vsel %vm7760_vm3, %v7754_v38, %v7766_v57  ;;  %v18209_v38 = vld [vmem:[%s23052_s5 + $0xc8] sm:$0xff] }
 0x571   : > { %v7591_v16 = vpop.f32.mrf.mxu0  ;;  %vm7765_vm1 = vcmp.ge.f32.partialorder %v7759_v50, 0.0  ;;  %v7771_v18 = vmul.f32 0.2, %v7759_v50  ;;  %8269 = vmatpush.bf16.msra.mxu3 %v18189_v46  ;;  %v18193_v57 = vld [vmem:[%s23052_s5 + $0x48] sm:$0xff]  ;;  %v8314_v46 = vunpack.c.l.b16 %v8295_v24  ;;  %v18236_v24 = vld [vmem:[%s23052_s5 + $0x1a0] sm:$0xff] }
 0x572   : > { %v7605_v61 = vadd.f32 %v7591_v16, %v7497_v0  ;;  %v18195_v0 = vld [vmem:[%s23052_s5 + $0x58] sm:$0xff]  ;;  %8377 = vmatpush.bf16.msra.mxu0 %v18205_v23  ;;  %v18194_v16 = vld [vmem:[%s23052_s5 + $0x50] sm:$0xff]  ;;  %v18237_v23 = vld [vmem:[%s23052_s5 + $0x1a8] sm:$0xff] }
 0x573   : > { %v7777_v9 = vsel %vm7765_vm1, %v7759_v50, %v7771_v18  ;;  %v18184_v50 = vld [vmem:[%s23052_s5] sm:$0xff]  ;;  %8190 = vmatpush.bf16.msra.mxu2 %v18195_v0  ;;  %v18222_v0 = vld [vmem:[%s23052_s5 + $0x130] sm:$0xff] }
 0x574   : > { %v7755_v12 = vadd.f32 %v21485_v53, %v7605_v61  ;;  %v18768_v40 = vpack.c.bf16 %v7777_v9, %v7776_v37  ;;  %v18204_v18 = vld [vmem:[%s23052_s5 + $0xa0] sm:$0xff]  ;;  %v18771_v37 = vld [vmem:[#allocation5] sm:$0xff]  }
 0x575   : > { %8270 = vmatpush.bf16.msra.mxu3 %v18188_v15  ;;  %v18208_v61 = vld [vmem:[%s23052_s5 + $0xc0] sm:$0xff]  ;;  %v18203_v9 = vld [vmem:[%s23052_s5 + $0x98] sm:$0xff]  ;;  %v18773_v25 = vunpack.c.h.b16 %v18771_v37  ;;  %v8106_v30 = vshll.u32 %v18771_v37, 16 }
 0x576   : > { %vm7761_vm4 = vcmp.ge.f32.partialorder %v7755_v12, 0.0  ;;  %v7767_v4 = vmul.f32 0.2, %v7755_v12  ;;  %19004 = vst [vmem:[#allocation2 + $0x50] sm:$0xff] %v18768_v40   ;;  %8378 = vmatpush.bf16.msra.mxu0 %v18204_v18  ;;  %v18202_v40 = vld [vmem:[%s23052_s5 + $0x90] sm:$0xff] }
 0x577   : > { %8191 = vmatpush.bf16.msra.mxu2 %v18194_v16  ;;  %v8315_v15 = vpack.c.b16 %v18773_v25, %v8314_v46  ;;  %v18221_v16 = vld [vmem:[%s23052_s5 + $0x128] sm:$0xff] }
 0x578   : > { %v7773_v53 = vsel %vm7761_vm4, %v7755_v12, %v7767_v4  ;;  %v18192_v12 = vld [vmem:[%s23052_s5 + $0x40] sm:$0xff] }
 0x579   : > { %v18758_v55 = vpack.c.bf16 %v7773_v53, %v7772_v29  ;;  %8271 = vmatpush.bf16.msra.mxu3 %v18187_v6  ;;  %v18200_v4 = vld [vmem:[%s23052_s5 + $0x80] sm:$0xff] }
 0x57a   : > { %8379 = vmatpush.bf16.msra.mxu0 %v18203_v9  ;;  %v21702_v9 = vld [vmem:[#allocation5 + $0x18] sm:$0xff] }
 0x57b   : > { %19002 = vst [vmem:[#allocation2 + $0x40] sm:$0xff] %v18758_v55   ;;  %8192 = vmatpush.bf16.msra.mxu2 %v18193_v57 }
 0x57d   : > { %8272 = vmatpush.bf16.msra.mxu3 %v18186_v58  ;;  %v18223_v58 = vld [vmem:[%s23052_s5 + $0x138] sm:$0xff] }
 0x57e   : > { %8380 = vmatpush.bf16.msra.mxu0 %v18202_v40 }
 0x57f   : > { %8193 = vmatpush.bf16.msra.mxu2 %v18192_v12 }
 0x581   : > { %8273 = vmatpush.bf16.msra.mxu3 %v18185_v36  ;;  %v18245_v36 = vld [vmem:[%s23052_s5 + $0x1d0] sm:$0xff] }
 0x582   : > { %v18183_v41 = vld [vmem:[#allocation2 + $0x3c] sm:$0xff]  ;;  %v7985_v62 = vld [vmem:[#allocation2 + $0x44] sm:$0xf]  ;;  %8381 = vmatpush.bf16.msra.mxu0 %v18201_v52 }
 0x583   : > { %v7995_v17 = vunpack.c.l.b16 %v7985_v62  ;;  %v8008_v56 = vshrl.u32 %v18183_v41, 16  ;;  %v8011_v33 = vshll.u32 %v18183_v41, 16  ;;  %v8104_v41 = vshrl.u32 %v18771_v37, 16  ;;  %8649 = vmatpush.bf16.msrb.mxu2 %v18223_v58 }
 0x584   : > { %v8108_v62 = vrot.slane %v8106_v30, 1 }
 0x585   : > { %v7998_v63 = vpack.c.b16 %v7995_v17, %v7995_v17  ;;  %v8010_v59 = vrot.slane %v8008_v56, 3  ;;  %v8013_v20 = vrot.slane %v8011_v33, 4  ;;  %8274 = vmatpush.bf16.msra.mxu3 %v18184_v50  ;;  %v8316_v17 = vrot.slane %v8315_v15, 1  ;;  %v18244_v50 = vld [vmem:[%s23052_s5 + $0x1c8] sm:$0xff]  ;;  %v8065_v15 = vld [vmem:[#allocation5 + $0x1c] sm:$0x1] }
 0x586   : > { %8382 = vmatpush.bf16.msra.mxu0 %v18200_v4  ;;  %v8109_v33 = vor.u32 %v8108_v62, %v8104_v41  ;;  %v9097_v41 = vrot.slane %v21702_v9, 1 }
 0x587   : > { %v8017_v42 = vshrl.u32 %v7998_v63, 16  ;;  %v8020_v51 = vshll.u32 %v7998_v63, 16  ;;  %v8014_v43 = vor.u32 %v8013_v20, %v8010_v59  ;;  %8650 = vmatpush.bf16.msrb.mxu2 %v18222_v0 }
 0x588   : > { %8275 = vmatmul.bf16.vlgmr.msra.gmra.mxu3 %v18771_v37 }
 0x589   : > { %v8019_v45 = vrot.slane %v8017_v42, 3  ;;  %v8022_v14 = vrot.slane %v8020_v51, 4  ;;  %v8015_v10 = vsel %vm7812_vm9, %v8006_v34, %v8014_v43  ;;  %v18249_v34 = vld [vmem:[%s23052_s5 + $0x1f0] sm:$0xff] }
 0x58b   : > { %v8023_v11 = vor.u32 %v8022_v14, %v8019_v45  ;;  %8651 = vmatpush.bf16.msrb.mxu2 %v18221_v16 }
 0x58d   : > { %v8024_v13 = vsel %vm7812_vm9, %v8014_v43, %v8023_v11  ;;  %v18231_v11 = vld [vmem:[%s23052_s5 + $0x178] sm:$0xff] }
 0x58e   : > { %8033 = vmatpush.bf16.msra.mxu1 %v8024_v13  ;;  %8764 = vmatpush.bf16.msrb.mxu3 %v18231_v11  ;;  %v18229_v13 = vld [vmem:[%s23052_s5 + $0x168] sm:$0xff] }
 0x592   : > { %8034 = vmatpush.bf16.msra.mxu1 %v8015_v10  ;;  %8765 = vmatpush.bf16.msrb.mxu3 %v18230_v26  ;;  %v18248_v10 = vld [vmem:[%s23052_s5 + $0x1e8] sm:$0xff] }
 0x595   : > { %15752 = vmatmul.msk.bf16.vlgmr.msra.gmra.mxu1 %vm1052_vm2, %v21492_v47  ;;  %v18211_v47 = vld [vmem:[%s23052_s5 + $0xd8] sm:$0xff] }
 0x596   : > { %8486 = vmatpush.bf16.msrb.mxu1 %v18215_v5  ;;  %8766 = vmatpush.bf16.msrb.mxu3 %v18229_v13  ;;  %v18228_v5 = vld [vmem:[%s23052_s5 + $0x160] sm:$0xff] }
 0x59a   : > { %8487 = vmatpush.bf16.msrb.mxu1 %v18214_v39  ;;  %8767 = vmatpush.bf16.msrb.mxu3 %v18228_v5  ;;  %v18227_v39 = vld [vmem:[%s23052_s5 + $0x158] sm:$0xff]  ;;  %v18232_v5 = vld [vmem:[%s23052_s5 + $0x180] sm:$0xff] }
 0x59e   : > { %8488 = vmatpush.bf16.msrb.mxu1 %v18213_v27  ;;  %v18247_v27 = vld [vmem:[%s23052_s5 + $0x1e0] sm:$0xff]  ;;  %8768 = vmatpush.bf16.msrb.mxu3 %v18227_v39 }
 0x5a2   : > { %8489 = vmatpush.bf16.msrb.mxu1 %v18212_v32  ;;  %v18239_v32 = vld [vmem:[%s23052_s5 + $0x1b8] sm:$0xff]  ;;  %8769 = vmatpush.bf16.msrb.mxu3 %v18226_v3 }
 0x5a3   : > { %8875 = vmatpush.bf16.msrb.mxu0 %v18239_v32 }
 0x5a6   : > { %8490 = vmatpush.bf16.msrb.mxu1 %v18211_v47  ;;  %v18246_v47 = vld [vmem:[%s23052_s5 + $0x1d8] sm:$0xff] }
 0x5a7   : > { %8876 = vmatpush.bf16.msrb.mxu0 %v18238_v44 }
 0x5aa   : > { %8491 = vmatpush.bf16.msrb.mxu1 %v18210_v21  ;;  %v18225_v21 = vld [vmem:[%s23052_s5 + $0x148] sm:$0xff] }
 0x5ab   : > { %8770 = vmatpush.bf16.msrb.mxu3 %v18225_v21  ;;  %8877 = vmatpush.bf16.msrb.mxu0 %v18237_v23  ;;  %v8521_v21 = vld [vmem:[#allocation5 + $0x4] sm:$0xf] }
 0x5ac   : > { %v8554_v23 = vunpack.c.l.b16 %v8521_v21 }
 0x5ae   : > { %8492 = vmatpush.bf16.msrb.mxu1 %v18209_v38  ;;  %v18224_v38 = vld [vmem:[%s23052_s5 + $0x140] sm:$0xff] }
 0x5af   : > { %8771 = vmatpush.bf16.msrb.mxu3 %v18224_v38  ;;  %8878 = vmatpush.bf16.msrb.mxu0 %v18236_v24 }
 0x5b2   : > { %8493 = vmatpush.bf16.msrb.mxu1 %v18208_v61  ;;  %v8048_v61 = vld [vmem:[#allocation5 + $0x18] sm:$0xff]  }
 0x5b3   : > { %v8097_v52 = vunpack.c.l.b16 %v8048_v61 }
 0x5b5   : > { %v7853_v2 = vpop.f32.mrf.mxu0  ;;  %v7914_v29 = vpop.f32.mrf.mxu1 }
 0x5b6   : > { %v7857_v53 = vpack.c.bf16 %v7853_v2, %v7853_v2  ;;  %v7918_v55 = vpack.c.bf16 %v7914_v29, %v7914_v29  ;;  %9038 = vmatpush.bf16.msra.mxu1 %v18250_v35  ;;  %v18243_v2 = vld [vmem:[%s23052_s5 + $0x1c0] sm:$0xff] }
 0x5b7   : > { %v18220_v29 = vld [vmem:[%s23052_s5 + $0x120] sm:$0xff] }
 0x5b8   : > { %7858 = vst [vmem:[#allocation5 + $0x8] sm:$0xf] %v7857_v53  ;;  %8652 = vmatpush.bf16.msrb.mxu2 %v18220_v29 }
 0x5b9   : > { %7919 = vst [vmem:[#allocation5 + $0xc] sm:$0xf] %v7918_v55 }
 0x5ba   : > { %9039 = vmatpush.bf16.msra.mxu1 %v18249_v34  ;;  %v8684_v34 = vld [vmem:[#allocation5 + $0x4] sm:$0xe] }
 0x5bd   : > { %v7855_v31 = vpop.f32.mrf.mxu0  ;;  %v7916_v60 = vpop.f32.mrf.mxu1 }
 0x5be   : > { %9040 = vmatpush.bf16.msra.mxu1 %v18248_v10  ;;  %v18235_v31 = vld [vmem:[%s23052_s5 + $0x198] sm:$0xff]  ;;  %v18216_v10 = vld [vmem:[%s23052_s5 + $0x100] sm:$0xff] }
 0x5bf   : > { %v18219_v60 = vld [vmem:[%s23052_s5 + $0x118] sm:$0xff]  ;;  %8879 = vmatpush.bf16.msrb.mxu0 %v18235_v31 }
 0x5c0   : > { %v21620_v6 = vld [vmem:[#allocation5 + $0x8] sm:$0xff]   ;;  %8653 = vmatpush.bf16.msrb.mxu2 %v18219_v60  ;;  %v19122_v31 = vld [vmem:[#allocation5 + $0x1c] sm:$0x10] }
 0x5c1   : > { %v21623_v56 = vunpack.c.l.b16 %v21620_v6  ;;  %v8111_v63 = vshll.u32 %v21620_v6, 16  ;;  %8280 = vmatmul.bf16.gmra.mxu3 %v21620_v6  ;;  %v8317_v22 = vrot.slane %v21620_v6, 1  ;;  %v8115_v37 = vshrl.u32 %v21620_v6, 16  ;;  %v16099_v60 = vld [vmem:[#allocation5 + $0x20] sm:$0xf] }
 0x5c2   : > { %9041 = vmatpush.bf16.msra.mxu1 %v18247_v27  ;;  %v8703_v27 = vunpack.c.l.b16 %v8684_v34 }
 0x5c3   : > { %v8430_v7 = vpack.c.b16 %v21623_v56, %v18773_v25  ;;  %v21629_v59 = vrot.slane %v8111_v63, 1  ;;  %v8318_v20 = vsel %vm1681_vm13, %v8316_v17, %v8317_v22  ;;  %v18234_v63 = vld [vmem:[%s23052_s5 + $0x190] sm:$0xff]  ;;  %v8562_v16 = vpack.c.b16 %v21623_v56, %v8554_v23 }
 0x5c4   : > { %8383 = vmatmul.bf16.vlgmr.msra.gmra.mxu0 %v8318_v20  ;;  %v18233_v20 = vld [vmem:[%s23052_s5 + $0x188] sm:$0xff] }
 0x5c5   : > { %8494 = vmatmul.bf16.vlgmr.msrb.gmra.mxu1 %v8430_v7  ;;  %v7975_v42 = vpop.f32.mrf.mxu0  ;;  %v8114_v51 = vsel %vm1381_vm12, %v8109_v33, %v21629_v59  ;;  %v8117_v25 = vor.u32 %v8115_v37, %v21629_v59  ;;  %v8098_v33 = vunpack.c.l.b16 %v8065_v15  ;;  %v18218_v7 = vld [vmem:[%s23052_s5 + $0x110] sm:$0xff]  ;;  %8880 = vmatpush.bf16.msrb.mxu0 %v18234_v63 }
 0x5c6   : > { %v7979_v45 = vpack.c.bf16 %v7975_v42, %v7975_v42  ;;  %8194 = vmatmul.bf16.vlgmr.msra.gmra.mxu2 %v8114_v51  ;;  %9042 = vmatpush.bf16.msra.mxu1 %v18246_v47  ;;  %v8214_v42 = vpack.c.b16 %v8097_v52, %v8097_v52  ;;  %v8429_v51 = vunpack.c.h.b16 %v8048_v61  ;;  %v8569_v61 = vshll.u32 %v8562_v16, 16  ;;  %v19120_v15 = vld [vmem:[#allocation5 + $0x1c] sm:$0xf] }
 0x5c7   : > { %v8102_v59 = vpack.c.b16 %v8098_v33, %v8097_v52  ;;  %8654 = vmatpush.bf16.msrb.mxu2 %v18218_v7  ;;  %v18242_v33 = vld [vmem:[#allocation5 + $0x20] sm:$0x10]  ;;  %v19071_v63 = vor.u32 %v19122_v31, %v19120_v15 }
 0x5c8   : > { %7980 = vst [vmem:[#allocation5 + $0x10] sm:$0xf] %v7979_v45  ;;  %v8433_v26 = vpack.c.b16 %v8429_v51, %v8429_v51  ;;  %v21780_v7 = vor.u32 %v18242_v33, %v16099_v60  ;;  %v18256_v51 = vld [vmem:[%s23052_s5 + $0x228] sm:$0xff] }
 0x5c9   : > { %v8127_v45 = vshll.u32 %v8102_v59, 16  ;;  %8881 = vmatpush.bf16.msrb.mxu0 %v18233_v20  ;;  %v8131_v44 = vshrl.u32 %v8102_v59, 16 }
 0x5ca   : > { %9043 = vmatpush.bf16.msra.mxu1 %v18245_v36  ;;  %v8979_v20 = vshll.u32 %v21780_v7, 16  ;;  %v9099_v15 = vrot.slane %v21780_v7, 1 }
 0x5cb   : > { %v8129_v13 = vrot.slane %v8127_v45, 1 }
 0x5cd   : > { %v7977_v14 = vpop.f32.mrf.mxu0  ;;  %8882 = vmatpush.bf16.msrb.mxu0 %v18232_v5  ;;  %v8133_v38 = vor.u32 %v8131_v44, %v8129_v13  ;;  %v8983_v44 = vshrl.u32 %v21780_v7, 16 }
 0x5ce   : > { %9044 = vmatpush.bf16.msra.mxu1 %v18244_v50  ;;  %v18217_v14 = vld [vmem:[%s23052_s5 + $0x108] sm:$0xff] }
 0x5cf   : > { %v19056_v43 = vld [vmem:[#allocation5 + $0xc] sm:$0xff]   ;;  %8655 = vmatpush.bf16.msrb.mxu2 %v18217_v14 }
 0x5d0   : > { %v19119_v3 = vld [vmem:[#allocation5 + $0xc] sm:$0xff]  }
 0x5d1   : > { %v8706_v58 = vrot.slane %v19119_v3, 1  ;;  %v8574_v24 = vshll.u32 %v19119_v3, 16 }
 0x5d2   : > { %9045 = vmatpush.bf16.msra.mxu1 %v18243_v2 }
 0x5d3   : > { %8656 = vmatpush.bf16.msrb.mxu2 %v18216_v10 }
 0x5d5   : > { %8499 = vmatmul.bf16.gmra.mxu1 %v19056_v43  ;;  %v8321_v43 = vrot.slane %v8102_v59, 1  ;;  %v8975_v59 = vshrl.u32 %v21702_v9, 16 }
 0x612   : > { %v8036_v19 = vpop.f32.mrf.mxu1 }
 0x613   : > { %v8040_v28 = vpack.c.bf16 %v8036_v19, %v8036_v19  ;;  %v8704_v19 = vpack.c.b16 %v21623_v56, %v8703_v27  ;;  %v8576_v56 = vrot.slane %v8574_v24, 1  ;;  %v18253_v27 = vld [vmem:[%s23052_s5 + $0x210] sm:$0xff] }
 0x615   : > { %8041 = vst [vmem:[#allocation5 + $0x14] sm:$0xf] %v8040_v28  ;;  %v8705_v47 = vrot.slane %v8704_v19, 1 }
 0x617   : > { %v8707_v36 = vsel %vm1681_vm13, %v8705_v47, %v8706_v58 }
 0x61a   : > { %v8038_v18 = vpop.f32.mrf.mxu1 }
 0x61c   : > { %v21700_v57 = vld [vmem:[#allocation5 + $0x10] sm:$0xff]  }
 0x61d   : > { %8285 = vmatmul.bf16.gmra.mxu3 %v21700_v57  ;;  %v8319_v12 = vrot.slane %v21700_v57, 1  ;;  %v18781_v40 = vunpack.c.h.b16 %v21700_v57  ;;  %v8119_v4 = vshll.u32 %v21700_v57, 16  ;;  %v21717_v53 = vld [vmem:[#allocation5 + $0x10] sm:$0xff]  ;;  %v8123_v11 = vshrl.u32 %v21700_v57, 16 }
 0x61e   : > { %v9095_v17 = vrot.slane %v21717_v53, 1  ;;  %v8963_v28 = vshll.u32 %v21717_v53, 16  ;;  %v21765_v18 = vld [vmem:[#allocation5 + $0x14] sm:$0xff]  }
 0x61f   : > { %v8320_v55 = vsel %vm1681_vm13, %v8317_v22, %v8319_v12  ;;  %v8432_v46 = vpack.c.b16 %v8097_v52, %v18781_v40  ;;  %v8121_v30 = vrot.slane %v8119_v4, 1  ;;  %v8322_v39 = vsel %vm1681_vm13, %v8319_v12, %v8321_v43 }
 0x620   : > { %8388 = vmatmul.bf16.gmra.mxu0 %v8320_v55  ;;  %v21740_v22 = vsel %vm1681_vm13, %v9095_v17, %v9097_v41  ;;  %v8965_v0 = vrot.slane %v8963_v28, 1  ;;  %v8708_v37 = vrot.slane %v21765_v18, 1  ;;  %v8971_v12 = vshll.u32 %v21702_v9, 16 }
 0x621   : > { %8504 = vmatmul.bf16.gmra.mxu1 %v8432_v46  ;;  %v8122_v62 = vsel %vm1381_vm12, %v8117_v25, %v8121_v30  ;;  %v8125_v35 = vor.u32 %v8123_v11, %v8121_v30  ;;  %v8567_v40 = vshrl.u32 %v8562_v16, 16  ;;  %v8571_v52 = vrot.slane %v8569_v61, 1  ;;  %v8799_v61 = vld [vmem:[#allocation5 + $0x20] sm:$0xf] }
 0x622   : > { %8199 = vmatmul.bf16.gmra.mxu2 %v8122_v62  ;;  %v8966_v50 = vsel %vm1381_vm12, %v8117_v25, %v8965_v0  ;;  %v8967_v4 = vshrl.u32 %v21717_v53, 16  ;;  %v8709_v2 = vsel %vm1681_vm13, %v8706_v58, %v8708_v37  ;;  %v8973_v55 = vrot.slane %v8971_v12, 1  ;;  %v18258_v62 = vld [vmem:[%s23052_s5 + $0x238] sm:$0xff] }
 0x623   : > { %v8130_v32 = vsel %vm1381_vm12, %v8125_v35, %v8129_v13  ;;  %v8572_v46 = vor.u32 %v8571_v52, %v8567_v40  ;;  %9153 = vmatpush.bf16.msra.mxu2 %v18258_v62  ;;  %v8582_v45 = vshll.u32 %v21765_v18, 16  ;;  %v8578_v11 = vshrl.u32 %v19119_v3, 16  ;;  %v18255_v35 = vld [vmem:[%s23052_s5 + $0x220] sm:$0xff] }
 0x624   : > { %v8969_v29 = vor.u32 %v8967_v4, %v8965_v0  ;;  %v8977_v14 = vor.u32 %v8975_v59, %v8973_v55  ;;  %v8590_v58 = vshll.u32 %v19071_v63, 16  ;;  %v8586_v21 = vshrl.u32 %v21765_v18, 16 }
 0x625   : > { %v8577_v30 = vsel %vm1381_vm12, %v8572_v46, %v8576_v56  ;;  %v8584_v13 = vrot.slane %v8582_v45, 1  ;;  %v8580_v5 = vor.u32 %v8578_v11, %v8576_v56  ;;  %v8818_v12 = vunpack.c.l.b16 %v8799_v61 }
 0x626   : > { %v8974_v25 = vsel %vm1381_vm12, %v8969_v29, %v8973_v55  ;;  %v8592_v23 = vrot.slane %v8590_v58, 1  ;;  %v8594_v18 = vshrl.u32 %v19071_v63, 16  ;;  %v19017_v29 = vld [vmem:[#allocation5 + $0x8] sm:$0xe]  ;;  %v9100_v62 = vsel %vm1681_vm13, %v9097_v41, %v9099_v15 }
 0x627   : > { %v8585_v10 = vsel %vm1381_vm12, %v8580_v5, %v8584_v13  ;;  %v8588_v0 = vor.u32 %v8586_v21, %v8584_v13  ;;  %v8822_v40 = vpack.c.b16 %v8818_v12, %v8818_v12 }
 0x628   : > { %v8596_v52 = vor.u32 %v8594_v18, %v8592_v23 }
 0x629   : > { %v8593_v16 = vsel %vm1381_vm12, %v8588_v0, %v8592_v23 }
 0x62d   : > { %8290 = vmatmul.bf16.gmra.mxu3 %v8214_v42  ;;  %v8710_v42 = vrot.slane %v19071_v63, 1 }
 0x630   : > { %8393 = vmatmul.bf16.gmra.mxu0 %v8322_v39  ;;  %v18254_v39 = vld [vmem:[%s23052_s5 + $0x218] sm:$0xff] }
 0x631   : > { %8509 = vmatmul.bf16.gmra.mxu1 %v8433_v26  ;;  %v8711_v26 = vsel %vm1681_vm13, %v8708_v37, %v8710_v42 }
 0x632   : > { %8204 = vmatmul.bf16.gmra.mxu2 %v8130_v32  ;;  %v8276_v32 = vpop.f32.mrf.mxu3 }
 0x63a   : > { %v21812_v24 = vpop.f32.mrf.mxu3 }
 0x63d   : > { %8772 = vmatmul.bf16.vlgmr.msrb.gmra.mxu3 %v8707_v36  ;;  %v18251_v36 = vld [vmem:[%s23052_s5 + $0x200] sm:$0xff] }
 0x640   : > { %8398 = vmatmul.bf16.gmra.mxu0 %v8321_v43  ;;  %v8981_v43 = vrot.slane %v8979_v20, 1 }
 0x641   : > { %9046 = vmatmul.bf16.vlgmr.msra.gmra.mxu1 %v8966_v50  ;;  %v8384_v47 = vpop.f32.mrf.mxu0 }
 0x642   : > { %8209 = vmatmul.bf16.gmra.mxu2 %v8133_v38  ;;  %v8982_v34 = vsel %vm1381_vm12, %v8977_v14, %v8981_v43  ;;  %v19014_v38 = vld [vmem:[#allocation5 + $0x18] sm:$0xff]   ;;  %v8985_v50 = vor.u32 %v8983_v44, %v8981_v43  ;;  %v8495_v37 = vpop.f32.mrf.mxu1 }
 0x649   : > { %v8195_v19 = vpop.f32.mrf.mxu2  ;;  %v21821_v60 = vpop.f32.mrf.mxu0 }
 0x64a   : > { %v8277_v3 = vadd.f32 %v8276_v32, %v8195_v19  ;;  %v21810_v4 = vpop.f32.mrf.mxu1 }
 0x64c   : > { %v8403_v28 = vadd.f32 %v8384_v47, %v8277_v3 }
 0x64d   : > { %8777 = vmatmul.bf16.gmra.mxu3 %v8709_v2  ;;  %v19016_v2 = vld [vmem:[#allocation5 + $0x8] sm:$0xf0] }
 0x64e   : > { %v8514_v55 = vadd.f32 %v8495_v37, %v8403_v28  ;;  %v19018_v46 = vor.u32 %v19017_v29, %v19016_v2 }
 0x650   : > { %8883 = vmatmul.bf16.vlgmr.msrb.gmra.mxu0 %v21620_v6  ;;  %v18257_v6 = vld [vmem:[%s23052_s5 + $0x230] sm:$0xff] }
 0x651   : > { %9051 = vmatmul.bf16.gmra.mxu1 %v8974_v25  ;;  %9154 = vmatpush.bf16.msra.mxu2 %v18257_v6  ;;  %v8281_v25 = vpop.f32.mrf.mxu3  ;;  %v21827_v6 = vpop.f32.mrf.mxu2 }
 0x652   : > { %8657 = vmatmul.bf16.vlgmr.msrb.gmra.mxu2 %v8577_v30  ;;  %v8500_v56 = vpop.f32.mrf.mxu1  ;;  %v9094_v30 = vrot.slane %v19018_v46, 1 }
 0x654   : > { %v9096_v31 = vsel %vm1681_vm13, %v9094_v30, %v9095_v17 }
 0x655   : > { %9155 = vmatpush.bf16.msra.mxu2 %v18256_v51 }
 0x659   : > { %9156 = vmatpush.bf16.msra.mxu2 %v18255_v35  ;;  %v21825_v63 = vpop.f32.mrf.mxu3 }
 0x65a   : > { %v21823_v33 = vpop.f32.mrf.mxu1 }
 0x65d   : > { %8782 = vmatmul.bf16.gmra.mxu3 %v8711_v26  ;;  %9157 = vmatpush.bf16.msra.mxu2 %v18254_v39 }
 0x660   : > { %8888 = vmatmul.bf16.gmra.mxu0 %v21700_v57  ;;  %v18252_v57 = vld [vmem:[%s23052_s5 + $0x208] sm:$0xff] }
 0x661   : > { %9056 = vmatmul.bf16.gmra.mxu1 %v8982_v34  ;;  %9158 = vmatpush.bf16.msra.mxu2 %v18253_v27 }
 0x662   : > { %8662 = vmatmul.bf16.gmra.mxu2 %v8585_v10 }
 0x665   : > { %9159 = vmatpush.bf16.msra.mxu2 %v18252_v57 }
 0x669   : > { %9160 = vmatpush.bf16.msra.mxu2 %v18251_v36 }
 0x66d   : > { %8787 = vmatmul.bf16.gmra.mxu3 %v8710_v42 }
 0x670   : > { %8893 = vmatmul.bf16.gmra.mxu0 %v19014_v38 }
 0x671   : > { %9061 = vmatmul.bf16.gmra.mxu1 %v8985_v50 }
 0x672   : > { %8667 = vmatmul.bf16.gmra.mxu2 %v8593_v16 }
 0x680   : > { %8898 = vmatmul.bf16.gmra.mxu0 %v8822_v40 }
 0x682   : > { %8672 = vmatmul.bf16.gmra.mxu2 %v8596_v52 }
 0x692   : > { %9161 = vmatmul.bf16.vlgmr.msra.gmra.mxu2 %v9096_v31 }
 0x69d   : > { %v8389_v59 = vpop.f32.mrf.mxu0 }
 0x69e   : > { %v8505_v20 = vpop.f32.mrf.mxu1 }
 0x6a0   : > { %v8286_v7 = vpop.f32.mrf.mxu3 }
 0x6a2   : > { %9166 = vmatmul.bf16.gmra.mxu2 %v21740_v22 }
 0x6a5   : > { %v8200_v53 = vpop.f32.mrf.mxu2  ;;  %v21830_v17 = vpop.f32.mrf.mxu0 }
 0x6a6   : > { %v8282_v42 = vadd.f32 %v8281_v25, %v8200_v53  ;;  %v21832_v9 = vpop.f32.mrf.mxu1 }
 0x6a8   : > { %v8405_v41 = vadd.f32 %v8389_v59, %v8282_v42  ;;  %v21834_v51 = vpop.f32.mrf.mxu3 }
 0x6aa   : > { %v8516_v45 = vadd.f32 %v8500_v56, %v8405_v41 }
 0x6ad   : > { %v21836_v14 = vpop.f32.mrf.mxu2  ;;  %v8394_v43 = vpop.f32.mrf.mxu0 }
 0x6ae   : > { %v8510_v11 = vpop.f32.mrf.mxu1 }
 0x6b0   : > { %v8291_v26 = vpop.f32.mrf.mxu3 }
 0x6b2   : > { %9171 = vmatmul.bf16.gmra.mxu2 %v9100_v62 }
 0x6b5   : > { %v8205_v35 = vpop.f32.mrf.mxu2  ;;  %v21838_v13 = vpop.f32.mrf.mxu0 }
 0x6b6   : > { %v8287_v22 = vadd.f32 %v8286_v7, %v8205_v35  ;;  %v8512_v34 = vpop.f32.mrf.mxu1 }
 0x6b8   : > { %v8407_v5 = vadd.f32 %v8394_v43, %v8287_v22  ;;  %v8293_v10 = vpop.f32.mrf.mxu3 }
 0x6ba   : > { %v8518_v39 = vadd.f32 %v8505_v20, %v8407_v5 }
 0x6bd   : > { %v21840_v27 = vpop.f32.mrf.mxu2  ;;  %v8399_v32 = vpop.f32.mrf.mxu0 }
 0x6be   : > { %v9047_v19 = vpop.f32.mrf.mxu1 }
 0x6c0   : > { %v8773_v3 = vpop.f32.mrf.mxu3 }
 0x6c2   : > { %9176 = vmatmul.bf16.gmra.mxu2 %v9099_v15 }
 0x6c5   : > { %v8210_v47 = vpop.f32.mrf.mxu2  ;;  %v8401_v57 = vpop.f32.mrf.mxu0 }
 0x6c6   : > { %v8292_v58 = vadd.f32 %v8291_v26, %v8210_v47  ;;  %v21842_v28 = vpop.f32.mrf.mxu1  ;;  %v18266_v47 = vld [vmem:[%s23053_s6 + $0x38] sm:$0xff] }
 0x6c7   : > { %9516 = vmatpush.bf16.msra.mxu0 %v18266_v47 }
 0x6c8   : > { %v8409_v44 = vadd.f32 %v8399_v32, %v8292_v58  ;;  %v8775_v21 = vpop.f32.mrf.mxu3  ;;  %v8279_v58 = vadd.f32 %v21812_v24, %v21827_v6  ;;  %v18263_v6 = vld [vmem:[%s23053_s6 + $0x20] sm:$0xff] }
 0x6ca   : > { %v8520_v36 = vadd.f32 %v8510_v11, %v8409_v44 }
 0x6cd   : > { %v8212_v0 = vpop.f32.mrf.mxu2  ;;  %v8884_v23 = vpop.f32.mrf.mxu0 }
 0x6ce   : > { %v9052_v38 = vpop.f32.mrf.mxu1 }
 0x6d0   : > { %v8778_v50 = vpop.f32.mrf.mxu3 }
 0x6d5   : > { %v8658_v16 = vpop.f32.mrf.mxu2  ;;  %v21844_v61 = vpop.f32.mrf.mxu0 }
 0x6d6   : > { %v8677_v37 = vadd.f32 %v8658_v16, %v8514_v55  ;;  %v21846_v12 = vpop.f32.mrf.mxu1 }
 0x6d8   : > { %v8792_v18 = vadd.f32 %v8773_v3, %v8677_v37  ;;  %v21848_v40 = vpop.f32.mrf.mxu3 }
 0x6da   : > { %v8903_v52 = vadd.f32 %v8884_v23, %v8792_v18  ;;  %v8404_v23 = vadd.f32 %v21821_v60, %v8279_v58  ;;  %v18287_v58 = vld [vmem:[%s23053_s6 + $0xe0] sm:$0xff] }
 0x6dc   : > { %v9066_v2 = vadd.f32 %v9047_v19, %v8903_v52  ;;  %v8515_v24 = vadd.f32 %v21810_v4, %v8404_v23  ;;  %v18262_v52 = vld [vmem:[%s23053_s6 + $0x18] sm:$0xff]  ;;  %v8284_v4 = vadd.f32 %v21825_v63, %v21836_v14 }
 0x6dd   : > { %v8660_v29 = vpop.f32.mrf.mxu2  ;;  %v8889_v46 = vpop.f32.mrf.mxu0 }
 0x6de   : > { %v9057_v56 = vpop.f32.mrf.mxu1  ;;  %v8406_v14 = vadd.f32 %v21830_v17, %v8284_v4  ;;  %v18268_v4 = vld [vmem:[%s23053_s6 + $0x48] sm:$0xff] }
 0x6e0   : > { %v8783_v25 = vpop.f32.mrf.mxu3 }
 0x6e5   : > { %v8663_v30 = vpop.f32.mrf.mxu2  ;;  %v21850_v15 = vpop.f32.mrf.mxu0 }
 0x6e6   : > { %v8679_v31 = vadd.f32 %v8663_v30, %v8516_v45  ;;  %v21852_v62 = vpop.f32.mrf.mxu1 }
 0x6e8   : > { %v8794_v59 = vadd.f32 %v8778_v50, %v8679_v31  ;;  %v21854_v20 = vpop.f32.mrf.mxu3  ;;  %v18264_v50 = vld [vmem:[%s23053_s6 + $0x28] sm:$0xff]  ;;  %v18289_v31 = vld [vmem:[%s23053_s6 + $0xf0] sm:$0xff] }
 0x6ea   : > { %v8905_v55 = vadd.f32 %v8889_v46, %v8794_v59  ;;  %v18282_v46 = vld [vmem:[%s23053_s6 + $0xb8] sm:$0xff]  ;;  %v18273_v59 = vld [vmem:[%s23053_s6 + $0x70] sm:$0xff] }
 0x6eb   : > { %9624 = vmatpush.bf16.msrb.mxu1 %v18282_v46  ;;  %v18284_v46 = vld [vmem:[%s23053_s6 + $0xc8] sm:$0xff] }
 0x6ec   : > { %v21856_v7 = vadd.f32 %v9052_v38, %v8905_v55  ;;  %v18260_v55 = vld [vmem:[%s23053_s6 + $0x8] sm:$0xff] }
 0x6ed   : > { %v21858_v53 = vpop.f32.mrf.mxu2  ;;  %v8894_v42 = vpop.f32.mrf.mxu0 }
 0x6ee   : > { %v9062_v41 = vpop.f32.mrf.mxu1 }
 0x6f0   : > { %v8788_v43 = vpop.f32.mrf.mxu3 }
 0x6f5   : > { %v8668_v11 = vpop.f32.mrf.mxu2  ;;  %v21860_v26 = vpop.f32.mrf.mxu0 }
 0x6f6   : > { %v8681_v35 = vadd.f32 %v8668_v11, %v8518_v39  ;;  %v9064_v22 = vpop.f32.mrf.mxu1  ;;  %v18265_v39 = vld [vmem:[%s23053_s6 + $0x30] sm:$0xff] }
 0x6f7   : > { %9517 = vmatpush.bf16.msra.mxu0 %v18265_v39  ;;  %v18279_v22 = vld [vmem:[%s23053_s6 + $0xa0] sm:$0xff]  ;;  %v8289_v39 = vadd.f32 %v21834_v51, %v21840_v27 }
 0x6f8   : > { %v8796_v34 = vadd.f32 %v8783_v25, %v8681_v35  ;;  %v8790_v45 = vpop.f32.mrf.mxu3  ;;  %v18281_v25 = vld [vmem:[%s23053_s6 + $0xb0] sm:$0xff] }
 0x6f9   : > { %9625 = vmatpush.bf16.msrb.mxu1 %v18281_v25  ;;  %v8408_v51 = vadd.f32 %v21838_v13, %v8289_v39  ;;  %v18276_v13 = vld [vmem:[%s23053_s6 + $0x88] sm:$0xff] }
 0x6fa   : > { %v8907_v5 = vadd.f32 %v8894_v42, %v8796_v34  ;;  %v18272_v42 = vld [vmem:[%s23053_s6 + $0x68] sm:$0xff] }
 0x6fb   : > { %9518 = vmatpush.bf16.msra.mxu0 %v18264_v50 }
 0x6fc   : > { %v21862_v10 = vadd.f32 %v9057_v56, %v8907_v5  ;;  %v18290_v56 = vld [vmem:[%s23053_s6 + $0xf8] sm:$0xff] }
 0x6fd   : > { %v21864_v32 = vpop.f32.mrf.mxu2  ;;  %v8899_v19 = vpop.f32.mrf.mxu0  ;;  %9735 = vmatpush.bf16.msrb.mxu2 %v18290_v56 }
 0x6ff   : > { %9519 = vmatpush.bf16.msra.mxu0 %v18263_v6 }
 0x701   : > { %9736 = vmatpush.bf16.msrb.mxu2 %v18289_v31 }
 0x703   : > { %9520 = vmatpush.bf16.msra.mxu0 %v18262_v52 }
 0x705   : > { %v8673_v3 = vpop.f32.mrf.mxu2  ;;  %v8901_v57 = vpop.f32.mrf.mxu0 }
 0x706   : > { %v8683_v44 = vadd.f32 %v8673_v3, %v8520_v36  ;;  %v8678_v36 = vadd.f32 %v8660_v29, %v8515_v24  ;;  %v18261_v29 = vld [vmem:[%s23053_s6 + $0x10] sm:$0xff]  ;;  %v21933_v3 = vld [vmem:[#allocation6] sm:$0xff]  }
 0x707   : > { %9521 = vmatpush.bf16.msra.mxu0 %v18261_v29 }
 0x708   : > { %v8798_v0 = vadd.f32 %v8788_v43, %v8683_v44  ;;  %v8793_v18 = vadd.f32 %v8775_v21, %v8678_v36  ;;  %v18274_v21 = vld [vmem:[%s23053_s6 + $0x78] sm:$0xff]  ;;  %v8517_v43 = vadd.f32 %v21823_v33, %v8406_v14  ;;  %v18269_v36 = vld [vmem:[%s23053_s6 + $0x50] sm:$0xff] }
 0x709   : > { %9435 = vmatpush.bf16.msra.mxu3 %v18274_v21  ;;  %v18278_v44 = vld [vmem:[%s23053_s6 + $0x98] sm:$0xff] }
 0x70a   : > { %v8909_v38 = vadd.f32 %v8899_v19, %v8798_v0  ;;  %v8904_v63 = vadd.f32 %v21844_v61, %v8793_v18  ;;  %v18280_v61 = vld [vmem:[%s23053_s6 + $0xa8] sm:$0xff]  ;;  %v8680_v34 = vadd.f32 %v21858_v53, %v8517_v43  ;;  %v18271_v53 = vld [vmem:[%s23053_s6 + $0x60] sm:$0xff]  ;;  %v18270_v0 = vld [vmem:[%s23053_s6 + $0x58] sm:$0xff] }
 0x70b   : > { %9522 = vmatpush.bf16.msra.mxu0 %v18260_v55  ;;  %9626 = vmatpush.bf16.msrb.mxu1 %v18280_v61  ;;  %v18267_v61 = vld [vmem:[%s23053_s6 + $0x40] sm:$0xff] }
 0x70c   : > { %v21878_v16 = vadd.f32 %v9062_v41, %v8909_v38  ;;  %v9067_v17 = vadd.f32 %v21842_v28, %v8904_v63  ;;  %v18259_v28 = vld [vmem:[%s23053_s6] sm:$0xff]  ;;  %v8795_v47 = vadd.f32 %v21848_v40, %v8680_v34  ;;  %v18286_v40 = vld [vmem:[%s23053_s6 + $0xd8] sm:$0xff]  ;;  %v18277_v38 = vld [vmem:[%s23053_s6 + $0x90] sm:$0xff] }
 0x70d   : > { %v8675_v37 = vpop.f32.mrf.mxu2  ;;  %9436 = vmatpush.bf16.msra.mxu3 %v18273_v59 }
 0x70e   : > { %v8906_v23 = vadd.f32 %v21850_v15, %v8795_v47  ;;  %v18285_v15 = vld [vmem:[%s23053_s6 + $0xd0] sm:$0xff] }
 0x70f   : > { %9523 = vmatpush.bf16.msra.mxu0 %v18259_v28  ;;  %9627 = vmatpush.bf16.msrb.mxu1 %v18279_v22 }
 0x710   : > { %v9069_v50 = vadd.f32 %v21846_v12, %v8906_v23  ;;  %v8519_v12 = vadd.f32 %v21832_v9, %v8408_v51  ;;  %v18275_v9 = vld [vmem:[%s23053_s6 + $0x80] sm:$0xff] }
 0x711   : > { %9437 = vmatpush.bf16.msra.mxu3 %v18272_v42 }
 0x712   : > { %9524 = vmatmul.bf16.vlgmr.msra.gmra.mxu0 %v21933_v3  ;;  %v8682_v29 = vadd.f32 %v21864_v32, %v8519_v12  ;;  %v18283_v32 = vld [vmem:[%s23053_s6 + $0xc0] sm:$0xff] }
 0x713   : > { %9628 = vmatpush.bf16.msrb.mxu1 %v18278_v44 }
 0x715   : > { %v9162_v60 = vpop.f32.mrf.mxu2  ;;  %9438 = vmatpush.bf16.msra.mxu3 %v18271_v53 }
 0x716   : > { %v9181_v30 = vadd.f32 %v9162_v60, %v9066_v2  ;;  %v18288_v2 = vld [vmem:[%s23053_s6 + $0xe8] sm:$0xff] }
 0x717   : > { %9737 = vmatpush.bf16.msrb.mxu2 %v18288_v2  ;;  %9629 = vmatpush.bf16.msrb.mxu1 %v18277_v38  ;;  %v18305_v38 = vld [vmem:[%s23053_s6 + $0x170] sm:$0xff] }
 0x718   : > { %v9195_v11 = vmul.f32 0.2, %v9181_v30  ;;  %vm9188_vm5 = vcmp.ge.f32.partialorder %v9181_v30, 0.0 }
 0x719   : > { %9439 = vmatpush.bf16.msra.mxu3 %v18270_v0 }
 0x71a   : > { %v9202_v33 = vsel %vm9188_vm5, %v9181_v30, %v9195_v11 }
 0x71b   : > { %9738 = vmatpush.bf16.msrb.mxu2 %v18287_v58  ;;  %9630 = vmatpush.bf16.msrb.mxu1 %v18276_v13  ;;  %v9544_v58 = vld [vmem:[#allocation6] sm:$0xe]  ;;  %v18304_v13 = vld [vmem:[%s23053_s6 + $0x168] sm:$0xff] }
 0x71d   : > { %v9164_v41 = vpop.f32.mrf.mxu2  ;;  %9440 = vmatpush.bf16.msra.mxu3 %v18269_v36  ;;  %v9355_v36 = vshll.u32 %v21933_v3, 16 }
 0x71e   : > { %v9182_v35 = vadd.f32 %v9164_v41, %v9067_v17  ;;  %v8797_v17 = vadd.f32 %v21854_v20, %v8682_v29 }
 0x71f   : > { %9739 = vmatpush.bf16.msrb.mxu2 %v18286_v40  ;;  %9631 = vmatpush.bf16.msrb.mxu1 %v18275_v9 }
 0x720   : > { %vm9189_vm6 = vcmp.ge.f32.partialorder %v9182_v35, 0.0  ;;  %v9196_v45 = vmul.f32 0.2, %v9182_v35  ;;  %v8908_v42 = vadd.f32 %v21860_v26, %v8797_v17  ;;  %v18306_v26 = vld [vmem:[%s23053_s6 + $0x178] sm:$0xff] }
 0x721   : > { %9441 = vmatpush.bf16.msra.mxu3 %v18268_v4  ;;  %10013 = vmatpush.bf16.msrb.mxu0 %v18306_v26  ;;  %v18303_v4 = vld [vmem:[%s23053_s6 + $0x160] sm:$0xff]  ;;  %v18312_v26 = vld [vmem:[%s23053_s6 + $0x1a8] sm:$0xff] }
 0x722   : > { %v9203_v5 = vsel %vm9189_vm6, %v9182_v35, %v9196_v45  ;;  %v9071_v11 = vadd.f32 %v21852_v62, %v8908_v42 }
 0x723   : > { %v18801_v19 = vpack.c.bf16 %v9203_v5, %v9202_v33  ;;  %9740 = vmatpush.bf16.msrb.mxu2 %v18285_v15 }
 0x725   : > { %18802 = vst [vmem:[#allocation2] sm:$0xff] %v18801_v19   ;;  %v9167_v57 = vpop.f32.mrf.mxu2  ;;  %9442 = vmatpush.bf16.msra.mxu3 %v18267_v61  ;;  %10014 = vmatpush.bf16.msrb.mxu0 %v18305_v38  ;;  %v18295_v38 = vld [vmem:[%s23053_s6 + $0x120] sm:$0xff] }
 0x726   : > { %v9183_v27 = vadd.f32 %v9167_v57, %v21856_v7 }
 0x727   : > { %9741 = vmatpush.bf16.msrb.mxu2 %v18284_v46 }
 0x728   : > { %v9197_v60 = vmul.f32 0.2, %v9183_v27  ;;  %vm9190_vm7 = vcmp.ge.f32.partialorder %v9183_v27, 0.0 }
 0x729   : > { %10015 = vmatpush.bf16.msrb.mxu0 %v18304_v13  ;;  %v18310_v13 = vld [vmem:[%s23053_s6 + $0x198] sm:$0xff] }
 0x72a   : > { %v9204_v30 = vsel %vm9190_vm7, %v9183_v27, %v9197_v60  ;;  %v18816_v27 = vunpack.c.h.b16 %v21933_v3  ;;  %v9353_v60 = vshrl.u32 %v21933_v3, 16 }
 0x72b   : > { %9742 = vmatpush.bf16.msrb.mxu2 %v18283_v32 }
 0x72c   : > { %v9223_v37 = vld [vmem:[#allocation2] sm:$0x8]  ;;  %v9224_v24 = vld [vmem:[#allocation2 + $0x4] sm:$0x3]  ;;  %v9240_v43 = vld [vmem:[#allocation2 + $0x4] sm:$0x8] }
 0x72d   : > { %v9169_v6 = vpop.f32.mrf.mxu2  ;;  %v9226_v7 = vshrl.u32 %v9223_v37, 16  ;;  %v9231_v18 = vshrl.u32 %v9224_v24, 16  ;;  %v9234_v21 = vshll.u32 %v9224_v24, 16  ;;  %v9243_v45 = vshrl.u32 %v9240_v43, 16  ;;  %10016 = vmatpush.bf16.msrb.mxu0 %v18303_v4 }
 0x72e   : > { %v9184_v52 = vadd.f32 %v9169_v6, %v9069_v50  ;;  %v9563_v37 = vunpack.c.l.b16 %v9544_v58  ;;  %v18299_v58 = vld [vmem:[%s23053_s6 + $0x140] sm:$0xff] }
 0x72f   : > { %v9233_v56 = vrot.slane %v9231_v18, 7  ;;  %v16181_v63 = vrot.slane %v9226_v7, 11  ;;  %v16182_v39 = vrot.slane %v9243_v45, 11  ;;  %v18298_v45 = vld [vmem:[%s23053_s6 + $0x138] sm:$0xff] }
 0x730   : > { %vm9191_vm11 = vcmp.ge.f32.partialorder %v9184_v52, 0.0  ;;  %v9198_v25 = vmul.f32 0.2, %v9184_v52  ;;  %v9564_v12 = vpack.c.b16 %v18816_v27, %v9563_v37  ;;  %9898 = vmatpush.bf16.msrb.mxu3 %v18298_v45 }
 0x731   : > { %v9236_v14 = vor.u32 %v9234_v21, %v9233_v56 }
 0x732   : > { %v9205_v31 = vsel %vm9191_vm11, %v9184_v52, %v9198_v25  ;;  %v9357_v52 = vrot.slane %v9355_v36, 1  ;;  %v9565_v21 = vrot.slane %v9564_v12, 1  ;;  %v18294_v12 = vld [vmem:[%s23053_s6 + $0x118] sm:$0xff] }
 0x733   : > { %v18806_v59 = vpack.c.bf16 %v9205_v31, %v9204_v30  ;;  %v9237_v55 = vsel %vm20436_vm8, %v16181_v63, %v9236_v14 }
 0x734   : > { %9239 = vst [vmem:[#allocation6 + $0x8] sm:$0x3] %v9237_v55  ;;  %v9358_v63 = vor.u32 %v9357_v52, %v9353_v60  ;;  %v18302_v55 = vld [vmem:[%s23053_s6 + $0x158] sm:$0xff] }
 0x735   : > { %19019 = vst [vmem:[#allocation2 + $0x8] sm:$0xff] %v18806_v59   ;;  %v9172_v2 = vpop.f32.mrf.mxu2  ;;  %10017 = vmatpush.bf16.msrb.mxu0 %v18302_v55 }
 0x736   : > { %v9185_v41 = vadd.f32 %v9172_v2, %v21862_v10 }
 0x738   : > { %vm9192_vm14 = vcmp.ge.f32.partialorder %v9185_v41, 0.0  ;;  %v9199_v19 = vmul.f32 0.2, %v9185_v41 }
 0x73a   : > { %v9206_v51 = vsel %vm9192_vm14, %v9185_v41, %v9199_v19  ;;  %v18297_v19 = vld [vmem:[%s23053_s6 + $0x130] sm:$0xff]  ;;  %vm10634_vm14 = vcmp.eq.s32.totalorder %v19306_v54, 8 }
 0x73b   : > { %9899 = vmatpush.bf16.msrb.mxu3 %v18297_v19 }
 0x73c   : > { %v9241_v35 = vld [vmem:[#allocation2 + $0x8] sm:$0x3]  ;;  %v9257_v28 = vld [vmem:[#allocation2 + $0x8] sm:$0x8]  ;;  %v9258_v22 = vld [vmem:[#allocation2 + $0xc] sm:$0x3] }
 0x73d   : > { %v9174_v34 = vpop.f32.mrf.mxu2  ;;  %v9248_v33 = vshrl.u32 %v9241_v35, 16  ;;  %v9260_v20 = vshrl.u32 %v9257_v28, 16  ;;  %v9265_v5 = vshrl.u32 %v9258_v22, 16  ;;  %v9251_v10 = vshll.u32 %v9241_v35, 16  ;;  %v9274_v29 = vld [vmem:[#allocation2 + $0xc] sm:$0x8] }
 0x73e   : > { %v9186_v47 = vadd.f32 %v9174_v34, %v9071_v11  ;;  %v9268_v62 = vshll.u32 %v9258_v22, 16  ;;  %v9277_v31 = vshrl.u32 %v9274_v29, 16  ;;  %v18314_v11 = vld [vmem:[%s23053_s6 + $0x1b8] sm:$0xff]  ;;  %v18301_v22 = vld [vmem:[%s23053_s6 + $0x150] sm:$0xff] }
 0x73f   : > { %v9250_v57 = vrot.slane %v9248_v33, 7  ;;  %v9267_v53 = vrot.slane %v9265_v5, 7  ;;  %v16183_v0 = vrot.slane %v9260_v20, 11  ;;  %v18325_v34 = vld [vmem:[%s23053_s6 + $0x1f8] sm:$0xff]  ;;  %10124 = vmatpush.bf16.msra.mxu1 %v18314_v11  ;;  %v18313_v33 = vld [vmem:[%s23053_s6 + $0x1b0] sm:$0xff]  ;;  %10018 = vmatpush.bf16.msrb.mxu0 %v18301_v22 }
 0x740   : > { %vm9193_vm15 = vcmp.ge.f32.partialorder %v9186_v47, 0.0  ;;  %v9200_v44 = vmul.f32 0.2, %v9186_v47  ;;  %v16184_v35 = vrot.slane %v9277_v31, 11  ;;  %10287 = vmatpush.bf16.msra.mxu2 %v18325_v34  ;;  %v18324_v5 = vld [vmem:[%s23053_s6 + $0x1f0] sm:$0xff]  ;;  %v18292_v31 = vld [vmem:[%s23053_s6 + $0x108] sm:$0xff] }
 0x741   : > { %v9253_v40 = vor.u32 %v9251_v10, %v9250_v57  ;;  %v9270_v23 = vor.u32 %v9268_v62, %v9267_v53  ;;  %v18323_v57 = vld [vmem:[%s23053_s6 + $0x1e8] sm:$0xff]  ;;  %v22068_v62 = vld [vmem:[#allocation6 + $0x18] sm:$0xff] }
 0x742   : > { %v9207_v50 = vsel %vm9193_vm15, %v9186_v47, %v9200_v44  ;;  %v18300_v47 = vld [vmem:[%s23053_s6 + $0x148] sm:$0xff]  ;;  %vm10635_vm15 = vmor %vm19310_vm10, %vm10634_vm14 }
 0x743   : > { %v18811_v24 = vpack.c.bf16 %v9207_v50, %v9206_v51  ;;  %v9254_v6 = vsel %vm20436_vm8, %v16182_v39, %v9253_v40  ;;  %v9271_v15 = vsel %vm20436_vm8, %v16183_v0, %v9270_v23  ;;  %10125 = vmatpush.bf16.msra.mxu1 %v18313_v33  ;;  %v18296_v10 = vld [vmem:[%s23053_s6 + $0x128] sm:$0xff]  ;;  %10019 = vmatpush.bf16.msrb.mxu0 %v18300_v47  ;;  %v18311_v0 = vld [vmem:[%s23053_s6 + $0x1a0] sm:$0xff] }
 0x744   : > { %9256 = vst [vmem:[#allocation6 + $0xc] sm:$0x3] %v9254_v6  ;;  %10288 = vmatpush.bf16.msra.mxu2 %v18324_v5  ;;  %9900 = vmatpush.bf16.msrb.mxu3 %v18296_v10  ;;  %v18322_v23 = vld [vmem:[%s23053_s6 + $0x1e0] sm:$0xff]  ;;  %v22088_v6 = vld [vmem:[#allocation6 + $0x18] sm:$0xff]  }
 0x745   : > { %19020 = vst [vmem:[#allocation2 + $0x10] sm:$0xff] %v18811_v24   ;;  %v9177_v7 = vpop.f32.mrf.mxu2  ;;  %v9346_v60 = vunpack.c.l.b16 %v22088_v6  ;;  %v9770_v47 = vld [vmem:[#allocation6 + $0x4] sm:$0xf] }
 0x746   : > { %v9187_v18 = vadd.f32 %v9177_v7, %v21878_v16  ;;  %9273 = vst [vmem:[#allocation6 + $0x10] sm:$0x3] %v9271_v15  ;;  %v9314_v15 = vld [vmem:[#allocation6 + $0x1c] sm:$0x1]  ;;  %v10346_v7 = vrot.slane %v22068_v62, 1  ;;  %v9803_v10 = vunpack.c.l.b16 %v9770_v47 }
 0x747   : > { %10126 = vmatpush.bf16.msra.mxu1 %v18312_v26  ;;  %10020 = vmatpush.bf16.msrb.mxu0 %v18299_v58  ;;  %v9347_v52 = vunpack.c.l.b16 %v9314_v15  ;;  %v18345_v58 = vld [vmem:[%s23054_s7 + $0x38] sm:$0xff] }
 0x748   : > { %vm9194_vm0 = vcmp.ge.f32.partialorder %v9187_v18, 0.0  ;;  %v9201_v46 = vmul.f32 0.2, %v9187_v18  ;;  %10289 = vmatpush.bf16.msra.mxu2 %v18323_v57  ;;  %9901 = vmatpush.bf16.msrb.mxu3 %v18295_v38 }
 0x74a   : > { %v9208_v56 = vsel %vm9194_vm0, %v9187_v18, %v9201_v46  ;;  %v18321_v18 = vld [vmem:[%s23053_s6 + $0x1d8] sm:$0xff]  ;;  %v18309_v46 = vld [vmem:[%s23053_s6 + $0x190] sm:$0xff]  ;;  %vm10636_vm0 = vcmp.eq.s32.totalorder %v19306_v54, 9 }
 0x74b   : > { %v9215_v25 = vpack.c.bf16 %v9208_v56, %v9208_v56  ;;  %v22014_v9 = vld [vmem:[#allocation6 + $0x8] sm:$0xff]   ;;  %10127 = vmatpush.bf16.msra.mxu1 %v18311_v0  ;;  %v18320_v56 = vld [vmem:[%s23053_s6 + $0x1d0] sm:$0xff]  ;;  %10564 = vmatpush.bf16.msra.mxu0 %v18345_v58  ;;  %v18334_v58 = vld [vmem:[#allocation5 + $0x4] sm:$0xff] }
 0x74c   : > { %v22017_v16 = vunpack.c.l.b16 %v22014_v9  ;;  %9529 = vmatmul.bf16.gmra.mxu0 %v22014_v9  ;;  %v9566_v3 = vrot.slane %v22014_v9, 1  ;;  %v9360_v14 = vshll.u32 %v22014_v9, 16  ;;  %v9275_v30 = vld [vmem:[#allocation2 + $0x10] sm:$0x3]  ;;  %v9364_v39 = vshrl.u32 %v22014_v9, 16  ;;  %10290 = vmatpush.bf16.msra.mxu2 %v18322_v23  ;;  %v18343_v23 = vld [vmem:[%s23054_s7 + $0x28] sm:$0xff] }
 0x74d   : > { %9222 = vst [vmem:[#allocation2 + $0x18] sm:$0xf] %v9215_v25  ;;  %v9282_v59 = vshrl.u32 %v9275_v30, 16  ;;  %v9179_v32 = vpop.f32.mrf.mxu2  ;;  %v9285_v41 = vshll.u32 %v9275_v30, 16  ;;  %9902 = vmatpush.bf16.msrb.mxu3 %v18294_v12  ;;  %v9351_v25 = vpack.c.b16 %v9347_v52, %v9346_v60  ;;  %v22143_v45 = vld [vmem:[#allocation6 + $0xc] sm:$0xff]   ;;  %v18341_v12 = vld [vmem:[%s23054_s7 + $0x18] sm:$0xff] }
 0x74e   : > { %v9567_v61 = vsel %vm1681_vm13, %v9565_v21, %v9566_v3  ;;  %v9679_v17 = vpack.c.b16 %v22017_v16, %v18816_v27  ;;  %v9362_v2 = vrot.slane %v9360_v14, 1  ;;  %v19073_v27 = vld [vmem:[#allocation6 + $0xc] sm:$0xff]   ;;  %v9463_v14 = vpack.c.b16 %v9346_v60, %v9346_v60 }
 0x74f   : > { %9632 = vmatmul.bf16.vlgmr.msrb.gmra.mxu1 %v9567_v61  ;;  %v9284_v42 = vrot.slane %v9282_v59, 7  ;;  %v18293_v21 = vld [vmem:[%s23053_s6 + $0x110] sm:$0xff]  ;;  %v9376_v30 = vshll.u32 %v9351_v25, 16  ;;  %v9570_v59 = vrot.slane %v9351_v25, 1  ;;  %v9933_v61 = vld [vmem:[#allocation6 + $0x4] sm:$0xe] }
 0x750   : > { %9743 = vmatmul.bf16.vlgmr.msrb.gmra.mxu2 %v9679_v17  ;;  %v9363_v43 = vsel %vm1381_vm12, %v9358_v63, %v9362_v2  ;;  %v22084_v50 = vor.u32 %v9364_v39, %v9362_v2  ;;  %10128 = vmatpush.bf16.msra.mxu1 %v18310_v13  ;;  %v18319_v63 = vld [vmem:[%s23053_s6 + $0x1c8] sm:$0xff]  ;;  %v9955_v5 = vrot.slane %v22143_v45, 1  ;;  %v9380_v19 = vshrl.u32 %v9351_v25, 16  ;;  %v18340_v25 = vld [vmem:[%s23054_s7 + $0x10] sm:$0xff] }
 0x751   : > { %9443 = vmatmul.bf16.vlgmr.msra.gmra.mxu3 %v9363_v43  ;;  %v9287_v28 = vor.u32 %v9285_v41, %v9284_v42  ;;  %10291 = vmatpush.bf16.msra.mxu2 %v18321_v18  ;;  %v9378_v2 = vrot.slane %v9376_v30, 1  ;;  %v18307_v42 = vld [vmem:[%s23053_s6 + $0x180] sm:$0xff]  ;;  %v9811_v39 = vpack.c.b16 %v22017_v16, %v9803_v10  ;;  %v9823_v15 = vshll.u32 %v22143_v45, 16 }
 0x752   : > { %9903 = vmatpush.bf16.msrb.mxu3 %v18293_v21  ;;  %v18318_v41 = vld [vmem:[%s23053_s6 + $0x1c0] sm:$0xff]  ;;  %v10220_v30 = vshll.u32 %v22068_v62, 16 }
 0x753   : > { %v9288_v20 = vsel %vm20436_vm8, %v16184_v35, %v9287_v28  ;;  %v18291_v43 = vld [vmem:[%s23053_s6 + $0x100] sm:$0xff]  ;;  %v9952_v28 = vunpack.c.l.b16 %v9933_v61  ;;  %v9818_v38 = vshll.u32 %v9811_v39, 16 }
 0x754   : > { %9290 = vst [vmem:[#allocation6 + $0x14] sm:$0x3] %v9288_v20  ;;  %10129 = vmatpush.bf16.msra.mxu1 %v18309_v46  ;;  %v9678_v20 = vunpack.c.h.b16 %v22088_v6  ;;  %v9816_v6 = vshrl.u32 %v9811_v39, 16  ;;  %v19128_v21 = vld [vmem:[#allocation6 + $0x1c] sm:$0x10] }
 0x755   : > { %10292 = vmatpush.bf16.msra.mxu2 %v18320_v56  ;;  %v9953_v34 = vpack.c.b16 %v22017_v16, %v9952_v28  ;;  %v18342_v16 = vld [vmem:[%s23054_s7 + $0x20] sm:$0xff]  ;;  %v19126_v56 = vld [vmem:[#allocation6 + $0x1c] sm:$0xf] }
 0x756   : > { %9904 = vmatpush.bf16.msrb.mxu3 %v18292_v31  ;;  %v9682_v57 = vpack.c.b16 %v9678_v20, %v9678_v20  ;;  %v18338_v31 = vld [vmem:[%s23054_s7] sm:$0xff]  ;;  %v18328_v20 = vld [vmem:[%s23053_s6 + $0x210] sm:$0xff] }
 0x757   : > { %v9954_v33 = vrot.slane %v9953_v34, 1  ;;  %v18317_v28 = vld [vmem:[#allocation6 + $0x20] sm:$0x10] }
 0x759   : > { %10293 = vmatpush.bf16.msra.mxu2 %v18319_v63  ;;  %v9956_v26 = vsel %vm1681_vm13, %v9954_v33, %v9955_v5  ;;  %v22180_v63 = vor.u32 %v19128_v21, %v19126_v56 }
 0x75a   : > { %9905 = vmatpush.bf16.msrb.mxu3 %v18291_v43  ;;  %v18330_v43 = vld [vmem:[%s23053_s6 + $0x220] sm:$0xff] }
 0x75b   : > { %v22066_v53 = vld [vmem:[#allocation6 + $0x10] sm:$0xff]  }
 0x75c   : > { %9534 = vmatmul.bf16.gmra.mxu0 %v22066_v53  ;;  %v9568_v44 = vrot.slane %v22066_v53, 1  ;;  %v9368_v40 = vshll.u32 %v22066_v53, 16  ;;  %v22086_v24 = vld [vmem:[#allocation6 + $0x10] sm:$0xff]  ;;  %v18824_v55 = vunpack.c.h.b16 %v22066_v53  ;;  %v9372_v32 = vshrl.u32 %v22066_v53, 16 }
 0x75d   : > { %v10344_v4 = vrot.slane %v22086_v24, 1  ;;  %10294 = vmatpush.bf16.msra.mxu2 %v18318_v41  ;;  %v22155_v0 = vld [vmem:[#allocation6 + $0x14] sm:$0xff]  }
 0x75e   : > { %v9569_v51 = vsel %vm1681_vm13, %v9566_v3, %v9568_v44  ;;  %v9370_v37 = vrot.slane %v9368_v40, 1  ;;  %v18308_v3 = vld [vmem:[%s23053_s6 + $0x188] sm:$0xff]  ;;  %v9571_v11 = vsel %vm1681_vm13, %v9568_v44, %v9570_v59  ;;  %v9681_v35 = vpack.c.b16 %v9346_v60, %v18824_v55  ;;  %v18344_v40 = vld [vmem:[%s23054_s7 + $0x30] sm:$0xff] }
 0x75f   : > { %9637 = vmatmul.bf16.gmra.mxu1 %v9569_v51  ;;  %v22118_v29 = vsel %vm1681_vm13, %v10344_v4, %v10346_v7  ;;  %v9382_v44 = vor.u32 %v9380_v19, %v9378_v2  ;;  %10565 = vmatpush.bf16.msra.mxu0 %v18344_v40  ;;  %v9957_v51 = vrot.slane %v22155_v0, 1  ;;  %v9825_v60 = vrot.slane %v9823_v15, 1  ;;  %v19030_v40 = vld [vmem:[#allocation6 + $0x18] sm:$0xff]  }
 0x760   : > { %9748 = vmatmul.bf16.gmra.mxu2 %v19073_v27  ;;  %v9371_v36 = vsel %vm1381_vm12, %v22084_v50, %v9370_v37  ;;  %10130 = vmatpush.bf16.msra.mxu1 %v18308_v3  ;;  %v9374_v17 = vor.u32 %v9372_v32, %v9370_v37  ;;  %v10212_v27 = vshll.u32 %v22086_v24, 16  ;;  %v9820_v37 = vrot.slane %v9818_v38, 1  ;;  %v18333_v3 = vld [vmem:[%s23053_s6 + $0x238] sm:$0xff] }
 0x761   : > { %9448 = vmatmul.bf16.gmra.mxu3 %v9371_v36  ;;  %v9958_v36 = vsel %vm1681_vm13, %v9955_v5, %v9957_v51  ;;  %v9831_v55 = vshll.u32 %v22155_v0, 16  ;;  %v10216_v32 = vshrl.u32 %v22086_v24, 16  ;;  %v9839_v19 = vshll.u32 %v22180_v63, 16 }
 0x762   : > { %v9379_v22 = vsel %vm1381_vm12, %v9374_v17, %v9378_v2  ;;  %v10214_v13 = vrot.slane %v10212_v27, 1  ;;  %v9821_v18 = vor.u32 %v9820_v37, %v9816_v6  ;;  %10402 = vmatpush.bf16.msra.mxu3 %v18333_v3  ;;  %v10222_v2 = vrot.slane %v10220_v30, 1  ;;  %v10048_v6 = vld [vmem:[#allocation6 + $0x20] sm:$0xf] }
 0x763   : > { %10566 = vmatpush.bf16.msra.mxu0 %v18343_v23  ;;  %v9833_v41 = vrot.slane %v9831_v55, 1  ;;  %v9835_v10 = vshrl.u32 %v22155_v0, 16  ;;  %v9841_v39 = vrot.slane %v9839_v19, 1  ;;  %v18326_v23 = vld [vmem:[%s23053_s6 + $0x200] sm:$0xff] }
 0x764   : > { %10131 = vmatpush.bf16.msra.mxu1 %v18307_v42  ;;  %v10215_v52 = vsel %vm1381_vm12, %v22084_v50, %v10214_v13  ;;  %v9826_v46 = vsel %vm1381_vm12, %v9821_v18, %v9825_v60  ;;  %v18332_v50 = vld [vmem:[%s23053_s6 + $0x230] sm:$0xff]  ;;  %v10218_v17 = vor.u32 %v10216_v32, %v10214_v13  ;;  %v9827_v42 = vshrl.u32 %v22143_v45, 16  ;;  %v18329_v45 = vld [vmem:[%s23053_s6 + $0x218] sm:$0xff]  ;;  %v18335_v0 = vld [vmem:[#allocation5 + $0xc] sm:$0xff] }
 0x765   : > { %v10067_v18 = vunpack.c.l.b16 %v10048_v6  ;;  %v19033_v32 = vld [vmem:[#allocation6 + $0x8] sm:$0xe] }
 0x766   : > { %10403 = vmatpush.bf16.msra.mxu3 %v18332_v50 }
 0x767   : > { %10567 = vmatpush.bf16.msra.mxu0 %v18342_v16  ;;  %v10482_v16 = vshrl.u32 %v18334_v58, 16  ;;  %v10071_v56 = vpack.c.b16 %v10067_v18, %v10067_v18 }
 0x76b   : > { %10568 = vmatpush.bf16.msra.mxu0 %v18341_v12 }
 0x76c   : > { %9539 = vmatmul.bf16.gmra.mxu0 %v9463_v14  ;;  %v9959_v14 = vrot.slane %v22180_v63, 1 }
 0x76e   : > { %v9960_v61 = vsel %vm1681_vm13, %v9957_v51, %v9959_v14  ;;  %v10484_v51 = vshll.u32 %v18334_v58, 16 }
 0x76f   : > { %9642 = vmatmul.bf16.gmra.mxu1 %v9571_v11  ;;  %10569 = vmatpush.bf16.msra.mxu0 %v18340_v25  ;;  %v9829_v11 = vor.u32 %v9827_v42, %v9825_v60  ;;  %v18337_v42 = vld [vmem:[#allocation5 + $0x1c] sm:$0x10] }
 0x770   : > { %9753 = vmatmul.bf16.gmra.mxu2 %v9681_v35  ;;  %v16531_v35 = vld [vmem:[#allocation6 + $0x20] sm:$0xf]  ;;  %v10486_v37 = vrot.slane %v10484_v51, 1 }
 0x771   : > { %9453 = vmatmul.bf16.gmra.mxu3 %v9379_v22  ;;  %v10223_v22 = vsel %vm1381_vm12, %v10218_v17, %v10222_v2  ;;  %v9834_v34 = vsel %vm1381_vm12, %v9829_v11, %v9833_v41  ;;  %v22206_v33 = vor.u32 %v18317_v28, %v16531_v35 }
 0x772   : > { %v10487_v13 = vor.u32 %v10486_v37, %v10482_v16 }
 0x773   : > { %v10228_v5 = vshll.u32 %v22206_v33, 16  ;;  %v10232_v12 = vshrl.u32 %v22206_v33, 16  ;;  %v10348_v28 = vrot.slane %v22206_v33, 1 }
 0x77c   : > { %10021 = vmatmul.bf16.vlgmr.msrb.gmra.mxu0 %v9956_v26  ;;  %v10230_v26 = vrot.slane %v10228_v5, 1 }
 0x77e   : > { %v10234_v21 = vor.u32 %v10232_v12, %v10230_v26 }
 0x77f   : > { %9647 = vmatmul.bf16.gmra.mxu1 %v9570_v59  ;;  %v18331_v59 = vld [vmem:[%s23053_s6 + $0x228] sm:$0xff] }
 0x780   : > { %9758 = vmatmul.bf16.gmra.mxu2 %v9682_v57  ;;  %10404 = vmatpush.bf16.msra.mxu3 %v18331_v59  ;;  %v18327_v57 = vld [vmem:[%s23053_s6 + $0x208] sm:$0xff] }
 0x781   : > { %9458 = vmatmul.bf16.gmra.mxu3 %v9382_v44  ;;  %v9837_v44 = vor.u32 %v9835_v10, %v9833_v41 }
 0x783   : > { %v9842_v27 = vsel %vm1381_vm12, %v9837_v44, %v9841_v39 }
 0x784   : > { %10405 = vmatpush.bf16.msra.mxu3 %v18330_v43 }
 0x788   : > { %10406 = vmatpush.bf16.msra.mxu3 %v18329_v45  ;;  %v10349_v45 = vsel %vm1681_vm13, %v10346_v7, %v10348_v28 }
 0x78c   : > { %10026 = vmatmul.bf16.gmra.mxu0 %v9958_v36  ;;  %10407 = vmatpush.bf16.msra.mxu3 %v18328_v20  ;;  %v10489_v36 = vshll.u32 %v18335_v0, 16 }
 0x78e   : > { %v10491_v60 = vrot.slane %v10489_v36, 1 }
 0x78f   : > { %10132 = vmatmul.bf16.vlgmr.msra.gmra.mxu1 %v22014_v9  ;;  %v18339_v9 = vld [vmem:[%s23054_s7 + $0x8] sm:$0xff]  ;;  %v9525_v15 = vpop.f32.mrf.mxu0 }
 0x790   : > { %10295 = vmatmul.bf16.vlgmr.msra.gmra.mxu2 %v10215_v52  ;;  %10570 = vmatpush.bf16.msra.mxu0 %v18339_v9  ;;  %v9843_v52 = vshrl.u32 %v22180_v63, 16  ;;  %v18336_v9 = vld [vmem:[#allocation5 + $0x14] sm:$0xff] }
 0x791   : > { %9906 = vmatmul.bf16.vlgmr.msrb.gmra.mxu3 %v9826_v46  ;;  %v10492_v46 = vsel %vm1381_vm12, %v10487_v13, %v10491_v60  ;;  %v10497_v50 = vshll.u32 %v18336_v9, 16  ;;  %v10501_v19 = vshrl.u32 %v18336_v9, 16 }
 0x792   : > { %10408 = vmatpush.bf16.msra.mxu3 %v18327_v57  ;;  %v9845_v25 = vor.u32 %v9843_v52, %v9841_v39 }
 0x793   : > { %v10499_v30 = vrot.slane %v10497_v50, 1 }
 0x794   : > { %10571 = vmatpush.bf16.msra.mxu0 %v18338_v31  ;;  %v19032_v31 = vld [vmem:[#allocation6 + $0x8] sm:$0xf0] }
 0x795   : > { %v19034_v63 = vor.u32 %v19033_v32, %v19032_v31  ;;  %v10503_v24 = vor.u32 %v10501_v19, %v10499_v30 }
 0x796   : > { %10409 = vmatpush.bf16.msra.mxu3 %v18326_v23 }
 0x797   : > { %v22229_v3 = vpop.f32.mrf.mxu0  ;;  %v10343_v41 = vrot.slane %v19034_v63, 1 }
 0x799   : > { %v10345_v11 = vsel %vm1681_vm13, %v10343_v41, %v10344_v4 }
 0x79c   : > { %10031 = vmatmul.bf16.gmra.mxu0 %v9960_v61 }
 0x79f   : > { %10137 = vmatmul.bf16.gmra.mxu1 %v22066_v53  ;;  %v10224_v53 = vshrl.u32 %v22068_v62, 16 }
 0x7a0   : > { %10300 = vmatmul.bf16.gmra.mxu2 %v10223_v22 }
 0x7a1   : > { %9911 = vmatmul.bf16.gmra.mxu3 %v9834_v34  ;;  %v10226_v47 = vor.u32 %v10224_v53, %v10222_v2  ;;  %v16627_v2 = vld [vmem:[#allocation5 + $0x1c] sm:$0xf] }
 0x7a2   : > { %v16628_v43 = vor.u32 %v18337_v42, %v16627_v2 }
 0x7a3   : > { %v10231_v38 = vsel %vm1381_vm12, %v10226_v47, %v10230_v26 }
 0x7a4   : > { %v10505_v34 = vshll.u32 %v16628_v43, 16 }
 0x7a6   : > { %v10507_v26 = vrot.slane %v10505_v34, 1 }
 0x7a8   : > { %v10508_v33 = vsel %vm1381_vm12, %v10503_v24, %v10507_v26 }
 0x7ac   : > { %10036 = vmatmul.bf16.gmra.mxu0 %v9959_v14  ;;  %v10493_v14 = vshrl.u32 %v18335_v0, 16 }
 0x7ae   : > { %v10495_v55 = vor.u32 %v10493_v14, %v10491_v60 }
 0x7af   : > { %10142 = vmatmul.bf16.gmra.mxu1 %v19030_v40 }
 0x7b0   : > { %10305 = vmatmul.bf16.gmra.mxu2 %v10231_v38  ;;  %v10500_v61 = vsel %vm1381_vm12, %v10495_v55, %v10499_v30 }
 0x7b1   : > { %9916 = vmatmul.bf16.gmra.mxu3 %v9842_v27  ;;  %v10509_v27 = vshrl.u32 %v16628_v43, 16 }
 0x7b3   : > { %v10511_v37 = vor.u32 %v10509_v27, %v10507_v26 }
 0x7bc   : > { %10572 = vmatmul.bf16.vlgmr.msra.gmra.mxu0 %v10492_v46 }
 0x7bf   : > { %10147 = vmatmul.bf16.gmra.mxu1 %v10071_v56 }
 0x7c0   : > { %10310 = vmatmul.bf16.gmra.mxu2 %v10234_v21 }
 0x7c1   : > { %9921 = vmatmul.bf16.gmra.mxu3 %v9845_v25 }
 0x7c9   : > { %v9530_v59 = vpop.f32.mrf.mxu0 }
 0x7cc   : > { %v9633_v17 = vpop.f32.mrf.mxu1  ;;  %10577 = vmatmul.bf16.gmra.mxu0 %v10500_v61 }
 0x7d1   : > { %v22235_v35 = vpop.f32.mrf.mxu0  ;;  %10410 = vmatmul.bf16.vlgmr.msra.gmra.mxu3 %v10345_v11 }
 0x7d3   : > { %v9744_v22 = vpop.f32.mrf.mxu2 }
 0x7d4   : > { %v9444_v20 = vpop.f32.mrf.mxu3  ;;  %v22241_v53 = vpop.f32.mrf.mxu1 }
 0x7d5   : > { %v9526_v5 = vadd.f32 %v9525_v15, %v9444_v20 }
 0x7d7   : > { %v9652_v47 = vadd.f32 %v9633_v17, %v9526_v5 }
 0x7d9   : > { %v9535_v4 = vpop.f32.mrf.mxu0  ;;  %v9763_v57 = vadd.f32 %v9744_v22, %v9652_v47 }
 0x7db   : > { %v22243_v10 = vpop.f32.mrf.mxu2 }
 0x7dc   : > { %v22246_v58 = vpop.f32.mrf.mxu3  ;;  %v9638_v44 = vpop.f32.mrf.mxu1  ;;  %10582 = vmatmul.bf16.gmra.mxu0 %v10508_v33 }
 0x7e1   : > { %v22248_v62 = vpop.f32.mrf.mxu0  ;;  %10415 = vmatmul.bf16.gmra.mxu3 %v22118_v29 }
 0x7e3   : > { %v9749_v7 = vpop.f32.mrf.mxu2 }
 0x7e4   : > { %v9449_v39 = vpop.f32.mrf.mxu3  ;;  %v22251_v40 = vpop.f32.mrf.mxu1 }
 0x7e5   : > { %v9531_v23 = vadd.f32 %v9530_v59, %v9449_v39 }
 0x7e7   : > { %v9654_v38 = vadd.f32 %v9638_v44, %v9531_v23 }
 0x7e9   : > { %v9540_v51 = vpop.f32.mrf.mxu0  ;;  %v9765_v0 = vadd.f32 %v9749_v7, %v9654_v38 }
 0x7eb   : > { %v22253_v16 = vpop.f32.mrf.mxu2 }
 0x7ec   : > { %v22255_v6 = vpop.f32.mrf.mxu3  ;;  %v9643_v15 = vpop.f32.mrf.mxu1  ;;  %10587 = vmatmul.bf16.gmra.mxu0 %v10511_v37 }
 0x7f1   : > { %v9542_v36 = vpop.f32.mrf.mxu0  ;;  %10420 = vmatmul.bf16.gmra.mxu3 %v10349_v45 }
 0x7f3   : > { %v9754_v13 = vpop.f32.mrf.mxu2 }
 0x7f4   : > { %v9454_v29 = vpop.f32.mrf.mxu3  ;;  %v22257_v18 = vpop.f32.mrf.mxu1 }
 0x7f5   : > { %v9536_v12 = vadd.f32 %v9535_v4, %v9454_v29 }
 0x7f7   : > { %v9656_v60 = vadd.f32 %v9643_v15, %v9536_v12 }
 0x7f9   : > { %v10022_v52 = vpop.f32.mrf.mxu0  ;;  %v9767_v46 = vadd.f32 %v9754_v13, %v9656_v60 }
 0x7fb   : > { %v22259_v56 = vpop.f32.mrf.mxu2 }
 0x7fc   : > { %v22261_v21 = vpop.f32.mrf.mxu3  ;;  %v9648_v25 = vpop.f32.mrf.mxu1 }
 0x801   : > { %v22263_v9 = vpop.f32.mrf.mxu0  ;;  %10425 = vmatmul.bf16.gmra.mxu3 %v10348_v28 }
 0x803   : > { %v9759_v50 = vpop.f32.mrf.mxu2 }
 0x804   : > { %v9459_v14 = vpop.f32.mrf.mxu3  ;;  %v9650_v30 = vpop.f32.mrf.mxu1 }
 0x805   : > { %v9541_v31 = vadd.f32 %v9540_v51, %v9459_v14 }
 0x807   : > { %v9658_v59 = vadd.f32 %v9648_v25, %v9541_v31 }
 0x809   : > { %v10027_v55 = vpop.f32.mrf.mxu0  ;;  %v9769_v32 = vadd.f32 %v9759_v50, %v9658_v59 }
 0x80b   : > { %v9761_v63 = vpop.f32.mrf.mxu2 }
 0x80c   : > { %v9461_v61 = vpop.f32.mrf.mxu3  ;;  %v10133_v17 = vpop.f32.mrf.mxu1 }
 0x811   : > { %v22265_v2 = vpop.f32.mrf.mxu0 }
 0x813   : > { %v10296_v42 = vpop.f32.mrf.mxu2 }
 0x814   : > { %v9907_v41 = vpop.f32.mrf.mxu3  ;;  %v10135_v43 = vpop.f32.mrf.mxu1 }
 0x815   : > { %v9926_v11 = vadd.f32 %v9907_v41, %v9763_v57 }
 0x817   : > { %v10041_v22 = vadd.f32 %v10022_v52, %v9926_v11 }
 0x819   : > { %v10032_v34 = vpop.f32.mrf.mxu0  ;;  %v10152_v45 = vadd.f32 %v10133_v17, %v10041_v22 }
 0x81b   : > { %v10298_v28 = vpop.f32.mrf.mxu2  ;;  %v10315_v20 = vadd.f32 %v10296_v42, %v10152_v45 }
 0x81c   : > { %v9909_v5 = vpop.f32.mrf.mxu3  ;;  %v10138_v19 = vpop.f32.mrf.mxu1 }
 0x821   : > { %v22267_v47 = vpop.f32.mrf.mxu0 }
 0x823   : > { %v10301_v24 = vpop.f32.mrf.mxu2 }
 0x824   : > { %v9912_v26 = vpop.f32.mrf.mxu3  ;;  %v22269_v4 = vpop.f32.mrf.mxu1 }
 0x825   : > { %v9928_v33 = vadd.f32 %v9912_v26, %v9765_v0  ;;  %v9533_v26 = vadd.f32 %v22235_v35, %v22255_v6 }
 0x827   : > { %v10043_v44 = vadd.f32 %v10027_v55, %v9928_v33  ;;  %v9528_v55 = vadd.f32 %v22229_v3, %v22246_v58 }
 0x829   : > { %v10037_v7 = vpop.f32.mrf.mxu0  ;;  %v10154_v39 = vadd.f32 %v10138_v19, %v10043_v44 }
 0x82b   : > { %v10303_v23 = vpop.f32.mrf.mxu2  ;;  %v10317_v38 = vadd.f32 %v10301_v24, %v10154_v39 }
 0x82c   : > { %v9914_v57 = vpop.f32.mrf.mxu3  ;;  %v10143_v51 = vpop.f32.mrf.mxu1 }
 0x831   : > { %v10039_v27 = vpop.f32.mrf.mxu0 }
 0x833   : > { %v10306_v37 = vpop.f32.mrf.mxu2 }
 0x834   : > { %v9917_v15 = vpop.f32.mrf.mxu3  ;;  %v22271_v36 = vpop.f32.mrf.mxu1 }
 0x835   : > { %v9930_v13 = vadd.f32 %v9917_v15, %v9767_v46  ;;  %v9653_v46 = vadd.f32 %v22241_v53, %v9528_v55 }
 0x837   : > { %v10045_v29 = vadd.f32 %v10032_v34, %v9930_v13  ;;  %v9764_v22 = vadd.f32 %v22243_v10, %v9653_v46 }
 0x839   : > { %v10156_v12 = vadd.f32 %v10143_v51, %v10045_v29  ;;  %v10573_v60 = vpop.f32.mrf.mxu0  ;;  %v9927_v34 = vadd.f32 %v9909_v5, %v9764_v22 }
 0x83b   : > { %v22273_v52 = vadd.f32 %v10306_v37, %v10156_v12  ;;  %v22275_v25 = vpop.f32.mrf.mxu2  ;;  %v10042_v19 = vadd.f32 %v22263_v9, %v9927_v34 }
 0x83c   : > { %v9919_v0 = vpop.f32.mrf.mxu3  ;;  %v10148_v50 = vpop.f32.mrf.mxu1 }
 0x83d   : > { %v10153_v58 = vadd.f32 %v10135_v43, %v10042_v19 }
 0x83f   : > { %v10316_v44 = vadd.f32 %v10298_v28, %v10153_v58  ;;  %v9538_v28 = vadd.f32 %v22248_v62, %v22261_v21 }
 0x841   : > { %v10575_v14 = vpop.f32.mrf.mxu0 }
 0x843   : > { %v22277_v30 = vpop.f32.mrf.mxu2 }
 0x844   : > { %v9922_v31 = vpop.f32.mrf.mxu3  ;;  %v10150_v59 = vpop.f32.mrf.mxu1 }
 0x845   : > { %v9932_v63 = vadd.f32 %v9922_v31, %v9769_v32  ;;  %v9655_v32 = vadd.f32 %v22251_v40, %v9533_v26 }
 0x847   : > { %v10047_v61 = vadd.f32 %v10037_v7, %v9932_v63  ;;  %v9766_v39 = vadd.f32 %v22253_v16, %v9655_v32 }
 0x849   : > { %v22282_v17 = vadd.f32 %v10148_v50, %v10047_v61  ;;  %v10578_v42 = vpop.f32.mrf.mxu0  ;;  %v9929_v10 = vadd.f32 %v9914_v57, %v9766_v39  ;;  %v9657_v57 = vadd.f32 %v22257_v18, %v9538_v28 }
 0x84b   : > { %v10313_v41 = vpop.f32.mrf.mxu2  ;;  %v10044_v35 = vadd.f32 %v22265_v2, %v9929_v10  ;;  %v9768_v50 = vadd.f32 %v22259_v56, %v9657_v57 }
 0x84c   : > { %v9924_v11 = vpop.f32.mrf.mxu3 }
 0x84d   : > { %v10155_v16 = vadd.f32 %v22269_v4, %v10044_v35 }
 0x84f   : > { %v10318_v12 = vadd.f32 %v10303_v23, %v10155_v16 }
 0x851   : > { %v10580_v45 = vpop.f32.mrf.mxu0 }
 0x854   : > { %v10411_v24 = vpop.f32.mrf.mxu3 }
 0x855   : > { %v10430_v3 = vadd.f32 %v10411_v24, %v10315_v20 }
 0x857   : > { %v10592_v33 = vadd.f32 %v10573_v60, %v10430_v3 }
 0x859   : > { %v10583_v53 = vpop.f32.mrf.mxu0  ;;  %v10606_v5 = vmul.f32 0.2, %v10592_v33  ;;  %vm10599_vm1 = vcmp.ge.f32.partialorder %v10592_v33, 0.0 }
 0x85b   : > { %v10613_v6 = vsel %vm10599_vm1, %v10592_v33, %v10606_v5  ;;  %vm10637_vm1 = vmor %vm10635_vm15, %vm10636_vm0 }
 0x85c   : > { %v10413_v7 = vpop.f32.mrf.mxu3 }
 0x85d   : > { %v10431_v51 = vadd.f32 %v10413_v7, %v10316_v44 }
 0x85f   : > { %v10593_v27 = vadd.f32 %v10575_v14, %v10431_v51  ;;  %v9931_v14 = vadd.f32 %v9919_v0, %v9768_v50 }
 0x861   : > { %vm10600_vm3 = vcmp.ge.f32.partialorder %v10593_v27, 0.0  ;;  %v10607_v9 = vmul.f32 0.2, %v10593_v27  ;;  %v10585_v37 = vpop.f32.mrf.mxu0  ;;  %v10046_v21 = vadd.f32 %v22267_v47, %v9931_v14  ;;  %v10321_v47 = vadd.f32 %v22277_v30, %v22282_v17 }
 0x863   : > { %v10614_v43 = vsel %vm10600_vm3, %v10593_v27, %v10607_v9  ;;  %v10157_v23 = vadd.f32 %v22271_v36, %v10046_v21  ;;  %vm10638_vm3 = vcmp.lt.s32.totalorder %v19303_v48, 2 }
 0x864   : > { %v18844_v20 = vpack.c.bf16 %v10614_v43, %v10613_v6  ;;  %v10416_v40 = vpop.f32.mrf.mxu3  ;;  %vm10639_vm10 = vmand %vm10637_vm1, %vm10638_vm3 }
 0x865   : > { %v10432_v15 = vadd.f32 %v10416_v40, %v10317_v38  ;;  %v10320_v56 = vadd.f32 %v22275_v25, %v10157_v23  ;;  %v18373_v40 = vld [vmem:[%s23055_s8 + $0xb8] sm:$0xff]  ;;  %v10640_v48 = vsel %vm10639_vm10, 0.25, %v19156_v8 }
 0x866   : > { %18845 = vst [vmem:[#allocation2] sm:$0xff] %v18844_v20   ;;  %11070 = vmatpush.bf16.msrb.mxu3 %v18373_v40  ;;  %v18397_v40 = vld [vmem:[%s23055_s8 + $0x178] sm:$0xff] }
 0x867   : > { %v10594_v29 = vadd.f32 %v10578_v42, %v10432_v15 }
 0x869   : > { %v10588_v13 = vpop.f32.mrf.mxu0  ;;  %v10608_v31 = vmul.f32 0.2, %v10594_v29  ;;  %vm10601_vm4 = vcmp.ge.f32.partialorder %v10594_v29, 0.0 }
 0x86b   : > { %v10615_v38 = vsel %vm10601_vm4, %v10594_v29, %v10608_v31 }
 0x86c   : > { %v10418_v60 = vpop.f32.mrf.mxu3 }
 0x86d   : > { %v10433_v2 = vadd.f32 %v10418_v60, %v10318_v12  ;;  %v16663_v3 = vld [vmem:[#allocation2] sm:$0x8]  ;;  %v18346_v58 = vld [vmem:[#allocation2] sm:$0xf0] }
 0x86e   : > { %v16664_v51 = vor.u32 %v18346_v58, %v16663_v3  ;;  %v18352_v3 = vld [vmem:[%s23055_s8 + $0x10] sm:$0xff]  ;;  %v18371_v58 = vld [vmem:[%s23055_s8 + $0xa8] sm:$0xff] }
 0x86f   : > { %v10595_v59 = vadd.f32 %v10580_v45, %v10433_v2 }
 0x870   : > { %v10661_v27 = vshrl.u32 %v16664_v51, 16  ;;  %v10664_v9 = vshll.u32 %v16664_v51, 16  ;;  %v18350_v51 = vld [vmem:[%s23055_s8] sm:$0xff] }
 0x871   : > { %vm10602_vm5 = vcmp.ge.f32.partialorder %v10595_v59, 0.0  ;;  %v10609_v55 = vmul.f32 0.2, %v10595_v59  ;;  %v10590_v62 = vpop.f32.mrf.mxu0 }
 0x872   : > { %v10663_v15 = vrot.slane %v10661_v27, 3  ;;  %v10666_v16 = vrot.slane %v10664_v9, 4  ;;  %v18368_v27 = vld [vmem:[%s23055_s8 + $0x90] sm:$0xff] }
 0x873   : > { %v10616_v4 = vsel %vm10602_vm5, %v10595_v59, %v10609_v55  ;;  %v18376_v9 = vld [vmem:[%s23055_s8 + $0xd0] sm:$0xff] }
 0x874   : > { %v18849_v63 = vpack.c.bf16 %v10616_v4, %v10615_v38  ;;  %v10421_v18 = vpop.f32.mrf.mxu3  ;;  %v10667_v31 = vor.u32 %v10666_v16, %v10663_v15  ;;  %v18374_v15 = vld [vmem:[%s23055_s8 + $0xc0] sm:$0xff] }
 0x875   : > { %v10434_v61 = vadd.f32 %v10421_v18, %v22273_v52  ;;  %v10641_v18 = vpack.c.bf16 %v10640_v48, %v10640_v48  ;;  %v18358_v16 = vld [vmem:[%s23055_s8 + $0x40] sm:$0xff] }
 0x876   : > { %19035 = vst [vmem:[#allocation2 + $0x8] sm:$0xff] %v18849_v63  }
 0x877   : > { %v10596_v0 = vadd.f32 %v10583_v53, %v10434_v61 }
 0x879   : > { %v10610_v41 = vmul.f32 0.2, %v10596_v0  ;;  %vm10603_vm6 = vcmp.ge.f32.partialorder %v10596_v0, 0.0 }
 0x87b   : > { %v10617_v34 = vsel %vm10603_vm6, %v10596_v0, %v10610_v41 }
 0x87c   : > { %v10423_v46 = vpop.f32.mrf.mxu3 }
 0x87d   : > { %v10435_v42 = vadd.f32 %v10423_v46, %v10320_v56  ;;  %v18347_v26 = vld [vmem:[#allocation2 + $0x8] sm:$0xff] }
 0x87e   : > { %v10669_v7 = vshrl.u32 %v18347_v26, 16  ;;  %v10672_v39 = vshll.u32 %v18347_v26, 16  ;;  %v18348_v20 = vld [vmem:[#allocation2 + $0x8] sm:$0xf0]  ;;  %v18364_v26 = vld [vmem:[%s23055_s8 + $0x70] sm:$0xff] }
 0x87f   : > { %v10597_v11 = vadd.f32 %v10585_v37, %v10435_v42  ;;  %v16672_v37 = vld [vmem:[#allocation2 + $0x8] sm:$0x8] }
 0x880   : > { %v10671_v10 = vrot.slane %v10669_v7, 3  ;;  %v10674_v5 = vrot.slane %v10672_v39, 4  ;;  %v18378_v7 = vld [vmem:[%s23055_s8 + $0xe0] sm:$0xff] }
 0x881   : > { %vm10604_vm7 = vcmp.ge.f32.partialorder %v10597_v11, 0.0  ;;  %v10611_v22 = vmul.f32 0.2, %v10597_v11  ;;  %v18362_v39 = vld [vmem:[%s23055_s8 + $0x60] sm:$0xff] }
 0x882   : > { %v10675_v54 = vor.u32 %v10674_v5, %v10671_v10  ;;  %v18361_v10 = vld [vmem:[%s23055_s8 + $0x58] sm:$0xff]  ;;  %v22383_v5 = vld [vmem:[#allocation7] sm:$0xff]  }
 0x883   : > { %v10618_v45 = vsel %vm10604_vm7, %v10597_v11, %v10611_v22  ;;  %v18357_v11 = vld [vmem:[%s23055_s8 + $0x38] sm:$0xff] }
 0x884   : > { %v18854_v19 = vpack.c.bf16 %v10618_v45, %v10617_v34  ;;  %v10426_v24 = vpop.f32.mrf.mxu3  ;;  %v10676_v63 = vsel %vm7812_vm9, %v10667_v31, %v10675_v54  ;;  %v18355_v34 = vld [vmem:[%s23055_s8 + $0x28] sm:$0xff]  ;;  %v18354_v45 = vld [vmem:[%s23055_s8 + $0x20] sm:$0xff]  ;;  %v18393_v31 = vld [vmem:[%s23055_s8 + $0x158] sm:$0xff] }
 0x885   : > { %v10436_v36 = vadd.f32 %v10426_v24, %v10321_v47  ;;  %v18356_v47 = vld [vmem:[%s23055_s8 + $0x30] sm:$0xff]  ;;  %v18365_v24 = vld [vmem:[%s23055_s8 + $0x78] sm:$0xff] }
 0x886   : > { %19036 = vst [vmem:[#allocation2 + $0x10] sm:$0xff] %v18854_v19   ;;  %v18381_v19 = vld [vmem:[%s23055_s8 + $0xf8] sm:$0xff]  ;;  %10895 = vmatpush.bf16.msrb.mxu2 %v18365_v24 }
 0x887   : > { %v10598_v52 = vadd.f32 %v10588_v13, %v10436_v36  ;;  %v16673_v13 = vor.u32 %v18348_v20, %v16672_v37  ;;  %v18353_v36 = vld [vmem:[%s23055_s8 + $0x18] sm:$0xff]  ;;  %11172 = vmatpush.bf16.msrb.mxu0 %v18381_v19  ;;  %v18360_v37 = vld [vmem:[%s23055_s8 + $0x50] sm:$0xff]  ;;  %v18359_v20 = vld [vmem:[%s23055_s8 + $0x48] sm:$0xff] }
 0x889   : > { %vm10605_vm11 = vcmp.ge.f32.partialorder %v10598_v52, 0.0  ;;  %v10612_v25 = vmul.f32 0.2, %v10598_v52  ;;  %v10725_v59 = vshrl.u32 %v16673_v13, 16  ;;  %v10728_v55 = vshll.u32 %v16673_v13, 16 }
 0x88a   : > { %10896 = vmatpush.bf16.msrb.mxu2 %v18364_v26 }
 0x88b   : > { %v10619_v32 = vsel %vm10605_vm11, %v10598_v52, %v10612_v25  ;;  %v10727_v46 = vrot.slane %v10725_v59, 3  ;;  %v10730_v42 = vrot.slane %v10728_v55, 4  ;;  %v18372_v52 = vld [vmem:[%s23055_s8 + $0xb0] sm:$0xff]  ;;  %v18859_v59 = vunpack.c.h.b16 %v22383_v5 }
 0x88c   : > { %v10626_v53 = vpack.c.bf16 %v10619_v32, %v10619_v32  ;;  %v10428_v33 = vpop.f32.mrf.mxu3  ;;  %v18380_v25 = vld [vmem:[%s23055_s8 + $0xf0] sm:$0xff]  ;;  %11071 = vmatpush.bf16.msrb.mxu3 %v18372_v52  ;;  %v18379_v32 = vld [vmem:[%s23055_s8 + $0xe8] sm:$0xff] }
 0x88d   : > { %v10646_v44 = vld [vmem:[#allocation2 + $0x10] sm:$0xf]  ;;  %v10731_v41 = vor.u32 %v10730_v42, %v10727_v46  ;;  %11173 = vmatpush.bf16.msrb.mxu0 %v18380_v25  ;;  %v18351_v33 = vld [vmem:[%s23055_s8 + $0x8] sm:$0xff] }
 0x88e   : > { %10633 = vst [vmem:[#allocation2 + $0x18] sm:$0xf] %v10626_v53  ;;  %v10656_v30 = vunpack.c.l.b16 %v10646_v44  ;;  %v18349_v43 = vld [vmem:[#allocation2 + $0x10] sm:$0xff]  ;;  %v18363_v53 = vld [vmem:[%s23055_s8 + $0x68] sm:$0xff]  ;;  %v18370_v44 = vld [vmem:[%s23055_s8 + $0xa0] sm:$0xff] }
 0x88f   : > { %v10733_v60 = vshrl.u32 %v18349_v43, 16  ;;  %v10736_v50 = vshll.u32 %v18349_v43, 16  ;;  %10897 = vmatpush.bf16.msrb.mxu2 %v18363_v53  ;;  %v18391_v42 = vld [vmem:[%s23055_s8 + $0x148] sm:$0xff] }
 0x890   : > { %v10659_v17 = vpack.c.b16 %v10656_v30, %v10656_v30  ;;  %11072 = vmatpush.bf16.msrb.mxu3 %v18371_v58  ;;  %v18369_v30 = vld [vmem:[%s23055_s8 + $0x98] sm:$0xff] }
 0x891   : > { %v10735_v62 = vrot.slane %v10733_v60, 3  ;;  %v10738_v21 = vrot.slane %v10736_v50, 4  ;;  %11174 = vmatpush.bf16.msrb.mxu0 %v18379_v32  ;;  %v18405_v60 = vld [vmem:[%s23055_s8 + $0x1b8] sm:$0xff]  ;;  %v18390_v32 = vld [vmem:[%s23055_s8 + $0x140] sm:$0xff] }
 0x892   : > { %v10678_v35 = vshrl.u32 %v10659_v17, 16  ;;  %v10681_v6 = vshll.u32 %v10659_v17, 16  ;;  %v18377_v17 = vld [vmem:[%s23055_s8 + $0xd8] sm:$0xff] }
 0x893   : > { %v10739_v56 = vor.u32 %v10738_v21, %v10735_v62  ;;  %10898 = vmatpush.bf16.msrb.mxu2 %v18362_v39  ;;  %v18404_v62 = vld [vmem:[%s23055_s8 + $0x1b0] sm:$0xff]  ;;  %v10788_v58 = vld [vmem:[#allocation7 + $0x14] sm:$0x1] }
 0x894   : > { %v10680_v1 = vrot.slane %v10678_v35, 3  ;;  %v10683_v28 = vrot.slane %v10681_v6, 4  ;;  %11073 = vmatpush.bf16.msrb.mxu3 %v18370_v44  ;;  %v18367_v35 = vld [vmem:[%s23055_s8 + $0x88] sm:$0xff]  ;;  %v18414_v21 = vld [vmem:[%s23055_s8 + $0x1f0] sm:$0xff]  ;;  %v18411_v44 = vld [vmem:[%s23055_s8 + $0x1d8] sm:$0xff] }
 0x895   : > { %v10710_v57 = vld [vmem:[#allocation2 + $0x18] sm:$0xf]  ;;  %v10740_v22 = vsel %vm7812_vm9, %v10731_v41, %v10739_v56  ;;  %11175 = vmatpush.bf16.msrb.mxu0 %v18378_v7  ;;  %v18375_v6 = vld [vmem:[%s23055_s8 + $0xc8] sm:$0xff] }
 0x896   : > { %v10684_v29 = vor.u32 %v10683_v28, %v10680_v1  ;;  %v10720_v12 = vunpack.c.l.b16 %v10710_v57  ;;  %v18396_v28 = vld [vmem:[%s23055_s8 + $0x170] sm:$0xff]  ;;  %v18395_v57 = vld [vmem:[%s23055_s8 + $0x168] sm:$0xff]  ;;  %v18385_v7 = vld [vmem:[%s23055_s8 + $0x118] sm:$0xff] }
 0x897   : > { %10899 = vmatpush.bf16.msrb.mxu2 %v18361_v10  ;;  %v18384_v10 = vld [vmem:[%s23055_s8 + $0x110] sm:$0xff] }
 0x898   : > { %v10685_v2 = vsel %vm7812_vm9, %v10675_v54, %v10684_v29  ;;  %v10723_v14 = vpack.c.b16 %v10720_v12, %v10720_v12  ;;  %11074 = vmatpush.bf16.msrb.mxu3 %v18369_v30  ;;  %v18366_v54 = vld [vmem:[%s23055_s8 + $0x80] sm:$0xff]  ;;  %v10993_v29 = vld [vmem:[#allocation7] sm:$0xe]  ;;  %v18400_v30 = vld [vmem:[%s23055_s8 + $0x190] sm:$0xff] }
 0x899   : > { %10697 = vmatpush.bf16.msrb.mxu1 %v10685_v2  ;;  %11176 = vmatpush.bf16.msrb.mxu0 %v18377_v17  ;;  %v18394_v12 = vld [vmem:[%s23055_s8 + $0x160] sm:$0xff]  ;;  %v18415_v2 = vld [vmem:[%s23055_s8 + $0x1f8] sm:$0xff]  ;;  %v11012_v55 = vunpack.c.l.b16 %v10993_v29  ;;  %v18410_v17 = vld [vmem:[%s23055_s8 + $0x1d0] sm:$0xff] }
 0x89a   : > { %v10742_v38 = vshrl.u32 %v10723_v14, 16  ;;  %v10745_v4 = vshll.u32 %v10723_v14, 16  ;;  %v18389_v14 = vld [vmem:[%s23055_s8 + $0x138] sm:$0xff] }
 0x89b   : > { %10900 = vmatpush.bf16.msrb.mxu2 %v18360_v37 }
 0x89c   : > { %v10744_v23 = vrot.slane %v10742_v38, 3  ;;  %v10747_v61 = vrot.slane %v10745_v4, 4  ;;  %11075 = vmatpush.bf16.msrb.mxu3 %v18368_v27  ;;  %v18388_v38 = vld [vmem:[%s23055_s8 + $0x130] sm:$0xff]  ;;  %v10824_v4 = vshll.u32 %v22383_v5, 16  ;;  %v18399_v27 = vld [vmem:[%s23055_s8 + $0x188] sm:$0xff] }
 0x89d   : > { %10698 = vmatpush.bf16.msrb.mxu1 %v10676_v63  ;;  %11177 = vmatpush.bf16.msrb.mxu0 %v18376_v9  ;;  %v18392_v63 = vld [vmem:[%s23055_s8 + $0x150] sm:$0xff]  ;;  %v18409_v9 = vld [vmem:[%s23055_s8 + $0x1c8] sm:$0xff] }
 0x89e   : > { %v10748_v0 = vor.u32 %v10747_v61, %v10744_v23  ;;  %v18403_v23 = vld [vmem:[%s23055_s8 + $0x1a8] sm:$0xff]  ;;  %v10826_v46 = vrot.slane %v10824_v4, 1 }
 0x89f   : > { %10901 = vmatpush.bf16.msrb.mxu2 %v18359_v20  ;;  %v18413_v61 = vld [vmem:[%s23055_s8 + $0x1e8] sm:$0xff] }
 0x8a0   : > { %16669 = vmatmul.msk.bf16.vlgmr.msrb.gmra.mxu1 %vm1052_vm2, %v10641_v18  ;;  %v10749_v8 = vsel %vm7812_vm9, %v10739_v56, %v10748_v0  ;;  %11076 = vmatpush.bf16.msrb.mxu3 %v18367_v35  ;;  %v18387_v56 = vld [vmem:[%s23055_s8 + $0x128] sm:$0xff]  ;;  %v10822_v0 = vshrl.u32 %v22383_v5, 16 }
 0x8a1   : > { %10758 = vmatpush.bf16.msra.mxu1 %v10749_v8  ;;  %11178 = vmatpush.bf16.msrb.mxu0 %v18375_v6  ;;  %v18383_v6 = vld [vmem:[%s23055_s8 + $0x108] sm:$0xff] }
 0x8a2   : > { %v10827_v19 = vor.u32 %v10826_v46, %v10822_v0  ;;  %v18422_v46 = vld [vmem:[%s23055_s8 + $0x230] sm:$0xff] }
 0x8a3   : > { %10902 = vmatpush.bf16.msrb.mxu2 %v18358_v16  ;;  %v11340_v16 = vld [vmem:[#allocation7 + $0x4] sm:$0xe] }
 0x8a4   : > { %11077 = vmatpush.bf16.msrb.mxu3 %v18366_v54 }
 0x8a5   : > { %10759 = vmatpush.bf16.msra.mxu1 %v10740_v22  ;;  %11179 = vmatpush.bf16.msrb.mxu0 %v18374_v15 }
 0x8a7   : > { %11312 = vmatpush.bf16.msra.mxu2 %v18389_v14 }
 0x8a8   : > { %11519 = vmatpush.bf16.msra.mxu3 %v18405_v60 }
 0x8a9   : > { %10970 = vmatpush.bf16.msrb.mxu1 %v18357_v11  ;;  %11659 = vmatpush.bf16.msra.mxu0 %v18415_v2  ;;  %v18402_v11 = vld [vmem:[%s23055_s8 + $0x1a0] sm:$0xff] }
 0x8ab   : > { %11313 = vmatpush.bf16.msra.mxu2 %v18388_v38 }
 0x8ac   : > { %11520 = vmatpush.bf16.msra.mxu3 %v18404_v62 }
 0x8ad   : > { %10971 = vmatpush.bf16.msrb.mxu1 %v18356_v47  ;;  %11660 = vmatpush.bf16.msra.mxu0 %v18414_v21  ;;  %v18412_v47 = vld [vmem:[%s23055_s8 + $0x1e0] sm:$0xff] }
 0x8af   : > { %11314 = vmatpush.bf16.msra.mxu2 %v18387_v56  ;;  %v22533_v56 = vld [vmem:[#allocation7 + $0x10] sm:$0xff] }
 0x8b0   : > { %16678 = vmatmul.msk.bf16.vlgmr.msra.gmra.mxu1 %vm1052_vm2, %v10641_v18  ;;  %v11013_v18 = vpack.c.b16 %v18859_v59, %v11012_v55  ;;  %11521 = vmatpush.bf16.msra.mxu3 %v18403_v23  ;;  %v11200_v55 = vld [vmem:[#allocation7 + $0x4] sm:$0xf]  ;;  %v19132_v23 = vld [vmem:[#allocation7 + $0x14] sm:$0x10] }
 0x8b1   : > { %10972 = vmatpush.bf16.msrb.mxu1 %v18355_v34  ;;  %11661 = vmatpush.bf16.msra.mxu0 %v18413_v61  ;;  %v11229_v38 = vunpack.c.l.b16 %v11200_v55  ;;  %v18423_v61 = vld [vmem:[%s23055_s8 + $0x238] sm:$0xff] }
 0x8b2   : > { %v11014_v41 = vrot.slane %v11013_v18, 1  ;;  %v19130_v18 = vld [vmem:[#allocation7 + $0x14] sm:$0xf] }
 0x8b3   : > { %v19098_v0 = vor.u32 %v19132_v23, %v19130_v18 }
 0x8b4   : > { %11522 = vmatpush.bf16.msra.mxu3 %v18402_v11  ;;  %v18421_v11 = vld [vmem:[%s23055_s8 + $0x228] sm:$0xff] }
 0x8b5   : > { %10973 = vmatpush.bf16.msrb.mxu1 %v18354_v45  ;;  %11662 = vmatpush.bf16.msra.mxu0 %v18412_v47 }
 0x8b9   : > { %10974 = vmatpush.bf16.msrb.mxu1 %v18353_v36  ;;  %v18386_v36 = vld [vmem:[%s23055_s8 + $0x120] sm:$0xff]  ;;  %11663 = vmatpush.bf16.msra.mxu0 %v18411_v44  ;;  %v18418_v44 = vld [vmem:[%s23055_s8 + $0x210] sm:$0xff] }
 0x8ba   : > { %11315 = vmatpush.bf16.msra.mxu2 %v18386_v36  ;;  %v18420_v36 = vld [vmem:[%s23055_s8 + $0x220] sm:$0xff] }
 0x8bd   : > { %10975 = vmatpush.bf16.msrb.mxu1 %v18352_v3  ;;  %v10771_v3 = vld [vmem:[#allocation7 + $0x10] sm:$0xff]   ;;  %11664 = vmatpush.bf16.msra.mxu0 %v18410_v17 }
 0x8be   : > { %v10816_v39 = vunpack.c.l.b16 %v10771_v3  ;;  %11316 = vmatpush.bf16.msra.mxu2 %v18385_v7  ;;  %v11597_v7 = vshrl.u32 %v22533_v56, 16 }
 0x8c0   : > { %v10918_v35 = vpack.c.b16 %v10816_v39, %v10816_v39 }
 0x8c1   : > { %10976 = vmatpush.bf16.msrb.mxu1 %v18351_v33  ;;  %v18401_v33 = vld [vmem:[%s23055_s8 + $0x198] sm:$0xff]  ;;  %11665 = vmatpush.bf16.msra.mxu0 %v18409_v9 }
 0x8c2   : > { %11523 = vmatpush.bf16.msra.mxu3 %v18401_v33  ;;  %11317 = vmatpush.bf16.msra.mxu2 %v18384_v10  ;;  %v18419_v33 = vld [vmem:[%s23055_s8 + $0x218] sm:$0xff] }
 0x8c5   : > { %10977 = vmatpush.bf16.msrb.mxu1 %v18350_v51  ;;  %v10817_v51 = vunpack.c.l.b16 %v10788_v58 }
 0x8c6   : > { %11524 = vmatpush.bf16.msra.mxu3 %v18400_v30  ;;  %11318 = vmatpush.bf16.msra.mxu2 %v18383_v6 }
 0x8c8   : > { %10978 = vmatmul.bf16.vlgmr.msrb.gmra.mxu1 %v22383_v5  ;;  %v10820_v5 = vpack.c.b16 %v10817_v51, %v10816_v39  ;;  %v11254_v51 = vshll.u32 %v19098_v0, 16 }
 0x8c9   : > { %11417 = vmatpush.bf16.msra.mxu1 %v18397_v40 }
 0x8ca   : > { %v10837_v37 = vshll.u32 %v10820_v5, 16  ;;  %11525 = vmatpush.bf16.msra.mxu3 %v18399_v27  ;;  %v11256_v9 = vrot.slane %v11254_v51, 1 }
 0x8cc   : > { %v10839_v15 = vrot.slane %v10837_v37, 1  ;;  %v19039_v37 = vld [vmem:[#allocation7 + $0x10] sm:$0xff]  }
 0x8cd   : > { %11418 = vmatpush.bf16.msra.mxu1 %v18396_v28  ;;  %v18408_v28 = vld [vmem:[%s23055_s8 + $0x1c0] sm:$0xff] }
 0x8ce   : > { %11666 = vmatpush.bf16.msra.mxu0 %v18408_v28 }
 0x8d1   : > { %11419 = vmatpush.bf16.msra.mxu1 %v18395_v57  ;;  %v18382_v57 = vld [vmem:[%s23055_s8 + $0x100] sm:$0xff] }
 0x8d2   : > { %11319 = vmatpush.bf16.msra.mxu2 %v18382_v57 }
 0x8d5   : > { %11420 = vmatpush.bf16.msra.mxu1 %v18394_v12  ;;  %v11359_v12 = vunpack.c.l.b16 %v11340_v16 }
 0x8d9   : > { %11421 = vmatpush.bf16.msra.mxu1 %v18393_v31  ;;  %v11117_v31 = vunpack.c.h.b16 %v10771_v3  ;;  %v18407_v3 = vld [vmem:[#allocation7 + $0x18] sm:$0x10] }
 0x8db   : > { %v11120_v21 = vpack.c.b16 %v11117_v31, %v11117_v31 }
 0x8dd   : > { %11422 = vmatpush.bf16.msra.mxu1 %v18392_v63 }
 0x8e1   : > { %11423 = vmatpush.bf16.msra.mxu1 %v18391_v42 }
 0x8e5   : > { %11424 = vmatpush.bf16.msra.mxu1 %v18390_v32 }
 0x91d   : > { %v10700_v43 = vpop.f32.mrf.mxu1 }
 0x91e   : > { %v10704_v1 = vpack.c.bf16 %v10700_v43, %v10700_v43  ;;  %v11017_v43 = vrot.slane %v10820_v5, 1 }
 0x920   : > { %10705 = vst [vmem:[#allocation7 + $0x8] sm:$0xf] %v10704_v1  ;;  %v18398_v1 = vld [vmem:[%s23055_s8 + $0x180] sm:$0xff] }
 0x921   : > { %11526 = vmatpush.bf16.msra.mxu3 %v18398_v1  ;;  %v11258_v1 = vshrl.u32 %v19098_v0, 16 }
 0x925   : > { %v10702_v13 = vpop.f32.mrf.mxu1 }
 0x927   : > { %v19042_v57 = vld [vmem:[#allocation7 + $0x8] sm:$0xe] }
 0x92d   : > { %v10761_v50 = vpop.f32.mrf.mxu1 }
 0x92e   : > { %v10765_v48 = vpack.c.bf16 %v10761_v50, %v10761_v50 }
 0x930   : > { %10766 = vst [vmem:[#allocation7 + $0xc] sm:$0xf] %v10765_v48  ;;  %v10841_v48 = vshrl.u32 %v10820_v5, 16  ;;  %v18416_v5 = vld [vmem:[%s23055_s8 + $0x200] sm:$0xff] }
 0x932   : > { %v10843_v4 = vor.u32 %v10841_v48, %v10839_v15 }
 0x935   : > { %v10763_v8 = vpop.f32.mrf.mxu1 }
 0x936   : > { %v11593_v8 = vshll.u32 %v22533_v56, 16 }
 0x937   : > { %v22467_v22 = vld [vmem:[#allocation7 + $0x8] sm:$0xff]  }
 0x938   : > { %v22473_v34 = vunpack.c.l.b16 %v22467_v22  ;;  %v11015_v45 = vrot.slane %v22467_v22, 1  ;;  %v10829_v24 = vshll.u32 %v22467_v22, 16  ;;  %10983 = vmatmul.bf16.gmra.mxu1 %v22467_v22  ;;  %v18863_v20 = vunpack.c.h.b16 %v22467_v22  ;;  %v19131_v2 = vld [vmem:[#allocation7 + $0xc] sm:$0xff]  }
 0x939   : > { %v10833_v40 = vshrl.u32 %v22467_v22, 16  ;;  %v11250_v10 = vshrl.u32 %v19131_v2, 16  ;;  %v19041_v16 = vld [vmem:[#allocation7 + $0x8] sm:$0xf0] }
 0x93a   : > { %v11118_v52 = vpack.c.b16 %v22473_v34, %v18859_v59  ;;  %v11016_v25 = vsel %vm1681_vm13, %v11014_v41, %v11015_v45  ;;  %v10831_v26 = vrot.slane %v10829_v24, 1  ;;  %v11018_v13 = vsel %vm1681_vm13, %v11015_v45, %v11017_v43 }
 0x93b   : > { %11078 = vmatmul.bf16.vlgmr.msrb.gmra.mxu3 %v11016_v25  ;;  %v11119_v29 = vpack.c.b16 %v10816_v39, %v18863_v20  ;;  %v11360_v50 = vpack.c.b16 %v22473_v34, %v11359_v12  ;;  %v11362_v59 = vrot.slane %v19131_v2, 1  ;;  %v11235_v63 = vpack.c.b16 %v22473_v34, %v11229_v38  ;;  %v18417_v39 = vld [vmem:[%s23055_s8 + $0x208] sm:$0xff] }
 0x93c   : > { %11180 = vmatmul.bf16.vlgmr.msrb.gmra.mxu0 %v11118_v52  ;;  %v10832_v53 = vsel %vm1381_vm12, %v10827_v19, %v10831_v26  ;;  %v10835_v54 = vor.u32 %v10833_v40, %v10831_v26  ;;  %v11364_v41 = vrot.slane %v19098_v0, 1  ;;  %v11246_v45 = vshll.u32 %v19131_v2, 16  ;;  %v17021_v26 = vld [vmem:[#allocation7 + $0x18] sm:$0xf] }
 0x93d   : > { %10903 = vmatmul.bf16.vlgmr.msrb.gmra.mxu2 %v10832_v53  ;;  %v11361_v14 = vrot.slane %v11360_v50, 1  ;;  %v11241_v42 = vshll.u32 %v11235_v63, 16  ;;  %v11239_v34 = vshrl.u32 %v11235_v63, 16  ;;  %v11595_v19 = vrot.slane %v11593_v8, 1 }
 0x93e   : > { %v10840_v60 = vsel %vm1381_vm12, %v10835_v54, %v10839_v15  ;;  %11764 = vmatpush.bf16.msrb.mxu2 %v18423_v61  ;;  %v11365_v24 = vsel %vm1681_vm13, %v11362_v59, %v11364_v41  ;;  %v11248_v25 = vrot.slane %v11246_v45, 1  ;;  %v17022_v53 = vor.u32 %v18407_v3, %v17021_v26 }
 0x93f   : > { %v11363_v62 = vsel %vm1681_vm13, %v11361_v14, %v11362_v59  ;;  %v11243_v47 = vrot.slane %v11241_v42, 1  ;;  %v11596_v58 = vsel %vm1381_vm12, %v10835_v54, %v11595_v19  ;;  %v11599_v30 = vor.u32 %v11597_v7, %v11595_v19 }
 0x940   : > { %v11252_v27 = vor.u32 %v11250_v10, %v11248_v25  ;;  %v11605_v40 = vshrl.u32 %v17022_v53, 16  ;;  %v11260_v15 = vor.u32 %v11258_v1, %v11256_v9  ;;  %v11709_v12 = vrot.slane %v22533_v56, 1 }
 0x941   : > { %v11244_v52 = vor.u32 %v11243_v47, %v11239_v34  ;;  %v11711_v2 = vrot.slane %v17022_v53, 1 }
 0x942   : > { %11765 = vmatpush.bf16.msrb.mxu2 %v18422_v46  ;;  %v11257_v6 = vsel %vm1381_vm12, %v11252_v27, %v11256_v9 }
 0x943   : > { %v11249_v32 = vsel %vm1381_vm12, %v11244_v52, %v11248_v25  ;;  %v11712_v14 = vsel %vm1681_vm13, %v11709_v12, %v11711_v2 }
 0x945   : > { %v10979_v50 = vpop.f32.mrf.mxu1 }
 0x946   : > { %11766 = vmatpush.bf16.msrb.mxu2 %v18421_v11 }
 0x948   : > { %10988 = vmatmul.bf16.gmra.mxu1 %v10918_v35 }
 0x94a   : > { %11767 = vmatpush.bf16.msrb.mxu2 %v18420_v36 }
 0x94b   : > { %11083 = vmatmul.bf16.gmra.mxu3 %v11018_v13  ;;  %v19043_v13 = vor.u32 %v19042_v57, %v19041_v16  ;;  %v18430_v16 = vld [vmem:[%s23056_s9 + $0x30] sm:$0xff] }
 0x94c   : > { %11185 = vmatmul.bf16.gmra.mxu0 %v11119_v29 }
 0x94d   : > { %10908 = vmatmul.bf16.gmra.mxu2 %v10840_v60  ;;  %v11708_v29 = vrot.slane %v19043_v13, 1  ;;  %v10981_v31 = vpop.f32.mrf.mxu1 }
 0x94e   : > { %11768 = vmatpush.bf16.msrb.mxu2 %v18419_v33 }
 0x94f   : > { %v11710_v60 = vsel %vm1681_vm13, %v11708_v29, %v11709_v12  ;;  %v18429_v29 = vld [vmem:[%s23056_s9 + $0x28] sm:$0xff] }
 0x952   : > { %11769 = vmatpush.bf16.msrb.mxu2 %v18418_v44 }
 0x956   : > { %11770 = vmatpush.bf16.msrb.mxu2 %v18417_v39 }
 0x958   : > { %11425 = vmatmul.bf16.vlgmr.msra.gmra.mxu1 %v11363_v62 }
 0x95a   : > { %11771 = vmatpush.bf16.msrb.mxu2 %v18416_v5 }
 0x95b   : > { %11088 = vmatmul.bf16.gmra.mxu3 %v11017_v43  ;;  %v11445_v43 = vld [vmem:[#allocation7 + $0x18] sm:$0xf] }
 0x95c   : > { %11190 = vmatmul.bf16.gmra.mxu0 %v11120_v21  ;;  %v11464_v20 = vunpack.c.l.b16 %v11445_v43  ;;  %v18431_v43 = vld [vmem:[%s23056_s9 + $0x38] sm:$0xff] }
 0x95d   : > { %10913 = vmatmul.bf16.gmra.mxu2 %v10843_v4  ;;  %12046 = vmatpush.bf16.msrb.mxu3 %v18431_v43 }
 0x95e   : > { %v11467_v28 = vpack.c.b16 %v11464_v20, %v11464_v20 }
 0x961   : > { %12047 = vmatpush.bf16.msrb.mxu3 %v18430_v16  ;;  %v18435_v16 = vld [vmem:[%s23056_s9 + $0x58] sm:$0xff] }
 0x965   : > { %12048 = vmatpush.bf16.msrb.mxu3 %v18429_v29  ;;  %v18450_v29 = vld [vmem:[%s23056_s9 + $0xd0] sm:$0xff] }
 0x968   : > { %11430 = vmatmul.bf16.gmra.mxu1 %v11365_v24 }
 0x96b   : > { %11527 = vmatmul.bf16.vlgmr.msra.gmra.mxu3 %v22467_v22  ;;  %v11601_v22 = vshll.u32 %v17022_v53, 16 }
 0x96c   : > { %11667 = vmatmul.bf16.vlgmr.msra.gmra.mxu0 %v11596_v58 }
 0x96d   : > { %11320 = vmatmul.bf16.vlgmr.msra.gmra.mxu2 %v11249_v32  ;;  %v11603_v17 = vrot.slane %v11601_v22, 1 }
 0x96f   : > { %v11604_v35 = vsel %vm1381_vm12, %v11599_v30, %v11603_v17  ;;  %v11607_v54 = vor.u32 %v11605_v40, %v11603_v17 }
 0x978   : > { %11435 = vmatmul.bf16.gmra.mxu1 %v11364_v41 }
 0x97b   : > { %11532 = vmatmul.bf16.gmra.mxu3 %v19039_v37 }
 0x97c   : > { %11672 = vmatmul.bf16.gmra.mxu0 %v11604_v35 }
 0x97d   : > { %11325 = vmatmul.bf16.gmra.mxu2 %v11257_v6 }
 0x98b   : > { %11537 = vmatmul.bf16.gmra.mxu3 %v11467_v28 }
 0x98c   : > { %11677 = vmatmul.bf16.gmra.mxu0 %v11607_v54 }
 0x98d   : > { %11330 = vmatmul.bf16.gmra.mxu2 %v11260_v15 }
 0x99d   : > { %11772 = vmatmul.bf16.vlgmr.msrb.gmra.mxu2 %v11710_v60  ;;  %v18447_v60 = vld [vmem:[%s23056_s9 + $0xb8] sm:$0xff] }
 0x99e   : > { %12146 = vmatpush.bf16.msrb.mxu0 %v18447_v60  ;;  %v18434_v60 = vld [vmem:[%s23056_s9 + $0x50] sm:$0xff] }
 0x9ad   : > { %11777 = vmatmul.bf16.gmra.mxu2 %v11712_v14 }
 0x9b5   : > { %v10984_v48 = vpop.f32.mrf.mxu1 }
 0x9b9   : > { %v11181_v59 = vpop.f32.mrf.mxu0 }
 0x9bd   : > { %11782 = vmatmul.bf16.gmra.mxu2 %v11711_v2  ;;  %v22567_v55 = vpop.f32.mrf.mxu1 }
 0x9be   : > { %v11079_v62 = vpop.f32.mrf.mxu3 }
 0x9c0   : > { %v10904_v21 = vpop.f32.mrf.mxu2 }
 0x9c1   : > { %v10980_v38 = vadd.f32 %v10979_v50, %v10904_v21  ;;  %v11183_v4 = vpop.f32.mrf.mxu0  ;;  %v18428_v50 = vld [vmem:[%s23056_s9 + $0x20] sm:$0xff] }
 0x9c2   : > { %12049 = vmatpush.bf16.msrb.mxu3 %v18428_v50  ;;  %v18441_v50 = vld [vmem:[%s23056_s9 + $0x88] sm:$0xff] }
 0x9c3   : > { %v11093_v63 = vadd.f32 %v11079_v62, %v10980_v38 }
 0x9c5   : > { %v10989_v18 = vpop.f32.mrf.mxu1  ;;  %v11195_v23 = vadd.f32 %v11181_v59, %v11093_v63  ;;  %v18427_v59 = vld [vmem:[%s23056_s9 + $0x18] sm:$0xff] }
 0x9c6   : > { %v11081_v61 = vpop.f32.mrf.mxu3  ;;  %12050 = vmatpush.bf16.msrb.mxu3 %v18427_v59  ;;  %v18440_v59 = vld [vmem:[%s23056_s9 + $0x80] sm:$0xff] }
 0x9c8   : > { %v10906_v56 = vpop.f32.mrf.mxu2 }
 0x9c9   : > { %v11186_v0 = vpop.f32.mrf.mxu0  ;;  %v10982_v57 = vadd.f32 %v10981_v31, %v10906_v56 }
 0x9cb   : > { %v11094_v12 = vadd.f32 %v11081_v61, %v10982_v57  ;;  %v18426_v61 = vld [vmem:[%s23056_s9 + $0x10] sm:$0xff] }
 0x9cc   : > { %12051 = vmatpush.bf16.msrb.mxu3 %v18426_v61  ;;  %v18442_v57 = vld [vmem:[%s23056_s9 + $0x90] sm:$0xff]  ;;  %v18448_v61 = vld [vmem:[%s23056_s9 + $0xc0] sm:$0xff] }
 0x9cd   : > { %v10991_v46 = vpop.f32.mrf.mxu1 }
 0x9ce   : > { %v11084_v42 = vpop.f32.mrf.mxu3  ;;  %v18425_v46 = vld [vmem:[%s23056_s9 + $0x8] sm:$0xff] }
 0x9d0   : > { %v10909_v8 = vpop.f32.mrf.mxu2  ;;  %12052 = vmatpush.bf16.msrb.mxu3 %v18425_v46 }
 0x9d1   : > { %v10985_v41 = vadd.f32 %v10984_v48, %v10909_v8  ;;  %v22569_v11 = vpop.f32.mrf.mxu0  ;;  %v11196_v48 = vadd.f32 %v11183_v4, %v11094_v12  ;;  %v18439_v4 = vld [vmem:[%s23056_s9 + $0x78] sm:$0xff] }
 0x9d2   : > { %11971 = vmatpush.bf16.msrb.mxu1 %v18439_v4 }
 0x9d3   : > { %v11095_v47 = vadd.f32 %v11084_v42, %v10985_v41  ;;  %v18454_v42 = vld [vmem:[%s23056_s9 + $0xf0] sm:$0xff] }
 0x9d5   : > { %v22571_v34 = vadd.f32 %v11186_v0, %v11095_v47  ;;  %v11426_v52 = vpop.f32.mrf.mxu1  ;;  %v18446_v0 = vld [vmem:[%s23056_s9 + $0xb0] sm:$0xff]  ;;  %v18445_v47 = vld [vmem:[%s23056_s9 + $0xa8] sm:$0xff] }
 0x9d6   : > { %v22573_v45 = vpop.f32.mrf.mxu3  ;;  %12147 = vmatpush.bf16.msrb.mxu0 %v18446_v0  ;;  %v18432_v0 = vld [vmem:[%s23056_s9 + $0x40] sm:$0xff] }
 0x9d8   : > { %v10911_v19 = vpop.f32.mrf.mxu2 }
 0x9d9   : > { %v11191_v24 = vpop.f32.mrf.mxu0  ;;  %v10987_v56 = vadd.f32 %v22567_v55, %v10911_v19  ;;  %v18438_v55 = vld [vmem:[%s23056_s9 + $0x70] sm:$0xff] }
 0x9da   : > { %11972 = vmatpush.bf16.msrb.mxu1 %v18438_v55  ;;  %12148 = vmatpush.bf16.msrb.mxu0 %v18445_v47 }
 0x9db   : > { %v11096_v19 = vadd.f32 %v22573_v45, %v10987_v56  ;;  %v18437_v45 = vld [vmem:[%s23056_s9 + $0x68] sm:$0xff] }
 0x9dd   : > { %v11428_v44 = vpop.f32.mrf.mxu1 }
 0x9de   : > { %v11089_v36 = vpop.f32.mrf.mxu3  ;;  %11973 = vmatpush.bf16.msrb.mxu1 %v18437_v45  ;;  %v12069_v45 = vld [vmem:[#allocation8] sm:$0xe] }
 0x9e0   : > { %v10914_v25 = vpop.f32.mrf.mxu2 }
 0x9e1   : > { %v10990_v26 = vadd.f32 %v10989_v18, %v10914_v25  ;;  %v11193_v3 = vpop.f32.mrf.mxu0 }
 0x9e2   : > { %v18453_v3 = vld [vmem:[%s23056_s9 + $0xe8] sm:$0xff] }
 0x9e3   : > { %v11097_v58 = vadd.f32 %v11089_v36, %v10990_v26  ;;  %v18424_v26 = vld [vmem:[%s23056_s9] sm:$0xff] }
 0x9e4   : > { %12053 = vmatpush.bf16.msrb.mxu3 %v18424_v26 }
 0x9e5   : > { %v22575_v32 = vadd.f32 %v11191_v24, %v11097_v58  ;;  %v22577_v30 = vpop.f32.mrf.mxu1  ;;  %v11198_v58 = vadd.f32 %v22569_v11, %v11096_v19 }
 0x9e6   : > { %v11091_v53 = vpop.f32.mrf.mxu3 }
 0x9e8   : > { %v10916_v33 = vpop.f32.mrf.mxu2 }
 0x9e9   : > { %v11668_v7 = vpop.f32.mrf.mxu0  ;;  %v18444_v33 = vld [vmem:[%s23056_s9 + $0xa0] sm:$0xff] }
 0x9ea   : > { %12149 = vmatpush.bf16.msrb.mxu0 %v18444_v33  ;;  %v18466_v33 = vld [vmem:[%s23056_s9 + $0x150] sm:$0xff] }
 0x9ed   : > { %v22581_v27 = vpop.f32.mrf.mxu1 }
 0x9ee   : > { %v11528_v22 = vpop.f32.mrf.mxu3 }
 0x9f0   : > { %v11321_v39 = vpop.f32.mrf.mxu2 }
 0x9f1   : > { %v11670_v51 = vpop.f32.mrf.mxu0  ;;  %v11335_v14 = vadd.f32 %v11321_v39, %v11195_v23  ;;  %v18455_v23 = vld [vmem:[%s23056_s9 + $0xf8] sm:$0xff] }
 0x9f2   : > { %12248 = vmatpush.bf16.msra.mxu2 %v18455_v23  ;;  %v18469_v23 = vld [vmem:[%s23056_s9 + $0x168] sm:$0xff] }
 0x9f3   : > { %v11440_v62 = vadd.f32 %v11426_v52, %v11335_v14 }
 0x9f5   : > { %v22587_v6 = vpop.f32.mrf.mxu1  ;;  %v11542_v63 = vadd.f32 %v11528_v22, %v11440_v62 }
 0x9f6   : > { %v11530_v17 = vpop.f32.mrf.mxu3  ;;  %12249 = vmatpush.bf16.msra.mxu2 %v18454_v42 }
 0x9f7   : > { %v11682_v8 = vadd.f32 %v11668_v7, %v11542_v63  ;;  %v18452_v7 = vld [vmem:[%s23056_s9 + $0xe0] sm:$0xff] }
 0x9f8   : > { %v11323_v10 = vpop.f32.mrf.mxu2 }
 0x9f9   : > { %v22579_v5 = vpop.f32.mrf.mxu0  ;;  %v11336_v21 = vadd.f32 %v11323_v10, %v11196_v48 }
 0x9fa   : > { %12250 = vmatpush.bf16.msra.mxu2 %v18453_v3 }
 0x9fb   : > { %v11441_v38 = vadd.f32 %v11428_v44, %v11336_v21  ;;  %v22657_v44 = vld [vmem:[#allocation8] sm:$0xff]  }
 0x9fc   : > { %12054 = vmatmul.bf16.vlgmr.msrb.gmra.mxu3 %v22657_v44 }
 0x9fd   : > { %v11438_v28 = vpop.f32.mrf.mxu1  ;;  %v11543_v41 = vadd.f32 %v11530_v17, %v11441_v38  ;;  %v18443_v17 = vld [vmem:[%s23056_s9 + $0x98] sm:$0xff]  ;;  %v18470_v38 = vld [vmem:[%s23056_s9 + $0x170] sm:$0xff] }
 0x9fe   : > { %v22583_v9 = vpop.f32.mrf.mxu3  ;;  %12251 = vmatpush.bf16.msra.mxu2 %v18452_v7  ;;  %12150 = vmatpush.bf16.msrb.mxu0 %v18443_v17  ;;  %v18478_v17 = vld [vmem:[%s23056_s9 + $0x1b0] sm:$0xff] }
 0x9ff   : > { %v11683_v52 = vadd.f32 %v11670_v51, %v11543_v41  ;;  %v18436_v51 = vld [vmem:[%s23056_s9 + $0x60] sm:$0xff] }
 0xa00   : > { %v11326_v37 = vpop.f32.mrf.mxu2  ;;  %11974 = vmatpush.bf16.msrb.mxu1 %v18436_v51  ;;  %v18463_v51 = vld [vmem:[%s23056_s9 + $0x138] sm:$0xff] }
 0xa01   : > { %v22585_v35 = vpop.f32.mrf.mxu0  ;;  %v11337_v36 = vadd.f32 %v11326_v37, %v22571_v34 }
 0xa02   : > { %12151 = vmatpush.bf16.msrb.mxu0 %v18442_v57  ;;  %v11898_v57 = vshrl.u32 %v22657_v44, 16 }
 0xa03   : > { %v11442_v22 = vadd.f32 %v22577_v30, %v11337_v36  ;;  %v18451_v30 = vld [vmem:[%s23056_s9 + $0xd8] sm:$0xff] }
 0xa04   : > { %12252 = vmatpush.bf16.msra.mxu2 %v18451_v30  ;;  %11975 = vmatpush.bf16.msrb.mxu1 %v18435_v16  ;;  %v18488_v30 = vld [vmem:[%s23056_s9 + $0x1f0] sm:$0xff]  ;;  %v18464_v16 = vld [vmem:[%s23056_s9 + $0x140] sm:$0xff] }
 0xa06   : > { %v22592_v20 = vpop.f32.mrf.mxu3  ;;  %12152 = vmatpush.bf16.msrb.mxu0 %v18441_v50 }
 0xa08   : > { %v22594_v40 = vpop.f32.mrf.mxu2  ;;  %12253 = vmatpush.bf16.msra.mxu2 %v18450_v29  ;;  %11976 = vmatpush.bf16.msrb.mxu1 %v18434_v60  ;;  %v18487_v29 = vld [vmem:[%s23056_s9 + $0x1e8] sm:$0xff] }
 0xa09   : > { %v22596_v1 = vpop.f32.mrf.mxu0  ;;  %v11338_v39 = vadd.f32 %v22594_v40, %v11198_v58  ;;  %v11544_v40 = vadd.f32 %v22583_v9, %v11442_v22  ;;  %v18889_v22 = vunpack.c.h.b16 %v22657_v44 }
 0xa0a   : > { %12153 = vmatpush.bf16.msrb.mxu0 %v18440_v59  ;;  %v11864_v59 = vld [vmem:[#allocation8 + $0x14] sm:$0x1] }
 0xa0b   : > { %v11443_v28 = vadd.f32 %v22581_v27, %v11338_v39  ;;  %v11684_v9 = vadd.f32 %v22579_v5, %v11544_v40  ;;  %v12088_v39 = vunpack.c.l.b16 %v12069_v45  ;;  %v18462_v40 = vld [vmem:[%s23056_s9 + $0x130] sm:$0xff] }
 0xa0d   : > { %v11545_v27 = vadd.f32 %v22592_v20, %v11443_v28  ;;  %v18433_v20 = vld [vmem:[%s23056_s9 + $0x48] sm:$0xff]  ;;  %v12089_v49 = vpack.c.b16 %v18889_v22, %v12088_v39 }
 0xa0e   : > { %v22598_v54 = vpop.f32.mrf.mxu3  ;;  %11977 = vmatpush.bf16.msrb.mxu1 %v18433_v20  ;;  %v18477_v28 = vld [vmem:[%s23056_s9 + $0x1a8] sm:$0xff] }
 0xa0f   : > { %v12276_v39 = vld [vmem:[#allocation8 + $0x4] sm:$0xf] }
 0xa10   : > { %v22600_v15 = vpop.f32.mrf.mxu2 }
 0xa11   : > { %v11680_v13 = vpop.f32.mrf.mxu0  ;;  %v11339_v12 = vadd.f32 %v22600_v15, %v22575_v32  ;;  %v18449_v32 = vld [vmem:[%s23056_s9 + $0xc8] sm:$0xff]  ;;  %v11685_v15 = vadd.f32 %v22585_v35, %v11545_v27  ;;  %v12090_v27 = vrot.slane %v12089_v49, 1 }
 0xa12   : > { %12254 = vmatpush.bf16.msra.mxu2 %v18449_v32  ;;  %11978 = vmatpush.bf16.msrb.mxu1 %v18432_v0  ;;  %v18486_v32 = vld [vmem:[%s23056_s9 + $0x1e0] sm:$0xff] }
 0xa13   : > { %v11444_v14 = vadd.f32 %v22587_v6, %v11339_v12 }
 0xa15   : > { %v11546_v4 = vadd.f32 %v22598_v54, %v11444_v14  ;;  %v18468_v54 = vld [vmem:[%s23056_s9 + $0x160] sm:$0xff] }
 0xa16   : > { %v11540_v2 = vpop.f32.mrf.mxu3  ;;  %12255 = vmatpush.bf16.msra.mxu2 %v18448_v61  ;;  %12388 = vmatpush.bf16.msra.mxu1 %v18463_v51  ;;  %v18484_v61 = vld [vmem:[%s23056_s9 + $0x1d0] sm:$0xff] }
 0xa17   : > { %v18471_v2 = vld [vmem:[%s23056_s9 + $0x178] sm:$0xff]  ;;  %v11686_v55 = vadd.f32 %v22596_v1, %v11546_v4  ;;  %v18458_v4 = vld [vmem:[%s23056_s9 + $0x110] sm:$0xff] }
 0xa18   : > { %v11333_v31 = vpop.f32.mrf.mxu2  ;;  %12493 = vmatpush.bf16.msra.mxu3 %v18471_v2  ;;  %v18479_v1 = vld [vmem:[%s23056_s9 + $0x1b8] sm:$0xff] }
 0xa19   : > { %12595 = vmatpush.bf16.msra.mxu0 %v18479_v1 }
 0xa1a   : > { %12389 = vmatpush.bf16.msra.mxu1 %v18462_v40  ;;  %v18497_v40 = vld [vmem:[%s23056_s9 + $0x238] sm:$0xff] }
 0xa1c   : > { %12494 = vmatpush.bf16.msra.mxu3 %v18470_v38  ;;  %v18485_v38 = vld [vmem:[%s23056_s9 + $0x1d8] sm:$0xff] }
 0xa1d   : > { %12596 = vmatpush.bf16.msra.mxu0 %v18478_v17  ;;  %v12305_v17 = vunpack.c.l.b16 %v12276_v39 }
 0xa20   : > { %v11773_v18 = vpop.f32.mrf.mxu2  ;;  %12495 = vmatpush.bf16.msra.mxu3 %v18469_v23 }
 0xa21   : > { %v11787_v24 = vadd.f32 %v11773_v18, %v11682_v8  ;;  %12597 = vmatpush.bf16.msra.mxu0 %v18477_v28  ;;  %v22838_v28 = vld [vmem:[#allocation8 + $0x10] sm:$0xff] }
 0xa23   : > { %v11797_v53 = vmul.f32 0.2, %v11787_v24  ;;  %vm11792_vm2 = vcmp.ge.f32.partialorder %v11787_v24, 0.0 }
 0xa24   : > { %12496 = vmatpush.bf16.msra.mxu3 %v18468_v54 }
 0xa25   : > { %v11802_v10 = vsel %vm11792_vm2, %v11787_v24, %v11797_v53 }
 0xa28   : > { %v11775_v25 = vpop.f32.mrf.mxu2 }
 0xa29   : > { %v11788_v34 = vadd.f32 %v11775_v25, %v11683_v52  ;;  %v18467_v52 = vld [vmem:[%s23056_s9 + $0x158] sm:$0xff] }
 0xa2a   : > { %12497 = vmatpush.bf16.msra.mxu3 %v18467_v52  ;;  %v18482_v52 = vld [vmem:[%s23056_s9 + $0x1c0] sm:$0xff] }
 0xa2b   : > { %vm11793_vm9 = vcmp.ge.f32.partialorder %v11788_v34, 0.0  ;;  %v11798_v11 = vmul.f32 0.2, %v11788_v34 }
 0xa2d   : > { %v11803_v37 = vsel %vm11793_vm9, %v11788_v34, %v11798_v11  ;;  %v18489_v11 = vld [vmem:[%s23056_s9 + $0x1f8] sm:$0xff] }
 0xa2e   : > { %v18879_v43 = vpack.c.bf16 %v11803_v37, %v11802_v10  ;;  %12498 = vmatpush.bf16.msra.mxu3 %v18466_v33  ;;  %v18465_v37 = vld [vmem:[%s23056_s9 + $0x148] sm:$0xff]  ;;  %12735 = vmatpush.bf16.msrb.mxu2 %v18489_v11 }
 0xa30   : > { %18880 = vst [vmem:[#allocation2] sm:$0xff] %v18879_v43   ;;  %v11778_v13 = vpop.f32.mrf.mxu2  ;;  %v11900_v43 = vshll.u32 %v22657_v44, 16 }
 0xa31   : > { %v11789_v5 = vadd.f32 %v11778_v13, %v11684_v9  ;;  %v18461_v9 = vld [vmem:[%s23056_s9 + $0x128] sm:$0xff] }
 0xa32   : > { %12499 = vmatpush.bf16.msra.mxu3 %v18465_v37  ;;  %v11902_v13 = vrot.slane %v11900_v43, 1  ;;  %12736 = vmatpush.bf16.msrb.mxu2 %v18488_v30  ;;  %v19134_v37 = vld [vmem:[#allocation8 + $0x14] sm:$0xf]  ;;  %v19136_v43 = vld [vmem:[#allocation8 + $0x14] sm:$0x10] }
 0xa33   : > { %v11799_v63 = vmul.f32 0.2, %v11789_v5  ;;  %vm11794_vm4 = vcmp.ge.f32.partialorder %v11789_v5, 0.0  ;;  %12390 = vmatpush.bf16.msra.mxu1 %v18461_v9  ;;  %v19108_v49 = vor.u32 %v19136_v43, %v19134_v37  ;;  %v18495_v9 = vld [vmem:[%s23056_s9 + $0x228] sm:$0xff] }
 0xa34   : > { %v11903_v50 = vor.u32 %v11902_v13, %v11898_v57 }
 0xa35   : > { %v11804_v42 = vsel %vm11794_vm4, %v11789_v5, %v11799_v63  ;;  %v18476_v5 = vld [vmem:[%s23056_s9 + $0x1a0] sm:$0xff]  ;;  %v12440_v13 = vrot.slane %v19108_v49, 1 }
 0xa36   : > { %12500 = vmatpush.bf16.msra.mxu3 %v18464_v16  ;;  %12737 = vmatpush.bf16.msrb.mxu2 %v18487_v29  ;;  %v18496_v16 = vld [vmem:[%s23056_s9 + $0x230] sm:$0xff]  ;;  %v12669_v29 = vshll.u32 %v22838_v28, 16 }
 0xa37   : > { %v11817_v31 = vld [vmem:[#allocation2] sm:$0x8]  ;;  %v11818_v48 = vld [vmem:[#allocation2 + $0x4] sm:$0x1]  ;;  %v11830_v24 = vld [vmem:[#allocation2 + $0x4] sm:$0x8]  ;;  %12598 = vmatpush.bf16.msra.mxu0 %v18476_v5 }
 0xa38   : > { %v11780_v62 = vpop.f32.mrf.mxu2  ;;  %v11820_v21 = vshrl.u32 %v11817_v31, 16  ;;  %v11825_v6 = vshll.u32 %v11818_v48, 16  ;;  %v11833_v25 = vshrl.u32 %v11830_v24, 16  ;;  %v18460_v31 = vld [vmem:[%s23056_s9 + $0x120] sm:$0xff]  ;;  %v11847_v48 = vld [vmem:[#allocation8 + $0x10] sm:$0xff]  }
 0xa39   : > { %v11790_v18 = vadd.f32 %v11780_v62, %v11685_v15  ;;  %v11892_v63 = vunpack.c.l.b16 %v11847_v48  ;;  %12391 = vmatpush.bf16.msra.mxu1 %v18460_v31  ;;  %v12416_v24 = vld [vmem:[#allocation8 + $0x4] sm:$0xe]  ;;  %v12193_v33 = vunpack.c.h.b16 %v11847_v48  ;;  %v18494_v5 = vld [vmem:[%s23056_s9 + $0x220] sm:$0xff] }
 0xa3a   : > { %v17103_v35 = vrot.slane %v11820_v21, 11  ;;  %v17104_v53 = vrot.slane %v11833_v25, 11  ;;  %v18475_v21 = vld [vmem:[%s23056_s9 + $0x198] sm:$0xff]  ;;  %12738 = vmatpush.bf16.msrb.mxu2 %v18486_v32  ;;  %v12435_v45 = vunpack.c.l.b16 %v12416_v24 }
 0xa3b   : > { %vm11795_vm5 = vcmp.ge.f32.partialorder %v11790_v18, 0.0  ;;  %v11800_v56 = vmul.f32 0.2, %v11790_v18  ;;  %12599 = vmatpush.bf16.msra.mxu0 %v18475_v21  ;;  %v11994_v0 = vpack.c.b16 %v11892_v63, %v11892_v63  ;;  %v12196_v51 = vpack.c.b16 %v12193_v33, %v12193_v33  ;;  %v18492_v21 = vld [vmem:[%s23056_s9 + $0x210] sm:$0xff] }
 0xa3c   : > { %v11827_v46 = vsel %vm20436_vm8, %v17103_v35, %v11825_v6  ;;  %v18459_v35 = vld [vmem:[%s23056_s9 + $0x118] sm:$0xff]  ;;  %v18474_v6 = vld [vmem:[%s23056_s9 + $0x190] sm:$0xff] }
 0xa3d   : > { %v11805_v8 = vsel %vm11795_vm5, %v11790_v18, %v11800_v56  ;;  %11829 = vst [vmem:[#allocation8 + $0x8] sm:$0x1] %v11827_v46  ;;  %v11893_v18 = vunpack.c.l.b16 %v11864_v59  ;;  %12392 = vmatpush.bf16.msra.mxu1 %v18459_v35  ;;  %v18473_v56 = vld [vmem:[%s23056_s9 + $0x188] sm:$0xff] }
 0xa3e   : > { %v18884_v41 = vpack.c.bf16 %v11805_v8, %v11804_v42  ;;  %12739 = vmatpush.bf16.msrb.mxu2 %v18485_v38  ;;  %v18483_v42 = vld [vmem:[%s23056_s9 + $0x1c8] sm:$0xff]  ;;  %v12673_v38 = vshrl.u32 %v22838_v28, 16 }
 0xa3f   : > { %v11896_v23 = vpack.c.b16 %v11893_v18, %v11892_v63  ;;  %12600 = vmatpush.bf16.msra.mxu0 %v18474_v6  ;;  %v12330_v18 = vshll.u32 %v19108_v49, 16 }
 0xa40   : > { %19044 = vst [vmem:[#allocation2 + $0x8] sm:$0xff] %v18884_v41   ;;  %v11783_v47 = vpop.f32.mrf.mxu2 }
 0xa41   : > { %v11791_v19 = vadd.f32 %v11783_v47, %v11686_v55  ;;  %v11913_v46 = vshll.u32 %v11896_v23, 16  ;;  %v12093_v8 = vrot.slane %v11896_v23, 1  ;;  %12393 = vmatpush.bf16.msra.mxu1 %v18458_v4  ;;  %v18457_v55 = vld [vmem:[%s23056_s9 + $0x108] sm:$0xff] }
 0xa42   : > { %12740 = vmatpush.bf16.msrb.mxu2 %v18484_v61 }
 0xa43   : > { %vm11796_vm6 = vcmp.ge.f32.partialorder %v11791_v19, 0.0  ;;  %v11801_v36 = vmul.f32 0.2, %v11791_v19  ;;  %12601 = vmatpush.bf16.msra.mxu0 %v18473_v56  ;;  %v12332_v56 = vrot.slane %v12330_v18, 1 }
 0xa45   : > { %v11806_v26 = vsel %vm11796_vm6, %v11791_v19, %v11801_v36  ;;  %v11915_v19 = vrot.slane %v11913_v46, 1  ;;  %v18472_v36 = vld [vmem:[%s23056_s9 + $0x180] sm:$0xff]  ;;  %12394 = vmatpush.bf16.msra.mxu1 %v18457_v55  ;;  %v12334_v55 = vshrl.u32 %v19108_v49, 16 }
 0xa46   : > { %v11811_v3 = vpack.c.bf16 %v11806_v26, %v11806_v26  ;;  %12741 = vmatpush.bf16.msrb.mxu2 %v18483_v42 }
 0xa47   : > { %v11831_v58 = vld [vmem:[#allocation2 + $0x8] sm:$0x1]  ;;  %12602 = vmatpush.bf16.msra.mxu0 %v18472_v36  ;;  %v12336_v24 = vor.u32 %v12334_v55, %v12332_v56  ;;  %v18510_v55 = vld [vmem:[%s23057_s10 + $0x58] sm:$0xff] }
 0xa48   : > { %11816 = vst [vmem:[#allocation2 + $0x10] sm:$0xf] %v11811_v3  ;;  %v11838_v34 = vshll.u32 %v11831_v58, 16  ;;  %v11785_v7 = vpop.f32.mrf.mxu2  ;;  %v18456_v3 = vld [vmem:[%s23056_s9 + $0x100] sm:$0xff] }
 0xa49   : > { %12395 = vmatpush.bf16.msra.mxu1 %v18456_v3  ;;  %v12785_v3 = vrot.slane %v22838_v28, 1 }
 0xa4a   : > { %v11840_v10 = vsel %vm20436_vm8, %v17104_v53, %v11838_v34  ;;  %12742 = vmatpush.bf16.msrb.mxu2 %v18482_v52  ;;  %v19050_v52 = vld [vmem:[#allocation8 + $0x8] sm:$0xe] }
 0xa4b   : > { %11842 = vst [vmem:[#allocation8 + $0xc] sm:$0x1] %v11840_v10 }
 0xa52   : > { %v22772_v12 = vld [vmem:[#allocation8 + $0x8] sm:$0xff]  }
 0xa53   : > { %12059 = vmatmul.bf16.gmra.mxu3 %v22772_v12  ;;  %v12091_v44 = vrot.slane %v22772_v12, 1  ;;  %v22777_v60 = vunpack.c.l.b16 %v22772_v12  ;;  %v11905_v2 = vshll.u32 %v22772_v12, 16  ;;  %v18893_v41 = vunpack.c.h.b16 %v22772_v12  ;;  %v19135_v53 = vld [vmem:[#allocation8 + $0xc] sm:$0xff]  }
 0xa54   : > { %v11909_v54 = vshrl.u32 %v22772_v12, 16  ;;  %v12438_v7 = vrot.slane %v19135_v53, 1  ;;  %v12326_v61 = vshrl.u32 %v19135_v53, 16  ;;  %v19049_v36 = vld [vmem:[#allocation8 + $0x8] sm:$0xf0] }
 0xa55   : > { %v12092_v20 = vsel %vm1681_vm13, %v12090_v27, %v12091_v44  ;;  %v12194_v15 = vpack.c.b16 %v22777_v60, %v18889_v22  ;;  %v11907_v14 = vrot.slane %v11905_v2, 1  ;;  %v12094_v25 = vsel %vm1681_vm13, %v12091_v44, %v12093_v8 }
 0xa56   : > { %12154 = vmatmul.bf16.vlgmr.msrb.gmra.mxu0 %v12092_v20  ;;  %v12195_v26 = vpack.c.b16 %v11892_v63, %v18893_v41  ;;  %v12436_v1 = vpack.c.b16 %v22777_v60, %v12435_v45  ;;  %v11917_v22 = vshrl.u32 %v11896_v23, 16  ;;  %v12311_v30 = vpack.c.b16 %v22777_v60, %v12305_v17  ;;  %v18491_v63 = vld [vmem:[%s23056_s9 + $0x208] sm:$0xff]  ;;  %v18490_v23 = vld [vmem:[%s23056_s9 + $0x200] sm:$0xff] }
 0xa57   : > { %12256 = vmatmul.bf16.vlgmr.msra.gmra.mxu2 %v12194_v15  ;;  %v11908_v62 = vsel %vm1381_vm12, %v11903_v50, %v11907_v14  ;;  %v11911_v47 = vor.u32 %v11909_v54, %v11907_v14  ;;  %v12322_v60 = vshll.u32 %v19135_v53, 16  ;;  %v12441_v50 = vsel %vm1681_vm13, %v12438_v7, %v12440_v13  ;;  %v17447_v15 = vld [vmem:[#allocation8 + $0x18] sm:$0xf]  ;;  %v18481_v14 = vld [vmem:[#allocation8 + $0x18] sm:$0x10] }
 0xa58   : > { %11979 = vmatmul.bf16.vlgmr.msrb.gmra.mxu1 %v11908_v62  ;;  %v12437_v34 = vrot.slane %v12436_v1, 1  ;;  %v11919_v10 = vor.u32 %v11917_v22, %v11915_v19  ;;  %v12317_v57 = vshll.u32 %v12311_v30, 16  ;;  %v12315_v44 = vshrl.u32 %v12311_v30, 16  ;;  %v18493_v62 = vld [vmem:[%s23056_s9 + $0x218] sm:$0xff] }
 0xa59   : > { %v11916_v58 = vsel %vm1381_vm12, %v11911_v47, %v11915_v19  ;;  %12840 = vmatpush.bf16.msrb.mxu1 %v18497_v40  ;;  %v12671_v2 = vrot.slane %v12669_v29, 1  ;;  %v12324_v20 = vrot.slane %v12322_v60, 1  ;;  %v17448_v59 = vor.u32 %v18481_v14, %v17447_v15 }
 0xa5a   : > { %v12439_v11 = vsel %vm1681_vm13, %v12437_v34, %v12438_v7  ;;  %v12319_v27 = vrot.slane %v12317_v57, 1 }
 0xa5b   : > { %v12672_v31 = vsel %vm1381_vm12, %v11911_v47, %v12671_v2  ;;  %v12675_v35 = vor.u32 %v12673_v38, %v12671_v2  ;;  %v12328_v4 = vor.u32 %v12326_v61, %v12324_v20  ;;  %v12681_v54 = vshrl.u32 %v17448_v59, 16  ;;  %v18514_v61 = vld [vmem:[%s23057_s10 + $0x78] sm:$0xff] }
 0xa5c   : > { %v12320_v32 = vor.u32 %v12319_v27, %v12315_v44  ;;  %13016 = vmatpush.bf16.msrb.mxu3 %v18514_v61  ;;  %v18520_v61 = vld [vmem:[%s23057_s10 + $0xa0] sm:$0xff] }
 0xa5d   : > { %12841 = vmatpush.bf16.msrb.mxu1 %v18496_v16  ;;  %v12333_v42 = vsel %vm1381_vm12, %v12328_v4, %v12332_v56  ;;  %v18513_v4 = vld [vmem:[%s23057_s10 + $0x70] sm:$0xff] }
 0xa5e   : > { %v12325_v48 = vsel %vm1381_vm12, %v12320_v32, %v12324_v20 }
 0xa60   : > { %13017 = vmatpush.bf16.msrb.mxu3 %v18513_v4  ;;  %v18526_v4 = vld [vmem:[%s23057_s10 + $0xd0] sm:$0xff] }
 0xa61   : > { %12842 = vmatpush.bf16.msrb.mxu1 %v18495_v9 }
 0xa63   : > { %12064 = vmatmul.bf16.gmra.mxu3 %v11994_v0  ;;  %v19047_v0 = vld [vmem:[#allocation8 + $0x10] sm:$0xff]  }
 0xa65   : > { %12843 = vmatpush.bf16.msrb.mxu1 %v18494_v5 }
 0xa66   : > { %12159 = vmatmul.bf16.gmra.mxu0 %v12094_v25  ;;  %v19051_v25 = vor.u32 %v19050_v52, %v19049_v36 }
 0xa67   : > { %12261 = vmatmul.bf16.gmra.mxu2 %v12195_v26 }
 0xa68   : > { %11984 = vmatmul.bf16.gmra.mxu1 %v11916_v58  ;;  %v12784_v26 = vrot.slane %v19051_v25, 1  ;;  %v12787_v58 = vrot.slane %v17448_v59, 1 }
 0xa69   : > { %12844 = vmatpush.bf16.msrb.mxu1 %v18493_v62 }
 0xa6a   : > { %v12786_v45 = vsel %vm1681_vm13, %v12784_v26, %v12785_v3  ;;  %v12788_v53 = vsel %vm1681_vm13, %v12785_v3, %v12787_v58  ;;  %v18509_v26 = vld [vmem:[%s23057_s10 + $0x50] sm:$0xff]  ;;  %v18506_v3 = vld [vmem:[%s23057_s10 + $0x38] sm:$0xff] }
 0xa6b   : > { %13091 = vmatpush.bf16.msrb.mxu0 %v18506_v3  ;;  %v18525_v3 = vld [vmem:[%s23057_s10 + $0xc8] sm:$0xff] }
 0xa6d   : > { %12845 = vmatpush.bf16.msrb.mxu1 %v18492_v21 }
 0xa71   : > { %12846 = vmatpush.bf16.msrb.mxu1 %v18491_v63 }
 0xa73   : > { %12501 = vmatmul.bf16.vlgmr.msra.gmra.mxu3 %v12439_v11 }
 0xa75   : > { %12847 = vmatpush.bf16.msrb.mxu1 %v18490_v23 }
 0xa76   : > { %12164 = vmatmul.bf16.gmra.mxu0 %v12093_v8  ;;  %v12521_v8 = vld [vmem:[#allocation8 + $0x18] sm:$0xf] }
 0xa77   : > { %12266 = vmatmul.bf16.gmra.mxu2 %v12196_v51  ;;  %v12540_v41 = vunpack.c.l.b16 %v12521_v8 }
 0xa78   : > { %11989 = vmatmul.bf16.gmra.mxu1 %v11919_v10 }
 0xa79   : > { %v12543_v47 = vpack.c.b16 %v12540_v41, %v12540_v41  ;;  %v18511_v41 = vld [vmem:[%s23057_s10 + $0x60] sm:$0xff] }
 0xa7f   : > { %v12055_v1 = vpop.f32.mrf.mxu3 }
 0xa83   : > { %12506 = vmatmul.bf16.gmra.mxu3 %v12441_v50 }
 0xa86   : > { %12603 = vmatmul.bf16.vlgmr.msra.gmra.mxu0 %v22772_v12  ;;  %v12677_v12 = vshll.u32 %v17448_v59, 16 }
 0xa87   : > { %12743 = vmatmul.bf16.vlgmr.msrb.gmra.mxu2 %v12672_v31  ;;  %v12057_v34 = vpop.f32.mrf.mxu3 }
 0xa88   : > { %12396 = vmatmul.bf16.vlgmr.msra.gmra.mxu1 %v12325_v48  ;;  %v12679_v6 = vrot.slane %v12677_v12, 1 }
 0xa8a   : > { %v12680_v46 = vsel %vm1381_vm12, %v12675_v35, %v12679_v6  ;;  %v12683_v19 = vor.u32 %v12681_v54, %v12679_v6 }
 0xa93   : > { %12511 = vmatmul.bf16.gmra.mxu3 %v12440_v13 }
 0xa96   : > { %12608 = vmatmul.bf16.gmra.mxu0 %v19047_v0 }
 0xa97   : > { %12748 = vmatmul.bf16.gmra.mxu2 %v12680_v46  ;;  %v18512_v46 = vld [vmem:[%s23057_s10 + $0x68] sm:$0xff] }
 0xa98   : > { %12401 = vmatmul.bf16.gmra.mxu1 %v12333_v42  ;;  %13018 = vmatpush.bf16.msrb.mxu3 %v18512_v46 }
 0xa9c   : > { %13019 = vmatpush.bf16.msrb.mxu3 %v18511_v41 }
 0xaa0   : > { %13020 = vmatpush.bf16.msrb.mxu3 %v18510_v55 }
 0xaa4   : > { %13021 = vmatpush.bf16.msrb.mxu3 %v18509_v26 }
 0xaa6   : > { %12613 = vmatmul.bf16.gmra.mxu0 %v12543_v47 }
 0xaa7   : > { %12753 = vmatmul.bf16.gmra.mxu2 %v12683_v19 }
 0xaa8   : > { %12406 = vmatmul.bf16.gmra.mxu1 %v12336_v24 }
 0xab8   : > { %12848 = vmatmul.bf16.vlgmr.msrb.gmra.mxu1 %v12786_v45 }
 0xac8   : > { %12853 = vmatmul.bf16.gmra.mxu1 %v12788_v53 }
 0xad3   : > { %v12155_v33 = vpop.f32.mrf.mxu0 }
 0xad5   : > { %v11980_v7 = vpop.f32.mrf.mxu1 }
 0xad6   : > { %v12056_v22 = vadd.f32 %v12055_v1, %v11980_v7  ;;  %v12060_v39 = vpop.f32.mrf.mxu3  ;;  %v18505_v1 = vld [vmem:[%s23057_s10 + $0x30] sm:$0xff] }
 0xad7   : > { %13092 = vmatpush.bf16.msrb.mxu0 %v18505_v1 }
 0xad8   : > { %12858 = vmatmul.bf16.gmra.mxu1 %v12787_v58  ;;  %v12169_v11 = vadd.f32 %v12155_v33, %v12056_v22  ;;  %v18508_v58 = vld [vmem:[%s23057_s10 + $0x48] sm:$0xff]  ;;  %v18507_v22 = vld [vmem:[%s23057_s10 + $0x40] sm:$0xff] }
 0xad9   : > { %13022 = vmatpush.bf16.msrb.mxu3 %v18508_v58 }
 0xada   : > { %v12257_v51 = vpop.f32.mrf.mxu2 }
 0xadb   : > { %v22872_v17 = vadd.f32 %v12257_v51, %v12169_v11  ;;  %v12157_v10 = vpop.f32.mrf.mxu0  ;;  %v18531_v11 = vld [vmem:[%s23057_s10 + $0xf8] sm:$0xff]  ;;  %v18503_v51 = vld [vmem:[%s23057_s10 + $0x20] sm:$0xff] }
 0xadd   : > { %v11982_v37 = vpop.f32.mrf.mxu1  ;;  %13023 = vmatpush.bf16.msrb.mxu3 %v18507_v22 }
 0xade   : > { %v12058_v43 = vadd.f32 %v12057_v34, %v11982_v37  ;;  %v12062_v30 = vpop.f32.mrf.mxu3 }
 0xae0   : > { %v12170_v40 = vadd.f32 %v12157_v10, %v12058_v43  ;;  %v18530_v43 = vld [vmem:[%s23057_s10 + $0xf0] sm:$0xff] }
 0xae1   : > { %13264 = vmatpush.bf16.msra.mxu3 %v18531_v11  ;;  %v18524_v11 = vld [vmem:[%s23057_s10 + $0xc0] sm:$0xff] }
 0xae2   : > { %v12259_v49 = vpop.f32.mrf.mxu2 }
 0xae3   : > { %v22874_v28 = vadd.f32 %v12259_v49, %v12170_v40  ;;  %v12160_v16 = vpop.f32.mrf.mxu0  ;;  %v18523_v40 = vld [vmem:[%s23057_s10 + $0xb8] sm:$0xff] }
 0xae4   : > { %13185 = vmatpush.bf16.msra.mxu2 %v18523_v40 }
 0xae5   : > { %v11985_v57 = vpop.f32.mrf.mxu1  ;;  %13265 = vmatpush.bf16.msra.mxu3 %v18530_v43 }
 0xae6   : > { %v12061_v13 = vadd.f32 %v12060_v39, %v11985_v57  ;;  %v12065_v29 = vpop.f32.mrf.mxu3  ;;  %v18504_v39 = vld [vmem:[%s23057_s10 + $0x28] sm:$0xff] }
 0xae7   : > { %13093 = vmatpush.bf16.msrb.mxu0 %v18504_v39 }
 0xae8   : > { %v12171_v9 = vadd.f32 %v12160_v16, %v12061_v13  ;;  %v18502_v16 = vld [vmem:[%s23057_s10 + $0x18] sm:$0xff]  ;;  %v18522_v13 = vld [vmem:[%s23057_s10 + $0xb0] sm:$0xff] }
 0xae9   : > { %13186 = vmatpush.bf16.msra.mxu2 %v18522_v13 }
 0xaea   : > { %v12262_v27 = vpop.f32.mrf.mxu2 }
 0xaeb   : > { %v22876_v44 = vadd.f32 %v12262_v27, %v12171_v9  ;;  %v12162_v60 = vpop.f32.mrf.mxu0  ;;  %13094 = vmatpush.bf16.msrb.mxu0 %v18503_v51  ;;  %v12868_v9 = vld [vmem:[#allocation7 + $0x4] sm:$0xf]  ;;  %v19052_v27 = vld [vmem:[#allocation7 + $0x8] sm:$0xff]  }
 0xaed   : > { %v11987_v50 = vpop.f32.mrf.mxu1 }
 0xaee   : > { %v12063_v2 = vadd.f32 %v12062_v30, %v11987_v50  ;;  %v12067_v5 = vpop.f32.mrf.mxu3 }
 0xaef   : > { %13095 = vmatpush.bf16.msrb.mxu0 %v18502_v16 }
 0xaf0   : > { %v12172_v32 = vadd.f32 %v12162_v60, %v12063_v2  ;;  %v18501_v60 = vld [vmem:[%s23057_s10 + $0x10] sm:$0xff]  ;;  %v18528_v2 = vld [vmem:[%s23057_s10 + $0xe0] sm:$0xff] }
 0xaf2   : > { %v12264_v20 = vpop.f32.mrf.mxu2 }
 0xaf3   : > { %v22878_v15 = vadd.f32 %v12264_v20, %v12172_v32  ;;  %v12165_v14 = vpop.f32.mrf.mxu0  ;;  %v18908_v32 = vunpack.c.l.bf16 %v19052_v27  ;;  %v12874_v20 = vunpack.c.l.bf16 %v12868_v9  ;;  %13096 = vmatpush.bf16.msrb.mxu0 %v18501_v60  ;;  %v12873_v9 = vld [vmem:[#allocation7 + $0x18] sm:$0x1] }
 0xaf5   : > { %v11990_v31 = vpop.f32.mrf.mxu1 }
 0xaf6   : > { %v12066_v48 = vadd.f32 %v12065_v29, %v11990_v31  ;;  %v12502_v59 = vpop.f32.mrf.mxu3 }
 0xaf8   : > { %v12173_v62 = vadd.f32 %v12165_v14, %v12066_v48  ;;  %v12887_v48 = vrot.slane %v12874_v20, 1 }
 0xafa   : > { %v12267_v21 = vpop.f32.mrf.mxu2 }
 0xafb   : > { %v22880_v38 = vadd.f32 %v12267_v21, %v12173_v62  ;;  %v12167_v12 = vpop.f32.mrf.mxu0  ;;  %v18909_v62 = vunpack.c.h.bf16 %v19052_v27  ;;  %v18500_v21 = vld [vmem:[%s23057_s10 + $0x8] sm:$0xff] }
 0xafc   : > { %v18521_v12 = vld [vmem:[%s23057_s10 + $0xa8] sm:$0xff]  ;;  %13097 = vmatpush.bf16.msrb.mxu0 %v18500_v21 }
 0xafd   : > { %v11992_v63 = vpop.f32.mrf.mxu1  ;;  %13187 = vmatpush.bf16.msra.mxu2 %v18521_v12  ;;  %v12890_v46 = vrot.slane %v18909_v62, 1 }
 0xafe   : > { %v22882_v18 = vpop.f32.mrf.mxu3  ;;  %v18527_v63 = vld [vmem:[%s23057_s10 + $0xd8] sm:$0xff] }
 0xb01   : > { %13188 = vmatpush.bf16.msra.mxu2 %v18520_v61 }
 0xb02   : > { %v12269_v35 = vpop.f32.mrf.mxu2 }
 0xb03   : > { %v12604_v6 = vpop.f32.mrf.mxu0 }
 0xb05   : > { %v12397_v23 = vpop.f32.mrf.mxu1 }
 0xb06   : > { %v22890_v56 = vpop.f32.mrf.mxu3  ;;  %v12411_v10 = vadd.f32 %v12397_v23, %v22872_v17  ;;  %v18529_v17 = vld [vmem:[%s23057_s10 + $0xe8] sm:$0xff] }
 0xb07   : > { %13266 = vmatpush.bf16.msra.mxu3 %v18529_v17 }
 0xb08   : > { %v12516_v57 = vadd.f32 %v12502_v59, %v12411_v10  ;;  %v12888_v59 = vrot.slane %v18908_v32, 1 }
 0xb0a   : > { %v22892_v0 = vpop.f32.mrf.mxu2  ;;  %v12618_v50 = vadd.f32 %v12604_v6, %v12516_v57  ;;  %v18499_v6 = vld [vmem:[%s23057_s10] sm:$0xff] }
 0xb0b   : > { %v22897_v42 = vpop.f32.mrf.mxu0  ;;  %13267 = vmatpush.bf16.msra.mxu3 %v18528_v2  ;;  %13098 = vmatpush.bf16.msrb.mxu0 %v18499_v6 }
 0xb0c   : > { %v12758_v31 = vadd.f32 %v22892_v0, %v12618_v50  ;;  %v12889_v0 = vsel %vm1681_vm13, %v12887_v48, %v12888_v59 }
 0xb0d   : > { %v12399_v8 = vpop.f32.mrf.mxu1 }
 0xb0e   : > { %v22909_v19 = vpop.f32.mrf.mxu3  ;;  %v12412_v29 = vadd.f32 %v12399_v8, %v22874_v28 }
 0xb0f   : > { %13268 = vmatpush.bf16.msra.mxu3 %v18527_v63 }
 0xb10   : > { %v12517_v14 = vadd.f32 %v22882_v18, %v12412_v29  ;;  %v18516_v29 = vld [vmem:[%s23057_s10 + $0x80] sm:$0xff] }
 0xb12   : > { %v22902_v54 = vpop.f32.mrf.mxu2  ;;  %v12619_v18 = vadd.f32 %v22897_v42, %v12517_v14 }
 0xb13   : > { %v22907_v47 = vpop.f32.mrf.mxu0  ;;  %13269 = vmatpush.bf16.msra.mxu3 %v18526_v4 }
 0xb14   : > { %v12759_v42 = vadd.f32 %v22902_v54, %v12619_v18 }
 0xb15   : > { %v22911_v24 = vpop.f32.mrf.mxu1 }
 0xb16   : > { %v22917_v25 = vpop.f32.mrf.mxu3  ;;  %v12413_v23 = vadd.f32 %v22911_v24, %v22876_v44  ;;  %v12891_v44 = vsel %vm1681_vm13, %v12888_v59, %v12890_v46  ;;  %v18519_v24 = vld [vmem:[%s23057_s10 + $0x98] sm:$0xff] }
 0xb17   : > { %13189 = vmatpush.bf16.msra.mxu2 %v18519_v24  ;;  %13270 = vmatpush.bf16.msra.mxu3 %v18525_v3 }
 0xb18   : > { %v12518_v55 = vadd.f32 %v22890_v56, %v12413_v23  ;;  %v18518_v56 = vld [vmem:[%s23057_s10 + $0x90] sm:$0xff] }
 0xb1a   : > { %v22913_v36 = vpop.f32.mrf.mxu2  ;;  %v12620_v22 = vadd.f32 %v22907_v47, %v12518_v55  ;;  %v18517_v47 = vld [vmem:[%s23057_s10 + $0x88] sm:$0xff] }
 0xb1b   : > { %v22915_v52 = vpop.f32.mrf.mxu0  ;;  %13190 = vmatpush.bf16.msra.mxu2 %v18518_v56  ;;  %13271 = vmatpush.bf16.msra.mxu3 %v18524_v11 }
 0xb1d   : > { %v22925_v45 = vpop.f32.mrf.mxu1 }
 0xb1e   : > { %v12514_v33 = vpop.f32.mrf.mxu3  ;;  %v12414_v54 = vadd.f32 %v22925_v45, %v22878_v15 }
 0xb1f   : > { %v19053_v33 = vld [vmem:[#allocation7 + $0x10] sm:$0xff]   ;;  %13191 = vmatpush.bf16.msra.mxu2 %v18517_v47 }
 0xb20   : > { %v18912_v51 = vunpack.c.l.bf16 %v19053_v33  ;;  %v12519_v15 = vadd.f32 %v22909_v19, %v12414_v54  ;;  %v18913_v40 = vunpack.c.h.bf16 %v19053_v33 }
 0xb22   : > { %v22933_v53 = vpop.f32.mrf.mxu2  ;;  %v12892_v16 = vrot.slane %v18912_v51, 1  ;;  %v12621_v57 = vadd.f32 %v22915_v52, %v12519_v15  ;;  %v12894_v13 = vrot.slane %v18913_v40, 1 }
 0xb23   : > { %v22935_v34 = vpop.f32.mrf.mxu0  ;;  %13192 = vmatpush.bf16.msra.mxu2 %v18516_v29 }
 0xb24   : > { %v12893_v27 = vsel %vm1681_vm13, %v12890_v46, %v12892_v16  ;;  %v12895_v52 = vsel %vm1681_vm13, %v12892_v16, %v12894_v13 }
 0xb25   : > { %v22937_v7 = vpop.f32.mrf.mxu1 }
 0xb26   : > { %v12415_v19 = vadd.f32 %v22937_v7, %v22880_v38 }
 0xb28   : > { %v12520_v60 = vadd.f32 %v22917_v25, %v12415_v19 }
 0xb2a   : > { %v22952_v37 = vpop.f32.mrf.mxu2 }
 0xb2b   : > { %v12616_v30 = vpop.f32.mrf.mxu0 }
 0xb2d   : > { %v12409_v49 = vpop.f32.mrf.mxu1 }
 0xb2e   : > { %v12760_v49 = vadd.f32 %v22913_v36, %v12620_v22  ;;  %v12761_v36 = vadd.f32 %v22933_v53, %v12621_v57 }
 0xb32   : > { %v12756_v5 = vpop.f32.mrf.mxu2 }
 0xb33   : > { %v12879_v5 = vunpack.c.l.bf16 %v12873_v9 }
 0xb35   : > { %v12849_v28 = vpop.f32.mrf.mxu1  ;;  %v12896_v53 = vrot.slane %v12879_v5, 1 }
 0xb36   : > { %v12863_v35 = vadd.f32 %v12849_v28, %v12758_v31  ;;  %v12622_v28 = vadd.f32 %v22935_v34, %v12520_v60 }
 0xb37   : > { %v12897_v23 = vsel %vm1681_vm13, %v12894_v13, %v12896_v53 }
 0xb38   : > { %v12903_v8 = vadd.f32 %v12889_v0, %v12863_v35  ;;  %v12762_v63 = vadd.f32 %v22952_v37, %v12622_v28 }
 0xb3a   : > { %v12913_v58 = vmul.f32 0.2, %v12903_v8  ;;  %vm12908_vm12 = vcmp.ge.f32.partialorder %v12903_v8, 0.0 }
 0xb3c   : > { %v12918_v45 = vsel %vm12908_vm12, %v12903_v8, %v12913_v58 }
 0xb3d   : > { %v12851_v41 = vpop.f32.mrf.mxu1 }
 0xb3e   : > { %v12864_v26 = vadd.f32 %v12851_v41, %v12759_v42 }
 0xb40   : > { %v12904_v1 = vadd.f32 %v12891_v44, %v12864_v26 }
 0xb42   : > { %vm12909_vm8 = vcmp.ge.f32.partialorder %v12904_v1, 0.0  ;;  %v12914_v39 = vmul.f32 0.2, %v12904_v1 }
 0xb44   : > { %v12919_v10 = vsel %vm12909_vm8, %v12904_v1, %v12914_v39 }
 0xb45   : > { %v18917_v43 = vpack.c.bf16 %v12919_v10, %v12918_v45  ;;  %v12854_v30 = vpop.f32.mrf.mxu1 }
 0xb46   : > { %v12865_v17 = vadd.f32 %v12854_v30, %v12760_v49 }
 0xb47   : > { %18918 = vst [vmem:[#allocation2] sm:$0xff] %v18917_v43   ;;  %v19147_v43 = vld [vmem:[%s23058_s11] ss:$0 sm:$0xff] }
 0xb48   : > { %v12905_v50 = vadd.f32 %v12893_v27, %v12865_v17 }
 0xb4a   : > { %v12915_v31 = vmul.f32 0.2, %v12905_v50  ;;  %vm12910_vm7 = vcmp.ge.f32.partialorder %v12905_v50, 0.0 }
 0xb4c   : > { %v12920_v18 = vsel %vm12910_vm7, %v12905_v50, %v12915_v31 }
 0xb4d   : > { %v12856_v2 = vpop.f32.mrf.mxu1 }
 0xb4e   : > { %v12866_v38 = vadd.f32 %v12856_v2, %v12761_v36  ;;  %v12934_v7 = vld [vmem:[#allocation2 + $0x4] sm:$0xf]  ;;  %v17579_v32 = vld [vmem:[#allocation2] sm:$0x8] }
 0xb4f   : > { %v18498_v20 = vld [vmem:[#allocation2] sm:$0xf0]  ;;  %13024 = vmatmul.bf16.vlgmr.msrb.gmra.mxu3 %v12934_v7 }
 0xb50   : > { %v17580_v14 = vor.u32 %v18498_v20, %v17579_v32  ;;  %v12906_v48 = vadd.f32 %v12895_v52, %v12866_v38  ;;  %v17631_v26 = vld [vmem:[#allocation2 + $0x4] sm:$0x8] }
 0xb52   : > { %v13035_v59 = vshrl.u32 %v17580_v14, 16  ;;  %v13038_v25 = vshll.u32 %v17580_v14, 16  ;;  %vm12911_vm11 = vcmp.ge.f32.partialorder %v12906_v48, 0.0  ;;  %v12916_v62 = vmul.f32 0.2, %v12906_v48 }
 0xb54   : > { %v13037_v21 = vrot.slane %v13035_v59, 3  ;;  %v13040_v12 = vrot.slane %v13038_v25, 4  ;;  %v12921_v35 = vsel %vm12911_vm11, %v12906_v48, %v12916_v62 }
 0xb55   : > { %v18922_v6 = vpack.c.bf16 %v12921_v35, %v12920_v18  ;;  %v12859_v61 = vpop.f32.mrf.mxu1 }
 0xb56   : > { %v13041_v4 = vor.u32 %v13040_v12, %v13037_v21  ;;  %v12867_v34 = vadd.f32 %v12859_v61, %v12762_v63 }
 0xb57   : > { %19054 = vst [vmem:[#allocation2 + $0x8] sm:$0xff] %v18922_v6  }
 0xb58   : > { %13099 = vmatmul.bf16.vlgmr.msrb.gmra.mxu0 %v13041_v4  ;;  %v12907_v0 = vadd.f32 %v12897_v23, %v12867_v34 }
 0xb5a   : > { %vm12912_vm14 = vcmp.ge.f32.partialorder %v12907_v0, 0.0  ;;  %v12917_v46 = vmul.f32 0.2, %v12907_v0 }
 0xb5c   : > { %v12922_v42 = vsel %vm12912_vm14, %v12907_v0, %v12917_v46 }
 0xb5d   : > { %v12927_v8 = vpack.c.bf16 %v12922_v42, %v12922_v42  ;;  %v12861_v41 = vpop.f32.mrf.mxu1 }
 0xb5e   : > { %v13105_v55 = vld [vmem:[#allocation2 + $0x8] sm:$0xf] }
 0xb5f   : > { %v18515_v37 = vld [vmem:[#allocation2 + $0x4] sm:$0xf0]  ;;  %12932 = vst [vmem:[#allocation2 + $0x10] sm:$0xf] %v12927_v8  ;;  %13272 = vmatmul.bf16.vlgmr.msra.gmra.mxu3 %v13105_v55 }
 0xb60   : > { %v17632_v44 = vor.u32 %v18515_v37, %v17631_v26 }
 0xb62   : > { %v13129_v24 = vshrl.u32 %v17632_v44, 16  ;;  %v13132_v3 = vshll.u32 %v17632_v44, 16 }
 0xb64   : > { %v13131_v54 = vrot.slane %v13129_v24, 3  ;;  %v13134_v58 = vrot.slane %v13132_v3, 4 }
 0xb66   : > { %v13135_v1 = vor.u32 %v13134_v58, %v13131_v54 }
 0xb68   : > { %13193 = vmatmul.bf16.vlgmr.msra.gmra.mxu2 %v13135_v1 }
 0xbd2   : > { %v13025_v33 = vpop.f32.mrf.mxu3 }
 0xbd5   : > { %v13100_v56 = vpop.f32.mrf.mxu0 }
 0xbd6   : > { %v13101_v51 = vadd.f32 %v13100_v56, %v13025_v33 }
 0xbda   : > { %v13027_v22 = vpop.f32.mrf.mxu3 }
 0xbdd   : > { %v13102_v39 = vpop.f32.mrf.mxu0 }
 0xbe2   : > { %v13273_v11 = vpop.f32.mrf.mxu3 }
 0xbea   : > { %v13275_v45 = vpop.f32.mrf.mxu3 }
 0xbeb   : > { %v13194_v15 = vpop.f32.mrf.mxu2 }
 0xbec   : > { %v13198_v10 = vadd.f32 %v13194_v15, %v13101_v51 }
 0xbee   : > { %v13277_v30 = vadd.f32 %v13273_v11, %v13198_v10 }
 0xbf0   : > { %v13282_v40 = vadd.f32 %v19147_v43, %v13277_v30 }
 0xbf2   : > { %13283 = vst [vmem:[%s413_s15] sm:$0xff] %v13282_v40 }
 0xbf3   : > { %v13196_v47 = vpop.f32.mrf.mxu2 }
 0xbf4 PF: > { %s22_s21 = sadd.s32 1, %s19154_s21  }
 0xbf5   : > { %p19_p5 = scmp.ge.s32.totalorder %s22_s21, 4  }
 0xbf7   :  { %21 = sbr.rel (!%p19_p5) target bundleno = 1 (0x1), region = 149 }

</bundles_post_ra>
